<compile_context>
chip_gen: v7x
topology: tpu7x:2x2x1
jax: 0.10.0
libtpu: 0.0.40
codegen_flags: <defaults>
</compile_context>

<pallas_src>
import functools

import jax
import jax.numpy as jnp
from jax.experimental import pallas as pl
from jax.experimental.pallas import tpu as pltpu

LANE = 128


def _round_up(x, m):
    return (x + m - 1) // m * m


def _pad_axis_to(x, axis, target, value=0.0):
    cur = x.shape[axis]
    if cur >= target:
        return x
    widths = [(0, 0)] * x.ndim
    widths[axis] = (0, target - cur)
    return jnp.pad(x, widths, constant_values=value)


def _const_spec(shape):
    nd = len(shape)
    return pl.BlockSpec(shape, lambda i, _nd=nd: (0,) * _nd)


# ---------------------------------------------------------------------------
# Kernel 1: backbone stub (im2col conv + ReLU + GAP + Linear), batch-parallel
# ---------------------------------------------------------------------------
def backbone_kernel(x_ref, pool_ref, cw_ref, cb_ref, pw_ref, pb_ref,
                    feat_ref, *, mm_dt):
    tn, hw, kpad = x_ref.shape
    m = tn * hw

    # conv3x3(pad=1) as one dense im2col matmul; patches already lane-dense
    # (K = 9*Cin zero-padded to 128) and pre-cast to mm_dt in the wrapper.
    p2 = x_ref[...].reshape(m, kpad)
    conv = jnp.dot(p2, cw_ref[...], preferred_element_type=jnp.float32)
    conv = jnp.maximum(conv + cb_ref[...], 0.0)                  # (m, Cpad) f32

    # Global average pool via the constant (tn, m) block-averaging matrix
    # (built once in the wrapper, not regenerated per grid step).
    pooled = jnp.dot(pool_ref[...], conv.astype(mm_dt),
                     preferred_element_type=jnp.float32)         # (tn, Cpad)

    feat_ref[...] = (jnp.dot(pooled.astype(mm_dt), pw_ref[...],
                             preferred_element_type=jnp.float32)
                     + pb_ref[...])                              # (tn, Dpad)


# ---------------------------------------------------------------------------
# Kernel 2: SimCLR MLP head (Linear/BN/ReLU x2 + Linear) + F.normalize,
# single step on the full batch so BatchNorm batch statistics are exact.
# ---------------------------------------------------------------------------
def head_kernel(feat_ref,
                w1_ref, b1_ref, g1_ref, be1_ref,
                w2_ref, b2_ref, g2_ref, be2_ref,
                w3_ref, b3_ref,
                out_ref, *, mm_dt):
    eps_bn = 1e-5
    eps_norm = 1e-12

    def dense(h, w_r, b_r):
        return jnp.dot(h.astype(mm_dt), w_r[...],
                       preferred_element_type=jnp.float32) + b_r[...]

    def bn_relu(h, g_r, be_r):
        mu = jnp.mean(h, axis=0, keepdims=True)
        var = jnp.mean((h - mu) ** 2, axis=0, keepdims=True)     # biased var
        hn = (h - mu) * jax.lax.rsqrt(var + eps_bn)
        return jnp.maximum(hn * g_r[...] + be_r[...], 0.0)

    x_all = feat_ref[...]                                        # (N, Dpad) f32
    h1 = bn_relu(dense(x_all, w1_ref, b1_ref), g1_ref, be1_ref)
    h2 = bn_relu(dense(h1, w2_ref, b2_ref), g2_ref, be2_ref)
    z = dense(h2, w3_ref, b3_ref)                                # (N, Fdim) f32

    # F.normalize(dim=1): z / max(||z||, eps), via rsqrt (EUP slot).
    ssq = jnp.sum(z * z, axis=1, keepdims=True)
    inv = jax.lax.rsqrt(jnp.maximum(ssq, eps_norm * eps_norm))
    out_ref[...] = z * inv


# ---------------------------------------------------------------------------
# Wrapper
# ---------------------------------------------------------------------------
def simclr_forward(img_nchw, params, *, batch_tile=32, use_bf16_matmul=True):
    """img_nchw: (N, Cin, H, W) float32 -> L2-normalized (N, feature_dim)."""
    N, Cin, H, W = img_nchw.shape
    batch_tile = min(batch_tile, N)
    if N % batch_tile != 0 or batch_tile % 8 != 0:
        raise ValueError("N must be a multiple of batch_tile (multiple of 8)")
    n_tiles = N // batch_tile
    hw = H * W

    cout = params["conv_w"].shape[-1]
    dim_in = params["proj_w"].shape[1]
    feature_dim = params["w3"].shape[1]
    kpad = _round_up(9 * Cin, LANE)
    cpad = _round_up(cout, LANE)
    dpad = _round_up(dim_in, LANE)
    mm_dt = jnp.bfloat16 if use_bf16_matmul else jnp.float32

    # ---- wrapper-side im2col: (N,Cin,H,W) -> lane-dense (N, H*W, Kpad) -----
    x_nhwc = jnp.transpose(img_nchw, (0, 2, 3, 1))
    xp = jnp.pad(x_nhwc, ((0, 0), (1, 1), (1, 1), (0, 0)))
    taps = [xp[:, kh:kh + H, kw:kw + W, :] for kh in range(3) for kw in range(3)]
    patches = jnp.concatenate(taps, axis=-1).reshape(N, hw, 9 * Cin)
    patches = _pad_axis_to(patches, 2, kpad).astype(mm_dt)

    # ---- constant GAP block-averaging matrix (built once, not per step) ----
    m = batch_tile * hw
    pool = (jnp.arange(m, dtype=jnp.int32)[None, :] // hw
            == jnp.arange(batch_tile, dtype=jnp.int32)[:, None])
    pool = (pool.astype(jnp.float32) / hw).astype(mm_dt)

    # ---- lane-dense weight prep (zero padding is mathematically inert) -----
    cw = _pad_axis_to(_pad_axis_to(params["conv_w"].reshape(9 * Cin, cout),
                                   0, kpad), 1, cpad).astype(mm_dt)
    cb = _pad_axis_to(params["conv_b"].reshape(1, cout), 1, cpad)
    pw = _pad_axis_to(_pad_axis_to(params["proj_w"], 0, cpad), 1, dpad).astype(mm_dt)
    pb = _pad_axis_to(params["proj_b"].reshape(1, dim_in), 1, dpad)
    w1 = _pad_axis_to(_pad_axis_to(params["w1"], 0, dpad), 1, dpad).astype(mm_dt)
    b1 = _pad_axis_to(params["b1"].reshape(1, dim_in), 1, dpad)
    g1 = _pad_axis_to(params["g1"].reshape(1, dim_in), 1, dpad, value=1.0)
    be1 = _pad_axis_to(params["be1"].reshape(1, dim_in), 1, dpad)
    w2 = _pad_axis_to(_pad_axis_to(params["w2"], 0, dpad), 1, dpad).astype(mm_dt)
    b2 = _pad_axis_to(params["b2"].reshape(1, dim_in), 1, dpad)
    g2 = _pad_axis_to(params["g2"].reshape(1, dim_in), 1, dpad, value=1.0)
    be2 = _pad_axis_to(params["be2"].reshape(1, dim_in), 1, dpad)
    w3 = _pad_axis_to(params["w3"], 0, dpad).astype(mm_dt)
    b3 = params["b3"].reshape(1, feature_dim)

    # ---- pass 1: backbone, batch-parallel grid (lane-dense blocks) ---------
    feat = pl.pallas_call(
        functools.partial(backbone_kernel, mm_dt=mm_dt),
        out_shape=jax.ShapeDtypeStruct((N, dpad), jnp.float32),
        grid=(n_tiles,),
        in_specs=[
            pl.BlockSpec((batch_tile, hw, kpad), lambda i: (i, 0, 0)),
            _const_spec(pool.shape),
            _const_spec(cw.shape), _const_spec(cb.shape),
            _const_spec(pw.shape), _const_spec(pb.shape),
        ],
        out_specs=pl.BlockSpec((batch_tile, dpad), lambda i: (i, 0)),
        compiler_params=pltpu.CompilerParams(
            dimension_semantics=("parallel",)),
    )(patches, pool, cw, cb, pw, pb)

    # ---- pass 2: full-batch BN MLP head + L2 normalize (single step) -------
    z = pl.pallas_call(
        functools.partial(head_kernel, mm_dt=mm_dt),
        out_shape=jax.ShapeDtypeStruct((N, feature_dim), jnp.float32),
    )(feat, w1, b1, g1, be1, w2, b2, g2, be2, w3, b3)
    return z


# ---------------------------------------------------------------------------
# Pure-JAX reference (same math) and parameter init
# ---------------------------------------------------------------------------
def simclr_reference(img_nchw, params):
    with jax.default_matmul_precision("highest"):
        x = jnp.transpose(img_nchw, (0, 2, 3, 1))
        xp = jnp.pad(x, ((0, 0), (1, 1), (1, 1), (0, 0)))
        n, hp, wp, _ = xp.shape
        h, w = hp - 2, wp - 2
        cw = params["conv_w"]
        cout = cw.shape[-1]
        acc = jnp.zeros((n, h, w, cout), jnp.float32)
        for kh in range(3):
            for kw in range(3):
                acc += jnp.einsum("nhwc,co->nhwo",
                                  xp[:, kh:kh + h, kw:kw + w, :], cw[kh, kw])
        acc = jax.nn.relu(acc + params["conv_b"].reshape(1, 1, 1, cout))
        pooled = acc.mean(axis=(1, 2))
        feat = pooled @ params["proj_w"] + params["proj_b"]

        def bn_relu(t, g, be):
            mu = t.mean(0, keepdims=True)
            var = ((t - mu) ** 2).mean(0, keepdims=True)
            return jax.nn.relu((t - mu) / jnp.sqrt(var + 1e-5) * g + be)

        h1 = bn_relu(feat @ params["w1"] + params["b1"],
                     params["g1"], params["be1"])
        h2 = bn_relu(h1 @ params["w2"] + params["b2"],
                     params["g2"], params["be2"])
        z = h2 @ params["w3"] + params["b3"]
        return z / jnp.maximum(jnp.linalg.norm(z, axis=1, keepdims=True), 1e-12)


def init_params(key, cin=3, cout=8, dim_in=32, feature_dim=128):
    ks = jax.random.split(key, 5)
    s = 0.05
    return {
        "conv_w": jax.random.normal(ks[0], (3, 3, cin, cout), jnp.float32) * s,
        "conv_b": jnp.zeros((1, cout), jnp.float32),
        "proj_w": jax.random.normal(ks[1], (cout, dim_in), jnp.float32) * s,
        "proj_b": jnp.zeros((1, dim_in), jnp.float32),
        "w1": jax.random.normal(ks[2], (dim_in, dim_in), jnp.float32) * s,
        "b1": jnp.zeros((1, dim_in), jnp.float32),
        "g1": jnp.ones((1, dim_in), jnp.float32),
        "be1": jnp.zeros((1, dim_in), jnp.float32),
        "w2": jax.random.normal(ks[3], (dim_in, dim_in), jnp.float32) * s,
        "b2": jnp.zeros((1, dim_in), jnp.float32),
        "g2": jnp.ones((1, dim_in), jnp.float32),
        "be2": jnp.zeros((1, dim_in), jnp.float32),
        "w3": jax.random.normal(ks[4], (dim_in, feature_dim), jnp.float32) * s,
        "b3": jnp.zeros((1, feature_dim), jnp.float32),
    }


if __name__ == "__main__":
    key = jax.random.PRNGKey(0)
    k_img, k_param = jax.random.split(key)

    N, Cin, H, W = 64, 3, 16, 16
    cout, dim_in, feature_dim = 8, 32, 128

    img = jax.random.normal(k_img, (N, Cin, H, W), jnp.float32)
    params = init_params(k_param, cin=Cin, cout=cout,
                         dim_in=dim_in, feature_dim=feature_dim)

    z = simclr_forward(img, params, batch_tile=32)     # grid = (2,), bf16 MXU
    z = jax.block_until_ready(z)

    assert z.shape == (N, feature_dim)
    norms = jnp.linalg.norm(z, axis=1)
    assert bool(jnp.all(jnp.abs(norms - 1.0) < 1e-3)), "rows not unit-norm"

    z_ref = simclr_reference(img, params)
    err = float(jnp.max(jnp.abs(z - z_ref)))
    # bf16 MXU operands (fp32 accumulation); BN amplifies small-batch errors,
    # so the tolerance is slightly looser than pure-fp32 matmuls.
    assert err < 5e-2, f"mismatch vs reference: {err}"

    print("KERNEL_OK")
</pallas_src>

<mosaic_0001>
module attributes {stable_mosaic.version = 11 : i64} {
  func.func @backbone_kernel(%arg0: i32, %arg1: memref<32x256x128xbf16, #tpu.memory_space<vmem>>, %arg2: memref<32x8192xbf16, #tpu.memory_space<vmem>>, %arg3: memref<128x128xbf16, #tpu.memory_space<vmem>>, %arg4: memref<1x128xf32, #tpu.memory_space<vmem>>, %arg5: memref<128x128xbf16, #tpu.memory_space<vmem>>, %arg6: memref<1x128xf32, #tpu.memory_space<vmem>>, %arg7: memref<32x128xf32, #tpu.memory_space<vmem>>) attributes {dimension_semantics = [#tpu.dimension_semantics<parallel>], iteration_bounds = array<i64: 2>, scalar_prefetch = 0 : i64, scratch_operands = 0 : i64, tpu.core_type = #tpu.core_type<tc>, window_params = [{transform_indices = @transform_0, window_bounds = array<i64: 32, 256, 128>}, {pipeline_mode = #tpu.pipeline_mode<synchronous>, transform_indices = @transform_1, window_bounds = array<i64: 32, 8192>}, {pipeline_mode = #tpu.pipeline_mode<synchronous>, transform_indices = @transform_2, window_bounds = array<i64: 128, 128>}, {pipeline_mode = #tpu.pipeline_mode<synchronous>, transform_indices = @transform_3, window_bounds = array<i64: 1, 128>}, {pipeline_mode = #tpu.pipeline_mode<synchronous>, transform_indices = @transform_4, window_bounds = array<i64: 128, 128>}, {pipeline_mode = #tpu.pipeline_mode<synchronous>, transform_indices = @transform_5, window_bounds = array<i64: 1, 128>}, {transform_indices = @transform_6, window_bounds = array<i64: 32, 128>}]} {
    %c0 = arith.constant 0 : index
    %c0_0 = arith.constant 0 : index
    %c0_1 = arith.constant 0 : index
    %0 = vector.load %arg1[%c0, %c0_0, %c0_1] : memref<32x256x128xbf16, #tpu.memory_space<vmem>>, vector<32x256x128xbf16>
    %1 = vector.shape_cast %0 : vector<32x256x128xbf16> to vector<8192x128xbf16>
    %c0_2 = arith.constant 0 : index
    %c0_3 = arith.constant 0 : index
    %2 = vector.load %arg3[%c0_2, %c0_3] : memref<128x128xbf16, #tpu.memory_space<vmem>>, vector<128x128xbf16>
    %cst = arith.constant dense<0.000000e+00> : vector<8192x128xf32>
    %3 = tpu.matmul %1, %2, %cst {dimension_numbers = #tpu.dot_dimension_numbers<[1], [0], [0], [1], [0, 0, 1, 1], [], []>} : vector<8192x128xbf16>, vector<128x128xbf16>, vector<8192x128xf32> -> vector<8192x128xf32>
    %c0_4 = arith.constant 0 : index
    %c0_5 = arith.constant 0 : index
    %4 = vector.load %arg4[%c0_4, %c0_5] : memref<1x128xf32, #tpu.memory_space<vmem>>, vector<1x128xf32>
    %5 = vector.broadcast %4 : vector<1x128xf32> to vector<8192x128xf32>
    %6 = arith.addf %3, %5 : vector<8192x128xf32>
    %cst_6 = arith.constant 0.000000e+00 : f32
    %7 = vector.broadcast %cst_6 : f32 to vector<8192x128xf32>
    %8 = arith.maximumf %6, %7 : vector<8192x128xf32>
    %c0_7 = arith.constant 0 : index
    %c0_8 = arith.constant 0 : index
    %9 = vector.load %arg2[%c0_7, %c0_8] : memref<32x8192xbf16, #tpu.memory_space<vmem>>, vector<32x8192xbf16>
    %10 = arith.truncf %8 : vector<8192x128xf32> to vector<8192x128xbf16>
    %cst_9 = arith.constant dense<0.000000e+00> : vector<32x128xf32>
    %11 = tpu.matmul %9, %10, %cst_9 {dimension_numbers = #tpu.dot_dimension_numbers<[1], [0], [0], [1], [0, 0, 1, 1], [], []>} : vector<32x8192xbf16>, vector<8192x128xbf16>, vector<32x128xf32> -> vector<32x128xf32>
    %12 = arith.truncf %11 : vector<32x128xf32> to vector<32x128xbf16>
    %c0_10 = arith.constant 0 : index
    %c0_11 = arith.constant 0 : index
    %13 = vector.load %arg5[%c0_10, %c0_11] : memref<128x128xbf16, #tpu.memory_space<vmem>>, vector<128x128xbf16>
    %cst_12 = arith.constant dense<0.000000e+00> : vector<32x128xf32>
    %14 = tpu.matmul %12, %13, %cst_12 {dimension_numbers = #tpu.dot_dimension_numbers<[1], [0], [0], [1], [0, 0, 1, 1], [], []>} : vector<32x128xbf16>, vector<128x128xbf16>, vector<32x128xf32> -> vector<32x128xf32>
    %c0_13 = arith.constant 0 : index
    %c0_14 = arith.constant 0 : index
    %15 = vector.load %arg6[%c0_13, %c0_14] : memref<1x128xf32, #tpu.memory_space<vmem>>, vector<1x128xf32>
    %16 = vector.broadcast %15 : vector<1x128xf32> to vector<32x128xf32>
    %17 = arith.addf %14, %16 : vector<32x128xf32>
    %c0_15 = arith.constant 0 : index
    %c0_16 = arith.constant 0 : index
    %18 = vector.load %arg7[%c0_15, %c0_16] : memref<32x128xf32, #tpu.memory_space<vmem>>, vector<32x128xf32>
    tpu.vector_store %arg7[%c0_15, %c0_16], %17 {strides = array<i32>} : memref<32x128xf32, #tpu.memory_space<vmem>>, vector<32x128xf32>,
    return
  }
  func.func @transform_0(%arg0: i32) -> (i32, i32, i32) {
    %c0_i32 = arith.constant 0 : i32
    %c0_i32_0 = arith.constant 0 : i32
    %c0_i32_1 = arith.constant 0 : i32
    return %arg0, %c0_i32, %c0_i32_0 : i32, i32, i32
  }
  func.func @transform_1(%arg0: i32) -> (i32, i32) {
    %c0_i32 = arith.constant 0 : i32
    %c0_i32_0 = arith.constant 0 : i32
    %c0_i32_1 = arith.constant 0 : i32
    return %c0_i32, %c0_i32_0 : i32, i32
  }
  func.func @transform_2(%arg0: i32) -> (i32, i32) {
    %c0_i32 = arith.constant 0 : i32
    %c0_i32_0 = arith.constant 0 : i32
    %c0_i32_1 = arith.constant 0 : i32
    return %c0_i32, %c0_i32_0 : i32, i32
  }
  func.func @transform_3(%arg0: i32) -> (i32, i32) {
    %c0_i32 = arith.constant 0 : i32
    %c0_i32_0 = arith.constant 0 : i32
    %c0_i32_1 = arith.constant 0 : i32
    return %c0_i32, %c0_i32_0 : i32, i32
  }
  func.func @transform_4(%arg0: i32) -> (i32, i32) {
    %c0_i32 = arith.constant 0 : i32
    %c0_i32_0 = arith.constant 0 : i32
    %c0_i32_1 = arith.constant 0 : i32
    return %c0_i32, %c0_i32_0 : i32, i32
  }
  func.func @transform_5(%arg0: i32) -> (i32, i32) {
    %c0_i32 = arith.constant 0 : i32
    %c0_i32_0 = arith.constant 0 : i32
    %c0_i32_1 = arith.constant 0 : i32
    return %c0_i32, %c0_i32_0 : i32, i32
  }
  func.func @transform_6(%arg0: i32) -> (i32, i32) {
    %c0_i32 = arith.constant 0 : i32
    %c0_i32_0 = arith.constant 0 : i32
    return %arg0, %c0_i32 : i32, i32
  }
}

</mosaic_0001>

<bundles_post_ra>
// kernel: tpu_custom_call.1
= control target key start
LH: loop header
LB: loop body
LE: loop exit
PB: predicated region body
PF: predicated region fallthrough
CT: control target
= control target key end

     0   :  { %11 = vsyncpa [#allocation3], 0  ;;  %s20522_s0 = inlined_call_operand.hbm [shape: bf16[64,256,128], index: 0, kind: input, shape index: {}]   ;;  %s20523_s1 = inlined_call_operand.hbm [shape: bf16[32,8192], index: 1, kind: input, shape index: {}]   ;;  %s20524_s2 = inlined_call_operand.hbm [shape: bf16[128,128], index: 2, kind: input, shape index: {}]   ;;  %s20525_s3 = inlined_call_operand.hbm [shape: f32[1,128], index: 3, kind: input, shape index: {}]   ;;  %s20526_s4 = inlined_call_operand.hbm [shape: bf16[128,128], index: 4, kind: input, shape index: {}]   ;;  %s20527_s5 = inlined_call_operand.hbm [shape: f32[1,128], index: 5, kind: input, shape index: {}]   ;;  %s20528_s6 = inlined_call_operand.hbm [shape: f32[64,128], index: 6, kind: output, shape index: {}]  }
   0x1   :  { %13 = vsyncpa [#allocation3 + $0x1], 0 }
   0x2   :  { %14 = vsyncpa [#allocation6], 0 }
   0x3   :  { %15 = vsyncpa [#allocation9], 0 }
   0x4   :  { %16 = vsyncpa [#allocation12], 0 }
   0x5   :  { %17 = vsyncpa [#allocation4], 0 }
   0x6   :  { %19 = vsyncpa [#allocation4 + $0x1], 0  ;;  %s16900_s21 = smov 0   ;;  %s16902_s22 = smov 0  }
   0x7   :  { %s16904_s23 = smov 0   ;;  %s16906_s24 = smov 0  }
   0x8 LB: > { %s16852_s25 = smov [#allocation5]   ;;  %s16921_s27 = sadd.s32 4294967295, %s16850_s24   ;;  %s16850_s24 = sphi %s16906_s24, %s20839_s24   ;;  %s16846_s23 = sphi %s16904_s23, %s20838_s23   ;;  %s16842_s22 = sphi %s16902_s22, %s20837_s22   ;;  %s16838_s21 = sphi %s16900_s21, %s20836_s21  }
   0x9   : > { %s199_s26 = sshll.u32 %s16852_s25, 4  ;;  %p12773_p0 = scmp.ge.s32.totalorder %s16850_s24, 1  ;;  %s16926_s26 = int_to_ptr.vmem [resolvable:$true] %s199_s26 }
   0xa   : > { %p20529_p1 = scmp.eq.s32.totalorder %s16921_s27, 0  ;;  %p187_p2 = scmp.lt.s32.totalorder %s16850_s24, 3 }
   0xb   : > { %s16853_s29 = smov [#allocation8]   ;;  %s16854_s8 = smov [#allocation7]  }
   0xc   : > { %p16928_p3 = pnand %p12773_p0, %p187_p2  ;;  %s226_s30 = sshll.u32 %s16853_s29, 4  ;;  %s16941_s30 = int_to_ptr.vmem [resolvable:$true] %s226_s30 }
   0xd   : > { %s212_s9 = sshll.u32 %s16854_s8, 4  ;;  %s16602_s12 = scalar_lea.hbm %s20523_s1, 16384  ;;  %s16943_s9 = int_to_ptr.vmem [resolvable:$true] %s212_s9 }
   0xe   : > { %s20532_s28 = scalar_select %p16928_p3, 1, 0 }
   0xf   : > { %p15984_p5 = pneg %p16928_p3  ;;  %p16603_p7 = scmp.ne.s32.totalorder %s20523_s1, %s16602_s12 }
  0x10   : > { %p16609_p11 = scmp.lt.u32.totalorder %s16602_s12, %s20523_s1 }
  0x11   : > { %p16937_p6 = pnand %p15984_p5, %p20529_p1 }
  0x13   : > { %p16953_p8 = pneg %p16937_p6 }
  0x15   : > { %p16605_p9 = pnand %p16953_p8, %p16603_p7 }
  0x17   : > { %p16606_p10 = pneg %p16605_p9 }
  0x19   : > { %p16611_p12 = pnand %p16609_p11, %p16606_p10 }
  0x1b   : > { %16614 = shalt.err (!%p16611_p12)
}
  0x1c   : > { %s16615_s18 = scalar_lea.vmem %s16926_s26, 16384  ;;  %p16623_p5 = scmp.lt.s32.totalorder %s16926_s26, %s16926_s26 }
  0x1d   : > { %p16616_p13 = scmp.ne.s32.totalorder %s16926_s26, %s16615_s18  ;;  %p16624_p4 = scmp.lt.s32.totalorder %s16615_s18, %s16615_s18 }
  0x1f   : > { %p16618_p0 = pnand %p16616_p13, %p16953_p8  ;;  %p16625_p7 = por %p16624_p4, %p16623_p5 }
  0x21   : > { %p16619_p2 = pneg %p16618_p0 }
  0x23   : > { %p16626_p9 = pnand %p16625_p7, %p16619_p2 }
  0x25   : > { %16629 = shalt.err (!%p16626_p9)
}
  0x26   : > { %s16855_s19 = smov 4096   ;;  %s16856_s20 = smov 256  }
  0x27   : > { %15987 = dma.hbm_to_vmem [thread:$0]  (!%p16937_p6), %s20523_s1, 16384, %s16926_s26, [#allocation6], %s16855_s19, %s16855_s19, %s16856_s20  }
  0x28   : > { %s16630_s11 = scalar_lea.hbm %s20525_s3, 16 }
  0x29   : > { %p16631_p4 = scmp.ne.s32.totalorder %s20525_s3, %s16630_s11  ;;  %p16637_p12 = scmp.lt.u32.totalorder %s16630_s11, %s20525_s3 }
  0x2b   : > { %p16633_p10 = pnand %p16631_p4, %p16953_p8 }
  0x2d   : > { %p16634_p11 = pneg %p16633_p10 }
  0x2f   : > { %p16639_p13 = pnand %p16637_p12, %p16634_p11 }
  0x31   : > { %16642 = shalt.err (!%p16639_p13)
}
  0x32   : > { %s16643_s26 = scalar_lea.vmem %s16941_s30, 16  ;;  %s16650_s17 = scalar_lea.vmem %s16941_s30, 32 }
  0x33   : > { %p16644_p0 = scmp.ne.s32.totalorder %s16941_s30, %s16643_s26  ;;  %p16651_p7 = scmp.lt.s32.totalorder %s16941_s30, %s16941_s30 }
  0x34   : > { %p16652_p9 = scmp.lt.s32.totalorder %s16650_s17, %s16643_s26 }
  0x35   : > { %p16646_p2 = pnand %p16644_p0, %p16953_p8 }
  0x36   : > { %p16653_p4 = por %p16652_p9, %p16651_p7 }
  0x37   : > { %p16647_p5 = pneg %p16646_p2 }
  0x39   : > { %p16654_p10 = pnand %p16653_p4, %p16647_p5 }
  0x3b   : > { %16657 = shalt.err (!%p16654_p10)
}
  0x3c   : > { %15993 = dma.hbm_to_vmem [thread:$0]  (!%p16937_p6), %s20525_s3, 16, %s16941_s30, [#allocation9]  }
  0x3d   : > { %s16658_s29 = scalar_lea.hbm %s20524_s2, 1024 }
  0x3e   : > { %p16659_p11 = scmp.ne.s32.totalorder %s20524_s2, %s16658_s29  ;;  %p16665_p0 = scmp.lt.u32.totalorder %s16658_s29, %s20524_s2 }
  0x40   : > { %p16661_p12 = pnand %p16659_p11, %p16953_p8 }
  0x42   : > { %p16662_p13 = pneg %p16661_p12 }
  0x44   : > { %p16667_p2 = pnand %p16665_p0, %p16662_p13 }
  0x46   : > { %16670 = shalt.err (!%p16667_p2)
}
  0x47   : > { %s16671_s30 = scalar_lea.vmem %s16943_s9, 1024  ;;  %p16679_p4 = scmp.lt.s32.totalorder %s16943_s9, %s16943_s9 }
  0x48   : > { %p16672_p5 = scmp.ne.s32.totalorder %s16943_s9, %s16671_s30  ;;  %p16680_p10 = scmp.lt.s32.totalorder %s16671_s30, %s16671_s30 }
  0x4a   : > { %p16674_p7 = pnand %p16672_p5, %p16953_p8  ;;  %p16681_p11 = por %p16680_p10, %p16679_p4 }
  0x4c   : > { %p16675_p9 = pneg %p16674_p7 }
  0x4e   : > { %p16682_p12 = pnand %p16681_p11, %p16675_p9 }
  0x50   : > { %16685 = shalt.err (!%p16682_p12)
}
  0x51   : > { %s16857_s13 = smov 64   ;;  %s16858_s14 = smov 4  }
  0x52   : > { %15990 = dma.hbm_to_vmem [thread:$0]  (!%p16937_p6), %s20524_s2, 1024, %s16943_s9, [#allocation6], %s16857_s13, %s16857_s13, %s16858_s14  }
  0x53   : > { %s16859_s17 = smov [#allocation10]   ;;  %s16860_s19 = smov [#allocation11]  }
  0x54   : > { %s236_s18 = sshll.u32 %s16859_s17, 4  ;;  %s250_s20 = sshll.u32 %s16860_s19, 4  ;;  %s237_s18 = int_to_ptr.vmem [resolvable:$true] %s236_s18  ;;  %s251_s20 = int_to_ptr.vmem [resolvable:$true] %s250_s20 }
  0x55   : > { %s16686_s8 = scalar_lea.hbm %s20526_s4, 1024 }
  0x56   : > { %p16687_p13 = scmp.ne.s32.totalorder %s20526_s4, %s16686_s8  ;;  %p16693_p5 = scmp.lt.u32.totalorder %s16686_s8, %s20526_s4 }
  0x58   : > { %p16689_p0 = pnand %p16687_p13, %p16953_p8 }
  0x5a   : > { %p16690_p2 = pneg %p16689_p0 }
  0x5c   : > { %p16695_p7 = pnand %p16693_p5, %p16690_p2 }
  0x5e   : > { %16698 = shalt.err (!%p16695_p7)
}
  0x5f   : > { %s16699_s9 = scalar_lea.vmem %s237_s18, 1024  ;;  %p16707_p11 = scmp.lt.s32.totalorder %s237_s18, %s237_s18 }
  0x60   : > { %p16700_p9 = scmp.ne.s32.totalorder %s237_s18, %s16699_s9  ;;  %p16708_p12 = scmp.lt.s32.totalorder %s16699_s9, %s16699_s9 }
  0x62   : > { %p16702_p4 = pnand %p16700_p9, %p16953_p8  ;;  %p16709_p1 = por %p16708_p12, %p16707_p11 }
  0x64   : > { %p16703_p10 = pneg %p16702_p4 }
  0x66   : > { %p16710_p3 = pnand %p16709_p1, %p16703_p10 }
  0x68   : > { %16713 = shalt.err (!%p16710_p3)
}
  0x69   : > { %15996 = dma.hbm_to_vmem [thread:$0]  (!%p16937_p6), %s20526_s4, 1024, %s237_s18, [#allocation9], %s16857_s13, %s16857_s13, %s16858_s14  }
  0x6a   : > { %s16714_s25 = scalar_lea.hbm %s20527_s5, 16 }
  0x6b   : > { %p16715_p1 = scmp.ne.s32.totalorder %s20527_s5, %s16714_s25  ;;  %p16721_p0 = scmp.lt.u32.totalorder %s16714_s25, %s20527_s5 }
  0x6d   : > { %p16717_p3 = pnand %p16715_p1, %p16953_p8 }
  0x6f   : > { %p16718_p13 = pneg %p16717_p3 }
  0x71   : > { %p16723_p2 = pnand %p16721_p0, %p16718_p13 }
  0x73   : > { %16726 = shalt.err (!%p16723_p2)
}
  0x74   : > { %s16727_s12 = scalar_lea.vmem %s251_s20, 16  ;;  %s16734_s18 = scalar_lea.vmem %s251_s20, 32 }
  0x75   : > { %p16728_p5 = scmp.ne.s32.totalorder %s251_s20, %s16727_s12  ;;  %p16735_p4 = scmp.lt.s32.totalorder %s251_s20, %s251_s20 }
  0x76   : > { %p16736_p10 = scmp.lt.s32.totalorder %s16734_s18, %s16727_s12 }
  0x77   : > { %p16730_p7 = pnand %p16728_p5, %p16953_p8 }
  0x78   : > { %p16737_p11 = por %p16736_p10, %p16735_p4 }
  0x79   : > { %p16731_p9 = pneg %p16730_p7 }
  0x7b   : > { %p16738_p12 = pnand %p16737_p11, %p16731_p9 }
  0x7d   : > { %16741 = shalt.err (!%p16738_p12)
}
  0x7e   : > { %15999 = dma.hbm_to_vmem [thread:$0]  (!%p16937_p6), %s20527_s5, 16, %s251_s20, [#allocation12]  }
  0x7f   : > { %s12772_s15 = sadd.s32 4294967294, %s16850_s24   ;;  %s17065_s7 = sadd.s32 1, %s16850_s24  }
  0x80   : > { %s32_s16 = sadd.s32 1, %s16846_s23  ;;  %s29_s26 = ssub.s32 %s16850_s24, %s17065_s7 }
  0x81   : > { %p39_p8 = scmp.ne.s32.totalorder %s16846_s23, %s16842_s22  ;;  %p30_p1 = scmp.eq.s32.totalorder %s29_s26, 0 }
  0x82   : > { %p40_p3 = scmp.eq.s32.totalorder %s16850_s24, 0  ;;  %p45_p13 = scmp.ne.s32.totalorder %s16842_s22, %s16838_s21 }
  0x83   : > { %p174_p0 = scmp.eq.s32.totalorder %s16921_s27, 1  ;;  %p20535_p5 = scmp.eq.s32.totalorder %s16921_s27, 0 }
  0x84   : > { %s17077_s17 = scalar_select %p30_p1, %s16846_s23, %s32_s16  }
  0x85   : > { %p41_p2 = por %p40_p3, %p39_p8  ;;  %p17081_p7 = por %p20535_p5, %p45_p13 }
  0x86   : > { %p17085_p6 = por %p174_p0, %p39_p8  ;;  %p180_p9 = scmp.eq.s32.totalorder %s12772_s15, 1 }
  0x87   : > { %p16013_p4 = scmp.lt.s32.totalorder %s16850_s24, 2  ;;  %s261_s25 = sand.u32 1, %s16846_s23  }
  0x88   : > { %s20537_s20 = scalar_select %p17085_p6, 1, 0 }
  0x89   : > { %p17091_p10 = por %p180_p9, %p45_p13  ;;  %s12780_s8 = sshll.u32 %s261_s25, 12 }
  0x8a   : > { %s13456_s10 = sshll.u32 %s16850_s24, 16  ;;  %s265_s30 = scalar_lea.vmem [#allocation2], %s12780_s8 }
  0x8b   : > { %s20538_s29 = scalar_select %p17091_p10, 1, 0 }
  0x8c   : > { %s17099_s18 = scalar_lea.hbm %s20522_s0, %s13456_s10  ;;  %s273_s9 = sshll.u32 %s265_s30, 4  ;;  %s17105_s9 = int_to_ptr.vmem [resolvable:$true] %s273_s9 }
  0x8d   : > { %p17101_p11 = pnand %p16013_p4, %p41_p2  ;;  %s17107_s16 = scalar_lea.sflag [#allocation3], %s261_s25 }
  0x8e   : > { %s16742_s26 = scalar_lea.hbm %s17099_s18, 65536  ;;  %s16747_s11 = scalar_lea.hbm %s20522_s0, 131072 }
  0x8f   : > { %p16743_p12 = scmp.ne.s32.totalorder %s17099_s18, %s16742_s26  ;;  %p16744_p8 = pneg %p17101_p11 }
  0x90   : > { %p16748_p13 = scmp.lt.u32.totalorder %s17099_s18, %s20522_s0  ;;  %p16749_p0 = scmp.lt.u32.totalorder %s16747_s11, %s16742_s26 }
  0x91   : > { %p16745_p1 = pnand %p16744_p8, %p16743_p12  ;;  %p16751_p5 = scmp.lt.u32.totalorder %s16742_s26, %s17099_s18 }
  0x92   : > { %p16750_p2 = por %p16749_p0, %p16748_p13 }
  0x93   : > { %p16746_p3 = pneg %p16745_p1 }
  0x94   : > { %p16752_p9 = por %p16751_p5, %p16750_p2 }
  0x96   : > { %p16753_p4 = pnand %p16752_p9, %p16746_p3 }
  0x98   : > { %16756 = shalt.err (!%p16753_p4)
}
  0x99   : > { %s16757_s25 = scalar_lea.vmem %s17105_s9, 65536  ;;  %s16861_s8 = smov [#allocation2]  }
  0x9a   : > { %p16758_p12 = scmp.ne.s32.totalorder %s17105_s9, %s16757_s25  ;;  %s16762_s10 = sshll.u32 %s16861_s8, 4  ;;  %s16763_s10 = int_to_ptr.vmem [resolvable:$false] %s16762_s10 }
  0x9b   : > { %s16764_s12 = scalar_lea.vmem %s16763_s10, 131072  ;;  %p16765_p6 = scmp.lt.s32.totalorder %s17105_s9, %s16763_s10 }
  0x9c   : > { %p16760_p1 = pnand %p16758_p12, %p16744_p8  ;;  %p16766_p13 = scmp.lt.s32.totalorder %s16764_s12, %s16757_s25 }
  0x9e   : > { %p16761_p10 = pneg %p16760_p1  ;;  %p16767_p0 = por %p16766_p13, %p16765_p6 }
  0xa0   : > { %p16768_p2 = pnand %p16767_p0, %p16761_p10 }
  0xa2   : > { %16771 = shalt.err (!%p16768_p2)
}
  0xa3   : > { %16003 = dma.hbm_to_vmem [thread:$0]  (!%p17101_p11), %s17099_s18, 65536, %s17105_s9, %s17107_s16, %s16857_s13, %s16857_s13, %s16858_s14  }
  0xa4   : > { %p20540_p8 = scmp.ne.s32.totalorder %s20532_s28, 0 }
  0xa6   : > { %285 = sbr.rel (%p20540_p8) target bundleno = 2694 (0xa86), region = 44 }
  0xad   : > { %s17141_s26 = sand.u32 1, %s16842_s22  }
  0xae   : > { %s12785_s11 = sshll.u32 %s17141_s26, 12  ;;  %s288_s30 = scalar_lea.sflag [#allocation3], %s17141_s26 }
  0xaf   : > { %s17145_s25 = scalar_lea.vmem [#allocation2], %s12785_s11 }
  0xb0   : > { %16817 = dma.done.wait (%p17081_p7), %s288_s30, 65536  }
  0xb1   : > { %16819 = vsyncadd (%p17081_p7), %s288_s30, 4294901760  ;;  %p20541_p6 = scmp.eq.s32.totalorder %s16921_s27, 0 }
  0xb3   : > { %16821 = dma.done.wait (%p20541_p6), [#allocation6], 17408   ;;  %p20542_p10 = pmov %p20541_p6 }
  0xb4   : > { %p20543_p11 = pmov %p20541_p6 }
  0xb5   : > { %16823 = vsyncadd (%p20542_p10), [#allocation6], 4294949888 }
  0xb6   : > { %16825 = dma.done.wait (%p20543_p11), [#allocation9], 1040   ;;  %p20544_p3 = pmov %p20541_p6 }
  0xb8   : > { %16827 = vsyncadd (%p20544_p3), [#allocation9], 4294966256  ;;  %p20545_p5 = pmov %p20544_p3 }
  0xb9   : > { %p20546_p9 = pmov %p20544_p3 }
  0xba   : > { %16829 = dma.done.wait (%p20545_p5), [#allocation12], 16  }
  0xbb   : > { %16831 = vsyncadd (%p20546_p9), [#allocation12], 4294967280  ;;  %v16063_v0 = vld [vmem:[#allocation7] sm:$0xff]   ;;  %v16064_v1 = vld [vmem:[#allocation7 + $0x8] sm:$0xff]   ;;  %s12791_s28 = sshll.u32 %s17141_s26, 5  ;;  %s13457_s19 = sshll.u32 %s16921_s27, 9 }
  0xbc   : > { %14884 = vmatprep.subr.bf16.mxu0 %v16063_v0  ;;  %15944 = vmatprep.subr.bf16.mxu1 %v16063_v0  ;;  %v16065_v2 = vld [vmem:[#allocation7 + $0x10] sm:$0xff]   ;;  %v16066_v3 = vld [vmem:[#allocation7 + $0x18] sm:$0xff]   ;;  %v16071_v4 = vld [vmem:[%s17145_s25] sm:$0xff]   ;;  %s339_s13 = scalar_lea.vmem [#allocation13], %s12791_s28  ;;  %s20478_s15 = scalar_lea.hbm %s20528_s6, %s13457_s19 }
  0xbd   : > { %14885 = vmatpush3.bf16.msra.mxu0 %v16063_v0  ;;  %15952 = vmatpush3.bf16.msra.mxu1 %v16063_v0  ;;  %v16072_v5 = vld [vmem:[%s17145_s25 + $0xc10] sm:$0xff]   ;;  %v16067_v6 = vld [vmem:[#allocation7 + $0x20] sm:$0xff]   ;;  %v16068_v7 = vld [vmem:[#allocation7 + $0x28] sm:$0xff]   ;;  %s12651_s14 = sshll.u32 %s339_s13, 4  ;;  %s12638_s27 = scalar_lea.sflag [#allocation4], %s17141_s26  ;;  %s20473_s14 = int_to_ptr.vmem [resolvable:$true] %s12651_s14 }
  0xbe   : > { %14886 = vmatprep.subr.bf16.mxu0 %v16064_v1  ;;  %15945 = vmatprep.subr.bf16.mxu1 %v16064_v1  ;;  %v16069_v8 = vld [vmem:[#allocation7 + $0x30] sm:$0xff]   ;;  %v16070_v9 = vld [vmem:[#allocation7 + $0x38] sm:$0xff]   ;;  %v16073_v10 = vld [vmem:[%s17145_s25 + $0x8] sm:$0xff]   ;;  %s16772_s16 = scalar_lea.vmem %s20473_s14, 512  ;;  %p20833_p4 = scmp.ne.s32.totalorder %s20537_s20, 0 }
  0xbf   : > { %14900 = vmatprep.mubr.bf16.mxu0 %v16071_v4  ;;  %15672 = vmatprep.mubr.bf16.mxu1 %v16072_v5  ;;  %v16074_v11 = vld [vmem:[%s17145_s25 + $0xc18] sm:$0xff]   ;;  %v16075_v12 = vld [vmem:[%s17145_s25 + $0x10] sm:$0xff]   ;;  %v16076_v13 = vld [vmem:[%s17145_s25 + $0xc20] sm:$0xff]   ;;  %p16773_p7 = scmp.ne.s32.totalorder %s20473_s14, %s16772_s16  ;;  %s16862_s8 = smov [#allocation13]  }
  0xc0   : > { %v16077_v14 = vld [vmem:[%s17145_s25 + $0x18] sm:$0xff]   ;;  %v16078_v15 = vld [vmem:[%s17145_s25 + $0xc28] sm:$0xff]   ;;  %v16079_v16 = vld [vmem:[%s17145_s25 + $0x20] sm:$0xff]   ;;  %s16776_s10 = sshll.u32 %s16862_s8, 4  ;;  %s16777_s10 = int_to_ptr.vmem [resolvable:$false] %s16776_s10 }
  0xc1   : > { %14887 = vmatpush3.bf16.msra.mxu0 %v16064_v1  ;;  %15953 = vmatpush3.bf16.msra.mxu1 %v16064_v1  ;;  %v16080_v17 = vld [vmem:[%s17145_s25 + $0xc30] sm:$0xff]   ;;  %v16081_v18 = vld [vmem:[%s17145_s25 + $0x28] sm:$0xff]   ;;  %v16082_v19 = vld [vmem:[%s17145_s25 + $0xc38] sm:$0xff]   ;;  %p16774_p12 = pnand %p16773_p7, %p20833_p4  ;;  %s16778_s12 = scalar_lea.vmem %s16777_s10, 1024 }
  0xc2   : > { %14888 = vmatprep.subr.bf16.mxu0 %v16065_v2  ;;  %15946 = vmatprep.subr.bf16.mxu1 %v16065_v2  ;;  %v16083_v20 = vld [vmem:[%s17145_s25 + $0x30] sm:$0xff]   ;;  %v16084_v21 = vld [vmem:[%s17145_s25 + $0xc40] sm:$0xff]   ;;  %v16085_v22 = vld [vmem:[%s17145_s25 + $0x38] sm:$0xff]   ;;  %p16779_p13 = scmp.lt.s32.totalorder %s20473_s14, %s16777_s10  ;;  %p16780_p0 = scmp.lt.s32.totalorder %s16778_s12, %s16772_s16 }
  0xc3   : > { %v16086_v23 = vld [vmem:[%s17145_s25 + $0xc48] sm:$0xff]   ;;  %v16087_v24 = vld [vmem:[%s17145_s25 + $0x40] sm:$0xff]   ;;  %v16088_v25 = vld [vmem:[%s17145_s25 + $0xc50] sm:$0xff]   ;;  %p16775_p1 = pneg %p16774_p12 }
  0xc4   : > { %v16089_v26 = vld [vmem:[%s17145_s25 + $0x48] sm:$0xff]   ;;  %v16090_v27 = vld [vmem:[%s17145_s25 + $0xc58] sm:$0xff]   ;;  %v16091_v28 = vld [vmem:[%s17145_s25 + $0x50] sm:$0xff]   ;;  %p16781_p2 = por %p16780_p0, %p16779_p13 }
  0xc5   : > { %14889 = vmatpush3.bf16.msra.mxu0 %v16065_v2  ;;  %15954 = vmatpush3.bf16.msra.mxu1 %v16065_v2  ;;  %v16092_v29 = vld [vmem:[%s17145_s25 + $0xc60] sm:$0xff]   ;;  %v16093_v30 = vld [vmem:[%s17145_s25 + $0x58] sm:$0xff]   ;;  %v16094_v31 = vld [vmem:[%s17145_s25 + $0xc68] sm:$0xff]  }
  0xc6   : > { %14890 = vmatprep.subr.bf16.mxu0 %v16066_v3  ;;  %15947 = vmatprep.subr.bf16.mxu1 %v16066_v3  ;;  %v16095_v32 = vld [vmem:[%s17145_s25 + $0x60] sm:$0xff]   ;;  %v16096_v33 = vld [vmem:[%s17145_s25 + $0xc70] sm:$0xff]   ;;  %v16097_v34 = vld [vmem:[%s17145_s25 + $0x68] sm:$0xff]   ;;  %p16782_p8 = pnand %p16781_p2, %p16775_p1 }
  0xc7   : > { %v16098_v35 = vld [vmem:[%s17145_s25 + $0xc78] sm:$0xff]   ;;  %v16099_v36 = vld [vmem:[%s17145_s25 + $0x70] sm:$0xff]   ;;  %v16100_v37 = vld [vmem:[%s17145_s25 + $0xc80] sm:$0xff]  }
  0xc8   : > { %v16101_v38 = vld [vmem:[%s17145_s25 + $0x78] sm:$0xff]   ;;  %v16102_v39 = vld [vmem:[%s17145_s25 + $0xc88] sm:$0xff]   ;;  %v16103_v40 = vld [vmem:[%s17145_s25 + $0x80] sm:$0xff]  }
  0xc9   : > { %14891 = vmatpush3.bf16.msra.mxu0 %v16066_v3  ;;  %15955 = vmatpush3.bf16.msra.mxu1 %v16066_v3  ;;  %v16104_v41 = vld [vmem:[%s17145_s25 + $0xc90] sm:$0xff]   ;;  %v16105_v42 = vld [vmem:[%s17145_s25 + $0x88] sm:$0xff]   ;;  %v16106_v43 = vld [vmem:[%s17145_s25 + $0xc98] sm:$0xff]  }
  0xca   : > { %14892 = vmatprep.subr.bf16.mxu0 %v16067_v6  ;;  %15948 = vmatprep.subr.bf16.mxu1 %v16067_v6  ;;  %v16107_v44 = vld [vmem:[%s17145_s25 + $0x90] sm:$0xff]   ;;  %v16108_v45 = vld [vmem:[%s17145_s25 + $0xca0] sm:$0xff]   ;;  %v16109_v46 = vld [vmem:[%s17145_s25 + $0x98] sm:$0xff]  }
  0xcb   : > { %v16110_v47 = vld [vmem:[%s17145_s25 + $0xca8] sm:$0xff]   ;;  %v16111_v48 = vld [vmem:[%s17145_s25 + $0xa0] sm:$0xff]   ;;  %v16112_v49 = vld [vmem:[%s17145_s25 + $0xcb0] sm:$0xff]  }
  0xcc   : > { %v16113_v50 = vld [vmem:[%s17145_s25 + $0xa8] sm:$0xff]   ;;  %v16114_v51 = vld [vmem:[%s17145_s25 + $0xcb8] sm:$0xff]   ;;  %v16115_v52 = vld [vmem:[%s17145_s25 + $0xb0] sm:$0xff]  }
  0xcd   : > { %14893 = vmatpush3.bf16.msra.mxu0 %v16067_v6  ;;  %15956 = vmatpush3.bf16.msra.mxu1 %v16067_v6  ;;  %v16116_v53 = vld [vmem:[%s17145_s25 + $0xcc0] sm:$0xff]   ;;  %v16117_v54 = vld [vmem:[%s17145_s25 + $0xb8] sm:$0xff]   ;;  %v16118_v55 = vld [vmem:[%s17145_s25 + $0xcc8] sm:$0xff]  }
  0xce   : > { %14894 = vmatprep.subr.bf16.mxu0 %v16068_v7  ;;  %15949 = vmatprep.subr.bf16.mxu1 %v16068_v7  ;;  %v16119_v56 = vld [vmem:[%s17145_s25 + $0xc0] sm:$0xff]   ;;  %v16120_v57 = vld [vmem:[%s17145_s25 + $0xcd0] sm:$0xff]   ;;  %v16121_v58 = vld [vmem:[%s17145_s25 + $0xc8] sm:$0xff]  }
  0xcf   : > { %v16122_v59 = vld [vmem:[%s17145_s25 + $0xcd8] sm:$0xff]   ;;  %v16123_v60 = vld [vmem:[%s17145_s25 + $0xd0] sm:$0xff]   ;;  %v16124_v61 = vld [vmem:[%s17145_s25 + $0xce0] sm:$0xff]  }
  0xd0   : > { %v16125_v62 = vld [vmem:[%s17145_s25 + $0xd8] sm:$0xff]   ;;  %v16126_v63 = vld [vmem:[%s17145_s25 + $0xce8] sm:$0xff]   ;;  %v16127_v0 = vld [vmem:[%s17145_s25 + $0xe0] sm:$0xff]  }
  0xd1   : > { %14895 = vmatpush3.bf16.msra.mxu0 %v16068_v7  ;;  %15957 = vmatpush3.bf16.msra.mxu1 %v16068_v7  ;;  %v16128_v1 = vld [vmem:[%s17145_s25 + $0xcf0] sm:$0xff]   ;;  %v16129_v2 = vld [vmem:[%s17145_s25 + $0xe8] sm:$0xff]   ;;  %v16130_v3 = vld [vmem:[%s17145_s25 + $0xcf8] sm:$0xff]  }
  0xd2   : > { %14896 = vmatprep.subr.bf16.mxu0 %v16069_v8  ;;  %15950 = vmatprep.subr.bf16.mxu1 %v16069_v8  ;;  %v16131_v4 = vld [vmem:[%s17145_s25 + $0xf0] sm:$0xff]   ;;  %v16132_v5 = vld [vmem:[%s17145_s25 + $0xd00] sm:$0xff]   ;;  %v16133_v6 = vld [vmem:[%s17145_s25 + $0xf8] sm:$0xff]  }
  0xd3   : > { %v16134_v7 = vld [vmem:[%s17145_s25 + $0xd08] sm:$0xff]  }
  0xd5   : > { %14897 = vmatpush3.bf16.msra.mxu0 %v16069_v8  ;;  %15958 = vmatpush3.bf16.msra.mxu1 %v16069_v8  ;;  %v16135_v8 = vld [vmem:[%s17145_s25 + $0x100] sm:$0xff]  }
  0xd6   : > { %14898 = vmatprep.subr.bf16.mxu0 %v16070_v9  ;;  %15951 = vmatprep.subr.bf16.mxu1 %v16070_v9 }
  0xd9   : > { %14899 = vmatpush3.bf16.msra.mxu0 %v16070_v9  ;;  %15959 = vmatpush3.bf16.msra.mxu1 %v16070_v9  ;;  %v16136_v9 = vld [vmem:[%s17145_s25 + $0xd10] sm:$0xff]  }
  0xdc   : > { %14901 = vmatmul.mubr.bf16.vlgmr.msra.gmra.mrb[0].mxu0 %v16073_v10  ;;  %15673 = vmatmul.mubr.bf16.vlgmr.msra.gmra.mrb[0].mxu1 %v16074_v11  ;;  %v16137_v10 = vld [vmem:[%s17145_s25 + $0x108] sm:$0xff]   ;;  %v16138_v11 = vld [vmem:[%s17145_s25 + $0xd18] sm:$0xff]  }
  0xdd   : > { %14904 = vmatprep.mubr.bf16.mxu0 %v16075_v12  ;;  %15676 = vmatprep.mubr.bf16.mxu1 %v16076_v13  ;;  %v16139_v12 = vld [vmem:[%s17145_s25 + $0x110] sm:$0xff]   ;;  %v16140_v13 = vld [vmem:[%s17145_s25 + $0xd20] sm:$0xff]  }
  0xe4   : > { %14905 = vmatmul.mubr.bf16.gmra.mrb[4].mxu0 %v16077_v14  ;;  %15677 = vmatmul.mubr.bf16.gmra.mrb[4].mxu1 %v16078_v15  ;;  %v16141_v14 = vld [vmem:[%s17145_s25 + $0x118] sm:$0xff]   ;;  %v16142_v15 = vld [vmem:[%s17145_s25 + $0xd28] sm:$0xff]  }
  0xe5   : > { %14908 = vmatprep.mubr.bf16.mxu0 %v16079_v16  ;;  %15680 = vmatprep.mubr.bf16.mxu1 %v16080_v17  ;;  %v16143_v16 = vld [vmem:[%s17145_s25 + $0x120] sm:$0xff]   ;;  %v16144_v17 = vld [vmem:[%s17145_s25 + $0xd30] sm:$0xff]  }
  0xec   : > { %14909 = vmatmul.mubr.bf16.gmra.mrb[8].mxu0 %v16081_v18  ;;  %15681 = vmatmul.mubr.bf16.gmra.mrb[8].mxu1 %v16082_v19  ;;  %v16145_v18 = vld [vmem:[%s17145_s25 + $0x128] sm:$0xff]   ;;  %v16146_v19 = vld [vmem:[%s17145_s25 + $0xd38] sm:$0xff]  }
  0xed   : > { %14912 = vmatprep.mubr.bf16.mxu0 %v16083_v20  ;;  %15684 = vmatprep.mubr.bf16.mxu1 %v16084_v21  ;;  %v16147_v20 = vld [vmem:[%s17145_s25 + $0x130] sm:$0xff]   ;;  %v16148_v21 = vld [vmem:[%s17145_s25 + $0xd40] sm:$0xff]  }
  0xf4   : > { %14913 = vmatmul.mubr.bf16.gmra.mrb[12].mxu0 %v16085_v22  ;;  %15685 = vmatmul.mubr.bf16.gmra.mrb[12].mxu1 %v16086_v23  ;;  %v16149_v22 = vld [vmem:[%s17145_s25 + $0x138] sm:$0xff]   ;;  %v16150_v23 = vld [vmem:[%s17145_s25 + $0xd48] sm:$0xff]  }
  0xf5   : > { %14916 = vmatprep.mubr.bf16.mxu0 %v16087_v24  ;;  %15688 = vmatprep.mubr.bf16.mxu1 %v16088_v25  ;;  %v16151_v24 = vld [vmem:[%s17145_s25 + $0x140] sm:$0xff]   ;;  %v16152_v25 = vld [vmem:[%s17145_s25 + $0xd50] sm:$0xff]  }
  0xfc   : > { %14917 = vmatmul.mubr.bf16.gmra.mrb[16].mxu0 %v16089_v26  ;;  %15689 = vmatmul.mubr.bf16.gmra.mrb[16].mxu1 %v16090_v27  ;;  %v16153_v26 = vld [vmem:[%s17145_s25 + $0x148] sm:$0xff]   ;;  %v16154_v27 = vld [vmem:[%s17145_s25 + $0xd58] sm:$0xff]  }
  0xfd   : > { %14920 = vmatprep.mubr.bf16.mxu0 %v16091_v28  ;;  %15692 = vmatprep.mubr.bf16.mxu1 %v16092_v29  ;;  %v16155_v28 = vld [vmem:[%s17145_s25 + $0x150] sm:$0xff]   ;;  %v16156_v29 = vld [vmem:[%s17145_s25 + $0xd60] sm:$0xff]  }
 0x104   : > { %14921 = vmatmul.mubr.bf16.gmra.mrb[20].mxu0 %v16093_v30  ;;  %15693 = vmatmul.mubr.bf16.gmra.mrb[20].mxu1 %v16094_v31  ;;  %v16157_v30 = vld [vmem:[%s17145_s25 + $0x158] sm:$0xff]   ;;  %v16158_v31 = vld [vmem:[%s17145_s25 + $0xd68] sm:$0xff]  }
 0x105   : > { %14924 = vmatprep.mubr.bf16.mxu0 %v16095_v32  ;;  %15696 = vmatprep.mubr.bf16.mxu1 %v16096_v33  ;;  %v16159_v32 = vld [vmem:[%s17145_s25 + $0x160] sm:$0xff]   ;;  %v16160_v33 = vld [vmem:[%s17145_s25 + $0xd70] sm:$0xff]  }
 0x10c   : > { %14925 = vmatmul.mubr.bf16.gmra.mrb[24].mxu0 %v16097_v34  ;;  %15697 = vmatmul.mubr.bf16.gmra.mrb[24].mxu1 %v16098_v35  ;;  %v16161_v34 = vld [vmem:[%s17145_s25 + $0x168] sm:$0xff]   ;;  %v16162_v35 = vld [vmem:[%s17145_s25 + $0xd78] sm:$0xff]  }
 0x10d   : > { %14928 = vmatprep.mubr.bf16.mxu0 %v16099_v36  ;;  %15700 = vmatprep.mubr.bf16.mxu1 %v16100_v37  ;;  %v16163_v36 = vld [vmem:[%s17145_s25 + $0x170] sm:$0xff]   ;;  %v16164_v37 = vld [vmem:[%s17145_s25 + $0xd80] sm:$0xff]  }
 0x114   : > { %14929 = vmatmul.mubr.bf16.gmra.mrb[28].mxu0 %v16101_v38  ;;  %15701 = vmatmul.mubr.bf16.gmra.mrb[28].mxu1 %v16102_v39  ;;  %v16165_v38 = vld [vmem:[%s17145_s25 + $0x178] sm:$0xff]   ;;  %v16166_v39 = vld [vmem:[%s17145_s25 + $0xd88] sm:$0xff]  }
 0x115   : > { %14932 = vmatprep.mubr.bf16.mxu0 %v16103_v40  ;;  %15704 = vmatprep.mubr.bf16.mxu1 %v16104_v41  ;;  %v16167_v40 = vld [vmem:[%s17145_s25 + $0x180] sm:$0xff]   ;;  %v16168_v41 = vld [vmem:[%s17145_s25 + $0xd90] sm:$0xff]  }
 0x11c   : > { %14933 = vmatmul.mubr.bf16.gmra.mrb[32].mxu0 %v16105_v42  ;;  %15705 = vmatmul.mubr.bf16.gmra.mrb[32].mxu1 %v16106_v43  ;;  %v16169_v42 = vld [vmem:[%s17145_s25 + $0x188] sm:$0xff]   ;;  %v16170_v43 = vld [vmem:[%s17145_s25 + $0xd98] sm:$0xff]  }
 0x11d   : > { %14936 = vmatprep.mubr.bf16.mxu0 %v16107_v44  ;;  %15708 = vmatprep.mubr.bf16.mxu1 %v16108_v45  ;;  %v16171_v44 = vld [vmem:[%s17145_s25 + $0x190] sm:$0xff]   ;;  %v16172_v45 = vld [vmem:[%s17145_s25 + $0xda0] sm:$0xff]  }
 0x124   : > { %14937 = vmatmul.mubr.bf16.gmra.mrb[36].mxu0 %v16109_v46  ;;  %15709 = vmatmul.mubr.bf16.gmra.mrb[36].mxu1 %v16110_v47  ;;  %v16173_v46 = vld [vmem:[%s17145_s25 + $0x198] sm:$0xff]   ;;  %v16174_v47 = vld [vmem:[%s17145_s25 + $0xda8] sm:$0xff]  }
 0x125   : > { %14940 = vmatprep.mubr.bf16.mxu0 %v16111_v48  ;;  %15712 = vmatprep.mubr.bf16.mxu1 %v16112_v49  ;;  %v16175_v48 = vld [vmem:[%s17145_s25 + $0x1a0] sm:$0xff]   ;;  %v16176_v49 = vld [vmem:[%s17145_s25 + $0xdb0] sm:$0xff]  }
 0x12c   : > { %14941 = vmatmul.mubr.bf16.gmra.mrb[40].mxu0 %v16113_v50  ;;  %15713 = vmatmul.mubr.bf16.gmra.mrb[40].mxu1 %v16114_v51  ;;  %v16177_v50 = vld [vmem:[%s17145_s25 + $0x1a8] sm:$0xff]   ;;  %v16178_v51 = vld [vmem:[%s17145_s25 + $0xdb8] sm:$0xff]  }
 0x12d   : > { %14944 = vmatprep.mubr.bf16.mxu0 %v16115_v52  ;;  %15716 = vmatprep.mubr.bf16.mxu1 %v16116_v53  ;;  %v16179_v52 = vld [vmem:[%s17145_s25 + $0x1b0] sm:$0xff]   ;;  %v16180_v53 = vld [vmem:[%s17145_s25 + $0xdc0] sm:$0xff]  }
 0x134   : > { %14945 = vmatmul.mubr.bf16.gmra.mrb[44].mxu0 %v16117_v54  ;;  %15717 = vmatmul.mubr.bf16.gmra.mrb[44].mxu1 %v16118_v55  ;;  %v17273_v54 = vld [vmem:[#allocation8] ss:$0 sm:$0xff] }
 0x135   : > { %14948 = vmatprep.mubr.bf16.mxu0 %v16119_v56  ;;  %15720 = vmatprep.mubr.bf16.mxu1 %v16120_v57  ;;  %v16181_v56 = vld [vmem:[%s17145_s25 + $0x1b8] sm:$0xff]  }
 0x13c   : > { %14949 = vmatmul.mubr.bf16.gmra.mrb[48].mxu0 %v16121_v58  ;;  %15721 = vmatmul.mubr.bf16.gmra.mrb[48].mxu1 %v16122_v59  ;;  %v16182_v59 = vld [vmem:[%s17145_s25 + $0xdc8] sm:$0xff]  }
 0x13d   : > { %14952 = vmatprep.mubr.bf16.mxu0 %v16123_v60  ;;  %15724 = vmatprep.mubr.bf16.mxu1 %v16124_v61 }
 0x144   : > { %14953 = vmatmul.mubr.bf16.gmra.mrb[52].mxu0 %v16125_v62  ;;  %15725 = vmatmul.mubr.bf16.gmra.mrb[52].mxu1 %v16126_v63  ;;  %v16183_v62 = vld [vmem:[%s17145_s25 + $0x1c0] sm:$0xff]   ;;  %v16184_v63 = vld [vmem:[%s17145_s25 + $0xdd0] sm:$0xff]  }
 0x145   : > { %14956 = vmatprep.mubr.bf16.mxu0 %v16127_v0  ;;  %15728 = vmatprep.mubr.bf16.mxu1 %v16128_v1 }
 0x14c   : > { %14957 = vmatmul.mubr.bf16.gmra.mrb[56].mxu0 %v16129_v2  ;;  %15729 = vmatmul.mubr.bf16.gmra.mrb[56].mxu1 %v16130_v3 }
 0x14d   : > { %14960 = vmatprep.mubr.bf16.mxu0 %v16131_v4  ;;  %15732 = vmatprep.mubr.bf16.mxu1 %v16132_v5 }
 0x154   : > { %14961 = vmatmul.mubr.bf16.gmra.mrb[60].mxu0 %v16133_v6  ;;  %15733 = vmatmul.mubr.bf16.gmra.mrb[60].mxu1 %v16134_v7 }
 0x155   : > { %14964 = vmatprep.mubr.bf16.mxu0 %v16135_v8  ;;  %15736 = vmatprep.mubr.bf16.mxu1 %v16136_v9 }
 0x15c   : > { %14965 = vmatmul.mubr.bf16.gmra.mrb[64].mxu0 %v16137_v10  ;;  %15737 = vmatmul.mubr.bf16.gmra.mrb[64].mxu1 %v16138_v11  ;;  %v16185_v10 = vld [vmem:[%s17145_s25 + $0x1c8] sm:$0xff]  }
 0x15d   : > { %14968 = vmatprep.mubr.bf16.mxu0 %v16139_v12  ;;  %15740 = vmatprep.mubr.bf16.mxu1 %v16140_v13  ;;  %v16186_v13 = vld [vmem:[%s17145_s25 + $0xdd8] sm:$0xff]  }
 0x164   : > { %14969 = vmatmul.mubr.bf16.gmra.mrb[68].mxu0 %v16141_v14  ;;  %15741 = vmatmul.mubr.bf16.gmra.mrb[68].mxu1 %v16142_v15 }
 0x165   : > { %14972 = vmatprep.mubr.bf16.mxu0 %v16143_v16  ;;  %15744 = vmatprep.mubr.bf16.mxu1 %v16144_v17  ;;  %v16187_v16 = vld [vmem:[%s17145_s25 + $0x1d0] sm:$0xff]   ;;  %v16188_v17 = vld [vmem:[%s17145_s25 + $0xde0] sm:$0xff]  }
 0x16c   : > { %14973 = vmatmul.mubr.bf16.gmra.mrb[72].mxu0 %v16145_v18  ;;  %15745 = vmatmul.mubr.bf16.gmra.mrb[72].mxu1 %v16146_v19 }
 0x16d   : > { %14976 = vmatprep.mubr.bf16.mxu0 %v16147_v20  ;;  %15748 = vmatprep.mubr.bf16.mxu1 %v16148_v21 }
 0x174   : > { %14977 = vmatmul.mubr.bf16.gmra.mrb[76].mxu0 %v16149_v22  ;;  %15749 = vmatmul.mubr.bf16.gmra.mrb[76].mxu1 %v16150_v23 }
 0x175   : > { %14980 = vmatprep.mubr.bf16.mxu0 %v16151_v24  ;;  %15752 = vmatprep.mubr.bf16.mxu1 %v16152_v25 }
 0x17c   : > { %14981 = vmatmul.mubr.bf16.gmra.mrb[80].mxu0 %v16153_v26  ;;  %15753 = vmatmul.mubr.bf16.gmra.mrb[80].mxu1 %v16154_v27 }
 0x17d   : > { %14984 = vmatprep.mubr.bf16.mxu0 %v16155_v28  ;;  %15756 = vmatprep.mubr.bf16.mxu1 %v16156_v29  ;;  %v16189_v28 = vld [vmem:[%s17145_s25 + $0x1d8] sm:$0xff]  }
 0x184   : > { %14985 = vmatmul.mubr.bf16.gmra.mrb[84].mxu0 %v16157_v30  ;;  %15757 = vmatmul.mubr.bf16.gmra.mrb[84].mxu1 %v16158_v31  ;;  %v16190_v31 = vld [vmem:[%s17145_s25 + $0xde8] sm:$0xff]  }
 0x185   : > { %14988 = vmatprep.mubr.bf16.mxu0 %v16159_v32  ;;  %15760 = vmatprep.mubr.bf16.mxu1 %v16160_v33 }
 0x18c   : > { %14989 = vmatmul.mubr.bf16.gmra.mrb[88].mxu0 %v16161_v34  ;;  %15761 = vmatmul.mubr.bf16.gmra.mrb[88].mxu1 %v16162_v35  ;;  %v16191_v34 = vld [vmem:[%s17145_s25 + $0x1e0] sm:$0xff]   ;;  %v16192_v35 = vld [vmem:[%s17145_s25 + $0xdf0] sm:$0xff]  }
 0x18d   : > { %14992 = vmatprep.mubr.bf16.mxu0 %v16163_v36  ;;  %15764 = vmatprep.mubr.bf16.mxu1 %v16164_v37 }
 0x194   : > { %14993 = vmatmul.mubr.bf16.gmra.mrb[92].mxu0 %v16165_v38  ;;  %15765 = vmatmul.mubr.bf16.gmra.mrb[92].mxu1 %v16166_v39 }
 0x195   : > { %14996 = vmatprep.mubr.bf16.mxu0 %v16167_v40  ;;  %15768 = vmatprep.mubr.bf16.mxu1 %v16168_v41 }
 0x19c   : > { %14997 = vmatmul.mubr.bf16.gmra.mrb[96].mxu0 %v16169_v42  ;;  %15769 = vmatmul.mubr.bf16.gmra.mrb[96].mxu1 %v16170_v43 }
 0x19d   : > { %15000 = vmatprep.mubr.bf16.mxu0 %v16171_v44  ;;  %15772 = vmatprep.mubr.bf16.mxu1 %v16172_v45 }
 0x1a4   : > { %15001 = vmatmul.mubr.bf16.gmra.mrb[100].mxu0 %v16173_v46  ;;  %15773 = vmatmul.mubr.bf16.gmra.mrb[100].mxu1 %v16174_v47  ;;  %v16193_v46 = vld [vmem:[%s17145_s25 + $0x1e8] sm:$0xff]  }
 0x1a5   : > { %15004 = vmatprep.mubr.bf16.mxu0 %v16175_v48  ;;  %15776 = vmatprep.mubr.bf16.mxu1 %v16176_v49  ;;  %v16194_v49 = vld [vmem:[%s17145_s25 + $0xdf8] sm:$0xff]  }
 0x1ac   : > { %15005 = vmatmul.mubr.bf16.gmra.mrb[104].mxu0 %v16177_v50  ;;  %15777 = vmatmul.mubr.bf16.gmra.mrb[104].mxu1 %v16178_v51 }
 0x1ad   : > { %15008 = vmatprep.mubr.bf16.mxu0 %v16179_v52  ;;  %15780 = vmatprep.mubr.bf16.mxu1 %v16180_v53  ;;  %v16195_v52 = vld [vmem:[%s17145_s25 + $0x1f0] sm:$0xff]   ;;  %v16196_v53 = vld [vmem:[%s17145_s25 + $0xe00] sm:$0xff]  }
 0x1af   : > { %v14902_v55 = vpop.f32.mrb[0].mxu0 }
 0x1b0   : > { %v4553_v57 = vadd.f32 %v14902_v55, %v17273_v54  ;;  %v4544_v58 = vpop.f32.mrb[1].mxu0 }
 0x1b1   : > { %v4545_v60 = vadd.f32 %v17273_v54, %v4544_v58  ;;  %v14903_v61 = vpop.f32.mrb[2].mxu0 }
 0x1b2   : > { %v4556_v0 = vadd.f32 %v14903_v61, %v17273_v54  ;;  %v4547_v1 = vpop.f32.mrb[3].mxu0  ;;  %v8641_v3 = vmax.f32 %v4553_v57, 0.0 }
 0x1b3   : > { %v4548_v2 = vadd.f32 %v17273_v54, %v4547_v1  ;;  %v8639_v5 = vmax.f32 %v4545_v60, 0.0  ;;  %v16197_v1 = vld [vmem:[%s17145_s25 + $0x1f8] sm:$0xff]  }
 0x1b4   : > { %v8642_v4 = vmax.f32 %v4556_v0, 0.0  ;;  %15009 = vmatmul.mubr.bf16.gmra.mrb[108].mxu0 %v16181_v56  ;;  %15781 = vmatmul.mubr.bf16.gmra.mrb[108].mxu1 %v16182_v59 }
 0x1b5   : > { %v8640_v6 = vmax.f32 %v4548_v2, 0.0  ;;  %15012 = vmatprep.mubr.bf16.mxu0 %v16183_v62  ;;  %15784 = vmatprep.mubr.bf16.mxu1 %v16184_v63 }
 0x1b6   : > { %v17283_v7 = vpack.c.bf16 %v8642_v4, %v8641_v3  ;;  %v16198_v4 = vld [vmem:[%s17145_s25 + $0xe08] sm:$0xff]  }
 0x1b7   : > { %v17285_v8 = vpack.c.bf16 %v8640_v6, %v8639_v5  ;;  %v14906_v9 = vpop.f32.mrb[4].mxu0 }
 0x1b8   : > { %v4569_v11 = vadd.f32 %v14906_v9, %v17273_v54  ;;  %v4560_v12 = vpop.f32.mrb[5].mxu0  ;;  %v16199_v9 = vld [vmem:[%s17145_s25 + $0x200] sm:$0xff]  }
 0x1b9   : > { %v4561_v14 = vadd.f32 %v17273_v54, %v4560_v12  ;;  %v14907_v15 = vpop.f32.mrb[6].mxu0 }
 0x1ba   : > { %v4572_v18 = vadd.f32 %v14907_v15, %v17273_v54  ;;  %v4563_v19 = vpop.f32.mrb[7].mxu0  ;;  %v8645_v21 = vmax.f32 %v4569_v11, 0.0 }
 0x1bb   : > { %v4564_v20 = vadd.f32 %v17273_v54, %v4563_v19  ;;  %v8643_v23 = vmax.f32 %v4561_v14, 0.0 }
 0x1bc   : > { %v8646_v22 = vmax.f32 %v4572_v18, 0.0  ;;  %15013 = vmatmul.mubr.bf16.gmra.mrb[112].mxu0 %v16185_v10  ;;  %15785 = vmatmul.mubr.bf16.gmra.mrb[112].mxu1 %v16186_v13  ;;  %v16200_v10 = vld [vmem:[%s17145_s25 + $0xe10] sm:$0xff]  }
 0x1bd   : > { %v8644_v24 = vmax.f32 %v4564_v20, 0.0  ;;  %15016 = vmatprep.mubr.bf16.mxu0 %v16187_v16  ;;  %15788 = vmatprep.mubr.bf16.mxu1 %v16188_v17 }
 0x1be   : > { %v17295_v25 = vpack.c.bf16 %v8646_v22, %v8645_v21  ;;  %v16201_v21 = vld [vmem:[%s17145_s25 + $0x208] sm:$0xff]  }
 0x1bf   : > { %v17297_v26 = vpack.c.bf16 %v8644_v24, %v8643_v23  ;;  %v14910_v27 = vpop.f32.mrb[8].mxu0  ;;  %v16202_v24 = vld [vmem:[%s17145_s25 + $0xe18] sm:$0xff]  }
 0x1c0   : > { %v4585_v29 = vadd.f32 %v14910_v27, %v17273_v54  ;;  %v4576_v30 = vpop.f32.mrb[9].mxu0 }
 0x1c1   : > { %v4577_v32 = vadd.f32 %v17273_v54, %v4576_v30  ;;  %v14911_v33 = vpop.f32.mrb[10].mxu0  ;;  %v16204_v30 = vld [vmem:[%s17145_s25 + $0xe20] sm:$0xff]  }
 0x1c2   : > { %v4588_v36 = vadd.f32 %v14911_v33, %v17273_v54  ;;  %v4579_v37 = vpop.f32.mrb[11].mxu0  ;;  %v8649_v39 = vmax.f32 %v4585_v29, 0.0  ;;  %v16203_v29 = vld [vmem:[%s17145_s25 + $0x210] sm:$0xff]  }
 0x1c3   : > { %v4580_v38 = vadd.f32 %v17273_v54, %v4579_v37  ;;  %v8647_v41 = vmax.f32 %v4577_v32, 0.0 }
 0x1c4   : > { %v8650_v40 = vmax.f32 %v4588_v36, 0.0  ;;  %15017 = vmatmul.mubr.bf16.gmra.mrb[116].mxu0 %v16189_v28  ;;  %15789 = vmatmul.mubr.bf16.gmra.mrb[116].mxu1 %v16190_v31 }
 0x1c5   : > { %v8648_v42 = vmax.f32 %v4580_v38, 0.0  ;;  %15020 = vmatprep.mubr.bf16.mxu0 %v16191_v34  ;;  %15792 = vmatprep.mubr.bf16.mxu1 %v16192_v35 }
 0x1c6   : > { %v17307_v43 = vpack.c.bf16 %v8650_v40, %v8649_v39 }
 0x1c7   : > { %v17309_v44 = vpack.c.bf16 %v8648_v42, %v8647_v41  ;;  %v14914_v45 = vpop.f32.mrb[12].mxu0 }
 0x1c8   : > { %v4601_v47 = vadd.f32 %v14914_v45, %v17273_v54  ;;  %v4592_v48 = vpop.f32.mrb[13].mxu0  ;;  %v16206_v45 = vld [vmem:[%s17145_s25 + $0xe28] sm:$0xff]  }
 0x1c9   : > { %v4593_v50 = vadd.f32 %v17273_v54, %v4592_v48  ;;  %v14915_v51 = vpop.f32.mrb[14].mxu0  ;;  %v16207_v48 = vld [vmem:[%s17145_s25 + $0x220] sm:$0xff]  }
 0x1ca   : > { %v4604_v55 = vadd.f32 %v14915_v51, %v17273_v54  ;;  %v4595_v56 = vpop.f32.mrb[15].mxu0  ;;  %v8653_v58 = vmax.f32 %v4601_v47, 0.0 }
 0x1cb   : > { %v4596_v57 = vadd.f32 %v17273_v54, %v4595_v56  ;;  %v8651_v60 = vmax.f32 %v4593_v50, 0.0 }
 0x1cc   : > { %v8654_v59 = vmax.f32 %v4604_v55, 0.0  ;;  %15021 = vmatmul.mubr.bf16.gmra.mrb[120].mxu0 %v16193_v46  ;;  %15793 = vmatmul.mubr.bf16.gmra.mrb[120].mxu1 %v16194_v49  ;;  %v16208_v49 = vld [vmem:[%s17145_s25 + $0xe30] sm:$0xff]  }
 0x1cd   : > { %v8652_v61 = vmax.f32 %v4596_v57, 0.0  ;;  %15024 = vmatprep.mubr.bf16.mxu0 %v16195_v52  ;;  %15796 = vmatprep.mubr.bf16.mxu1 %v16196_v53 }
 0x1ce   : > { %v17319_v62 = vpack.c.bf16 %v8654_v59, %v8653_v58 }
 0x1cf   : > { %v17321_v63 = vpack.c.bf16 %v8652_v61, %v8651_v60  ;;  %v14918_v0 = vpop.f32.mrb[16].mxu0 }
 0x1d0   : > { %v4617_v2 = vadd.f32 %v14918_v0, %v17273_v54  ;;  %v4608_v3 = vpop.f32.mrb[17].mxu0  ;;  %v16210_v0 = vld [vmem:[%s17145_s25 + $0xe38] sm:$0xff]  }
 0x1d1   : > { %v4609_v5 = vadd.f32 %v17273_v54, %v4608_v3  ;;  %v14919_v6 = vpop.f32.mrb[18].mxu0  ;;  %v16211_v3 = vld [vmem:[%s17145_s25 + $0x230] sm:$0xff]  }
 0x1d2   : > { %v4620_v11 = vadd.f32 %v14919_v6, %v17273_v54  ;;  %v4611_v12 = vpop.f32.mrb[19].mxu0  ;;  %v8657_v14 = vmax.f32 %v4617_v2, 0.0 }
 0x1d3   : > { %v4612_v13 = vadd.f32 %v17273_v54, %v4611_v12  ;;  %v8655_v16 = vmax.f32 %v4609_v5, 0.0 }
 0x1d4   : > { %v8658_v15 = vmax.f32 %v4620_v11, 0.0  ;;  %15025 = vmatmul.mubr.bf16.gmra.mrb[124].mxu0 %v16197_v1  ;;  %15797 = vmatmul.mubr.bf16.gmra.mrb[124].mxu1 %v16198_v4  ;;  %v16212_v4 = vld [vmem:[%s17145_s25 + $0xe40] sm:$0xff]  }
 0x1d5   : > { %v8656_v17 = vmax.f32 %v4612_v13, 0.0  ;;  %15028 = vmatprep.mubr.bf16.mxu0 %v16199_v9  ;;  %15800 = vmatprep.mubr.bf16.mxu1 %v16200_v10 }
 0x1d6   : > { %v9800_v18 = vpack.c.bf16 %v8658_v15, %v8657_v14 }
 0x1d7   : > { %v14922_v19 = vpop.f32.mrb[20].mxu0  ;;  %v9799_v20 = vpack.c.bf16 %v8656_v17, %v8655_v16 }
 0x1d8   : > { %v4633_v22 = vadd.f32 %v14922_v19, %v17273_v54  ;;  %v4624_v23 = vpop.f32.mrb[21].mxu0 }
 0x1d9   : > { %v4625_v27 = vadd.f32 %v17273_v54, %v4624_v23  ;;  %v14923_v28 = vpop.f32.mrb[22].mxu0  ;;  %13978 = vmatprep.subr.bf16.mxu1 %v9799_v20 }
 0x1da   : > { %v4636_v31 = vadd.f32 %v14923_v28, %v17273_v54  ;;  %v4627_v32 = vpop.f32.mrb[23].mxu0  ;;  %13979 = vmatpush3.bf16.msra.mxu1 %v17285_v8  ;;  %v8661_v34 = vmax.f32 %v4633_v22, 0.0  ;;  %v16205_v8 = vld [vmem:[%s17145_s25 + $0x218] sm:$0xff]   ;;  %v16216_v22 = vld [vmem:[%s17145_s25 + $0xe50] sm:$0xff]  }
 0x1db   : > { %v4628_v33 = vadd.f32 %v17273_v54, %v4627_v32  ;;  %13980 = vmatprep.subr.bf16.mxu1 %v9800_v18  ;;  %v8659_v36 = vmax.f32 %v4625_v27, 0.0  ;;  %v16214_v18 = vld [vmem:[%s17145_s25 + $0xe48] sm:$0xff]  }
 0x1dc   : > { %v8662_v35 = vmax.f32 %v4636_v31, 0.0  ;;  %15029 = vmatmul.mubr.bf16.gmra.mrb[128].mxu0 %v16201_v21  ;;  %15801 = vmatmul.mubr.bf16.gmra.mrb[128].mxu1 %v16202_v24  ;;  %v16215_v21 = vld [vmem:[%s17145_s25 + $0x240] sm:$0xff]  }
 0x1dd   : > { %v8660_v37 = vmax.f32 %v4628_v33, 0.0  ;;  %15032 = vmatprep.mubr.bf16.mxu0 %v16203_v29  ;;  %15804 = vmatprep.mubr.bf16.mxu1 %v16204_v30  ;;  %v16217_v33 = vld [vmem:[%s17145_s25 + $0x248] sm:$0xff]  }
 0x1de   : > { %13981 = vmatpush3.bf16.msra.mxu1 %v17283_v7  ;;  %v9802_v38 = vpack.c.bf16 %v8662_v35, %v8661_v34 }
 0x1df   : > { %v14926_v39 = vpop.f32.mrb[24].mxu0  ;;  %v9801_v40 = vpack.c.bf16 %v8660_v37, %v8659_v36  ;;  %v16218_v36 = vld [vmem:[%s17145_s25 + $0xe58] sm:$0xff]  }
 0x1e0   : > { %v4649_v41 = vadd.f32 %v14926_v39, %v17273_v54  ;;  %v4640_v42 = vpop.f32.mrb[25].mxu0  ;;  %v16219_v39 = vld [vmem:[%s17145_s25 + $0x250] sm:$0xff]  }
 0x1e1   : > { %v4641_v46 = vadd.f32 %v17273_v54, %v4640_v42  ;;  %v14927_v47 = vpop.f32.mrb[26].mxu0  ;;  %13982 = vmatprep.subr.bf16.mxu1 %v9801_v40  ;;  %v16220_v40 = vld [vmem:[%s17145_s25 + $0xe60] sm:$0xff]  }
 0x1e2   : > { %v4652_v50 = vadd.f32 %v14927_v47, %v17273_v54  ;;  %v4643_v51 = vpop.f32.mrb[27].mxu0  ;;  %13983 = vmatpush3.bf16.msra.mxu1 %v17297_v26  ;;  %v8665_v52 = vmax.f32 %v4649_v41, 0.0  ;;  %v16209_v26 = vld [vmem:[%s17145_s25 + $0x228] sm:$0xff]  }
 0x1e3   : > { %v4644_v7 = vadd.f32 %v17273_v54, %v4643_v51  ;;  %13984 = vmatprep.subr.bf16.mxu1 %v9802_v38  ;;  %v8663_v55 = vmax.f32 %v4641_v46, 0.0  ;;  %v16221_v51 = vld [vmem:[%s17145_s25 + $0x258] sm:$0xff]  }
 0x1e4   : > { %v8666_v53 = vmax.f32 %v4652_v50, 0.0  ;;  %15033 = vmatmul.mubr.bf16.gmra.mrb[132].mxu0 %v16205_v8  ;;  %15805 = vmatmul.mubr.bf16.gmra.mrb[132].mxu1 %v16206_v45 }
 0x1e5   : > { %v8664_v56 = vmax.f32 %v4644_v7, 0.0  ;;  %15036 = vmatprep.mubr.bf16.mxu0 %v16207_v48  ;;  %15808 = vmatprep.mubr.bf16.mxu1 %v16208_v49 }
 0x1e6   : > { %13985 = vmatpush3.bf16.msra.mxu1 %v17295_v25  ;;  %v9804_v57 = vpack.c.bf16 %v8666_v53, %v8665_v52  ;;  %v16222_v53 = vld [vmem:[%s17145_s25 + $0xe68] sm:$0xff]  }
 0x1e7   : > { %v14930_v58 = vpop.f32.mrb[28].mxu0  ;;  %v9803_v59 = vpack.c.bf16 %v8664_v56, %v8663_v55 }
 0x1e8   : > { %v4665_v60 = vadd.f32 %v14930_v58, %v17273_v54  ;;  %v4656_v61 = vpop.f32.mrb[29].mxu0  ;;  %v16224_v58 = vld [vmem:[%s17145_s25 + $0xe70] sm:$0xff]  }
 0x1e9   : > { %v4657_v1 = vadd.f32 %v17273_v54, %v4656_v61  ;;  %v14931_v2 = vpop.f32.mrb[30].mxu0  ;;  %13986 = vmatprep.subr.bf16.mxu1 %v9803_v59 }
 0x1ea   : > { %v4668_v5 = vadd.f32 %v14931_v2, %v17273_v54  ;;  %v4659_v6 = vpop.f32.mrb[31].mxu0  ;;  %13987 = vmatpush3.bf16.msra.mxu1 %v17309_v44  ;;  %v8669_v9 = vmax.f32 %v4665_v60, 0.0  ;;  %v16213_v44 = vld [vmem:[%s17145_s25 + $0x238] sm:$0xff]  }
 0x1eb   : > { %v4660_v25 = vadd.f32 %v17273_v54, %v4659_v6  ;;  %13988 = vmatprep.subr.bf16.mxu1 %v9804_v57  ;;  %v8667_v11 = vmax.f32 %v4657_v1, 0.0  ;;  %v16223_v57 = vld [vmem:[%s17145_s25 + $0x260] sm:$0xff]   ;;  %v16225_v6 = vld [vmem:[%s17145_s25 + $0x268] sm:$0xff]  }
 0x1ec   : > { %v8670_v10 = vmax.f32 %v4668_v5, 0.0  ;;  %15037 = vmatmul.mubr.bf16.gmra.mrb[136].mxu0 %v16209_v26  ;;  %15809 = vmatmul.mubr.bf16.gmra.mrb[136].mxu1 %v16210_v0 }
 0x1ed   : > { %v8668_v12 = vmax.f32 %v4660_v25, 0.0  ;;  %15040 = vmatprep.mubr.bf16.mxu0 %v16211_v3  ;;  %15812 = vmatprep.mubr.bf16.mxu1 %v16212_v4 }
 0x1ee   : > { %13989 = vmatpush3.bf16.msra.mxu1 %v17307_v43  ;;  %v9806_v13 = vpack.c.bf16 %v8670_v10, %v8669_v9  ;;  %v16226_v10 = vld [vmem:[%s17145_s25 + $0xe78] sm:$0xff]  }
 0x1ef   : > { %v14934_v14 = vpop.f32.mrb[32].mxu0  ;;  %v9805_v15 = vpack.c.bf16 %v8668_v12, %v8667_v11 }
 0x1f0   : > { %v4681_v16 = vadd.f32 %v14934_v14, %v17273_v54  ;;  %v4672_v17 = vpop.f32.mrb[33].mxu0  ;;  %v16228_v14 = vld [vmem:[%s17145_s25 + $0xe80] sm:$0xff]  }
 0x1f1   : > { %v4673_v19 = vadd.f32 %v17273_v54, %v4672_v17  ;;  %v14935_v20 = vpop.f32.mrb[34].mxu0  ;;  %13990 = vmatprep.subr.bf16.mxu1 %v9805_v15 }
 0x1f2   : > { %v4684_v23 = vadd.f32 %v14935_v20, %v17273_v54  ;;  %v4675_v24 = vpop.f32.mrb[35].mxu0  ;;  %13991 = vmatpush3.bf16.msra.mxu1 %v17321_v63  ;;  %v8673_v27 = vmax.f32 %v4681_v16, 0.0 }
 0x1f3   : > { %v4676_v43 = vadd.f32 %v17273_v54, %v4675_v24  ;;  %13992 = vmatprep.subr.bf16.mxu1 %v9806_v13  ;;  %v8671_v29 = vmax.f32 %v4673_v19, 0.0  ;;  %v16227_v13 = vld [vmem:[%s17145_s25 + $0x270] sm:$0xff]   ;;  %v16229_v24 = vld [vmem:[%s17145_s25 + $0x278] sm:$0xff]  }
 0x1f4   : > { %v8674_v28 = vmax.f32 %v4684_v23, 0.0  ;;  %15041 = vmatmul.mubr.bf16.gmra.mrb[140].mxu0 %v16213_v44  ;;  %15813 = vmatmul.mubr.bf16.gmra.mrb[140].mxu1 %v16214_v18 }
 0x1f5   : > { %v8672_v30 = vmax.f32 %v4676_v43, 0.0  ;;  %15044 = vmatprep.mubr.bf16.mxu0 %v16215_v21  ;;  %15816 = vmatprep.mubr.bf16.mxu1 %v16216_v22 }
 0x1f6   : > { %v17370_v31 = vpack.c.bf16 %v8674_v28, %v8673_v27  ;;  %13993 = vmatpush3.bf16.msra.mxu1 %v17319_v62  ;;  %v16230_v28 = vld [vmem:[%s17145_s25 + $0xe88] sm:$0xff]  }
 0x1f7   : > { %v17373_v32 = vpack.c.bf16 %v8672_v30, %v8671_v29  ;;  %v14938_v63 = vpop.f32.mrb[36].mxu0 }
 0x1f8   : > { %v4697_v34 = vadd.f32 %v14938_v63, %v17273_v54  ;;  %v4688_v35 = vpop.f32.mrb[37].mxu0  ;;  %v16231_v63 = vld [vmem:[%s17145_s25 + $0x280] sm:$0xff]  }
 0x1f9   : > { %v4689_v37 = vadd.f32 %v17273_v54, %v4688_v35  ;;  %v14939_v38 = vpop.f32.mrb[38].mxu0 }
 0x1fa   : > { %v4700_v8 = vadd.f32 %v14939_v38, %v17273_v54  ;;  %v4691_v41 = vpop.f32.mrb[39].mxu0  ;;  %v8677_v42 = vmax.f32 %v4697_v34, 0.0 }
 0x1fb   : > { %v4692_v62 = vadd.f32 %v17273_v54, %v4691_v41  ;;  %v8675_v46 = vmax.f32 %v4689_v37, 0.0 }
 0x1fc   : > { %v8678_v45 = vmax.f32 %v4700_v8, 0.0  ;;  %15045 = vmatmul.mubr.bf16.gmra.mrb[144].mxu0 %v16217_v33  ;;  %15817 = vmatmul.mubr.bf16.gmra.mrb[144].mxu1 %v16218_v36  ;;  %v16232_v33 = vld [vmem:[%s17145_s25 + $0xe90] sm:$0xff]  }
 0x1fd   : > { %v8676_v47 = vmax.f32 %v4692_v62, 0.0  ;;  %15048 = vmatprep.mubr.bf16.mxu0 %v16219_v39  ;;  %15820 = vmatprep.mubr.bf16.mxu1 %v16220_v40 }
 0x1fe   : > { %v17383_v48 = vpack.c.bf16 %v8678_v45, %v8677_v42  ;;  %v16233_v42 = vld [vmem:[%s17145_s25 + $0x288] sm:$0xff]   ;;  %v17422_v45 = vld [vmem:[#allocation8] ss:$0 sm:$0xff] }
 0x1ff   : > { %v17385_v49 = vpack.c.bf16 %v8676_v47, %v8675_v46  ;;  %v14942_v50 = vpop.f32.mrb[40].mxu0  ;;  %v16234_v47 = vld [vmem:[%s17145_s25 + $0xe98] sm:$0xff]  }
 0x200   : > { %v4713_v7 = vadd.f32 %v14942_v50, %v17273_v54  ;;  %v4704_v52 = vpop.f32.mrb[41].mxu0 }
 0x201   : > { %v4705_v55 = vadd.f32 %v17273_v54, %v4704_v52  ;;  %v14943_v56 = vpop.f32.mrb[42].mxu0  ;;  %v16236_v52 = vld [vmem:[%s17145_s25 + $0xea0] sm:$0xff]  }
 0x202   : > { %v4716_v59 = vadd.f32 %v14943_v56, %v17273_v54  ;;  %v4707_v26 = vpop.f32.mrb[43].mxu0  ;;  %v8681_v61 = vmax.f32 %v4713_v7, 0.0  ;;  %v16235_v7 = vld [vmem:[%s17145_s25 + $0x290] sm:$0xff]  }
 0x203   : > { %v4708_v60 = vadd.f32 %v17273_v54, %v4707_v26  ;;  %v8679_v1 = vmax.f32 %v4705_v55, 0.0 }
 0x204   : > { %v8682_v0 = vmax.f32 %v4716_v59, 0.0  ;;  %15049 = vmatmul.mubr.bf16.gmra.mrb[148].mxu0 %v16221_v51  ;;  %15821 = vmatmul.mubr.bf16.gmra.mrb[148].mxu1 %v16222_v53 }
 0x205   : > { %v8680_v2 = vmax.f32 %v4708_v60, 0.0  ;;  %15052 = vmatprep.mubr.bf16.mxu0 %v16223_v57  ;;  %15824 = vmatprep.mubr.bf16.mxu1 %v16224_v58 }
 0x206   : > { %v17395_v3 = vpack.c.bf16 %v8682_v0, %v8681_v61  ;;  %v16237_v0 = vld [vmem:[%s17145_s25 + $0x298] sm:$0xff]  }
 0x207   : > { %v17397_v4 = vpack.c.bf16 %v8680_v2, %v8679_v1  ;;  %v14946_v5 = vpop.f32.mrb[44].mxu0 }
 0x208   : > { %v4729_v25 = vadd.f32 %v14946_v5, %v17273_v54  ;;  %v4720_v9 = vpop.f32.mrb[45].mxu0 }
 0x209   : > { %v4721_v11 = vadd.f32 %v17273_v54, %v4720_v9  ;;  %v14947_v12 = vpop.f32.mrb[46].mxu0 }
 0x20a   : > { %v4732_v15 = vadd.f32 %v14947_v12, %v17273_v54  ;;  %v4723_v44 = vpop.f32.mrb[47].mxu0  ;;  %v8685_v17 = vmax.f32 %v4729_v25, 0.0 }
 0x20b   : > { %v4724_v16 = vadd.f32 %v17273_v54, %v4723_v44  ;;  %v8683_v19 = vmax.f32 %v4721_v11, 0.0  ;;  %v16240_v11 = vld [vmem:[%s17145_s25 + $0xeb0] sm:$0xff]  }
 0x20c   : > { %v8686_v18 = vmax.f32 %v4732_v15, 0.0  ;;  %15053 = vmatmul.mubr.bf16.gmra.mrb[152].mxu0 %v16225_v6  ;;  %15825 = vmatmul.mubr.bf16.gmra.mrb[152].mxu1 %v16226_v10  ;;  %v16238_v6 = vld [vmem:[%s17145_s25 + $0xea8] sm:$0xff]   ;;  %v16239_v10 = vld [vmem:[%s17145_s25 + $0x2a0] sm:$0xff]  }
 0x20d   : > { %v8684_v20 = vmax.f32 %v4724_v16, 0.0  ;;  %15056 = vmatprep.mubr.bf16.mxu0 %v16227_v13  ;;  %15828 = vmatprep.mubr.bf16.mxu1 %v16228_v14 }
 0x20e   : > { %v17407_v21 = vpack.c.bf16 %v8686_v18, %v8685_v17 }
 0x20f   : > { %v17409_v22 = vpack.c.bf16 %v8684_v20, %v8683_v19  ;;  %v14950_v23 = vpop.f32.mrb[48].mxu0  ;;  %v16241_v20 = vld [vmem:[%s17145_s25 + $0x2a8] sm:$0xff]  }
 0x210   : > { %v4745_v43 = vadd.f32 %v14950_v23, %v17273_v54  ;;  %v4736_v27 = vpop.f32.mrb[49].mxu0 }
 0x211   : > { %v4737_v29 = vadd.f32 %v17273_v54, %v4736_v27  ;;  %v14951_v30 = vpop.f32.mrb[50].mxu0  ;;  %v16242_v27 = vld [vmem:[%s17145_s25 + $0xeb8] sm:$0xff]  }
 0x212   : > { %v4748_v34 = vadd.f32 %v14951_v30, %v17273_v54  ;;  %v4739_v35 = vpop.f32.mrb[51].mxu0  ;;  %v8689_v37 = vmax.f32 %v4745_v43, 0.0  ;;  %v16243_v30 = vld [vmem:[%s17145_s25 + $0x2b0] sm:$0xff]  }
 0x213   : > { %v4740_v36 = vadd.f32 %v17273_v54, %v4739_v35  ;;  %v8687_v39 = vmax.f32 %v4737_v29, 0.0 }
 0x214   : > { %v8690_v38 = vmax.f32 %v4748_v34, 0.0  ;;  %15057 = vmatmul.mubr.bf16.gmra.mrb[156].mxu0 %v16229_v24  ;;  %15829 = vmatmul.mubr.bf16.gmra.mrb[156].mxu1 %v16230_v28 }
 0x215   : > { %v8688_v40 = vmax.f32 %v4740_v36, 0.0  ;;  %15060 = vmatprep.mubr.bf16.mxu0 %v16231_v63  ;;  %15832 = vmatprep.mubr.bf16.mxu1 %v16232_v33  ;;  %v16244_v63 = vld [vmem:[%s17145_s25 + $0xec0] sm:$0xff]  }
 0x216   : > { %v17419_v8 = vpack.c.bf16 %v8690_v38, %v8689_v37 }
 0x217   : > { %v14954_v41 = vpop.f32.mrb[52].mxu0  ;;  %v9815_v62 = vpack.c.bf16 %v8688_v40, %v8687_v39 }
 0x218   : > { %v4761_v54 = vadd.f32 %v17422_v45, %v14954_v41  ;;  %v4752_v46 = vpop.f32.mrb[53].mxu0 }
 0x219   : > { %v4753_v50 = vadd.f32 %v17422_v45, %v4752_v46  ;;  %v14955_v51 = vpop.f32.mrb[54].mxu0  ;;  %14006 = vmatprep.subr.bf16.mxu1 %v9815_v62  ;;  %v16245_v62 = vld [vmem:[%s17145_s25 + $0x2b8] sm:$0xff]  }
 0x21a   : > { %v4764_v53 = vadd.f32 %v17422_v45, %v14955_v51  ;;  %v4755_v55 = vpop.f32.mrb[55].mxu0  ;;  %v8693_v57 = vmax.f32 %v4761_v54, 0.0 }
 0x21b   : > { %v4756_v56 = vadd.f32 %v17422_v45, %v4755_v55  ;;  %v8691_v59 = vmax.f32 %v4753_v50, 0.0 }
 0x21c   : > { %v8694_v58 = vmax.f32 %v4764_v53, 0.0  ;;  %15061 = vmatmul.mubr.bf16.gmra.mrb[160].mxu0 %v16233_v42  ;;  %15833 = vmatmul.mubr.bf16.gmra.mrb[160].mxu1 %v16234_v47  ;;  %v16246_v47 = vld [vmem:[%s17145_s25 + $0xec8] sm:$0xff]  }
 0x21d   : > { %v8692_v26 = vmax.f32 %v4756_v56, 0.0  ;;  %15064 = vmatprep.mubr.bf16.mxu0 %v16235_v7  ;;  %15836 = vmatprep.mubr.bf16.mxu1 %v16236_v52  ;;  %v16247_v7 = vld [vmem:[%s17145_s25 + $0x2c0] sm:$0xff]   ;;  %v16248_v52 = vld [vmem:[%s17145_s25 + $0xed0] sm:$0xff]  }
 0x21e   : > { %v17431_v60 = vpack.c.bf16 %v8694_v58, %v8693_v57 }
 0x21f   : > { %v14958_v61 = vpop.f32.mrb[56].mxu0  ;;  %v17434_v1 = vpack.c.bf16 %v8692_v26, %v8691_v59 }
 0x220   : > { %v4777_v2 = vadd.f32 %v17422_v45, %v14958_v61  ;;  %v4768_v5 = vpop.f32.mrb[57].mxu0 }
 0x221   : > { %v4769_v25 = vadd.f32 %v17422_v45, %v4768_v5  ;;  %v14959_v9 = vpop.f32.mrb[58].mxu0  ;;  %v16249_v5 = vld [vmem:[%s17145_s25 + $0x2c8] sm:$0xff]  }
 0x222   : > { %v4780_v12 = vadd.f32 %v17422_v45, %v14959_v9  ;;  %v4771_v13 = vpop.f32.mrb[59].mxu0  ;;  %v8697_v15 = vmax.f32 %v4777_v2, 0.0  ;;  %v16250_v9 = vld [vmem:[%s17145_s25 + $0xed8] sm:$0xff]  }
 0x223   : > { %v4772_v14 = vadd.f32 %v17422_v45, %v4771_v13  ;;  %v8695_v16 = vmax.f32 %v4769_v25, 0.0  ;;  %v16252_v13 = vld [vmem:[%s17145_s25 + $0xee0] sm:$0xff]  }
 0x224   : > { %v8698_v44 = vmax.f32 %v4780_v12, 0.0  ;;  %15065 = vmatmul.mubr.bf16.gmra.mrb[164].mxu0 %v16237_v0  ;;  %15837 = vmatmul.mubr.bf16.gmra.mrb[164].mxu1 %v16238_v6  ;;  %v16251_v12 = vld [vmem:[%s17145_s25 + $0x2d0] sm:$0xff]  }
 0x225   : > { %v8696_v17 = vmax.f32 %v4772_v14, 0.0  ;;  %15068 = vmatprep.mubr.bf16.mxu0 %v16239_v10  ;;  %15840 = vmatprep.mubr.bf16.mxu1 %v16240_v11 }
 0x226   : > { %v17443_v18 = vpack.c.bf16 %v8698_v44, %v8697_v15 }
 0x227   : > { %v14962_v19 = vpop.f32.mrb[60].mxu0  ;;  %v17446_v23 = vpack.c.bf16 %v8696_v17, %v8695_v16 }
 0x228   : > { %v4793_v24 = vadd.f32 %v17422_v45, %v14962_v19  ;;  %v4784_v43 = vpop.f32.mrb[61].mxu0 }
 0x229   : > { %v4785_v28 = vadd.f32 %v17422_v45, %v4784_v43  ;;  %v14963_v29 = vpop.f32.mrb[62].mxu0 }
 0x22a   : > { %v4796_v33 = vadd.f32 %v17422_v45, %v14963_v29  ;;  %v4787_v34 = vpop.f32.mrb[63].mxu0  ;;  %v8701_v36 = vmax.f32 %v4793_v24, 0.0 }
 0x22b   : > { %v4788_v35 = vadd.f32 %v17422_v45, %v4787_v34  ;;  %v8699_v38 = vmax.f32 %v4785_v28, 0.0  ;;  %v16253_v28 = vld [vmem:[%s17145_s25 + $0x2d8] sm:$0xff]  }
 0x22c   : > { %v8702_v37 = vmax.f32 %v4796_v33, 0.0  ;;  %15069 = vmatmul.mubr.bf16.gmra.mrb[168].mxu0 %v16241_v20  ;;  %15841 = vmatmul.mubr.bf16.gmra.mrb[168].mxu1 %v16242_v27 }
 0x22d   : > { %v8700_v39 = vmax.f32 %v4788_v35, 0.0  ;;  %15072 = vmatprep.mubr.bf16.mxu0 %v16243_v30  ;;  %15844 = vmatprep.mubr.bf16.mxu1 %v16244_v63  ;;  %v16254_v63 = vld [vmem:[%s17145_s25 + $0xee8] sm:$0xff]   ;;  %v16255_v35 = vld [vmem:[%s17145_s25 + $0x2e0] sm:$0xff]  }
 0x22e   : > { %v17455_v40 = vpack.c.bf16 %v8702_v37, %v8701_v36  ;;  %v16256_v36 = vld [vmem:[%s17145_s25 + $0xef0] sm:$0xff]  }
 0x22f   : > { %v14966_v41 = vpop.f32.mrb[64].mxu0  ;;  %v17458_v42 = vpack.c.bf16 %v8700_v39, %v8699_v38 }
 0x230   : > { %v4809_v54 = vadd.f32 %v17422_v45, %v14966_v41  ;;  %v4800_v46 = vpop.f32.mrb[65].mxu0 }
 0x231   : > { %v4801_v50 = vadd.f32 %v17422_v45, %v4800_v46  ;;  %v14967_v51 = vpop.f32.mrb[66].mxu0 }
 0x232   : > { %v4812_v53 = vadd.f32 %v17422_v45, %v14967_v51  ;;  %v4803_v55 = vpop.f32.mrb[67].mxu0  ;;  %v8705_v57 = vmax.f32 %v4809_v54, 0.0 }
 0x233   : > { %v4804_v56 = vadd.f32 %v17422_v45, %v4803_v55  ;;  %v8703_v59 = vmax.f32 %v4801_v50, 0.0  ;;  %v16258_v55 = vld [vmem:[%s17145_s25 + $0xef8] sm:$0xff]  }
 0x234   : > { %v8706_v58 = vmax.f32 %v4812_v53, 0.0  ;;  %15073 = vmatmul.mubr.bf16.gmra.mrb[172].mxu0 %v16245_v62  ;;  %15845 = vmatmul.mubr.bf16.gmra.mrb[172].mxu1 %v16246_v47 }
 0x235   : > { %v8704_v26 = vmax.f32 %v4804_v56, 0.0  ;;  %15076 = vmatprep.mubr.bf16.mxu0 %v16247_v7  ;;  %15848 = vmatprep.mubr.bf16.mxu1 %v16248_v52  ;;  %v16257_v7 = vld [vmem:[%s17145_s25 + $0x2e8] sm:$0xff]  }
 0x236   : > { %v17467_v61 = vpack.c.bf16 %v8706_v58, %v8705_v57  ;;  %v16259_v58 = vld [vmem:[%s17145_s25 + $0x2f0] sm:$0xff]  }
 0x237   : > { %v17469_v0 = vpack.c.bf16 %v8704_v26, %v8703_v59  ;;  %v14970_v2 = vpop.f32.mrb[68].mxu0  ;;  %v16260_v59 = vld [vmem:[%s17145_s25 + $0xf00] sm:$0xff]  }
 0x238   : > { %v4825_v6 = vadd.f32 %v17422_v45, %v14970_v2  ;;  %v4816_v25 = vpop.f32.mrb[69].mxu0 }
 0x239   : > { %v4817_v10 = vadd.f32 %v17422_v45, %v4816_v25  ;;  %v14971_v11 = vpop.f32.mrb[70].mxu0 }
 0x23a   : > { %v4828_v14 = vadd.f32 %v17422_v45, %v14971_v11  ;;  %v4819_v15 = vpop.f32.mrb[71].mxu0  ;;  %v8709_v16 = vmax.f32 %v4825_v6, 0.0 }
 0x23b   : > { %v4820_v44 = vadd.f32 %v17422_v45, %v4819_v15  ;;  %v8707_v19 = vmax.f32 %v4817_v10, 0.0 }
 0x23c   : > { %v8710_v17 = vmax.f32 %v4828_v14, 0.0  ;;  %15077 = vmatmul.mubr.bf16.gmra.mrb[176].mxu0 %v16249_v5  ;;  %15849 = vmatmul.mubr.bf16.gmra.mrb[176].mxu1 %v16250_v9  ;;  %v16261_v14 = vld [vmem:[%s17145_s25 + $0x2f8] sm:$0xff]  }
 0x23d   : > { %v8708_v20 = vmax.f32 %v4820_v44, 0.0  ;;  %15080 = vmatprep.mubr.bf16.mxu0 %v16251_v12  ;;  %15852 = vmatprep.mubr.bf16.mxu1 %v16252_v13 }
 0x23e   : > { %v17479_v24 = vpack.c.bf16 %v8710_v17, %v8709_v16  ;;  %v16262_v16 = vld [vmem:[%s17145_s25 + $0xf08] sm:$0xff]   ;;  %v16263_v17 = vld [vmem:[%s17145_s25 + $0x300] sm:$0xff]  }
 0x23f   : > { %v17481_v43 = vpack.c.bf16 %v8708_v20, %v8707_v19  ;;  %v14974_v27 = vpop.f32.mrb[72].mxu0 }
 0x240   : > { %v4841_v29 = vadd.f32 %v17422_v45, %v14974_v27  ;;  %v4832_v30 = vpop.f32.mrb[73].mxu0  ;;  %v16264_v27 = vld [vmem:[%s17145_s25 + $0xf10] sm:$0xff]  }
 0x241   : > { %v4833_v33 = vadd.f32 %v17422_v45, %v4832_v30  ;;  %v14975_v34 = vpop.f32.mrb[74].mxu0 }
 0x242   : > { %v4844_v37 = vadd.f32 %v17422_v45, %v14975_v34  ;;  %v4835_v38 = vpop.f32.mrb[75].mxu0  ;;  %v8713_v41 = vmax.f32 %v4841_v29, 0.0 }
 0x243   : > { %v4836_v39 = vadd.f32 %v17422_v45, %v4835_v38  ;;  %v8711_v54 = vmax.f32 %v4833_v33, 0.0 }
 0x244   : > { %v8714_v62 = vmax.f32 %v4844_v37, 0.0  ;;  %15081 = vmatmul.mubr.bf16.gmra.mrb[180].mxu0 %v16253_v28  ;;  %15853 = vmatmul.mubr.bf16.gmra.mrb[180].mxu1 %v16254_v63 }
 0x245   : > { %v8712_v46 = vmax.f32 %v4836_v39, 0.0  ;;  %15084 = vmatprep.mubr.bf16.mxu0 %v16255_v35  ;;  %15856 = vmatprep.mubr.bf16.mxu1 %v16256_v36  ;;  %v16265_v36 = vld [vmem:[%s17145_s25 + $0x308] sm:$0xff]   ;;  %v16266_v39 = vld [vmem:[%s17145_s25 + $0xf18] sm:$0xff]  }
 0x246   : > { %v17491_v47 = vpack.c.bf16 %v8714_v62, %v8713_v41 }
 0x247   : > { %v17493_v50 = vpack.c.bf16 %v8712_v46, %v8711_v54  ;;  %v14978_v51 = vpop.f32.mrb[76].mxu0  ;;  %v16267_v46 = vld [vmem:[%s17145_s25 + $0x310] sm:$0xff]  }
 0x248   : > { %v4857_v52 = vadd.f32 %v17422_v45, %v14978_v51  ;;  %v4848_v53 = vpop.f32.mrb[77].mxu0 }
 0x249   : > { %v4849_v56 = vadd.f32 %v17422_v45, %v4848_v53  ;;  %v14979_v57 = vpop.f32.mrb[78].mxu0 }
 0x24a   : > { %v4860_v26 = vadd.f32 %v17422_v45, %v14979_v57  ;;  %v4851_v2 = vpop.f32.mrb[79].mxu0  ;;  %v8717_v6 = vmax.f32 %v4857_v52, 0.0  ;;  %v16268_v52 = vld [vmem:[%s17145_s25 + $0xf20] sm:$0xff]  }
 0x24b   : > { %v4852_v5 = vadd.f32 %v17422_v45, %v4851_v2  ;;  %v8715_v9 = vmax.f32 %v4849_v56, 0.0  ;;  %v16269_v2 = vld [vmem:[%s17145_s25 + $0x318] sm:$0xff]  }
 0x24c   : > { %v8718_v25 = vmax.f32 %v4860_v26, 0.0  ;;  %15085 = vmatmul.mubr.bf16.gmra.mrb[184].mxu0 %v16257_v7  ;;  %15857 = vmatmul.mubr.bf16.gmra.mrb[184].mxu1 %v16258_v55 }
 0x24d   : > { %v8716_v10 = vmax.f32 %v4852_v5, 0.0  ;;  %15088 = vmatprep.mubr.bf16.mxu0 %v16259_v58  ;;  %15860 = vmatprep.mubr.bf16.mxu1 %v16260_v59 }
 0x24e   : > { %v17503_v11 = vpack.c.bf16 %v8718_v25, %v8717_v6  ;;  %v16270_v25 = vld [vmem:[%s17145_s25 + $0xf28] sm:$0xff]  }
 0x24f   : > { %v17505_v12 = vpack.c.bf16 %v8716_v10, %v8715_v9  ;;  %v14982_v13 = vpop.f32.mrb[80].mxu0 }
 0x250   : > { %v4873_v15 = vadd.f32 %v17422_v45, %v14982_v13  ;;  %v4864_v44 = vpop.f32.mrb[81].mxu0 }
 0x251   : > { %v4865_v19 = vadd.f32 %v17422_v45, %v4864_v44  ;;  %v14983_v20 = vpop.f32.mrb[82].mxu0 }
 0x252   : > { %v4876_v28 = vadd.f32 %v17422_v45, %v14983_v20  ;;  %v4867_v29 = vpop.f32.mrb[83].mxu0  ;;  %v8721_v63 = vmax.f32 %v4873_v15, 0.0 }
 0x253   : > { %v4868_v30 = vadd.f32 %v17422_v45, %v4867_v29  ;;  %v8719_v34 = vmax.f32 %v4865_v19, 0.0 }
 0x254   : > { %v8722_v33 = vmax.f32 %v4876_v28, 0.0  ;;  %15089 = vmatmul.mubr.bf16.gmra.mrb[188].mxu0 %v16261_v14  ;;  %15861 = vmatmul.mubr.bf16.gmra.mrb[188].mxu1 %v16262_v16  ;;  %v16271_v14 = vld [vmem:[%s17145_s25 + $0x320] sm:$0xff]   ;;  %v16272_v16 = vld [vmem:[%s17145_s25 + $0xf30] sm:$0xff]  }
 0x255   : > { %v8720_v35 = vmax.f32 %v4868_v30, 0.0  ;;  %15092 = vmatprep.mubr.bf16.mxu0 %v16263_v17  ;;  %15864 = vmatprep.mubr.bf16.mxu1 %v16264_v27 }
 0x256   : > { %v17516_v37 = vpack.c.bf16 %v8722_v33, %v8721_v63 }
 0x257   : > { %v14986_v38 = vpop.f32.mrb[84].mxu0  ;;  %v17519_v41 = vpack.c.bf16 %v8720_v35, %v8719_v34  ;;  %v16273_v34 = vld [vmem:[%s17145_s25 + $0x328] sm:$0xff]  }
 0x258   : > { %v4889_v62 = vadd.f32 %v17422_v45, %v14986_v38  ;;  %v4880_v54 = vpop.f32.mrb[85].mxu0 }
 0x259   : > { %v4881_v51 = vadd.f32 %v17422_v45, %v4880_v54  ;;  %v14987_v7 = vpop.f32.mrb[86].mxu0 }
 0x25a   : > { %v4892_v53 = vadd.f32 %v17422_v45, %v14987_v7  ;;  %v4883_v55 = vpop.f32.mrb[87].mxu0  ;;  %v8725_v57 = vmax.f32 %v4889_v62, 0.0 }
 0x25b   : > { %v4884_v56 = vadd.f32 %v17422_v45, %v4883_v55  ;;  %v8723_v59 = vmax.f32 %v4881_v51, 0.0  ;;  %v16276_v51 = vld [vmem:[%s17145_s25 + $0xf40] sm:$0xff]  }
 0x25c   : > { %v8726_v58 = vmax.f32 %v4892_v53, 0.0  ;;  %15093 = vmatmul.mubr.bf16.gmra.mrb[192].mxu0 %v16265_v36  ;;  %15865 = vmatmul.mubr.bf16.gmra.mrb[192].mxu1 %v16266_v39  ;;  %v16274_v39 = vld [vmem:[%s17145_s25 + $0xf38] sm:$0xff]   ;;  %v15674_v53 = vpop.f32.mrb[0].mxu1 }
 0x25d   : > { %v8724_v26 = vmax.f32 %v4884_v56, 0.0  ;;  %15096 = vmatprep.mubr.bf16.mxu0 %v16267_v46  ;;  %15868 = vmatprep.mubr.bf16.mxu1 %v16268_v52  ;;  %v16275_v46 = vld [vmem:[%s17145_s25 + $0x330] sm:$0xff]  }
 0x25e   : > { %v17528_v5 = vpack.c.bf16 %v8726_v58, %v8725_v57  ;;  %v7632_v58 = vpop.f32.mrb[1].mxu1 }
 0x25f   : > { %v14990_v6 = vpop.f32.mrb[88].mxu0  ;;  %v17531_v9 = vpack.c.bf16 %v8724_v26, %v8723_v59  ;;  %v7641_v26 = vadd.f32 %v17422_v45, %v15674_v53 }
 0x260   : > { %v4905_v10 = vadd.f32 %v17422_v45, %v14990_v6  ;;  %v4896_v13 = vpop.f32.mrb[89].mxu0 }
 0x261   : > { %v4897_v15 = vadd.f32 %v17422_v45, %v4896_v13  ;;  %v14991_v44 = vpop.f32.mrb[90].mxu0 }
 0x262   : > { %v4908_v17 = vadd.f32 %v17422_v45, %v14991_v44  ;;  %v4899_v19 = vpop.f32.mrb[91].mxu0  ;;  %v8729_v27 = vmax.f32 %v4905_v10, 0.0 }
 0x263   : > { %v4900_v20 = vadd.f32 %v17422_v45, %v4899_v19  ;;  %v8727_v29 = vmax.f32 %v4897_v15, 0.0  ;;  %v9413_v15 = vmax.f32 %v7641_v26, 0.0  ;;  %v16278_v19 = vld [vmem:[%s17145_s25 + $0xf48] sm:$0xff]  }
 0x264   : > { %v8730_v28 = vmax.f32 %v4908_v17, 0.0  ;;  %15097 = vmatmul.mubr.bf16.gmra.mrb[196].mxu0 %v16269_v2  ;;  %15869 = vmatmul.mubr.bf16.gmra.mrb[196].mxu1 %v16270_v25  ;;  %v15675_v2 = vpop.f32.mrb[2].mxu1  ;;  %v7633_v25 = vadd.f32 %v17422_v45, %v7632_v58 }
 0x265   : > { %v8728_v30 = vmax.f32 %v4900_v20, 0.0  ;;  %15100 = vmatprep.mubr.bf16.mxu0 %v16271_v14  ;;  %15872 = vmatprep.mubr.bf16.mxu1 %v16272_v16  ;;  %v7644_v10 = vadd.f32 %v17422_v45, %v15675_v2  ;;  %v7635_v13 = vpop.f32.mrb[3].mxu1  ;;  %v16277_v14 = vld [vmem:[%s17145_s25 + $0x338] sm:$0xff]  }
 0x266   : > { %v17539_v63 = vpack.c.bf16 %v8730_v28, %v8729_v27  ;;  %v7636_v44 = vadd.f32 %v17422_v45, %v7635_v13  ;;  %v9411_v20 = vmax.f32 %v7633_v25, 0.0  ;;  %v16282_v25 = vld [vmem:[%s17145_s25 + $0xf58] sm:$0xff]  }
 0x267   : > { %v14994_v33 = vpop.f32.mrb[92].mxu0  ;;  %v17542_v35 = vpack.c.bf16 %v8728_v30, %v8727_v29  ;;  %v9414_v27 = vmax.f32 %v7644_v10, 0.0 }
 0x268   : > { %v4921_v36 = vadd.f32 %v17422_v45, %v14994_v33  ;;  %v4912_v38 = vpop.f32.mrb[93].mxu0  ;;  %v9412_v33 = vmax.f32 %v7636_v44, 0.0  ;;  %v16283_v44 = vld [vmem:[%s17145_s25 + $0x350] sm:$0xff]  }
 0x269   : > { %v4913_v62 = vadd.f32 %v17422_v45, %v4912_v38  ;;  %v14995_v54 = vpop.f32.mrb[94].mxu0  ;;  %v16279_v38 = vld [vmem:[%s17145_s25 + $0x340] sm:$0xff]  }
 0x26a   : > { %v4924_v7 = vadd.f32 %v17422_v45, %v14995_v54  ;;  %v4915_v52 = vpop.f32.mrb[95].mxu0  ;;  %v8733_v55 = vmax.f32 %v4921_v36, 0.0 }
 0x26b   : > { %v8731_v56 = vmax.f32 %v4913_v62, 0.0  ;;  %v4916_v57 = vadd.f32 %v17422_v45, %v4915_v52  ;;  %v17565_v62 = vpack.c.bf16 %v9414_v27, %v9413_v15 }
 0x26c   : > { %v8734_v59 = vmax.f32 %v4924_v7, 0.0  ;;  %15101 = vmatmul.mubr.bf16.gmra.mrb[200].mxu0 %v16273_v34  ;;  %15873 = vmatmul.mubr.bf16.gmra.mrb[200].mxu1 %v16274_v39  ;;  %v16280_v39 = vld [vmem:[%s17145_s25 + $0xf50] sm:$0xff]   ;;  %v15678_v7 = vpop.f32.mrb[4].mxu1 }
 0x26d   : > { %v8732_v6 = vmax.f32 %v4916_v57, 0.0  ;;  %15104 = vmatprep.mubr.bf16.mxu0 %v16275_v46  ;;  %15876 = vmatprep.mubr.bf16.mxu1 %v16276_v51  ;;  %20547 = vst [vmem:[#allocation19_spill] sm:$0xff] %v17565_v62  ;;  %v17568_v51 = vpack.c.bf16 %v9412_v33, %v9411_v20  ;;  %v7657_v10 = vadd.f32 %v17422_v45, %v15678_v7 }
 0x26e   : > { %v17556_v16 = vpack.c.bf16 %v8734_v59, %v8733_v55 }
 0x26f   : > { %v14998_v17 = vpop.f32.mrb[96].mxu0  ;;  %v17559_v28 = vpack.c.bf16 %v8732_v6, %v8731_v56  ;;  %20548 = vst [vmem:[#allocation20_spill] sm:$0xff] %v17568_v51  ;;  %v7648_v56 = vpop.f32.mrb[5].mxu1  ;;  %v16281_v6 = vld [vmem:[%s17145_s25 + $0x348] sm:$0xff]  }
 0x270   : > { %v4937_v29 = vadd.f32 %v17422_v45, %v14998_v17  ;;  %v4928_v30 = vpop.f32.mrb[97].mxu0  ;;  %v15679_v58 = vpop.f32.mrb[6].mxu1  ;;  %v16284_v17 = vld [vmem:[%s17145_s25 + $0xf60] sm:$0xff]   ;;  %v7649_v20 = vadd.f32 %v17422_v45, %v7648_v56  ;;  %v16302_v51 = vld [vmem:[%s17145_s25 + $0xfa8] sm:$0xff]  }
 0x271   : > { %v4929_v34 = vadd.f32 %v17422_v45, %v4928_v30  ;;  %v14999_v36 = vpop.f32.mrb[98].mxu0  ;;  %v7651_v26 = vpop.f32.mrb[7].mxu1  ;;  %v9417_v30 = vmax.f32 %v7657_v10, 0.0 }
 0x272   : > { %v4940_v54 = vadd.f32 %v17422_v45, %v14999_v36  ;;  %v4931_v46 = vpop.f32.mrb[99].mxu0  ;;  %v8737_v52 = vmax.f32 %v4937_v29, 0.0  ;;  %v9415_v36 = vmax.f32 %v7649_v20, 0.0  ;;  %v16286_v20 = vld [vmem:[%s17145_s25 + $0xf68] sm:$0xff]  }
 0x273   : > { %v8735_v53 = vmax.f32 %v4929_v34, 0.0  ;;  %v4932_v55 = vadd.f32 %v17422_v45, %v4931_v46 }
 0x274   : > { %v8738_v57 = vmax.f32 %v4940_v54, 0.0  ;;  %15105 = vmatmul.mubr.bf16.gmra.mrb[204].mxu0 %v16277_v14  ;;  %15877 = vmatmul.mubr.bf16.gmra.mrb[204].mxu1 %v16278_v19  ;;  %v7660_v14 = vadd.f32 %v17422_v45, %v15679_v58  ;;  %v7652_v19 = vadd.f32 %v17422_v45, %v7651_v26  ;;  %v16285_v26 = vld [vmem:[%s17145_s25 + $0x358] sm:$0xff]  }
 0x275   : > { %v8736_v59 = vmax.f32 %v4932_v55, 0.0  ;;  %15108 = vmatprep.mubr.bf16.mxu0 %v16279_v38  ;;  %15880 = vmatprep.mubr.bf16.mxu1 %v16280_v39 }
 0x276   : > { %v17571_v2 = vpack.c.bf16 %v8738_v57, %v8737_v52  ;;  %v9418_v38 = vmax.f32 %v7660_v14, 0.0  ;;  %v9416_v39 = vmax.f32 %v7652_v19, 0.0 }
 0x277   : > { %v17576_v13 = vpack.c.bf16 %v8736_v59, %v8735_v53  ;;  %v15002_v15 = vpop.f32.mrb[100].mxu0 }
 0x278   : > { %v4953_v27 = vadd.f32 %v17422_v45, %v15002_v15  ;;  %v4944_v29 = vpop.f32.mrb[101].mxu0  ;;  %v17587_v52 = vpack.c.bf16 %v9418_v38, %v9417_v30  ;;  %v17589_v53 = vpack.c.bf16 %v9416_v39, %v9415_v36  ;;  %v16288_v30 = vld [vmem:[%s17145_s25 + $0xf70] sm:$0xff]  }
 0x279   : > { %v4945_v33 = vadd.f32 %v17422_v45, %v4944_v29  ;;  %v15003_v34 = vpop.f32.mrb[102].mxu0  ;;  %v16287_v29 = vld [vmem:[%s17145_s25 + $0x360] sm:$0xff]  }
 0x27a   : > { %v4956_v54 = vadd.f32 %v17422_v45, %v15003_v34  ;;  %v4947_v46 = vpop.f32.mrb[103].mxu0  ;;  %20549 = vst [vmem:[#allocation21_spill] sm:$0xff] %v17587_v52  ;;  %20550 = vst [vmem:[#allocation22_spill] sm:$0xff] %v17589_v53  ;;  %v8741_v55 = vmax.f32 %v4953_v27, 0.0  ;;  %v17599_v27 = vld [vmem:[#allocation8] ss:$0 sm:$0xff] }
 0x27b   : > { %v4948_v7 = vadd.f32 %v17422_v45, %v4947_v46  ;;  %v8739_v57 = vmax.f32 %v4945_v33, 0.0 }
 0x27c   : > { %v8742_v56 = vmax.f32 %v4956_v54, 0.0  ;;  %15109 = vmatmul.mubr.bf16.gmra.mrb[208].mxu0 %v16281_v6  ;;  %15881 = vmatmul.mubr.bf16.gmra.mrb[208].mxu1 %v16282_v25 }
 0x27d   : > { %v8740_v58 = vmax.f32 %v4948_v7, 0.0  ;;  %15112 = vmatprep.mubr.bf16.mxu0 %v16283_v44  ;;  %15884 = vmatprep.mubr.bf16.mxu1 %v16284_v17  ;;  %v16289_v7 = vld [vmem:[%s17145_s25 + $0x368] sm:$0xff]  }
 0x27e   : > { %v17591_v59 = vpack.c.bf16 %v8742_v56, %v8741_v55 }
 0x27f   : > { %v17594_v10 = vpack.c.bf16 %v8740_v58, %v8739_v57  ;;  %v15006_v15 = vpop.f32.mrb[104].mxu0  ;;  %v16290_v57 = vld [vmem:[%s17145_s25 + $0xf78] sm:$0xff]  }
 0x280   : > { %v4969_v14 = vadd.f32 %v17422_v45, %v15006_v15  ;;  %v4960_v19 = vpop.f32.mrb[105].mxu0 }
 0x281   : > { %v4961_v6 = vadd.f32 %v17599_v27, %v4960_v19  ;;  %v15007_v25 = vpop.f32.mrb[106].mxu0 }
 0x282   : > { %v4972_v44 = vadd.f32 %v17599_v27, %v15007_v25  ;;  %v4963_v17 = vpop.f32.mrb[107].mxu0  ;;  %v8745_v34 = vmax.f32 %v4969_v14, 0.0  ;;  %v16292_v14 = vld [vmem:[%s17145_s25 + $0xf80] sm:$0xff]  }
 0x283   : > { %v4964_v33 = vadd.f32 %v17599_v27, %v4963_v17  ;;  %v8743_v45 = vmax.f32 %v4961_v6, 0.0 }
 0x284   : > { %v8746_v36 = vmax.f32 %v4972_v44, 0.0  ;;  %15113 = vmatmul.mubr.bf16.gmra.mrb[212].mxu0 %v16285_v26  ;;  %15885 = vmatmul.mubr.bf16.gmra.mrb[212].mxu1 %v16286_v20  ;;  %v16291_v26 = vld [vmem:[%s17145_s25 + $0x370] sm:$0xff]  }
 0x285   : > { %v8744_v38 = vmax.f32 %v4964_v33, 0.0  ;;  %15116 = vmatprep.mubr.bf16.mxu0 %v16287_v29  ;;  %15888 = vmatprep.mubr.bf16.mxu1 %v16288_v30  ;;  %v15682_v29 = vpop.f32.mrb[8].mxu1 }
 0x286   : > { %v17605_v39 = vpack.c.bf16 %v8746_v36, %v8745_v34  ;;  %v7664_v44 = vpop.f32.mrb[9].mxu1 }
 0x287   : > { %v17607_v54 = vpack.c.bf16 %v8744_v38, %v8743_v45  ;;  %v15010_v46 = vpop.f32.mrb[108].mxu0  ;;  %v15683_v33 = vpop.f32.mrb[10].mxu1  ;;  %v16293_v38 = vld [vmem:[%s17145_s25 + $0x378] sm:$0xff]  }
 0x288   : > { %20551 = vst [vmem:[#allocation23_spill] sm:$0xff] %v17605_v39  ;;  %v4985_v55 = vadd.f32 %v17599_v27, %v15010_v46  ;;  %v4976_v56 = vpop.f32.mrb[109].mxu0  ;;  %v7667_v36 = vpop.f32.mrb[11].mxu1  ;;  %v7673_v46 = vadd.f32 %v17599_v27, %v15682_v29  ;;  %v16324_v39 = vld [vmem:[%s17145_s25 + $0x3f8] sm:$0xff]  }
 0x289   : > { %v4977_v58 = vadd.f32 %v17599_v27, %v4976_v56  ;;  %v15011_v15 = vpop.f32.mrb[110].mxu0  ;;  %v17632_v62 = vpop.f32.mrb[12].mxu1 }
 0x28a   : > { %v4988_v20 = vadd.f32 %v17599_v27, %v15011_v15  ;;  %v4979_v19 = vpop.f32.mrb[111].mxu0  ;;  %v8749_v6 = vmax.f32 %v4985_v55, 0.0  ;;  %v7665_v15 = vadd.f32 %v17599_v27, %v7664_v44  ;;  %20554 = vst [vmem:[#allocation26_spill] sm:$0xff] %v17632_v62  ;;  %v16303_v62 = vld [vmem:[%s17145_s25 + $0x3a0] sm:$0xff]  }
 0x28b   : > { %v8747_v25 = vmax.f32 %v4977_v58, 0.0  ;;  %v4980_v30 = vadd.f32 %v17599_v27, %v4979_v19  ;;  %v16294_v58 = vld [vmem:[%s17145_s25 + $0xf88] sm:$0xff]  }
 0x28c   : > { %v8750_v17 = vmax.f32 %v4988_v20, 0.0  ;;  %15117 = vmatmul.mubr.bf16.gmra.mrb[216].mxu0 %v16289_v7  ;;  %15889 = vmatmul.mubr.bf16.gmra.mrb[216].mxu1 %v16290_v57  ;;  %v7676_v7 = vadd.f32 %v17599_v27, %v15683_v33  ;;  %v7668_v57 = vadd.f32 %v17599_v27, %v7667_v36  ;;  %v9421_v20 = vmax.f32 %v7673_v46, 0.0 }
 0x28d   : > { %v8748_v34 = vmax.f32 %v4980_v30, 0.0  ;;  %15120 = vmatprep.mubr.bf16.mxu0 %v16291_v26  ;;  %15892 = vmatprep.mubr.bf16.mxu1 %v16292_v14  ;;  %v16295_v30 = vld [vmem:[%s17145_s25 + $0x380] sm:$0xff]   ;;  %v9419_v29 = vmax.f32 %v7665_v15, 0.0 }
 0x28e   : > { %v17617_v45 = vpack.c.bf16 %v8750_v17, %v8749_v6  ;;  %v16296_v17 = vld [vmem:[%s17145_s25 + $0xf90] sm:$0xff]  }
 0x28f   : > { %v17621_v55 = vpack.c.bf16 %v8748_v34, %v8747_v25  ;;  %v15014_v56 = vpop.f32.mrb[112].mxu0  ;;  %v9422_v25 = vmax.f32 %v7676_v7, 0.0  ;;  %v9420_v34 = vmax.f32 %v7668_v57, 0.0 }
 0x290   : > { %20552 = vst [vmem:[#allocation24_spill] sm:$0xff] %v17617_v45  ;;  %v5001_v26 = vadd.f32 %v17599_v27, %v15014_v56  ;;  %v4992_v14 = vpop.f32.mrb[113].mxu0  ;;  %v16311_v45 = vld [vmem:[%s17145_s25 + $0x3c0] sm:$0xff]  }
 0x291   : > { %20553 = vst [vmem:[#allocation25_spill] sm:$0xff] %v17621_v55  ;;  %v4993_v19 = vadd.f32 %v17599_v27, %v4992_v14  ;;  %v15015_v6 = vpop.f32.mrb[114].mxu0  ;;  %v17635_v46 = vpack.c.bf16 %v9422_v25, %v9421_v20  ;;  %v17637_v56 = vpack.c.bf16 %v9420_v34, %v9419_v29  ;;  %v17639_v14 = vpop.f32.mrb[13].mxu1  ;;  %v16298_v29 = vld [vmem:[%s17145_s25 + $0xf98] sm:$0xff]   ;;  %v16315_v55 = vld [vmem:[%s17145_s25 + $0x3d0] sm:$0xff]  }
 0x292   : > { %v8753_v52 = vmax.f32 %v5001_v26, 0.0  ;;  %v5004_v53 = vadd.f32 %v17599_v27, %v15015_v6  ;;  %v4995_v44 = vpop.f32.mrb[115].mxu0  ;;  %20557 = vst [vmem:[#allocation29_spill] sm:$0xff] %v17639_v14  ;;  %v17641_v7 = vpop.f32.mrb[14].mxu1  ;;  %v16297_v6 = vld [vmem:[%s17145_s25 + $0x388] sm:$0xff]   ;;  %v16308_v14 = vld [vmem:[%s17145_s25 + $0xfc0] sm:$0xff]  }
 0x293   : > { %v8751_v33 = vmax.f32 %v4993_v19, 0.0  ;;  %v4996_v36 = vadd.f32 %v17599_v27, %v4995_v44  ;;  %20555 = vst [vmem:[#allocation27_spill] sm:$0xff] %v17635_v46  ;;  %20556 = vst [vmem:[#allocation28_spill] sm:$0xff] %v17637_v56  ;;  %v17643_v26 = vpop.f32.mrb[15].mxu1 }
 0x294   : > { %v8754_v15 = vmax.f32 %v5004_v53, 0.0  ;;  %15121 = vmatmul.mubr.bf16.gmra.mrb[220].mxu0 %v16293_v38  ;;  %15893 = vmatmul.mubr.bf16.gmra.mrb[220].mxu1 %v16294_v58  ;;  %20558 = vst [vmem:[#allocation30_spill] sm:$0xff] %v17641_v7  ;;  %20559 = vst [vmem:[#allocation31_spill] sm:$0xff] %v17643_v26  ;;  %v16299_v38 = vld [vmem:[%s17145_s25 + $0x390] sm:$0xff]  }
 0x295   : > { %v8752_v57 = vmax.f32 %v4996_v36, 0.0  ;;  %15124 = vmatprep.mubr.bf16.mxu0 %v16295_v30  ;;  %15896 = vmatprep.mubr.bf16.mxu1 %v16296_v17  ;;  %v16300_v30 = vld [vmem:[%s17145_s25 + $0xfa0] sm:$0xff]  }
 0x296   : > { %v17645_v19 = vpack.c.bf16 %v8754_v15, %v8753_v52 }
 0x297   : > { %v15018_v20 = vpop.f32.mrb[116].mxu0  ;;  %v17649_v25 = vpack.c.bf16 %v8752_v57, %v8751_v33 }
 0x298   : > { %v5017_v34 = vadd.f32 %v17599_v27, %v15018_v20  ;;  %v5008_v53 = vpop.f32.mrb[117].mxu0  ;;  %v16301_v20 = vld [vmem:[%s17145_s25 + $0x398] sm:$0xff]  }
 0x299   : > { %v5009_v58 = vadd.f32 %v17599_v27, %v5008_v53  ;;  %v15019_v44 = vpop.f32.mrb[118].mxu0 }
 0x29a   : > { %v5020_v17 = vadd.f32 %v17599_v27, %v15019_v44  ;;  %v5011_v36 = vpop.f32.mrb[119].mxu0  ;;  %v8757_v15 = vmax.f32 %v5017_v34, 0.0 }
 0x29b   : > { %v5012_v52 = vadd.f32 %v17599_v27, %v5011_v36  ;;  %v8755_v33 = vmax.f32 %v5009_v58, 0.0 }
 0x29c   : > { %v8758_v46 = vmax.f32 %v5020_v17, 0.0  ;;  %15125 = vmatmul.mubr.bf16.gmra.mrb[224].mxu0 %v16297_v6  ;;  %15897 = vmatmul.mubr.bf16.gmra.mrb[224].mxu1 %v16298_v29  ;;  %v16304_v29 = vld [vmem:[%s17145_s25 + $0xfb0] sm:$0xff]  }
 0x29d   : > { %v8756_v57 = vmax.f32 %v5012_v52, 0.0  ;;  %15128 = vmatprep.mubr.bf16.mxu0 %v16299_v38  ;;  %15900 = vmatprep.mubr.bf16.mxu1 %v16300_v30 }
 0x29e   : > { %v17658_v53 = vpack.c.bf16 %v8758_v46, %v8757_v15 }
 0x29f   : > { %v15022_v56 = vpop.f32.mrb[120].mxu0  ;;  %v17661_v7 = vpack.c.bf16 %v8756_v57, %v8755_v33  ;;  %v16305_v57 = vld [vmem:[%s17145_s25 + $0x3a8] sm:$0xff]  }
 0x2a0   : > { %v5033_v44 = vadd.f32 %v17599_v27, %v15022_v56  ;;  %v5024_v36 = vpop.f32.mrb[121].mxu0 }
 0x2a1   : > { %v5025_v34 = vadd.f32 %v17599_v27, %v5024_v36  ;;  %v15023_v6 = vpop.f32.mrb[122].mxu0 }
 0x2a2   : > { %v5036_v58 = vadd.f32 %v17599_v27, %v15023_v6  ;;  %v5027_v38 = vpop.f32.mrb[123].mxu0  ;;  %v8761_v30 = vmax.f32 %v5033_v44, 0.0 }
 0x2a3   : > { %v5028_v46 = vadd.f32 %v17599_v27, %v5027_v38  ;;  %v8759_v56 = vmax.f32 %v5025_v34, 0.0  ;;  %v16306_v38 = vld [vmem:[%s17145_s25 + $0xfb8] sm:$0xff]  }
 0x2a4   : > { %v8762_v17 = vmax.f32 %v5036_v58, 0.0  ;;  %15129 = vmatmul.mubr.bf16.gmra.mrb[228].mxu0 %v16301_v20  ;;  %15901 = vmatmul.mubr.bf16.gmra.mrb[228].mxu1 %v16302_v51  ;;  %v16307_v20 = vld [vmem:[%s17145_s25 + $0x3b0] sm:$0xff]  }
 0x2a5   : > { %v8760_v52 = vmax.f32 %v5028_v46, 0.0  ;;  %15132 = vmatprep.mubr.bf16.mxu0 %v16303_v62  ;;  %15904 = vmatprep.mubr.bf16.mxu1 %v16304_v29  ;;  %v17680_v62 = vpop.f32.mrb[16].mxu1 }
 0x2a6   : > { %v17669_v15 = vpack.c.bf16 %v8762_v17, %v8761_v30  ;;  %20561 = vst [vmem:[#allocation33_spill] sm:$0xff] %v17680_v62  ;;  %v17683_v17 = vpop.f32.mrb[17].mxu1 }
 0x2a7   : > { %v15026_v33 = vpop.f32.mrb[124].mxu0  ;;  %v17672_v36 = vpack.c.bf16 %v8760_v52, %v8759_v56  ;;  %20562 = vst [vmem:[#allocation34_spill] sm:$0xff] %v17683_v17 }
 0x2a8   : > { %20560 = vst [vmem:[#allocation32_spill] sm:$0xff] %v17669_v15  ;;  %v5049_v6 = vadd.f32 %v17599_v27, %v15026_v33  ;;  %v5040_v26 = vpop.f32.mrb[125].mxu0 }
 0x2a9   : > { %v5041_v44 = vadd.f32 %v17599_v27, %v5040_v26  ;;  %v15027_v58 = vpop.f32.mrb[126].mxu0  ;;  %v17685_v26 = vpop.f32.mrb[18].mxu1 }
 0x2aa   : > { %v5052_v51 = vadd.f32 %v17599_v27, %v15027_v58  ;;  %v5043_v34 = vpop.f32.mrb[127].mxu0  ;;  %v8765_v29 = vmax.f32 %v5049_v6, 0.0  ;;  %20563 = vst [vmem:[#allocation35_spill] sm:$0xff] %v17685_v26  ;;  %v17687_v33 = vpop.f32.mrb[19].mxu1  ;;  %v16312_v26 = vld [vmem:[%s17145_s25 + $0xfd0] sm:$0xff]  }
 0x2ab   : > { %v8763_v46 = vmax.f32 %v5041_v44, 0.0  ;;  %v5044_v30 = vadd.f32 %v17599_v27, %v5043_v34  ;;  %20564 = vst [vmem:[#allocation36_spill] sm:$0xff] %v17687_v33  ;;  %v16309_v44 = vld [vmem:[%s17145_s25 + $0x3b8] sm:$0xff]  }
 0x2ac   : > { %v8766_v56 = vmax.f32 %v5052_v51, 0.0  ;;  %15133 = vmatmul.mubr.bf16.gmra.mrb[232].mxu0 %v16305_v57  ;;  %15905 = vmatmul.mubr.bf16.gmra.mrb[232].mxu1 %v16306_v38  ;;  %v16310_v57 = vld [vmem:[%s17145_s25 + $0xfc8] sm:$0xff]  }
 0x2ad   : > { %v8764_v52 = vmax.f32 %v5044_v30, 0.0  ;;  %15136 = vmatprep.mubr.bf16.mxu0 %v16307_v20  ;;  %15908 = vmatprep.mubr.bf16.mxu1 %v16308_v14  ;;  %v17700_v30 = vpop.f32.mrb[20].mxu1 }
 0x2ae   : > { %v17689_v58 = vpack.c.bf16 %v8766_v56, %v8765_v29  ;;  %20567 = vst [vmem:[#allocation39_spill] sm:$0xff] %v17700_v30 }
 0x2af   : > { %v15030_v6 = vpop.f32.mrb[128].mxu0  ;;  %v17692_v34 = vpack.c.bf16 %v8764_v52, %v8763_v46  ;;  %v17703_v52 = vpop.f32.mrb[21].mxu1 }
 0x2b0   : > { %20565 = vst [vmem:[#allocation37_spill] sm:$0xff] %v17689_v58  ;;  %v5065_v17 = vadd.f32 %v17599_v27, %v15030_v6  ;;  %v5056_v51 = vpop.f32.mrb[129].mxu0  ;;  %20568 = vst [vmem:[#allocation40_spill] sm:$0xff] %v17703_v52 }
 0x2b1   : > { %20566 = vst [vmem:[#allocation38_spill] sm:$0xff] %v17692_v34  ;;  %v5057_v38 = vadd.f32 %v17599_v27, %v5056_v51  ;;  %v15031_v62 = vpop.f32.mrb[130].mxu0  ;;  %v17705_v51 = vpop.f32.mrb[22].mxu1  ;;  %v16320_v34 = vld [vmem:[%s17145_s25 + $0xff0] sm:$0xff]  }
 0x2b2   : > { %v5068_v20 = vadd.f32 %v17599_v27, %v15031_v62  ;;  %v5059_v14 = vpop.f32.mrb[131].mxu0  ;;  %v8769_v29 = vmax.f32 %v5065_v17, 0.0  ;;  %20569 = vst [vmem:[#allocation41_spill] sm:$0xff] %v17705_v51  ;;  %v17707_v62 = vpop.f32.mrb[23].mxu1  ;;  %v16316_v51 = vld [vmem:[%s17145_s25 + $0xfe0] sm:$0xff]  }
 0x2b3   : > { %v8767_v56 = vmax.f32 %v5057_v38, 0.0  ;;  %v5060_v46 = vadd.f32 %v17599_v27, %v5059_v14  ;;  %20570 = vst [vmem:[#allocation42_spill] sm:$0xff] %v17707_v62  ;;  %v16313_v14 = vld [vmem:[%s17145_s25 + $0x3c8] sm:$0xff]  }
 0x2b4   : > { %v8770_v6 = vmax.f32 %v5068_v20, 0.0  ;;  %15137 = vmatmul.mubr.bf16.gmra.mrb[236].mxu0 %v16309_v44  ;;  %15909 = vmatmul.mubr.bf16.gmra.mrb[236].mxu1 %v16310_v57  ;;  %v16314_v44 = vld [vmem:[%s17145_s25 + $0xfd8] sm:$0xff]  }
 0x2b5   : > { %v8768_v33 = vmax.f32 %v5060_v46, 0.0  ;;  %15140 = vmatprep.mubr.bf16.mxu0 %v16311_v45  ;;  %15912 = vmatprep.mubr.bf16.mxu1 %v16312_v26 }
 0x2b6   : > { %v17709_v30 = vpack.c.bf16 %v8770_v6, %v8769_v29 }
 0x2b7   : > { %v17711_v17 = vpack.c.bf16 %v8768_v33, %v8767_v56  ;;  %v15034_v38 = vpop.f32.mrb[132].mxu0 }
 0x2b8   : > { %20571 = vst [vmem:[#allocation43_spill] sm:$0xff] %v17709_v30  ;;  %v5081_v52 = vadd.f32 %v17599_v27, %v15034_v38  ;;  %v5072_v20 = vpop.f32.mrb[133].mxu0 }
 0x2b9   : > { %20572 = vst [vmem:[#allocation44_spill] sm:$0xff] %v17711_v17  ;;  %v5073_v57 = vadd.f32 %v17599_v27, %v5072_v20  ;;  %v15035_v58 = vpop.f32.mrb[134].mxu0  ;;  %v16317_v17 = vld [vmem:[%s17145_s25 + $0x3d8] sm:$0xff]  }
 0x2ba   : > { %v5084_v45 = vadd.f32 %v17599_v27, %v15035_v58  ;;  %v5075_v26 = vpop.f32.mrb[135].mxu0  ;;  %v8773_v33 = vmax.f32 %v5081_v52, 0.0 }
 0x2bb   : > { %v5076_v29 = vadd.f32 %v17599_v27, %v5075_v26  ;;  %v8771_v46 = vmax.f32 %v5073_v57, 0.0  ;;  %v16318_v26 = vld [vmem:[%s17145_s25 + $0xfe8] sm:$0xff]  }
 0x2bc   : > { %v8774_v56 = vmax.f32 %v5084_v45, 0.0  ;;  %15141 = vmatmul.mubr.bf16.gmra.mrb[240].mxu0 %v16313_v14  ;;  %15913 = vmatmul.mubr.bf16.gmra.mrb[240].mxu1 %v16314_v44  ;;  %v16319_v14 = vld [vmem:[%s17145_s25 + $0x3e0] sm:$0xff]  }
 0x2bd   : > { %v8772_v6 = vmax.f32 %v5076_v29, 0.0  ;;  %15144 = vmatprep.mubr.bf16.mxu0 %v16315_v55  ;;  %15916 = vmatprep.mubr.bf16.mxu1 %v16316_v51 }
 0x2be   : > { %v17721_v38 = vpack.c.bf16 %v8774_v56, %v8773_v33 }
 0x2bf   : > { %v17723_v20 = vpack.c.bf16 %v8772_v6, %v8771_v46  ;;  %v15038_v58 = vpop.f32.mrb[136].mxu0  ;;  %v9663_v46 = vld [vmem:[#allocation5] sm:$0xff] }
 0x2c0   : > { %20573 = vst [vmem:[#allocation45_spill] sm:$0xff] %v17721_v38  ;;  %v5097_v62 = vadd.f32 %v17599_v27, %v15038_v58  ;;  %v5088_v30 = vpop.f32.mrb[137].mxu0  ;;  %v9695_v6 = vld [vmem:[#allocation5 + $0x100] sm:$0xff] }
 0x2c1   : > { %20574 = vst [vmem:[#allocation46_spill] sm:$0xff] %v17723_v20  ;;  %v5089_v52 = vadd.f32 %v17599_v27, %v5088_v30  ;;  %v15039_v45 = vpop.f32.mrb[138].mxu0  ;;  %v16322_v20 = vld [vmem:[%s17145_s25 + $0xff8] sm:$0xff]  }
 0x2c2   : > { %v5100_v44 = vadd.f32 %v17599_v27, %v15039_v45  ;;  %v5091_v57 = vpop.f32.mrb[139].mxu0  ;;  %v8777_v51 = vmax.f32 %v5097_v62, 0.0  ;;  %v16321_v62 = vld [vmem:[%s17145_s25 + $0x3e8] sm:$0xff]  }
 0x2c3   : > { %v5092_v55 = vadd.f32 %v17599_v27, %v5091_v57  ;;  %v8775_v33 = vmax.f32 %v5089_v52, 0.0  ;;  %v13314_v52 = vcombine.high %v9663_v46, %v9695_v6 }
 0x2c4   : > { %v8778_v29 = vmax.f32 %v5100_v44, 0.0  ;;  %15145 = vmatmul.mubr.bf16.gmra.mrb[244].mxu0 %v16317_v17  ;;  %15917 = vmatmul.mubr.bf16.gmra.mrb[244].mxu1 %v16318_v26  ;;  %v16323_v44 = vld [vmem:[%s17145_s25 + $0x3f0] sm:$0xff]  }
 0x2c5   : > { %v8776_v56 = vmax.f32 %v5092_v55, 0.0  ;;  %15148 = vmatprep.mubr.bf16.mxu0 %v16319_v14  ;;  %15920 = vmatprep.mubr.bf16.mxu1 %v16320_v34  ;;  %v17743_v55 = vpop.f32.mrb[24].mxu1 }
 0x2c6   : > { %v17733_v30 = vpack.c.bf16 %v8778_v29, %v8777_v51  ;;  %20577 = vst [vmem:[#allocation49_spill] sm:$0xff] %v17743_v55  ;;  %v17746_v29 = vpop.f32.mrb[25].mxu1 }
 0x2c7   : > { %v17735_v58 = vpack.c.bf16 %v8776_v56, %v8775_v33  ;;  %v15042_v45 = vpop.f32.mrb[140].mxu0  ;;  %20578 = vst [vmem:[#allocation50_spill] sm:$0xff] %v17746_v29  ;;  %v9727_v29 = vld [vmem:[#allocation5 + $0x200] sm:$0xff] }
 0x2c8   : > { %20575 = vst [vmem:[#allocation47_spill] sm:$0xff] %v17733_v30  ;;  %v5113_v57 = vadd.f32 %v17599_v27, %v15042_v45  ;;  %v5104_v38 = vpop.f32.mrb[141].mxu0  ;;  %v17748_v45 = vpop.f32.mrb[26].mxu1 }
 0x2c9   : > { %20576 = vst [vmem:[#allocation48_spill] sm:$0xff] %v17735_v58  ;;  %v5105_v17 = vadd.f32 %v17599_v27, %v5104_v38  ;;  %v15043_v26 = vpop.f32.mrb[142].mxu0  ;;  %20579 = vst [vmem:[#allocation51_spill] sm:$0xff] %v17748_v45 }
 0x2ca   : > { %v5116_v14 = vadd.f32 %v17599_v27, %v15043_v26  ;;  %v5107_v34 = vpop.f32.mrb[143].mxu0  ;;  %v8781_v33 = vmax.f32 %v5113_v57, 0.0  ;;  %v17750_v26 = vpop.f32.mrb[27].mxu1  ;;  %v9759_v57 = vld [vmem:[#allocation5 + $0x300] sm:$0xff] }
 0x2cb   : > { %v5108_v51 = vadd.f32 %v17599_v27, %v5107_v34  ;;  %v8779_v38 = vmax.f32 %v5105_v17, 0.0  ;;  %20580 = vst [vmem:[#allocation52_spill] sm:$0xff] %v17750_v26  ;;  %v13378_v26 = vcombine.high %v9727_v29, %v9759_v57 }
 0x2cc   : > { %v8782_v56 = vmax.f32 %v5116_v14, 0.0  ;;  %15149 = vmatmul.mubr.bf16.gmra.mrb[248].mxu0 %v16321_v62  ;;  %15921 = vmatmul.mubr.bf16.gmra.mrb[248].mxu1 %v16322_v20  ;;  %v13313_v20 = vcombine.low %v9663_v46, %v9695_v6 }
 0x2cd   : > { %v8780_v30 = vmax.f32 %v5108_v51, 0.0  ;;  %15152 = vmatprep.mubr.bf16.mxu0 %v16323_v44  ;;  %10975 = vmatprep.mubr.bf16.mxu1 %v13314_v52  ;;  %v16325_v51 = vld [vmem:[%s17145_s25 + $0x400] sm:$0xff]  }
 0x2ce   : > { %v17752_v58 = vpack.c.bf16 %v8782_v56, %v8781_v33  ;;  %v15702_v33 = vpop.f32.mrb[28].mxu1 }
 0x2cf   : > { %v17754_v55 = vpack.c.bf16 %v8780_v30, %v8779_v38  ;;  %v15046_v34 = vpop.f32.mrb[144].mxu0  ;;  %v7744_v56 = vpop.f32.mrb[29].mxu1 }
 0x2d0   : > { %20581 = vst [vmem:[#allocation53_spill] sm:$0xff] %v17752_v58  ;;  %v5129_v62 = vadd.f32 %v17599_v27, %v15046_v34  ;;  %v5120_v14 = vpop.f32.mrb[145].mxu0  ;;  %v7753_v34 = vadd.f32 %v17599_v27, %v15702_v33  ;;  %v15703_v46 = vpop.f32.mrb[30].mxu1 }
 0x2d1   : > { %20582 = vst [vmem:[#allocation54_spill] sm:$0xff] %v17754_v55  ;;  %v5121_v17 = vadd.f32 %v17599_v27, %v5120_v14  ;;  %v15047_v45 = vpop.f32.mrb[146].mxu0  ;;  %v7756_v14 = vadd.f32 %v17599_v27, %v15703_v46  ;;  %v7747_v15 = vpop.f32.mrb[31].mxu1 }
 0x2d2   : > { %v5132_v44 = vadd.f32 %v17599_v27, %v15047_v45  ;;  %v5123_v52 = vpop.f32.mrb[147].mxu0  ;;  %v8785_v38 = vmax.f32 %v5129_v62, 0.0  ;;  %v7745_v45 = vadd.f32 %v17599_v27, %v7744_v56 }
 0x2d3   : > { %v5124_v30 = vadd.f32 %v17599_v27, %v5123_v52  ;;  %v8783_v6 = vmax.f32 %v5121_v17, 0.0  ;;  %v9442_v33 = vmax.f32 %v7756_v14, 0.0 }
 0x2d4   : > { %v8786_v58 = vmax.f32 %v5132_v44, 0.0  ;;  %15153 = vmatmul.mubr.bf16.gmra.mrb[252].mxu0 %v16324_v39  ;;  %10976 = vmatmul.mubr.bf16.vlgmr.msra.gmra.mrb[252].mxu1 %v13313_v20  ;;  %v9441_v39 = vmax.f32 %v7753_v34, 0.0  ;;  %v7748_v20 = vadd.f32 %v17599_v27, %v7747_v15  ;;  %v17770_v44 = vld [vmem:[#allocation5 + $0x8] sm:$0xff]  ;;  %v9439_v52 = vmax.f32 %v7745_v45, 0.0  ;;  %v16327_v34 = vld [vmem:[%s17145_s25 + $0x410] sm:$0xff]  }
 0x2d5   : > { %v8784_v55 = vmax.f32 %v5124_v30, 0.0  ;;  %14007 = vmatpush3.bf16.msra.mxu1 %v17373_v32  ;;  %15156 = vmatprep.mubr.bf16.mxu0 %v16325_v51  ;;  %v17772_v32 = vld [vmem:[#allocation5 + $0x108] sm:$0xff] }
 0x2d6   : > { %14008 = vmatprep.subr.bf16.mxu1 %v17419_v8  ;;  %10983 = vmatprep.mubr.bf16.mxu1 %v13378_v26  ;;  %v17767_v62 = vpack.c.bf16 %v8786_v58, %v8785_v38  ;;  %v16326_v8 = vld [vmem:[%s17145_s25 + $0x408] sm:$0xff]   ;;  %v13377_v26 = vcombine.low %v9727_v29, %v9759_v57  ;;  %v9440_v58 = vmax.f32 %v7748_v20, 0.0  ;;  %v17781_v46 = vpack.c.bf16 %v9442_v33, %v9441_v39 }
 0x2d7   : > { %v15050_v17 = vpop.f32.mrb[148].mxu0  ;;  %v17774_v51 = vpack.c.bf16 %v8784_v55, %v8783_v6  ;;  %v13316_v6 = vcombine.high %v17770_v44, %v17772_v32 }
 0x2d8   : > { %20583 = vst [vmem:[#allocation55_spill] sm:$0xff] %v17767_v62  ;;  %v5145_v30 = vadd.f32 %v17599_v27, %v15050_v17  ;;  %v5136_v56 = vpop.f32.mrb[149].mxu0  ;;  %20584 = vst [vmem:[#allocation56_spill] sm:$0xff] %v17781_v46  ;;  %v17787_v45 = vpack.c.bf16 %v9440_v58, %v9439_v52 }
 0x2d9   : > { %v5137_v38 = vadd.f32 %v17599_v27, %v5136_v56  ;;  %14009 = vmatpush3.bf16.msra.mxu1 %v17370_v31  ;;  %v15051_v15 = vpop.f32.mrb[150].mxu0 }
 0x2da   : > { %v5148_v62 = vadd.f32 %v17599_v27, %v15051_v15  ;;  %14010 = vmatprep.subr.bf16.mxu1 %v17434_v1  ;;  %v5139_v55 = vpop.f32.mrb[151].mxu0  ;;  %20585 = vst [vmem:[#allocation57_spill] sm:$0xff] %v17787_v45  ;;  %v8789_v57 = vmax.f32 %v5145_v30, 0.0 }
 0x2db   : > { %v5140_v29 = vadd.f32 %v17599_v27, %v5139_v55  ;;  %v8787_v31 = vmax.f32 %v5137_v38, 0.0 }
 0x2dc   : > { %v8790_v14 = vmax.f32 %v5148_v62, 0.0  ;;  %15157 = vmatmul.mubr.bf16.gmra.mrb[0].mxu0 %v16326_v8  ;;  %10984 = vmatmul.mubr.bf16.gmra.mrb[0].mxu1 %v13377_v26  ;;  %v16328_v62 = vld [vmem:[%s17145_s25 + $0x418] sm:$0xff]   ;;  %v16329_v8 = vld [vmem:[%s17145_s25 + $0x420] sm:$0xff]  }
 0x2dd   : > { %v8788_v39 = vmax.f32 %v5140_v29, 0.0  ;;  %14011 = vmatpush3.bf16.msra.mxu1 %v17385_v49  ;;  %15160 = vmatprep.mubr.bf16.mxu0 %v16327_v34 }
 0x2de   : > { %14012 = vmatprep.subr.bf16.mxu1 %v17431_v60  ;;  %11024 = vmatprep.mubr.bf16.mxu1 %v13316_v6  ;;  %v17792_v1 = vpack.c.bf16 %v8790_v14, %v8789_v57  ;;  %v16330_v57 = vld [vmem:[%s17145_s25 + $0x428] sm:$0xff]  }
 0x2df   : > { %v15054_v20 = vpop.f32.mrb[152].mxu0  ;;  %v17794_v17 = vpack.c.bf16 %v8788_v39, %v8787_v31  ;;  %v16331_v39 = vld [vmem:[%s17145_s25 + $0x430] sm:$0xff]  }
 0x2e0   : > { %v5161_v52 = vadd.f32 %v17599_v27, %v15054_v20  ;;  %v5152_v33 = vpop.f32.mrb[153].mxu0  ;;  %v15706_v20 = vpop.f32.mrb[32].mxu1 }
 0x2e1   : > { %v5153_v30 = vadd.f32 %v17599_v27, %v5152_v33  ;;  %14013 = vmatpush3.bf16.msra.mxu1 %v17383_v48  ;;  %v15055_v56 = vpop.f32.mrb[154].mxu0  ;;  %v7760_v33 = vpop.f32.mrb[33].mxu1 }
 0x2e2   : > { %v5164_v49 = vadd.f32 %v17599_v27, %v15055_v56  ;;  %14014 = vmatprep.subr.bf16.mxu1 %v17446_v23  ;;  %v5155_v60 = vpop.f32.mrb[155].mxu0  ;;  %v8793_v58 = vmax.f32 %v5161_v52, 0.0  ;;  %v7769_v56 = vadd.f32 %v17599_v27, %v15706_v20 }
 0x2e3   : > { %v5156_v26 = vadd.f32 %v17599_v27, %v5155_v60  ;;  %v8791_v15 = vmax.f32 %v5153_v30, 0.0 }
 0x2e4   : > { %v8794_v38 = vmax.f32 %v5164_v49, 0.0  ;;  %15161 = vmatmul.mubr.bf16.gmra.mrb[4].mxu0 %v16328_v62 }
 0x2e5   : > { %v8792_v34 = vmax.f32 %v5156_v26, 0.0  ;;  %14015 = vmatpush3.bf16.msra.mxu1 %v17397_v4  ;;  %15164 = vmatprep.mubr.bf16.mxu0 %v16329_v8  ;;  %v15707_v8 = vpop.f32.mrb[34].mxu1 }
 0x2e6   : > { %14016 = vmatprep.subr.bf16.mxu1 %v17443_v18  ;;  %v17806_v48 = vpack.c.bf16 %v8794_v38, %v8793_v58  ;;  %v7763_v26 = vpop.f32.mrb[35].mxu1  ;;  %v9445_v38 = vmax.f32 %v7769_v56, 0.0 }
 0x2e7   : > { %v15058_v55 = vpop.f32.mrb[156].mxu0  ;;  %v17808_v6 = vpack.c.bf16 %v8792_v34, %v8791_v15  ;;  %v7764_v15 = vadd.f32 %v17599_v27, %v7763_v26 }
 0x2e8   : > { %v5177_v23 = vadd.f32 %v17599_v27, %v15058_v55  ;;  %v5168_v29 = vpop.f32.mrb[157].mxu0  ;;  %v17826_v55 = vld [vmem:[#allocation5 + $0x208] sm:$0xff] }
 0x2e9   : > { %v5169_v14 = vadd.f32 %v17599_v27, %v5168_v29  ;;  %14017 = vmatpush3.bf16.msra.mxu1 %v17395_v3  ;;  %v15059_v31 = vpop.f32.mrb[158].mxu0  ;;  %v7761_v3 = vadd.f32 %v17599_v27, %v7760_v33 }
 0x2ea   : > { %v5180_v4 = vadd.f32 %v17599_v27, %v15059_v31  ;;  %14018 = vmatprep.subr.bf16.mxu1 %v17458_v42  ;;  %v5171_v18 = vpop.f32.mrb[159].mxu0  ;;  %v8797_v62 = vmax.f32 %v5177_v23, 0.0  ;;  %v7772_v42 = vadd.f32 %v17599_v27, %v15707_v8  ;;  %v17828_v23 = vld [vmem:[#allocation5 + $0x308] sm:$0xff] }
 0x2eb   : > { %v5172_v52 = vadd.f32 %v17599_v27, %v5171_v18  ;;  %v8795_v49 = vmax.f32 %v5169_v14, 0.0  ;;  %v9443_v29 = vmax.f32 %v7761_v3, 0.0  ;;  %v13380_v56 = vcombine.high %v17826_v55, %v17828_v23 }
 0x2ec   : > { %v8798_v30 = vmax.f32 %v5180_v4, 0.0  ;;  %15165 = vmatmul.mubr.bf16.gmra.mrb[8].mxu0 %v16330_v57  ;;  %v9446_v57 = vmax.f32 %v7772_v42, 0.0  ;;  %v9444_v4 = vmax.f32 %v7764_v15, 0.0  ;;  %v17852_v15 = vld [vmem:[#allocation8] ss:$0 sm:$0xff] }
 0x2ed   : > { %v8796_v60 = vmax.f32 %v5172_v52, 0.0  ;;  %14019 = vmatpush3.bf16.msra.mxu1 %v17409_v22  ;;  %15168 = vmatprep.mubr.bf16.mxu0 %v16331_v39  ;;  %v16332_v39 = vld [vmem:[%s17145_s25 + $0x438] sm:$0xff]   ;;  %v16333_v52 = vld [vmem:[%s17145_s25 + $0x440] sm:$0xff]  }
 0x2ee   : > { %14020 = vmatprep.subr.bf16.mxu1 %v17455_v40  ;;  %v17823_v58 = vpack.c.bf16 %v8798_v30, %v8797_v62  ;;  %v13315_v40 = vcombine.low %v17770_v44, %v17772_v32  ;;  %v17839_v33 = vpack.c.bf16 %v9446_v57, %v9445_v38  ;;  %v17845_v8 = vpack.c.bf16 %v9444_v4, %v9443_v29  ;;  %v15710_v44 = vpop.f32.mrb[36].mxu1  ;;  %v17857_v57 = vld [vmem:[#allocation5 + $0x10] sm:$0xff]  ;;  %v16334_v4 = vld [vmem:[%s17145_s25 + $0x448] sm:$0xff]  }
 0x2ef   : > { %v15062_v34 = vpop.f32.mrb[160].mxu0  ;;  %v17830_v22 = vpack.c.bf16 %v8796_v60, %v8795_v49  ;;  %v7776_v49 = vpop.f32.mrb[37].mxu1 }
 0x2f0   : > { %v5193_v14 = vadd.f32 %v17599_v27, %v15062_v34  ;;  %v5184_v31 = vpop.f32.mrb[161].mxu0  ;;  %20586 = vst [vmem:[#allocation58_spill] sm:$0xff] %v17839_v33  ;;  %20587 = vst [vmem:[#allocation59_spill] sm:$0xff] %v17845_v8  ;;  %v15711_v3 = vpop.f32.mrb[38].mxu1 }
 0x2f1   : > { %v5185_v18 = vadd.f32 %v17599_v27, %v5184_v31  ;;  %14021 = vmatpush3.bf16.msra.mxu1 %v17407_v21  ;;  %v15063_v20 = vpop.f32.mrb[162].mxu0  ;;  %v7788_v31 = vadd.f32 %v17852_v15, %v15711_v3 }
 0x2f2   : > { %v5196_v62 = vadd.f32 %v17599_v27, %v15063_v20  ;;  %14034 = vmatprep.subr.bf16.mxu1 %v17519_v41  ;;  %v5187_v30 = vpop.f32.mrb[163].mxu0  ;;  %v8801_v60 = vmax.f32 %v5193_v14, 0.0  ;;  %v7779_v41 = vpop.f32.mrb[39].mxu1  ;;  %v17859_v14 = vld [vmem:[#allocation5 + $0x110] sm:$0xff] }
 0x2f3   : > { %v5188_v32 = vadd.f32 %v17599_v27, %v5187_v30  ;;  %v8799_v42 = vmax.f32 %v5185_v18, 0.0  ;;  %v7785_v27 = vadd.f32 %v17852_v15, %v15710_v44  ;;  %v13379_v18 = vcombine.low %v17826_v55, %v17828_v23  ;;  %v16335_v30 = vld [vmem:[%s17145_s25 + $0x450] sm:$0xff]  }
 0x2f4   : > { %v8802_v21 = vmax.f32 %v5196_v62, 0.0  ;;  %15169 = vmatmul.mubr.bf16.gmra.mrb[12].mxu0 %v16332_v39  ;;  %11025 = vmatmul.mubr.bf16.vlgmr.msra.gmra.mrb[4].mxu1 %v13315_v40  ;;  %v7780_v40 = vadd.f32 %v17852_v15, %v7779_v41  ;;  %v9450_v44 = vmax.f32 %v7788_v31, 0.0 }
 0x2f5   : > { %v8800_v26 = vmax.f32 %v5188_v32, 0.0  ;;  %14035 = vmatpush3.bf16.msra.mxu1 %v17469_v0  ;;  %15172 = vmatprep.mubr.bf16.mxu0 %v16333_v52  ;;  %v7777_v0 = vadd.f32 %v17852_v15, %v7776_v49  ;;  %v9449_v20 = vmax.f32 %v7785_v27, 0.0 }
 0x2f6   : > { %v17849_v38 = vpack.c.bf16 %v8802_v21, %v8801_v60  ;;  %14036 = vmatprep.subr.bf16.mxu1 %v17516_v37  ;;  %11032 = vmatprep.mubr.bf16.mxu1 %v13380_v56  ;;  %v9448_v32 = vmax.f32 %v7780_v40, 0.0  ;;  %v13318_v21 = vcombine.high %v17857_v57, %v17859_v14  ;;  %v16336_v40 = vld [vmem:[%s17145_s25 + $0x458] sm:$0xff]  }
 0x2f7   : > { %v17855_v34 = vpack.c.bf16 %v8800_v26, %v8799_v42  ;;  %v15066_v29 = vpop.f32.mrb[164].mxu0  ;;  %v9447_v56 = vmax.f32 %v7777_v0, 0.0  ;;  %v17876_v23 = vpack.c.bf16 %v9450_v44, %v9449_v20 }
 0x2f8   : > { %v5209_v37 = vadd.f32 %v17852_v15, %v15066_v29  ;;  %v5200_v39 = vpop.f32.mrb[165].mxu0 }
 0x2f9   : > { %v5201_v52 = vadd.f32 %v17852_v15, %v5200_v39  ;;  %14037 = vmatpush3.bf16.msra.mxu1 %v17467_v61  ;;  %v15067_v62 = vpop.f32.mrb[166].mxu0  ;;  %20588 = vst [vmem:[#allocation60_spill] sm:$0xff] %v17876_v23  ;;  %v17878_v3 = vpack.c.bf16 %v9448_v32, %v9447_v56 }
 0x2fa   : > { %v5212_v49 = vadd.f32 %v17852_v15, %v15067_v62  ;;  %14038 = vmatprep.subr.bf16.mxu1 %v17531_v9  ;;  %v5203_v60 = vpop.f32.mrb[167].mxu0  ;;  %v8805_v61 = vmax.f32 %v5209_v37, 0.0 }
 0x2fb   : > { %v5204_v55 = vadd.f32 %v17852_v15, %v5203_v60  ;;  %20589 = vst [vmem:[#allocation61_spill] sm:$0xff] %v17878_v3  ;;  %v8803_v26 = vmax.f32 %v5201_v52, 0.0 }
 0x2fc   : > { %v8806_v42 = vmax.f32 %v5212_v49, 0.0  ;;  %15173 = vmatmul.mubr.bf16.gmra.mrb[16].mxu0 %v16334_v4  ;;  %11033 = vmatmul.mubr.bf16.gmra.mrb[8].mxu1 %v13379_v18  ;;  %v16337_v4 = vld [vmem:[%s17145_s25 + $0x460] sm:$0xff]   ;;  %v16338_v49 = vld [vmem:[%s17145_s25 + $0x468] sm:$0xff]  }
 0x2fd   : > { %v8804_v41 = vmax.f32 %v5204_v55, 0.0  ;;  %14039 = vmatpush3.bf16.msra.mxu1 %v17481_v43  ;;  %15176 = vmatprep.mubr.bf16.mxu0 %v16335_v30  ;;  %v16339_v55 = vld [vmem:[%s17145_s25 + $0x470] sm:$0xff]  }
 0x2fe   : > { %v17881_v9 = vpack.c.bf16 %v8806_v42, %v8805_v61  ;;  %14040 = vmatprep.subr.bf16.mxu1 %v17528_v5  ;;  %11073 = vmatprep.mubr.bf16.mxu1 %v13318_v21 }
 0x2ff   : > { %v17884_v27 = vpack.c.bf16 %v8804_v41, %v8803_v26  ;;  %v15070_v29 = vpop.f32.mrb[168].mxu0 }
 0x300   : > { %v5225_v0 = vadd.f32 %v17852_v15, %v15070_v29  ;;  %v5216_v31 = vpop.f32.mrb[169].mxu0 }
 0x301   : > { %v5217_v37 = vadd.f32 %v17852_v15, %v5216_v31  ;;  %14041 = vmatpush3.bf16.msra.mxu1 %v17479_v24  ;;  %v15071_v39 = vpop.f32.mrb[170].mxu0  ;;  %v17914_v31 = vld [vmem:[#allocation5 + $0x210] sm:$0xff] }
 0x302   : > { %v5228_v43 = vadd.f32 %v17852_v15, %v15071_v39  ;;  %14042 = vmatprep.subr.bf16.mxu1 %v17542_v35  ;;  %v5219_v5 = vpop.f32.mrb[171].mxu0  ;;  %v8809_v20 = vmax.f32 %v5225_v0, 0.0 }
 0x303   : > { %v5220_v18 = vadd.f32 %v17852_v15, %v5219_v5  ;;  %v8807_v62 = vmax.f32 %v5217_v37, 0.0 }
 0x304   : > { %v8810_v52 = vmax.f32 %v5228_v43, 0.0  ;;  %15177 = vmatmul.mubr.bf16.gmra.mrb[20].mxu0 %v16336_v40  ;;  %v17916_v40 = vld [vmem:[#allocation5 + $0x310] sm:$0xff]  ;;  %v15714_v43 = vpop.f32.mrb[40].mxu1 }
 0x305   : > { %v8808_v30 = vmax.f32 %v5220_v18, 0.0  ;;  %14043 = vmatpush3.bf16.msra.mxu1 %v17493_v50  ;;  %15180 = vmatprep.mubr.bf16.mxu0 %v16337_v4  ;;  %v13317_v4 = vcombine.low %v17857_v57, %v17859_v14  ;;  %v16341_v18 = vld [vmem:[%s17145_s25 + $0x480] sm:$0xff]  }
 0x306   : > { %v17895_v24 = vpack.c.bf16 %v8810_v52, %v8809_v20  ;;  %14044 = vmatprep.subr.bf16.mxu1 %v17539_v63  ;;  %v7792_v20 = vpop.f32.mrb[41].mxu1 }
 0x307   : > { %v17898_v56 = vpack.c.bf16 %v8808_v30, %v8807_v62  ;;  %v15074_v35 = vpop.f32.mrb[172].mxu0  ;;  %v13382_v30 = vcombine.high %v17914_v31, %v17916_v40  ;;  %v15715_v57 = vpop.f32.mrb[42].mxu1 }
 0x308   : > { %v5241_v44 = vadd.f32 %v17852_v15, %v15074_v35  ;;  %v5232_v32 = vpop.f32.mrb[173].mxu0  ;;  %v7801_v35 = vadd.f32 %v17852_v15, %v15714_v43 }
 0x309   : > { %v5233_v60 = vadd.f32 %v17852_v15, %v5232_v32  ;;  %14045 = vmatpush3.bf16.msra.mxu1 %v17491_v47  ;;  %v15075_v21 = vpop.f32.mrb[174].mxu0  ;;  %v7795_v32 = vpop.f32.mrb[43].mxu1 }
 0x30a   : > { %v5244_v50 = vadd.f32 %v17852_v15, %v15075_v21  ;;  %14046 = vmatprep.subr.bf16.mxu1 %v17559_v28  ;;  %v5235_v61 = vpop.f32.mrb[175].mxu0  ;;  %v8813_v42 = vmax.f32 %v5241_v44, 0.0  ;;  %v7793_v44 = vadd.f32 %v17852_v15, %v7792_v20  ;;  %v7804_v21 = vadd.f32 %v17852_v15, %v15715_v57  ;;  %v17950_v43 = vpop.f32.mrb[44].mxu1 }
 0x30b   : > { %v5236_v63 = vadd.f32 %v17852_v15, %v5235_v61  ;;  %v8811_v41 = vmax.f32 %v5233_v60, 0.0  ;;  %v9453_v60 = vmax.f32 %v7801_v35, 0.0  ;;  %v7796_v61 = vadd.f32 %v17852_v15, %v7795_v32 }
 0x30c   : > { %v8814_v26 = vmax.f32 %v5244_v50, 0.0  ;;  %15181 = vmatmul.mubr.bf16.gmra.mrb[24].mxu0 %v16338_v49  ;;  %v9451_v50 = vmax.f32 %v7793_v44, 0.0 }
 0x30d   : > { %v8812_v29 = vmax.f32 %v5236_v63, 0.0  ;;  %14047 = vmatpush3.bf16.msra.mxu1 %v17505_v12  ;;  %15184 = vmatprep.mubr.bf16.mxu0 %v16339_v55  ;;  %v16340_v12 = vld [vmem:[%s17145_s25 + $0x478] sm:$0xff]  }
 0x30e   : > { %v17909_v47 = vpack.c.bf16 %v8814_v26, %v8813_v42  ;;  %14048 = vmatprep.subr.bf16.mxu1 %v17556_v16  ;;  %v9454_v42 = vmax.f32 %v7804_v21, 0.0 }
 0x30f   : > { %v17912_v0 = vpack.c.bf16 %v8812_v29, %v8811_v41  ;;  %v15078_v28 = vpop.f32.mrb[176].mxu0  ;;  %v17938_v41 = vld [vmem:[#allocation5 + $0x18] sm:$0xff] }
 0x310   : > { %v5257_v37 = vadd.f32 %v17852_v15, %v15078_v28  ;;  %v5248_v39 = vpop.f32.mrb[177].mxu0  ;;  %v17940_v29 = vld [vmem:[#allocation5 + $0x118] sm:$0xff] }
 0x311   : > { %v5249_v5 = vadd.f32 %v17852_v15, %v5248_v39  ;;  %14049 = vmatpush3.bf16.msra.mxu1 %v17503_v11  ;;  %v15079_v16 = vpop.f32.mrb[178].mxu0 }
 0x312   : > { %v5260_v52 = vadd.f32 %v17852_v15, %v15079_v16  ;;  %14062 = vmatprep.subr.bf16.mxu1 %v17649_v25  ;;  %v5251_v62 = vpop.f32.mrb[179].mxu0  ;;  %v8817_v11 = vmax.f32 %v5257_v37, 0.0  ;;  %v9452_v37 = vmax.f32 %v7796_v61, 0.0  ;;  %v16345_v61 = vld [vmem:[%s17145_s25 + $0x4a0] sm:$0xff]  }
 0x313   : > { %v5252_v14 = vadd.f32 %v17852_v15, %v5251_v62  ;;  %v8815_v25 = vmax.f32 %v5249_v5, 0.0 }
 0x314   : > { %v8818_v49 = vmax.f32 %v5260_v52, 0.0  ;;  %15185 = vmatmul.mubr.bf16.gmra.mrb[28].mxu0 %v16340_v12  ;;  %11074 = vmatmul.mubr.bf16.vlgmr.msra.gmra.mrb[12].mxu1 %v13317_v4  ;;  %v16342_v4 = vld [vmem:[%s17145_s25 + $0x488] sm:$0xff]   ;;  %v17948_v12 = vpack.c.bf16 %v9454_v42, %v9453_v60  ;;  %v17955_v20 = vpack.c.bf16 %v9452_v37, %v9451_v50  ;;  %v17957_v52 = vpop.f32.mrb[45].mxu1 }
 0x315   : > { %v8816_v55 = vmax.f32 %v5252_v14, 0.0  ;;  %14063 = vmatpush3.bf16.msra.mxu1 %v17576_v13  ;;  %15188 = vmatprep.mubr.bf16.mxu0 %v16341_v18  ;;  %v16343_v18 = vld [vmem:[%s17145_s25 + $0x490] sm:$0xff]  }
 0x316   : > { %14064 = vmatprep.subr.bf16.mxu1 %v17645_v19  ;;  %11081 = vmatprep.mubr.bf16.mxu1 %v13382_v30  ;;  %v17936_v63 = vpack.c.bf16 %v8818_v49, %v8817_v11  ;;  %v13381_v19 = vcombine.low %v17914_v31, %v17916_v40  ;;  %20590 = vst [vmem:[#allocation62_spill] sm:$0xff] %v17948_v12  ;;  %20591 = vst [vmem:[#allocation63_spill] sm:$0xff] %v17955_v20  ;;  %v17963_v40 = vpop.f32.mrb[46].mxu1 }
 0x317   : > { %v15082_v26 = vpop.f32.mrb[180].mxu0  ;;  %v17942_v28 = vpack.c.bf16 %v8816_v55, %v8815_v25  ;;  %v13320_v31 = vcombine.high %v17938_v41, %v17940_v29  ;;  %v17966_v57 = vpop.f32.mrb[47].mxu1  ;;  %v16344_v25 = vld [vmem:[%s17145_s25 + $0x498] sm:$0xff]  }
 0x318   : > { %v5273_v13 = vadd.f32 %v17852_v15, %v15082_v26  ;;  %v5264_v39 = vpop.f32.mrb[181].mxu0 }
 0x319   : > { %v5265_v5 = vadd.f32 %v17852_v15, %v5264_v39  ;;  %14065 = vmatpush3.bf16.msra.mxu1 %v17571_v2  ;;  %v15083_v16 = vpop.f32.mrb[182].mxu0 }
 0x31a   : > { %v5276_v62 = vadd.f32 %v17852_v15, %v15083_v16  ;;  %14066 = vmatprep.subr.bf16.mxu1 %v17661_v7  ;;  %v5267_v30 = vpop.f32.mrb[183].mxu0  ;;  %v8821_v2 = vmax.f32 %v5273_v13, 0.0 }
 0x31b   : > { %v5268_v35 = vadd.f32 %v17852_v15, %v5267_v30  ;;  %v8819_v44 = vmax.f32 %v5265_v5, 0.0  ;;  %v20593_v30 = vld [vmem:[#allocation23_spill] sm:$0xff] }
 0x31c   : > { %v8822_v14 = vmax.f32 %v5276_v62, 0.0  ;;  %15189 = vmatmul.mubr.bf16.gmra.mrb[32].mxu0 %v16342_v4  ;;  %11082 = vmatmul.mubr.bf16.gmra.mrb[16].mxu1 %v13381_v19 }
 0x31d   : > { %v8820_v32 = vmax.f32 %v5268_v35, 0.0  ;;  %14067 = vmatpush3.bf16.msra.mxu1 %v17594_v10  ;;  %15192 = vmatprep.mubr.bf16.mxu0 %v16343_v18  ;;  %v16346_v18 = vld [vmem:[%s17145_s25 + $0x4a8] sm:$0xff]   ;;  %v16347_v35 = vld [vmem:[%s17145_s25 + $0x4b0] sm:$0xff]  }
 0x31e   : > { %14068 = vmatprep.subr.bf16.mxu1 %v17658_v53  ;;  %11122 = vmatprep.mubr.bf16.mxu1 %v13320_v31  ;;  %v17970_v7 = vpack.c.bf16 %v8822_v14, %v8821_v2  ;;  %v20594_v2 = vld [vmem:[#allocation38_spill] sm:$0xff] }
 0x31f   : > { %v15086_v11 = vpop.f32.mrb[184].mxu0  ;;  %v17972_v49 = vpack.c.bf16 %v8820_v32, %v8819_v44 }
 0x320   : > { %v5289_v60 = vadd.f32 %v17852_v15, %v15086_v11  ;;  %v5280_v21 = vpop.f32.mrb[185].mxu0 }
 0x321   : > { %v5281_v55 = vadd.f32 %v17852_v15, %v5280_v21  ;;  %14069 = vmatpush3.bf16.msra.mxu1 %v17591_v59  ;;  %v15087_v50 = vpop.f32.mrb[186].mxu0  ;;  %v20592_v59 = vld [vmem:[#allocation32_spill] sm:$0xff] }
 0x322   : > { %v5292_v10 = vadd.f32 %v17852_v15, %v15087_v50  ;;  %14070 = vmatprep.subr.bf16.mxu1 %v17672_v36  ;;  %v5283_v53 = vpop.f32.mrb[187].mxu0  ;;  %v8825_v26 = vmax.f32 %v5289_v60, 0.0 }
 0x323   : > { %v5284_v42 = vadd.f32 %v17852_v15, %v5283_v53  ;;  %v8823_v13 = vmax.f32 %v5281_v55, 0.0  ;;  %v20596_v55 = vld [vmem:[#allocation37_spill] sm:$0xff] }
 0x324   : > { %v8826_v37 = vmax.f32 %v5292_v10, 0.0  ;;  %15193 = vmatmul.mubr.bf16.gmra.mrb[36].mxu0 %v16344_v25  ;;  %v20595_v25 = vld [vmem:[#allocation25_spill] sm:$0xff] }
 0x325   : > { %v8824_v39 = vmax.f32 %v5284_v42, 0.0  ;;  %14071 = vmatpush3.bf16.msra.mxu1 %v17607_v54  ;;  %15196 = vmatprep.mubr.bf16.mxu0 %v16345_v61  ;;  %v9730_v10 = vld [vmem:[#allocation5 + $0x218] sm:$0xff] }
 0x326   : > { %14072 = vmatprep.subr.bf16.mxu1 %v20592_v59  ;;  %v17984_v4 = vpack.c.bf16 %v8826_v37, %v8825_v26  ;;  %v9762_v53 = vld [vmem:[#allocation5 + $0x318] sm:$0xff] }
 0x327   : > { %v15090_v19 = vpop.f32.mrb[188].mxu0  ;;  %v17986_v5 = vpack.c.bf16 %v8824_v39, %v8823_v13  ;;  %v13319_v13 = vcombine.low %v17938_v41, %v17940_v29  ;;  %v16348_v39 = vld [vmem:[%s17145_s25 + $0x4b8] sm:$0xff]  }
 0x328   : > { %v5305_v36 = vadd.f32 %v17852_v15, %v15090_v19  ;;  %v5296_v16 = vpop.f32.mrb[189].mxu0  ;;  %v20597_v19 = vld [vmem:[#allocation24_spill] sm:$0xff] }
 0x329   : > { %v5297_v62 = vadd.f32 %v17852_v15, %v5296_v16  ;;  %14073 = vmatpush3.bf16.msra.mxu1 %v20593_v30  ;;  %v15091_v31 = vpop.f32.mrb[190].mxu0  ;;  %v16349_v16 = vld [vmem:[%s17145_s25 + $0x4c0] sm:$0xff]   ;;  %v13384_v30 = vcombine.high %v9730_v10, %v9762_v53 }
 0x32a   : > { %v5308_v54 = vadd.f32 %v17852_v15, %v15091_v31  ;;  %14074 = vmatprep.subr.bf16.mxu1 %v20594_v2  ;;  %v5299_v14 = vpop.f32.mrb[191].mxu0  ;;  %v8829_v32 = vmax.f32 %v5305_v36, 0.0  ;;  %v20598_v2 = vld [vmem:[#allocation44_spill] sm:$0xff] }
 0x32b   : > { %v5300_v44 = vadd.f32 %v17852_v15, %v5299_v14  ;;  %v8827_v60 = vmax.f32 %v5297_v62, 0.0 }
 0x32c   : > { %v8830_v11 = vmax.f32 %v5308_v54, 0.0  ;;  %15197 = vmatmul.mubr.bf16.gmra.mrb[40].mxu0 %v16346_v18 }
 0x32d   : > { %v8828_v21 = vmax.f32 %v5300_v44, 0.0  ;;  %14075 = vmatpush3.bf16.msra.mxu1 %v20595_v25  ;;  %15200 = vmatprep.mubr.bf16.mxu0 %v16347_v35  ;;  %v20599_v44 = vld [vmem:[#allocation55_spill] sm:$0xff] }
 0x32e   : > { %14076 = vmatprep.subr.bf16.mxu1 %v20596_v55  ;;  %v17998_v50 = vpack.c.bf16 %v8830_v11, %v8829_v32  ;;  %v18018_v11 = vld [vmem:[#allocation5 + $0x20] sm:$0xff]  ;;  %v16350_v55 = vld [vmem:[%s17145_s25 + $0x4c8] sm:$0xff]  }
 0x32f   : > { %v15094_v61 = vpop.f32.mrb[192].mxu0  ;;  %v18000_v42 = vpack.c.bf16 %v8828_v21, %v8827_v60  ;;  %v18020_v60 = vld [vmem:[#allocation5 + $0x120] sm:$0xff] }
 0x330   : > { %v5321_v26 = vadd.f32 %v17852_v15, %v15094_v61  ;;  %v5312_v37 = vpop.f32.mrb[193].mxu0  ;;  %v13383_v61 = vcombine.low %v9730_v10, %v9762_v53 }
 0x331   : > { %v5313_v59 = vadd.f32 %v17852_v15, %v5312_v37  ;;  %14077 = vmatpush3.bf16.msra.mxu1 %v20597_v19  ;;  %v15095_v36 = vpop.f32.mrb[194].mxu0  ;;  %v20600_v37 = vld [vmem:[#allocation43_spill] sm:$0xff] }
 0x332   : > { %v5324_v18 = vadd.f32 %v17852_v15, %v15095_v36  ;;  %14090 = vmatprep.subr.bf16.mxu1 %v17774_v51  ;;  %v5315_v62 = vpop.f32.mrb[195].mxu0  ;;  %v8833_v35 = vmax.f32 %v5321_v26, 0.0  ;;  %v13322_v36 = vcombine.high %v18018_v11, %v18020_v60 }
 0x333   : > { %v5316_v31 = vadd.f32 %v17852_v15, %v5315_v62  ;;  %v8831_v41 = vmax.f32 %v5313_v59, 0.0 }
 0x334   : > { %v8834_v54 = vmax.f32 %v5324_v18, 0.0  ;;  %15201 = vmatmul.mubr.bf16.gmra.mrb[44].mxu0 %v16348_v39  ;;  %11123 = vmatmul.mubr.bf16.vlgmr.msra.gmra.mrb[20].mxu1 %v13319_v13  ;;  %v16351_v39 = vld [vmem:[%s17145_s25 + $0x4d0] sm:$0xff]  }
 0x335   : > { %v8832_v29 = vmax.f32 %v5316_v31, 0.0  ;;  %14091 = vmatpush3.bf16.msra.mxu1 %v20598_v2  ;;  %15204 = vmatprep.mubr.bf16.mxu0 %v16349_v16 }
 0x336   : > { %v18013_v14 = vpack.c.bf16 %v8834_v54, %v8833_v35  ;;  %14092 = vmatprep.subr.bf16.mxu1 %v20599_v44  ;;  %11130 = vmatprep.mubr.bf16.mxu1 %v13384_v30  ;;  %v20601_v30 = vld [vmem:[#allocation46_spill] sm:$0xff]  ;;  %v20602_v44 = vld [vmem:[#allocation45_spill] sm:$0xff] }
 0x337   : > { %v18016_v51 = vpack.c.bf16 %v8832_v29, %v8831_v41  ;;  %v15098_v32 = vpop.f32.mrb[196].mxu0  ;;  %v16352_v29 = vld [vmem:[%s17145_s25 + $0x4d8] sm:$0xff]  }
 0x338   : > { %v5337_v21 = vadd.f32 %v17852_v15, %v15098_v32  ;;  %v5328_v25 = vpop.f32.mrb[197].mxu0 }
 0x339   : > { %v5329_v26 = vadd.f32 %v17852_v15, %v5328_v25  ;;  %14093 = vmatpush3.bf16.msra.mxu1 %v20600_v37  ;;  %v15099_v13 = vpop.f32.mrb[198].mxu0 }
 0x33a   : > { %v5340_v59 = vadd.f32 %v17852_v15, %v15099_v13  ;;  %14094 = vmatprep.subr.bf16.mxu1 %v17794_v17  ;;  %v5331_v19 = vpop.f32.mrb[199].mxu0  ;;  %v8837_v18 = vmax.f32 %v5337_v21, 0.0  ;;  %v16353_v21 = vld [vmem:[%s17145_s25 + $0x4e0] sm:$0xff]  }
 0x33b   : > { %v5332_v16 = vadd.f32 %v17852_v15, %v5331_v19  ;;  %v8835_v10 = vmax.f32 %v5329_v26, 0.0 }
 0x33c   : > { %v8838_v62 = vmax.f32 %v5340_v59, 0.0  ;;  %15205 = vmatmul.mubr.bf16.gmra.mrb[48].mxu0 %v16350_v55  ;;  %11131 = vmatmul.mubr.bf16.gmra.mrb[24].mxu1 %v13383_v61 }
 0x33d   : > { %v8836_v53 = vmax.f32 %v5332_v16, 0.0  ;;  %14095 = vmatpush3.bf16.msra.mxu1 %v20601_v30  ;;  %15208 = vmatprep.mubr.bf16.mxu0 %v16351_v39  ;;  %v20603_v39 = vld [vmem:[#allocation48_spill] sm:$0xff] }
 0x33e   : > { %v18033_v31 = vpack.c.bf16 %v8838_v62, %v8837_v18  ;;  %14096 = vmatprep.subr.bf16.mxu1 %v17792_v1  ;;  %11171 = vmatprep.mubr.bf16.mxu1 %v13322_v36  ;;  %v16354_v18 = vld [vmem:[%s17145_s25 + $0x4e8] sm:$0xff]   ;;  %v16355_v30 = vld [vmem:[%s17145_s25 + $0x4f0] sm:$0xff]  }
 0x33f   : > { %v18036_v17 = vpack.c.bf16 %v8836_v53, %v8835_v10  ;;  %v15102_v35 = vpop.f32.mrb[200].mxu0  ;;  %v20604_v10 = vld [vmem:[#allocation47_spill] sm:$0xff] }
 0x340   : > { %v5353_v54 = vadd.f32 %v17852_v15, %v15102_v35  ;;  %v5344_v41 = vpop.f32.mrb[201].mxu0 }
 0x341   : > { %v5345_v2 = vadd.f32 %v17852_v15, %v5344_v41  ;;  %14097 = vmatpush3.bf16.msra.mxu1 %v20602_v44  ;;  %v15103_v32 = vpop.f32.mrb[202].mxu0  ;;  %v20605_v41 = vld [vmem:[#allocation29_spill] sm:$0xff] }
 0x342   : > { %v5356_v25 = vadd.f32 %v17852_v15, %v15103_v32  ;;  %14098 = vmatprep.subr.bf16.mxu1 %v17808_v6  ;;  %v5347_v1 = vpop.f32.mrb[203].mxu0  ;;  %v8841_v61 = vmax.f32 %v5353_v54, 0.0  ;;  %v20607_v32 = vld [vmem:[#allocation26_spill] sm:$0xff] }
 0x343   : > { %v5348_v55 = vadd.f32 %v17852_v15, %v5347_v1  ;;  %v8839_v37 = vmax.f32 %v5345_v2, 0.0 }
 0x344   : > { %v8842_v26 = vmax.f32 %v5356_v25, 0.0  ;;  %15209 = vmatmul.mubr.bf16.gmra.mrb[52].mxu0 %v16352_v29  ;;  %v20606_v29 = vld [vmem:[#allocation31_spill] sm:$0xff]  ;;  %v20608_v25 = vld [vmem:[#allocation30_spill] sm:$0xff] }
 0x345   : > { %v8840_v13 = vmax.f32 %v5348_v55, 0.0  ;;  %14099 = vmatpush3.bf16.msra.mxu1 %v20603_v39  ;;  %15212 = vmatprep.mubr.bf16.mxu0 %v16353_v21  ;;  %v7684_v2 = vadd.f32 %v17852_v15, %v20606_v29  ;;  %v7689_v21 = vadd.f32 %v17852_v15, %v20607_v32  ;;  %v7692_v1 = vadd.f32 %v17852_v15, %v20608_v25  ;;  %v20610_v29 = vld [vmem:[#allocation53_spill] sm:$0xff] }
 0x346   : > { %v18047_v59 = vpack.c.bf16 %v8842_v26, %v8841_v61  ;;  %14100 = vmatprep.subr.bf16.mxu1 %v17806_v48  ;;  %v7681_v48 = vadd.f32 %v17852_v15, %v20605_v41  ;;  %v16356_v41 = vld [vmem:[%s17145_s25 + $0x4f8] sm:$0xff]  }
 0x347   : > { %v18050_v19 = vpack.c.bf16 %v8840_v13, %v8839_v37  ;;  %v15106_v6 = vpop.f32.mrb[204].mxu0  ;;  %v20609_v37 = vld [vmem:[#allocation54_spill] sm:$0xff]  ;;  %v20611_v25 = vld [vmem:[#allocation33_spill] sm:$0xff] }
 0x348   : > { %v5369_v36 = vadd.f32 %v17852_v15, %v15106_v6  ;;  %v5360_v16 = vpop.f32.mrb[205].mxu0  ;;  %v9423_v39 = vmax.f32 %v7681_v48, 0.0  ;;  %v9424_v6 = vmax.f32 %v7684_v2, 0.0 }
 0x349   : > { %v5361_v62 = vadd.f32 %v17852_v15, %v5360_v16  ;;  %14101 = vmatpush3.bf16.msra.mxu1 %v20604_v10  ;;  %v15107_v53 = vpop.f32.mrb[206].mxu0 }
 0x34a   : > { %v5372_v35 = vadd.f32 %v17852_v15, %v15107_v53  ;;  %14102 = vmatprep.subr.bf16.mxu1 %v17830_v22  ;;  %v5363_v54 = vpop.f32.mrb[207].mxu0  ;;  %v8845_v55 = vmax.f32 %v5369_v36, 0.0  ;;  %v18074_v53 = vld [vmem:[#allocation5 + $0x220] sm:$0xff] }
 0x34b   : > { %v5364_v44 = vadd.f32 %v17852_v15, %v5363_v54  ;;  %v8843_v26 = vmax.f32 %v5361_v62, 0.0  ;;  %v18076_v36 = vld [vmem:[#allocation5 + $0x320] sm:$0xff]  ;;  %v9426_v62 = vmax.f32 %v7692_v1, 0.0 }
 0x34c   : > { %v8846_v61 = vmax.f32 %v5372_v35, 0.0  ;;  %15213 = vmatmul.mubr.bf16.gmra.mrb[56].mxu0 %v16354_v18  ;;  %v9425_v18 = vmax.f32 %v7689_v21, 0.0  ;;  %v7705_v21 = vadd.f32 %v17852_v15, %v20611_v25 }
 0x34d   : > { %v8844_v22 = vmax.f32 %v5364_v44, 0.0  ;;  %14103 = vmatpush3.bf16.msra.mxu1 %v20609_v37  ;;  %15216 = vmatprep.mubr.bf16.mxu0 %v16355_v30  ;;  %v13321_v30 = vcombine.low %v18018_v11, %v18020_v60  ;;  %v16357_v44 = vld [vmem:[%s17145_s25 + $0x500] sm:$0xff]   ;;  %v13386_v11 = vcombine.high %v18074_v53, %v18076_v36 }
 0x34e   : > { %v18069_v13 = vpack.c.bf16 %v8846_v61, %v8845_v55  ;;  %14104 = vmatprep.subr.bf16.mxu1 %v17823_v58  ;;  %v18082_v58 = vpop.f32.mrb[48].mxu1  ;;  %v20612_v61 = vld [vmem:[#allocation34_spill] sm:$0xff]  ;;  %v18108_v20 = vpack.c.bf16 %v9426_v62, %v9425_v18  ;;  %v18118_v18 = vld [vmem:[#allocation5 + $0x128] sm:$0xff]  ;;  %v9429_v62 = vmax.f32 %v7705_v21, 0.0 }
 0x34f   : > { %v18072_v16 = vpack.c.bf16 %v8844_v22, %v8843_v26  ;;  %v15110_v10 = vpop.f32.mrb[208].mxu0  ;;  %v18087_v32 = vpop.f32.mrb[49].mxu1  ;;  %v7697_v26 = vadd.f32 %v17852_v15, %v20612_v61  ;;  %v20613_v22 = vld [vmem:[#allocation36_spill] sm:$0xff] }
 0x350   : > { %v5385_v35 = vadd.f32 %v17852_v15, %v15110_v10  ;;  %v5376_v54 = vpop.f32.mrb[209].mxu0  ;;  %v18095_v60 = vpop.f32.mrb[50].mxu1  ;;  %v7700_v37 = vadd.f32 %v17852_v15, %v20613_v22 }
 0x351   : > { %v5377_v48 = vadd.f32 %v17852_v15, %v5376_v54  ;;  %14105 = vmatpush3.bf16.msra.mxu1 %v20610_v29  ;;  %v15111_v2 = vpop.f32.mrb[210].mxu0  ;;  %v18102_v54 = vpop.f32.mrb[51].mxu1  ;;  %v18104_v29 = vpack.c.bf16 %v9424_v6, %v9423_v39  ;;  %v9427_v6 = vmax.f32 %v7697_v26, 0.0  ;;  %v16359_v26 = vld [vmem:[%s17145_s25 + $0x510] sm:$0xff]  }
 0x352   : > { %v5388_v1 = vadd.f32 %v17852_v15, %v15111_v2  ;;  %14118 = vmatprep.subr.bf16.mxu1 %v17942_v28  ;;  %v5379_v55 = vpop.f32.mrb[211].mxu0  ;;  %v20614_v2 = vld [vmem:[#allocation35_spill] sm:$0xff]  ;;  %v8849_v25 = vmax.f32 %v5385_v35, 0.0 }
 0x353   : > { %v5380_v10 = vadd.f32 %v17852_v15, %v5379_v55  ;;  %v7708_v28 = vadd.f32 %v17852_v15, %v20614_v2  ;;  %v8847_v23 = vmax.f32 %v5377_v48, 0.0  ;;  %v9428_v55 = vmax.f32 %v7700_v37, 0.0  ;;  %v20615_v37 = vld [vmem:[#allocation39_spill] sm:$0xff] }
 0x354   : > { %v8850_v12 = vmax.f32 %v5388_v1, 0.0  ;;  %15217 = vmatmul.mubr.bf16.gmra.mrb[60].mxu0 %v16356_v41  ;;  %11172 = vmatmul.mubr.bf16.vlgmr.msra.gmra.mrb[28].mxu1 %v13321_v30  ;;  %v18116_v30 = vld [vmem:[#allocation5 + $0x28] sm:$0xff]  ;;  %v7721_v21 = vadd.f32 %v17852_v15, %v20615_v37 }
 0x355   : > { %v8848_v61 = vmax.f32 %v5380_v10, 0.0  ;;  %14119 = vmatpush3.bf16.msra.mxu1 %v17855_v34  ;;  %15220 = vmatprep.mubr.bf16.mxu0 %v16357_v44  ;;  %v9430_v41 = vmax.f32 %v7708_v28, 0.0  ;;  %v16358_v44 = vld [vmem:[%s17145_s25 + $0x508] sm:$0xff]  }
 0x356   : > { %14120 = vmatprep.subr.bf16.mxu1 %v17936_v63  ;;  %11179 = vmatprep.mubr.bf16.mxu1 %v13386_v11  ;;  %v18112_v39 = vpack.c.bf16 %v8850_v12, %v8849_v25  ;;  %v13385_v63 = vcombine.low %v18074_v53, %v18076_v36  ;;  %v18124_v12 = vpop.f32.mrb[52].mxu1  ;;  %v20616_v10 = vld [vmem:[#allocation40_spill] sm:$0xff]  ;;  %v13324_v36 = vcombine.high %v18116_v30, %v18118_v18 }
 0x357   : > { %v15114_v35 = vpop.f32.mrb[212].mxu0  ;;  %v18114_v1 = vpack.c.bf16 %v8848_v61, %v8847_v23  ;;  %v18129_v22 = vpop.f32.mrb[53].mxu1  ;;  %v7713_v2 = vadd.f32 %v17852_v15, %v20616_v10  ;;  %v18148_v10 = vpack.c.bf16 %v9428_v55, %v9427_v6  ;;  %v18150_v33 = vpack.c.bf16 %v9430_v41, %v9429_v62 }
 0x358   : > { %v5401_v34 = vadd.f32 %v17852_v15, %v15114_v35  ;;  %v5392_v48 = vpop.f32.mrb[213].mxu0  ;;  %v18139_v25 = vpop.f32.mrb[54].mxu1  ;;  %v20618_v35 = vld [vmem:[#allocation42_spill] sm:$0xff] }
 0x359   : > { %v5393_v11 = vadd.f32 %v17852_v15, %v5392_v48  ;;  %14121 = vmatpush3.bf16.msra.mxu1 %v17849_v38  ;;  %v15115_v23 = vpop.f32.mrb[214].mxu0  ;;  %v20617_v38 = vld [vmem:[#allocation41_spill] sm:$0xff]  ;;  %v7716_v48 = vadd.f32 %v17852_v15, %v20618_v35  ;;  %v18146_v3 = vpop.f32.mrb[55].mxu1  ;;  %v9431_v6 = vmax.f32 %v7713_v2, 0.0 }
 0x35a   : > { %v5404_v28 = vadd.f32 %v17852_v15, %v15115_v23  ;;  %14122 = vmatprep.subr.bf16.mxu1 %v17972_v49  ;;  %v5395_v53 = vpop.f32.mrb[215].mxu0  ;;  %v7724_v61 = vadd.f32 %v17852_v15, %v20617_v38  ;;  %v8853_v23 = vmax.f32 %v5401_v34, 0.0  ;;  %v9433_v38 = vmax.f32 %v7721_v21, 0.0  ;;  %v16361_v21 = vld [vmem:[%s17145_s25 + $0x520] sm:$0xff]  }
 0x35b   : > { %v5396_v37 = vadd.f32 %v17852_v15, %v5395_v53  ;;  %v8851_v8 = vmax.f32 %v5393_v11, 0.0  ;;  %v9432_v34 = vmax.f32 %v7716_v48, 0.0  ;;  %v16360_v11 = vld [vmem:[%s17145_s25 + $0x518] sm:$0xff]   ;;  %v20622_v48 = vld [vmem:[#allocation52_spill] sm:$0xff] }
 0x35c   : > { %v8854_v49 = vmax.f32 %v5404_v28, 0.0  ;;  %15221 = vmatmul.mubr.bf16.gmra.mrb[64].mxu0 %v16358_v44  ;;  %11180 = vmatmul.mubr.bf16.gmra.mrb[32].mxu1 %v13385_v63  ;;  %v9434_v55 = vmax.f32 %v7724_v61, 0.0  ;;  %v20621_v61 = vld [vmem:[#allocation51_spill] sm:$0xff] }
 0x35d   : > { %v8852_v46 = vmax.f32 %v5396_v37, 0.0  ;;  %14123 = vmatpush3.bf16.msra.mxu1 %v17884_v27  ;;  %15224 = vmatprep.mubr.bf16.mxu0 %v16359_v26  ;;  %v7732_v37 = vadd.f32 %v17852_v15, %v20622_v48 }
 0x35e   : > { %14124 = vmatprep.subr.bf16.mxu1 %v17970_v7  ;;  %11220 = vmatprep.mubr.bf16.mxu1 %v13324_v36  ;;  %v18154_v53 = vpack.c.bf16 %v8854_v49, %v8853_v23  ;;  %v20619_v7 = vld [vmem:[#allocation49_spill] sm:$0xff]  ;;  %v20620_v36 = vld [vmem:[#allocation50_spill] sm:$0xff]  ;;  %v18174_v23 = vpack.c.bf16 %v9432_v34, %v9431_v6  ;;  %v18176_v49 = vpack.c.bf16 %v9434_v55, %v9433_v38 }
 0x35f   : > { %v15118_v44 = vpop.f32.mrb[216].mxu0  ;;  %v18156_v63 = vpack.c.bf16 %v8852_v46, %v8851_v8  ;;  %v7737_v28 = vadd.f32 %v17852_v15, %v20619_v7  ;;  %v7729_v2 = vadd.f32 %v17852_v15, %v20620_v36  ;;  %v7740_v46 = vadd.f32 %v17852_v15, %v20621_v61 }
 0x360   : > { %v5417_v62 = vadd.f32 %v17852_v15, %v15118_v44  ;;  %v5408_v41 = vpop.f32.mrb[217].mxu0  ;;  %v9436_v34 = vmax.f32 %v7732_v37, 0.0 }
 0x361   : > { %v5409_v27 = vadd.f32 %v17852_v15, %v5408_v41  ;;  %14125 = vmatpush3.bf16.msra.mxu1 %v17881_v9  ;;  %v15119_v26 = vpop.f32.mrb[218].mxu0  ;;  %v9435_v61 = vmax.f32 %v7729_v2, 0.0  ;;  %v9438_v6 = vmax.f32 %v7740_v46, 0.0 }
 0x362   : > { %v5420_v8 = vadd.f32 %v17852_v15, %v15119_v26  ;;  %14126 = vmatprep.subr.bf16.mxu1 %v17986_v5  ;;  %v5411_v35 = vpop.f32.mrb[219].mxu0  ;;  %v8857_v44 = vmax.f32 %v5417_v62, 0.0  ;;  %v9437_v5 = vmax.f32 %v7737_v28, 0.0 }
 0x363   : > { %v5412_v9 = vadd.f32 %v17852_v15, %v5411_v35  ;;  %v8855_v7 = vmax.f32 %v5409_v27, 0.0  ;;  %v16362_v27 = vld [vmem:[%s17145_s25 + $0x528] sm:$0xff]   ;;  %v18192_v46 = vpack.c.bf16 %v9436_v34, %v9435_v61  ;;  %v16364_v34 = vld [vmem:[%s17145_s25 + $0x538] sm:$0xff]  }
 0x364   : > { %v8858_v41 = vmax.f32 %v5420_v8, 0.0  ;;  %15225 = vmatmul.mubr.bf16.gmra.mrb[68].mxu0 %v16360_v11  ;;  %v18194_v35 = vpack.c.bf16 %v9438_v6, %v9437_v5  ;;  %v13323_v6 = vcombine.low %v18116_v30, %v18118_v18 }
 0x365   : > { %v8856_v36 = vmax.f32 %v5412_v9, 0.0  ;;  %14127 = vmatpush3.bf16.msra.mxu1 %v17898_v56  ;;  %15228 = vmatprep.mubr.bf16.mxu0 %v16361_v21  ;;  %v16363_v21 = vld [vmem:[%s17145_s25 + $0x530] sm:$0xff]  }
 0x366   : > { %14128 = vmatprep.subr.bf16.mxu1 %v17984_v4  ;;  %v18180_v26 = vpack.c.bf16 %v8858_v41, %v8857_v44 }
 0x367   : > { %v15122_v38 = vpop.f32.mrb[220].mxu0  ;;  %v18182_v55 = vpack.c.bf16 %v8856_v36, %v8855_v7  ;;  %v9732_v7 = vld [vmem:[#allocation5 + $0x228] sm:$0xff] }
 0x368   : > { %v5433_v62 = vadd.f32 %v17852_v15, %v15122_v38  ;;  %v5424_v11 = vpop.f32.mrb[221].mxu0  ;;  %v9764_v36 = vld [vmem:[#allocation5 + $0x328] sm:$0xff] }
 0x369   : > { %v5425_v8 = vadd.f32 %v17852_v15, %v5424_v11  ;;  %14129 = vmatpush3.bf16.msra.mxu1 %v17895_v24  ;;  %v15123_v56 = vpop.f32.mrb[222].mxu0 }
 0x36a   : > { %v5436_v4 = vadd.f32 %v17852_v15, %v15123_v56  ;;  %14130 = vmatprep.subr.bf16.mxu1 %v18000_v42  ;;  %v5427_v28 = vpop.f32.mrb[223].mxu0  ;;  %v8861_v48 = vmax.f32 %v5433_v62, 0.0 }
 0x36b   : > { %v5428_v2 = vadd.f32 %v17852_v15, %v5427_v28  ;;  %v8859_v9 = vmax.f32 %v5425_v8, 0.0  ;;  %v18218_v28 = vld [vmem:[#allocation5 + $0x30] sm:$0xff] }
 0x36c   : > { %v8862_v37 = vmax.f32 %v5436_v4, 0.0  ;;  %15229 = vmatmul.mubr.bf16.gmra.mrb[72].mxu0 %v16362_v27  ;;  %v13388_v27 = vcombine.high %v9732_v7, %v9764_v36 }
 0x36d   : > { %v8860_v44 = vmax.f32 %v5428_v2, 0.0  ;;  %14131 = vmatpush3.bf16.msra.mxu1 %v17912_v0  ;;  %15232 = vmatprep.mubr.bf16.mxu0 %v16363_v21  ;;  %v18220_v2 = vld [vmem:[#allocation5 + $0x130] sm:$0xff] }
 0x36e   : > { %14132 = vmatprep.subr.bf16.mxu1 %v17998_v50  ;;  %v18198_v24 = vpack.c.bf16 %v8862_v37, %v8861_v48  ;;  %v16365_v50 = vld [vmem:[%s17145_s25 + $0x540] sm:$0xff]  }
 0x36f   : > { %v15126_v42 = vpop.f32.mrb[224].mxu0  ;;  %v18200_v41 = vpack.c.bf16 %v8860_v44, %v8859_v9  ;;  %v16366_v9 = vld [vmem:[%s17145_s25 + $0x548] sm:$0xff]   ;;  %v13387_v44 = vcombine.low %v9732_v7, %v9764_v36 }
 0x370   : > { %v5449_v5 = vadd.f32 %v17852_v15, %v15126_v42  ;;  %v5440_v61 = vpop.f32.mrb[225].mxu0 }
 0x371   : > { %v5441_v38 = vadd.f32 %v17852_v15, %v5440_v61  ;;  %14133 = vmatpush3.bf16.msra.mxu1 %v17909_v47  ;;  %v15127_v0 = vpop.f32.mrb[226].mxu0 }
 0x372   : > { %v5452_v62 = vadd.f32 %v17852_v15, %v15127_v0  ;;  %14146 = vmatprep.subr.bf16.mxu1 %v18114_v1  ;;  %v5443_v11 = vpop.f32.mrb[227].mxu0  ;;  %v8865_v56 = vmax.f32 %v5449_v5, 0.0  ;;  %v16367_v5 = vld [vmem:[%s17145_s25 + $0x550] sm:$0xff]  }
 0x373   : > { %v5444_v8 = vadd.f32 %v17852_v15, %v5443_v11  ;;  %v8863_v30 = vmax.f32 %v5441_v38, 0.0 }
 0x374   : > { %v8866_v21 = vmax.f32 %v5452_v62, 0.0  ;;  %15233 = vmatmul.mubr.bf16.gmra.mrb[76].mxu0 %v16364_v34  ;;  %11221 = vmatmul.mubr.bf16.vlgmr.msra.gmra.mrb[36].mxu1 %v13323_v6  ;;  %v13326_v6 = vcombine.high %v18218_v28, %v18220_v2 }
 0x375   : > { %v8864_v18 = vmax.f32 %v5444_v8, 0.0  ;;  %14147 = vmatpush3.bf16.msra.mxu1 %v18016_v51  ;;  %15236 = vmatprep.mubr.bf16.mxu0 %v16365_v50 }
 0x376   : > { %v18213_v47 = vpack.c.bf16 %v8866_v21, %v8865_v56  ;;  %14148 = vmatprep.subr.bf16.mxu1 %v18112_v39  ;;  %11228 = vmatprep.mubr.bf16.mxu1 %v13388_v27  ;;  %v16368_v27 = vld [vmem:[%s17145_s25 + $0x558] sm:$0xff]   ;;  %v16369_v21 = vld [vmem:[%s17145_s25 + $0x560] sm:$0xff]  }
 0x377   : > { %v18216_v1 = vpack.c.bf16 %v8864_v18, %v8863_v30  ;;  %v15130_v4 = vpop.f32.mrb[228].mxu0 }
 0x378   : > { %v5465_v48 = vadd.f32 %v17852_v15, %v15130_v4  ;;  %v5456_v37 = vpop.f32.mrb[229].mxu0 }
 0x379   : > { %v5457_v51 = vadd.f32 %v17852_v15, %v5456_v37  ;;  %14149 = vmatpush3.bf16.msra.mxu1 %v18013_v14  ;;  %v15131_v42 = vpop.f32.mrb[230].mxu0 }
 0x37a   : > { %v5468_v39 = vadd.f32 %v17852_v15, %v15131_v42  ;;  %14150 = vmatprep.subr.bf16.mxu1 %v18156_v63  ;;  %v5459_v61 = vpop.f32.mrb[231].mxu0  ;;  %v8869_v38 = vmax.f32 %v5465_v48, 0.0  ;;  %v16370_v42 = vld [vmem:[%s17145_s25 + $0x568] sm:$0xff]  }
 0x37b   : > { %v5460_v34 = vadd.f32 %v17852_v15, %v5459_v61  ;;  %v8867_v7 = vmax.f32 %v5457_v51, 0.0  ;;  %v16371_v61 = vld [vmem:[%s17145_s25 + $0x570] sm:$0xff]  }
 0x37c   : > { %v8870_v0 = vmax.f32 %v5468_v39, 0.0  ;;  %15237 = vmatmul.mubr.bf16.gmra.mrb[80].mxu0 %v16366_v9  ;;  %11229 = vmatmul.mubr.bf16.gmra.mrb[40].mxu1 %v13387_v44 }
 0x37d   : > { %v8868_v14 = vmax.f32 %v5460_v34, 0.0  ;;  %14151 = vmatpush3.bf16.msra.mxu1 %v18036_v17  ;;  %15240 = vmatprep.mubr.bf16.mxu0 %v16367_v5  ;;  %v18243_v17 = vld [vmem:[#allocation8] ss:$0 sm:$0xff] }
 0x37e   : > { %v18233_v36 = vpack.c.bf16 %v8870_v0, %v8869_v38  ;;  %14152 = vmatprep.subr.bf16.mxu1 %v18154_v53  ;;  %11269 = vmatprep.mubr.bf16.mxu1 %v13326_v6  ;;  %v7809_v34 = vadd.f32 %v18243_v17, %v17957_v52  ;;  %v7812_v38 = vadd.f32 %v18243_v17, %v17966_v57  ;;  %v18274_v52 = vld [vmem:[#allocation5 + $0x230] sm:$0xff] }
 0x37f   : > { %v18236_v63 = vpack.c.bf16 %v8868_v14, %v8867_v7  ;;  %v15134_v50 = vpop.f32.mrb[232].mxu0  ;;  %v7820_v14 = vadd.f32 %v18243_v17, %v17963_v40  ;;  %v18276_v57 = vld [vmem:[#allocation5 + $0x330] sm:$0xff] }
 0x380   : > { %v5481_v62 = vadd.f32 %v17852_v15, %v15134_v50  ;;  %v5472_v11 = vpop.f32.mrb[233].mxu0 }
 0x381   : > { %v5473_v8 = vadd.f32 %v17852_v15, %v5472_v11  ;;  %14153 = vmatpush3.bf16.msra.mxu1 %v18033_v31  ;;  %v15135_v56 = vpop.f32.mrb[234].mxu0 }
 0x382   : > { %v5484_v30 = vadd.f32 %v18243_v17, %v15135_v56  ;;  %14154 = vmatprep.subr.bf16.mxu1 %v18182_v55  ;;  %v5475_v53 = vpop.f32.mrb[235].mxu0  ;;  %v8873_v4 = vmax.f32 %v5481_v62, 0.0 }
 0x383   : > { %v5476_v18 = vadd.f32 %v18243_v17, %v5475_v53  ;;  %v8871_v37 = vmax.f32 %v5473_v8, 0.0  ;;  %v9456_v8 = vmax.f32 %v7812_v38, 0.0  ;;  %v13325_v53 = vcombine.low %v18218_v28, %v18220_v2  ;;  %v18313_v38 = vld [vmem:[#allocation5 + $0x138] sm:$0xff] }
 0x384   : > { %v8874_v48 = vmax.f32 %v5484_v30, 0.0  ;;  %15241 = vmatmul.mubr.bf16.gmra.mrb[84].mxu0 %v16368_v27  ;;  %v9455_v27 = vmax.f32 %v7809_v34, 0.0  ;;  %v9458_v30 = vmax.f32 %v7820_v14, 0.0 }
 0x385   : > { %v8872_v15 = vmax.f32 %v5476_v18, 0.0  ;;  %14155 = vmatpush3.bf16.msra.mxu1 %v18050_v19  ;;  %15244 = vmatprep.mubr.bf16.mxu0 %v16369_v21  ;;  %v16372_v21 = vld [vmem:[%s17145_s25 + $0x578] sm:$0xff]  }
 0x386   : > { %v18249_v31 = vpack.c.bf16 %v8874_v48, %v8873_v4  ;;  %14156 = vmatprep.subr.bf16.mxu1 %v18180_v26  ;;  %v16373_v48 = vld [vmem:[%s17145_s25 + $0x580] sm:$0xff]  }
 0x387   : > { %v18252_v9 = vpack.c.bf16 %v8872_v15, %v8871_v37  ;;  %v15138_v55 = vpop.f32.mrb[236].mxu0  ;;  %v13390_v37 = vcombine.high %v18274_v52, %v18276_v57 }
 0x388   : > { %v5497_v44 = vadd.f32 %v18243_v17, %v15138_v55  ;;  %v5488_v51 = vpop.f32.mrb[237].mxu0 }
 0x389   : > { %v5489_v5 = vadd.f32 %v18243_v17, %v5488_v51  ;;  %14157 = vmatpush3.bf16.msra.mxu1 %v18047_v59  ;;  %v15139_v39 = vpop.f32.mrb[238].mxu0  ;;  %v7817_v59 = vadd.f32 %v18243_v17, %v17950_v43  ;;  %v7833_v51 = vadd.f32 %v18243_v17, %v18082_v58  ;;  %v7836_v58 = vadd.f32 %v18243_v17, %v18095_v60  ;;  %v16374_v60 = vld [vmem:[%s17145_s25 + $0x588] sm:$0xff]  }
 0x38a   : > { %v5500_v19 = vadd.f32 %v18243_v17, %v15139_v39  ;;  %14158 = vmatprep.subr.bf16.mxu1 %v18200_v41  ;;  %v5491_v6 = vpop.f32.mrb[239].mxu0  ;;  %v8877_v0 = vmax.f32 %v5497_v44, 0.0  ;;  %v18305_v39 = vpack.c.bf16 %v9456_v8, %v9455_v27  ;;  %v13389_v8 = vcombine.low %v18274_v52, %v18276_v57 }
 0x38b   : > { %v5492_v26 = vadd.f32 %v18243_v17, %v5491_v6  ;;  %v8875_v41 = vmax.f32 %v5489_v5, 0.0  ;;  %v9462_v27 = vmax.f32 %v7836_v58, 0.0  ;;  %v7852_v52 = vadd.f32 %v18243_v17, %v18139_v25 }
 0x38c   : > { %v8878_v7 = vmax.f32 %v5500_v19, 0.0  ;;  %15245 = vmatmul.mubr.bf16.gmra.mrb[88].mxu0 %v16370_v42  ;;  %v7828_v42 = vadd.f32 %v18243_v17, %v18102_v54  ;;  %20623 = vst [vmem:[#allocation32_spill] sm:$0xff] %v18305_v39  ;;  %v18311_v54 = vld [vmem:[#allocation5 + $0x38] sm:$0xff]  ;;  %v7844_v57 = vadd.f32 %v18243_v17, %v18146_v3 }
 0x38d   : > { %v8876_v50 = vmax.f32 %v5492_v26, 0.0  ;;  %14159 = vmatpush3.bf16.msra.mxu1 %v18072_v16  ;;  %15248 = vmatprep.mubr.bf16.mxu0 %v16371_v61  ;;  %v9457_v16 = vmax.f32 %v7817_v59, 0.0 }
 0x38e   : > { %v18271_v62 = vpack.c.bf16 %v8878_v7, %v8877_v0  ;;  %14160 = vmatprep.subr.bf16.mxu1 %v18198_v24  ;;  %v18284_v24 = vpop.f32.mrb[56].mxu1  ;;  %v9460_v14 = vmax.f32 %v7828_v42, 0.0 }
 0x38f   : > { %v18278_v11 = vpack.c.bf16 %v8876_v50, %v8875_v41  ;;  %v15142_v43 = vpop.f32.mrb[240].mxu0  ;;  %v18291_v15 = vpop.f32.mrb[57].mxu1  ;;  %v18309_v6 = vpack.c.bf16 %v9458_v30, %v9457_v16  ;;  %v16375_v16 = vld [vmem:[%s17145_s25 + $0x590] sm:$0xff]   ;;  %v7849_v30 = vadd.f32 %v18243_v17, %v18124_v12 }
 0x390   : > { %v5513_v40 = vadd.f32 %v18243_v17, %v15142_v43  ;;  %v5504_v56 = vpop.f32.mrb[241].mxu0  ;;  %v18296_v28 = vpop.f32.mrb[58].mxu1  ;;  %v9461_v43 = vmax.f32 %v7833_v51, 0.0 }
 0x391   : > { %v5505_v18 = vadd.f32 %v18243_v17, %v5504_v56  ;;  %14161 = vmatpush3.bf16.msra.mxu1 %v18069_v13  ;;  %v15143_v4 = vpop.f32.mrb[242].mxu0  ;;  %v7825_v13 = vadd.f32 %v18243_v17, %v18087_v32  ;;  %v18303_v5 = vpop.f32.mrb[59].mxu1  ;;  %20624 = vst [vmem:[#allocation23_spill] sm:$0xff] %v18309_v6 }
 0x392   : > { %v5516_v55 = vadd.f32 %v18243_v17, %v15143_v4  ;;  %v5507_v44 = vpop.f32.mrb[243].mxu0  ;;  %v8881_v61 = vmax.f32 %v5513_v40, 0.0  ;;  %v15734_v40 = vpop.f32.mrb[60].mxu1 }
 0x393   : > { %v5508_v2 = vadd.f32 %v18243_v17, %v5507_v44  ;;  %v8879_v26 = vmax.f32 %v5505_v18, 0.0  ;;  %v9459_v59 = vmax.f32 %v7825_v13, 0.0  ;;  %v13328_v18 = vcombine.high %v18311_v54, %v18313_v38  ;;  %v7872_v4 = vpop.f32.mrb[61].mxu1 }
 0x394   : > { %v8882_v19 = vmax.f32 %v5516_v55, 0.0  ;;  %15249 = vmatmul.mubr.bf16.gmra.mrb[92].mxu0 %v16372_v21  ;;  %11270 = vmatmul.mubr.bf16.vlgmr.msra.gmra.mrb[44].mxu1 %v13325_v53  ;;  %v7841_v53 = vadd.f32 %v18243_v17, %v18129_v22  ;;  %v7881_v12 = vadd.f32 %v18243_v17, %v15734_v40  ;;  %v15735_v55 = vpop.f32.mrb[62].mxu1  ;;  %v7873_v51 = vadd.f32 %v18243_v17, %v7872_v4 }
 0x395   : > { %v8880_v34 = vmax.f32 %v5508_v2, 0.0  ;;  %15252 = vmatprep.mubr.bf16.mxu0 %v16373_v48  ;;  %11277 = vmatprep.mubr.bf16.mxu1 %v13390_v37  ;;  %v7875_v2 = vpop.f32.mrb[63].mxu1  ;;  %v18336_v13 = vpack.c.bf16 %v9460_v14, %v9459_v59  ;;  %v7884_v25 = vadd.f32 %v18243_v17, %v15735_v55  ;;  %v7857_v4 = vadd.f32 %v18243_v17, %v18291_v15 }
 0x396   : > { %v9912_v32 = vpack.c.bf16 %v8882_v19, %v8881_v61  ;;  %v18339_v61 = vpack.c.bf16 %v9462_v27, %v9461_v43  ;;  %v9471_v58 = vmax.f32 %v7873_v51, 0.0 }
 0x397   : > { %v15146_v0 = vpop.f32.mrb[244].mxu0  ;;  %v9911_v7 = vpack.c.bf16 %v8880_v34, %v8879_v26  ;;  %20625 = vst [vmem:[#allocation38_spill] sm:$0xff] %v18336_v13  ;;  %v7876_v26 = vadd.f32 %v18243_v17, %v7875_v2  ;;  %v9467_v2 = vmax.f32 %v7857_v4, 0.0 }
 0x398   : > { %v5529_v41 = vadd.f32 %v18243_v17, %v15146_v0  ;;  %v5520_v50 = vpop.f32.mrb[245].mxu0  ;;  %20626 = vst [vmem:[#allocation25_spill] sm:$0xff] %v18339_v61  ;;  %v9463_v0 = vmax.f32 %v7841_v53, 0.0 }
 0x399   : > { %v5521_v56 = vadd.f32 %v18243_v17, %v5520_v50  ;;  %v15147_v21 = vpop.f32.mrb[246].mxu0  ;;  %14174 = vmatprep.subr.bf16.mxu1 %v9911_v7  ;;  %v9474_v7 = vmax.f32 %v7884_v25, 0.0  ;;  %v9464_v50 = vmax.f32 %v7844_v57, 0.0 }
 0x39a   : > { %v5532_v48 = vadd.f32 %v18243_v17, %v15147_v21  ;;  %v5523_v37 = vpop.f32.mrb[247].mxu0  ;;  %14175 = vmatpush3.bf16.msra.mxu1 %v18216_v1  ;;  %v8885_v44 = vmax.f32 %v5529_v41, 0.0  ;;  %v9473_v1 = vmax.f32 %v7881_v12, 0.0  ;;  %v9466_v41 = vmax.f32 %v7852_v52, 0.0 }
 0x39b   : > { %v5524_v22 = vadd.f32 %v18243_v17, %v5523_v37  ;;  %14176 = vmatprep.subr.bf16.mxu1 %v9912_v32  ;;  %v8883_v3 = vmax.f32 %v5521_v56, 0.0  ;;  %v9465_v32 = vmax.f32 %v7849_v30, 0.0  ;;  %v7860_v52 = vadd.f32 %v18243_v17, %v18303_v5 }
 0x39c   : > { %v8886_v42 = vmax.f32 %v5532_v48, 0.0  ;;  %15253 = vmatmul.mubr.bf16.gmra.mrb[96].mxu0 %v16374_v60  ;;  %11278 = vmatmul.mubr.bf16.gmra.mrb[48].mxu1 %v13389_v8  ;;  %v9472_v60 = vmax.f32 %v7876_v26, 0.0  ;;  %v16376_v8 = vld [vmem:[%s17145_s25 + $0x598] sm:$0xff]   ;;  %v18345_v40 = vpack.c.bf16 %v9474_v7, %v9473_v1  ;;  %v7868_v48 = vadd.f32 %v18243_v17, %v18296_v28  ;;  %v16379_v26 = vld [vmem:[%s17145_s25 + $0x5b0] sm:$0xff]  }
 0x39d   : > { %v8884_v19 = vmax.f32 %v5524_v22, 0.0  ;;  %15256 = vmatprep.mubr.bf16.mxu0 %v16375_v16  ;;  %11318 = vmatprep.mubr.bf16.mxu1 %v13328_v18  ;;  %v7865_v18 = vadd.f32 %v18243_v17, %v18284_v24  ;;  %v18362_v57 = vpack.c.bf16 %v9464_v50, %v9463_v0  ;;  %v18364_v12 = vpack.c.bf16 %v9466_v41, %v9465_v32 }
 0x39e   : > { %14177 = vmatpush3.bf16.msra.mxu1 %v18213_v47  ;;  %v9914_v34 = vpack.c.bf16 %v8886_v42, %v8885_v44  ;;  %20627 = vst [vmem:[#allocation37_spill] sm:$0xff] %v18345_v40  ;;  %v16377_v47 = vld [vmem:[%s17145_s25 + $0x5a0] sm:$0xff]   ;;  %v18349_v16 = vpack.c.bf16 %v9472_v60, %v9471_v58  ;;  %v9470_v5 = vmax.f32 %v7868_v48, 0.0  ;;  %v9468_v42 = vmax.f32 %v7860_v52, 0.0  ;;  %v18388_v48 = vld [vmem:[#allocation5 + $0x338] sm:$0xff] }
 0x39f   : > { %v15150_v59 = vpop.f32.mrb[248].mxu0  ;;  %v9913_v14 = vpack.c.bf16 %v8884_v19, %v8883_v3  ;;  %20629 = vst [vmem:[#allocation44_spill] sm:$0xff] %v18362_v57  ;;  %20630 = vst [vmem:[#allocation55_spill] sm:$0xff] %v18364_v12  ;;  %v9469_v28 = vmax.f32 %v7865_v18, 0.0  ;;  %v16378_v3 = vld [vmem:[%s17145_s25 + $0x5a8] sm:$0xff]  }
 0x3a0   : > { %v5545_v43 = vadd.f32 %v18243_v17, %v15150_v59  ;;  %v5536_v27 = vpop.f32.mrb[249].mxu0  ;;  %20628 = vst [vmem:[#allocation24_spill] sm:$0xff] %v18349_v16  ;;  %v18374_v0 = vpack.c.bf16 %v9468_v42, %v9467_v2 }
 0x3a1   : > { %v5537_v56 = vadd.f32 %v18243_v17, %v5536_v27  ;;  %v15151_v21 = vpop.f32.mrb[250].mxu0  ;;  %14178 = vmatprep.subr.bf16.mxu1 %v9913_v14  ;;  %v18376_v7 = vpack.c.bf16 %v9470_v5, %v9469_v28 }
 0x3a2   : > { %v5548_v30 = vadd.f32 %v18243_v17, %v15151_v21  ;;  %v5539_v53 = vpop.f32.mrb[251].mxu0  ;;  %14179 = vmatpush3.bf16.msra.mxu1 %v18236_v63  ;;  %v8889_v63 = vmax.f32 %v5545_v43, 0.0  ;;  %20631 = vst [vmem:[#allocation43_spill] sm:$0xff] %v18374_v0 }
 0x3a3   : > { %v5540_v37 = vadd.f32 %v18243_v17, %v5539_v53  ;;  %14180 = vmatprep.subr.bf16.mxu1 %v9914_v34  ;;  %v8887_v24 = vmax.f32 %v5537_v56, 0.0  ;;  %20632 = vst [vmem:[#allocation46_spill] sm:$0xff] %v18376_v7  ;;  %v16380_v56 = vld [vmem:[%s17145_s25 + $0x5b8] sm:$0xff]  }
 0x3a4   : > { %v8890_v55 = vmax.f32 %v5548_v30, 0.0  ;;  %15257 = vmatmul.mubr.bf16.gmra.mrb[100].mxu0 %v16376_v8  ;;  %v16381_v30 = vld [vmem:[%s17145_s25 + $0x5c0] sm:$0xff]  }
 0x3a5   : > { %v8888_v44 = vmax.f32 %v5540_v37, 0.0  ;;  %15260 = vmatprep.mubr.bf16.mxu0 %v16377_v47  ;;  %v15738_v37 = vpop.f32.mrb[64].mxu1 }
 0x3a6   : > { %14181 = vmatpush3.bf16.msra.mxu1 %v18233_v36  ;;  %v9916_v15 = vpack.c.bf16 %v8890_v55, %v8889_v63  ;;  %v7888_v55 = vpop.f32.mrb[65].mxu1  ;;  %v7897_v42 = vadd.f32 %v18243_v17, %v15738_v37 }
 0x3a7   : > { %v15154_v22 = vpop.f32.mrb[252].mxu0  ;;  %v9915_v51 = vpack.c.bf16 %v8888_v44, %v8887_v24 }
 0x3a8   : > { %v5561_v1 = vadd.f32 %v18243_v17, %v15154_v22  ;;  %v5552_v25 = vpop.f32.mrb[253].mxu0 }
 0x3a9   : > { %v5553_v19 = vadd.f32 %v18243_v17, %v5552_v25  ;;  %v15155_v58 = vpop.f32.mrb[254].mxu0  ;;  %14182 = vmatprep.subr.bf16.mxu1 %v9915_v51 }
 0x3aa   : > { %v5564_v34 = vadd.f32 %v18243_v17, %v15155_v58  ;;  %v5555_v32 = vpop.f32.mrb[255].mxu0  ;;  %14183 = vmatpush3.bf16.msra.mxu1 %v18252_v9  ;;  %v8893_v59 = vmax.f32 %v5561_v1, 0.0  ;;  %v7889_v1 = vadd.f32 %v18243_v17, %v7888_v55 }
 0x3ab   : > { %v5556_v36 = vadd.f32 %v18243_v17, %v5555_v32  ;;  %14184 = vmatprep.subr.bf16.mxu1 %v9916_v15  ;;  %v8891_v41 = vmax.f32 %v5553_v19, 0.0  ;;  %v13327_v15 = vcombine.low %v18311_v54, %v18313_v38 }
 0x3ac   : > { %v8894_v14 = vmax.f32 %v5564_v34, 0.0  ;;  %15261 = vmatmul.mubr.bf16.gmra.mrb[104].mxu0 %v16378_v3  ;;  %v16382_v3 = vld [vmem:[%s17145_s25 + $0x5c8] sm:$0xff]   ;;  %v9477_v34 = vmax.f32 %v7897_v42, 0.0  ;;  %v9475_v32 = vmax.f32 %v7889_v1, 0.0  ;;  %v16385_v1 = vld [vmem:[%s17145_s25 + $0x5e0] sm:$0xff]  }
 0x3ad   : > { %v8892_v50 = vmax.f32 %v5556_v36, 0.0  ;;  %15264 = vmatprep.mubr.bf16.mxu0 %v16379_v26  ;;  %v16383_v26 = vld [vmem:[%s17145_s25 + $0x5d0] sm:$0xff]  }
 0x3ae   : > { %14185 = vmatpush3.bf16.msra.mxu1 %v18249_v31  ;;  %v9918_v60 = vpack.c.bf16 %v8894_v14, %v8893_v59  ;;  %v18386_v31 = vld [vmem:[#allocation5 + $0x238] sm:$0xff] }
 0x3af   : > { %v15158_v43 = vpop.f32.mrb[0].mxu0  ;;  %v9917_v9 = vpack.c.bf16 %v8892_v50, %v8891_v41  ;;  %v13392_v22 = vcombine.high %v18386_v31, %v18388_v48 }
 0x3b0   : > { %v5577_v27 = vadd.f32 %v18243_v17, %v15158_v43  ;;  %v5568_v8 = vpop.f32.mrb[1].mxu0  ;;  %v18411_v43 = vld [vmem:[#allocation5 + $0x140] sm:$0xff] }
 0x3b1   : > { %v5569_v21 = vadd.f32 %v18243_v17, %v5568_v8  ;;  %v15159_v47 = vpop.f32.mrb[2].mxu0  ;;  %14186 = vmatprep.subr.bf16.mxu1 %v9917_v9 }
 0x3b2   : > { %v5580_v53 = vadd.f32 %v18243_v17, %v15159_v47  ;;  %v5571_v18 = vpop.f32.mrb[3].mxu0  ;;  %14187 = vmatpush3.bf16.msra.mxu1 %v18278_v11  ;;  %v8897_v52 = vmax.f32 %v5577_v27, 0.0  ;;  %v15739_v11 = vpop.f32.mrb[66].mxu1 }
 0x3b3   : > { %v5572_v4 = vadd.f32 %v18243_v17, %v5571_v18  ;;  %14188 = vmatprep.subr.bf16.mxu1 %v9918_v60  ;;  %v8895_v24 = vmax.f32 %v5569_v21, 0.0  ;;  %v7891_v51 = vpop.f32.mrb[67].mxu1  ;;  %v7900_v25 = vadd.f32 %v18243_v17, %v15739_v11  ;;  %v18409_v60 = vld [vmem:[#allocation5 + $0x40] sm:$0xff]  ;;  %v13391_v18 = vcombine.low %v18386_v31, %v18388_v48  ;;  %v16384_v48 = vld [vmem:[%s17145_s25 + $0x5d8] sm:$0xff]  }
 0x3b4   : > { %v8898_v63 = vmax.f32 %v5580_v53, 0.0  ;;  %15265 = vmatmul.mubr.bf16.gmra.mrb[108].mxu0 %v16380_v56  ;;  %v7892_v19 = vadd.f32 %v18243_v17, %v7891_v51  ;;  %v15742_v27 = vpop.f32.mrb[68].mxu1 }
 0x3b5   : > { %v8896_v44 = vmax.f32 %v5572_v4, 0.0  ;;  %15268 = vmatprep.mubr.bf16.mxu0 %v16381_v30  ;;  %v9478_v36 = vmax.f32 %v7900_v25, 0.0  ;;  %v7904_v47 = vpop.f32.mrb[69].mxu1 }
 0x3b6   : > { %v18392_v28 = vpack.c.bf16 %v8898_v63, %v8897_v52  ;;  %14189 = vmatpush3.bf16.msra.mxu1 %v18271_v62  ;;  %v9476_v41 = vmax.f32 %v7892_v19, 0.0  ;;  %v15743_v4 = vpop.f32.mrb[70].mxu1  ;;  %v13330_v52 = vcombine.high %v18409_v60, %v18411_v43 }
 0x3b7   : > { %v18397_v2 = vpack.c.bf16 %v8896_v44, %v8895_v24  ;;  %v15162_v5 = vpop.f32.mrb[4].mxu0  ;;  %v18413_v9 = vpack.c.bf16 %v9478_v36, %v9477_v34  ;;  %v7907_v63 = vpop.f32.mrb[71].mxu1  ;;  %v7913_v44 = vadd.f32 %v18243_v17, %v15742_v27  ;;  %v7916_v11 = vadd.f32 %v18243_v17, %v15743_v4 }
 0x3b8   : > { %v5593_v54 = vadd.f32 %v18243_v17, %v15162_v5  ;;  %v5584_v38 = vpop.f32.mrb[5].mxu0  ;;  %v18415_v21 = vpack.c.bf16 %v9476_v41, %v9475_v32  ;;  %v7908_v51 = vadd.f32 %v18243_v17, %v7907_v63  ;;  %v15746_v34 = vpop.f32.mrb[72].mxu1 }
 0x3b9   : > { %v5585_v62 = vadd.f32 %v18243_v17, %v5584_v38  ;;  %v15163_v58 = vpop.f32.mrb[6].mxu0  ;;  %11319 = vmatmul.mubr.bf16.vlgmr.msra.gmra.mrb[52].mxu1 %v13327_v15  ;;  %20633 = vst [vmem:[#allocation45_spill] sm:$0xff] %v18413_v9  ;;  %v7905_v15 = vadd.f32 %v18243_v17, %v7904_v47  ;;  %v9481_v25 = vmax.f32 %v7913_v44, 0.0  ;;  %v9482_v38 = vmax.f32 %v7916_v11, 0.0 }
 0x3ba   : > { %v5596_v59 = vadd.f32 %v18243_v17, %v15163_v58  ;;  %v5587_v14 = vpop.f32.mrb[7].mxu0  ;;  %11326 = vmatprep.mubr.bf16.mxu1 %v13392_v22  ;;  %v8901_v8 = vmax.f32 %v5593_v54, 0.0  ;;  %20634 = vst [vmem:[#allocation48_spill] sm:$0xff] %v18415_v21 }
 0x3bb   : > { %v5588_v50 = vadd.f32 %v18243_v17, %v5587_v14  ;;  %v8899_v30 = vmax.f32 %v5585_v62, 0.0  ;;  %v9479_v54 = vmax.f32 %v7905_v15, 0.0  ;;  %v9480_v62 = vmax.f32 %v7908_v51, 0.0  ;;  %v7920_v14 = vpop.f32.mrb[73].mxu1 }
 0x3bc   : > { %v8902_v56 = vmax.f32 %v5596_v59, 0.0  ;;  %15269 = vmatmul.mubr.bf16.gmra.mrb[112].mxu0 %v16382_v3  ;;  %v15747_v27 = vpop.f32.mrb[74].mxu1 }
 0x3bd   : > { %v8900_v53 = vmax.f32 %v5588_v50, 0.0  ;;  %15272 = vmatprep.mubr.bf16.mxu0 %v16383_v26  ;;  %v18435_v26 = vpack.c.bf16 %v9482_v38, %v9481_v25  ;;  %v18437_v59 = vpack.c.bf16 %v9480_v62, %v9479_v54  ;;  %v7932_v4 = vadd.f32 %v18243_v17, %v15747_v27 }
 0x3be   : > { %v18419_v37 = vpack.c.bf16 %v8902_v56, %v8901_v8  ;;  %v7923_v56 = vpop.f32.mrb[75].mxu1 }
 0x3bf   : > { %v18423_v55 = vpack.c.bf16 %v8900_v53, %v8899_v30  ;;  %v15166_v24 = vpop.f32.mrb[8].mxu0  ;;  %20635 = vst [vmem:[#allocation47_spill] sm:$0xff] %v18435_v26  ;;  %20636 = vst [vmem:[#allocation29_spill] sm:$0xff] %v18437_v59  ;;  %v7929_v53 = vadd.f32 %v18243_v17, %v15746_v34  ;;  %v7924_v44 = vadd.f32 %v18243_v17, %v7923_v56  ;;  %v9486_v51 = vmax.f32 %v7932_v4, 0.0  ;;  %v15750_v38 = vpop.f32.mrb[76].mxu1  ;;  %v16450_v26 = vld [vmem:[%s17145_s25 + $0x7e8] sm:$0xff]  }
 0x3c0   : > { %v5609_v22 = vadd.f32 %v18243_v17, %v15166_v24  ;;  %v5600_v31 = vpop.f32.mrb[9].mxu0  ;;  %v16386_v24 = vld [vmem:[%s17145_s25 + $0x5e8] sm:$0xff]   ;;  %v7945_v56 = vadd.f32 %v18243_v17, %v15750_v38  ;;  %v16451_v59 = vld [vmem:[%s17145_s25 + $0x7f0] sm:$0xff]  }
 0x3c1   : > { %v5601_v5 = vadd.f32 %v18243_v17, %v5600_v31  ;;  %v15167_v42 = vpop.f32.mrb[10].mxu0  ;;  %11327 = vmatmul.mubr.bf16.gmra.mrb[56].mxu1 %v13391_v18  ;;  %v7921_v18 = vadd.f32 %v18243_v17, %v7920_v14  ;;  %v9485_v31 = vmax.f32 %v7929_v53, 0.0 }
 0x3c2   : > { %v5612_v3 = vadd.f32 %v18243_v17, %v15167_v42  ;;  %v5603_v19 = vpop.f32.mrb[11].mxu0  ;;  %11367 = vmatprep.mubr.bf16.mxu1 %v13330_v52  ;;  %v8905_v32 = vmax.f32 %v5609_v22, 0.0  ;;  %v16387_v22 = vld [vmem:[%s17145_s25 + $0x5f0] sm:$0xff]  }
 0x3c3   : > { %v5604_v58 = vadd.f32 %v18243_v17, %v5603_v19  ;;  %v8903_v41 = vmax.f32 %v5601_v5, 0.0  ;;  %v18453_v54 = vpack.c.bf16 %v9486_v51, %v9485_v31 }
 0x3c4   : > { %v8906_v36 = vmax.f32 %v5612_v3, 0.0  ;;  %15273 = vmatmul.mubr.bf16.gmra.mrb[116].mxu0 %v16384_v48  ;;  %v9483_v48 = vmax.f32 %v7921_v18, 0.0 }
 0x3c5   : > { %v8904_v50 = vmax.f32 %v5604_v58, 0.0  ;;  %15276 = vmatprep.mubr.bf16.mxu0 %v16385_v1  ;;  %v9484_v1 = vmax.f32 %v7924_v44, 0.0  ;;  %20637 = vst [vmem:[#allocation31_spill] sm:$0xff] %v18453_v54  ;;  %v7936_v58 = vpop.f32.mrb[77].mxu1 }
 0x3c6   : > { %v18439_v8 = vpack.c.bf16 %v8906_v36, %v8905_v32  ;;  %v15751_v36 = vpop.f32.mrb[78].mxu1 }
 0x3c7   : > { %v18441_v47 = vpack.c.bf16 %v8904_v50, %v8903_v41  ;;  %v15170_v30 = vpop.f32.mrb[12].mxu0  ;;  %v18455_v62 = vpack.c.bf16 %v9484_v1, %v9483_v48  ;;  %v7939_v41 = vpop.f32.mrb[79].mxu1  ;;  %v7948_v53 = vadd.f32 %v18243_v17, %v15751_v36 }
 0x3c8   : > { %v5625_v52 = vadd.f32 %v18243_v17, %v15170_v30  ;;  %v5616_v63 = vpop.f32.mrb[13].mxu0  ;;  %v7937_v30 = vadd.f32 %v18243_v17, %v7936_v58  ;;  %v15754_v1 = vpop.f32.mrb[80].mxu1 }
 0x3c9   : > { %v5617_v15 = vadd.f32 %v18243_v17, %v5616_v63  ;;  %v15171_v11 = vpop.f32.mrb[14].mxu0  ;;  %20638 = vst [vmem:[#allocation26_spill] sm:$0xff] %v18455_v62  ;;  %v7940_v63 = vadd.f32 %v18243_v17, %v7939_v41  ;;  %v9490_v31 = vmax.f32 %v7948_v53, 0.0  ;;  %v7961_v36 = vadd.f32 %v18243_v17, %v15754_v1 }
 0x3ca   : > { %v5628_v5 = vadd.f32 %v18243_v17, %v15171_v11  ;;  %v5619_v42 = vpop.f32.mrb[15].mxu0  ;;  %v8909_v3 = vmax.f32 %v5625_v52, 0.0  ;;  %v16388_v52 = vld [vmem:[%s17145_s25 + $0x5f8] sm:$0xff]   ;;  %v9489_v11 = vmax.f32 %v7945_v56, 0.0 }
 0x3cb   : > { %v5620_v25 = vadd.f32 %v18243_v17, %v5619_v42  ;;  %v8907_v34 = vmax.f32 %v5617_v15, 0.0  ;;  %v16389_v15 = vld [vmem:[%s17145_s25 + $0x600] sm:$0xff]  }
 0x3cc   : > { %v8910_v19 = vmax.f32 %v5628_v5, 0.0  ;;  %15277 = vmatmul.mubr.bf16.gmra.mrb[120].mxu0 %v16386_v24  ;;  %v9488_v5 = vmax.f32 %v7940_v63, 0.0 }
 0x3cd   : > { %v8908_v32 = vmax.f32 %v5620_v25, 0.0  ;;  %15280 = vmatprep.mubr.bf16.mxu0 %v16387_v22  ;;  %v9487_v22 = vmax.f32 %v7937_v30, 0.0  ;;  %v18471_v25 = vpack.c.bf16 %v9490_v31, %v9489_v11 }
 0x3ce   : > { %v18457_v14 = vpack.c.bf16 %v8910_v19, %v8909_v3  ;;  %v7952_v19 = vpop.f32.mrb[81].mxu1 }
 0x3cf   : > { %v18459_v50 = vpack.c.bf16 %v8908_v32, %v8907_v34  ;;  %v15174_v27 = vpop.f32.mrb[16].mxu0  ;;  %20639 = vst [vmem:[#allocation30_spill] sm:$0xff] %v18471_v25  ;;  %v18473_v58 = vpack.c.bf16 %v9488_v5, %v9487_v22  ;;  %v7953_v41 = vadd.f32 %v18243_v17, %v7952_v19 }
 0x3d0   : > { %v5641_v18 = vadd.f32 %v18243_v17, %v15174_v27  ;;  %v5632_v4 = vpop.f32.mrb[17].mxu0  ;;  %v15755_v27 = vpop.f32.mrb[82].mxu1 }
 0x3d1   : > { %v5633_v24 = vadd.f32 %v18243_v17, %v5632_v4  ;;  %v15175_v44 = vpop.f32.mrb[18].mxu0  ;;  %20640 = vst [vmem:[#allocation54_spill] sm:$0xff] %v18473_v58  ;;  %v7964_v30 = vadd.f32 %v18243_v17, %v15755_v27  ;;  %v7955_v53 = vpop.f32.mrb[83].mxu1  ;;  %v9491_v63 = vmax.f32 %v7953_v41, 0.0 }
 0x3d2   : > { %v5644_v48 = vadd.f32 %v18243_v17, %v15175_v44  ;;  %v5635_v51 = vpop.f32.mrb[19].mxu0  ;;  %v8913_v38 = vmax.f32 %v5641_v18, 0.0  ;;  %v7956_v44 = vadd.f32 %v18243_v17, %v7955_v53 }
 0x3d3   : > { %v5636_v42 = vadd.f32 %v18243_v17, %v5635_v51  ;;  %v8911_v34 = vmax.f32 %v5633_v24, 0.0  ;;  %v9494_v22 = vmax.f32 %v7964_v30, 0.0  ;;  %v16391_v51 = vld [vmem:[%s17145_s25 + $0x610] sm:$0xff]  }
 0x3d4   : > { %v8914_v3 = vmax.f32 %v5644_v48, 0.0  ;;  %15281 = vmatmul.mubr.bf16.gmra.mrb[124].mxu0 %v16388_v52  ;;  %v9493_v52 = vmax.f32 %v7961_v36, 0.0  ;;  %v9492_v5 = vmax.f32 %v7956_v44, 0.0 }
 0x3d5   : > { %v8912_v32 = vmax.f32 %v5636_v42, 0.0  ;;  %15284 = vmatprep.mubr.bf16.mxu0 %v16389_v15  ;;  %v16390_v15 = vld [vmem:[%s17145_s25 + $0x608] sm:$0xff]  }
 0x3d6   : > { %v9928_v56 = vpack.c.bf16 %v8914_v3, %v8913_v38  ;;  %v15758_v3 = vpop.f32.mrb[84].mxu1  ;;  %v18486_v19 = vpack.c.bf16 %v9492_v5, %v9491_v63 }
 0x3d7   : > { %v15178_v18 = vpop.f32.mrb[20].mxu0  ;;  %v9927_v4 = vpack.c.bf16 %v8912_v32, %v8911_v34  ;;  %v18488_v34 = vpack.c.bf16 %v9494_v22, %v9493_v52  ;;  %v7968_v41 = vpop.f32.mrb[85].mxu1  ;;  %v7977_v53 = vadd.f32 %v18243_v17, %v15758_v3 }
 0x3d8   : > { %v5657_v24 = vadd.f32 %v18243_v17, %v15178_v18  ;;  %v5648_v11 = vpop.f32.mrb[21].mxu0  ;;  %20641 = vst [vmem:[#allocation53_spill] sm:$0xff] %v18486_v19  ;;  %v15759_v18 = vpop.f32.mrb[86].mxu1 }
 0x3d9   : > { %v5649_v31 = vadd.f32 %v18243_v17, %v5648_v11  ;;  %v15179_v48 = vpop.f32.mrb[22].mxu0  ;;  %14202 = vmatprep.subr.bf16.mxu1 %v9927_v4  ;;  %20642 = vst [vmem:[#allocation33_spill] sm:$0xff] %v18488_v34  ;;  %v7980_v4 = vadd.f32 %v18243_v17, %v15759_v18  ;;  %v7971_v52 = vpop.f32.mrb[87].mxu1 }
 0x3da   : > { %v5660_v42 = vadd.f32 %v18243_v17, %v15179_v48  ;;  %v5651_v1 = vpop.f32.mrb[23].mxu0  ;;  %14203 = vmatpush3.bf16.msra.mxu1 %v18397_v2  ;;  %v8917_v32 = vmax.f32 %v5657_v24, 0.0  ;;  %v7969_v2 = vadd.f32 %v18243_v17, %v7968_v41  ;;  %v9497_v24 = vmax.f32 %v7977_v53, 0.0  ;;  %v16392_v48 = vld [vmem:[%s17145_s25 + $0x618] sm:$0xff]  }
 0x3db   : > { %v5652_v38 = vadd.f32 %v18243_v17, %v5651_v1  ;;  %14204 = vmatprep.subr.bf16.mxu1 %v9928_v56  ;;  %v8915_v27 = vmax.f32 %v5649_v31, 0.0 }
 0x3dc   : > { %v8918_v36 = vmax.f32 %v5660_v42, 0.0  ;;  %15285 = vmatmul.mubr.bf16.gmra.mrb[128].mxu0 %v16390_v15  ;;  %v9495_v11 = vmax.f32 %v7969_v2, 0.0  ;;  %v7972_v15 = vadd.f32 %v18243_v17, %v7971_v52 }
 0x3dd   : > { %v8916_v30 = vmax.f32 %v5652_v38, 0.0  ;;  %15288 = vmatprep.mubr.bf16.mxu0 %v16391_v51  ;;  %v9498_v51 = vmax.f32 %v7980_v4, 0.0 }
 0x3de   : > { %14205 = vmatpush3.bf16.msra.mxu1 %v18392_v28  ;;  %v9930_v56 = vpack.c.bf16 %v8918_v36, %v8917_v32  ;;  %v16393_v28 = vld [vmem:[%s17145_s25 + $0x620] sm:$0xff]   ;;  %v9496_v1 = vmax.f32 %v7972_v15, 0.0  ;;  %v15762_v36 = vpop.f32.mrb[88].mxu1 }
 0x3df   : > { %v15182_v63 = vpop.f32.mrb[24].mxu0  ;;  %v9929_v44 = vpack.c.bf16 %v8916_v30, %v8915_v27  ;;  %v18504_v27 = vpack.c.bf16 %v9498_v51, %v9497_v24  ;;  %v7984_v2 = vpop.f32.mrb[89].mxu1  ;;  %v7993_v52 = vadd.f32 %v18243_v17, %v15762_v36 }
 0x3e0   : > { %v5673_v22 = vadd.f32 %v18243_v17, %v15182_v63  ;;  %v5664_v31 = vpop.f32.mrb[25].mxu0  ;;  %v18502_v41 = vpack.c.bf16 %v9496_v1, %v9495_v11  ;;  %v15763_v63 = vpop.f32.mrb[90].mxu1 }
 0x3e1   : > { %v5665_v5 = vadd.f32 %v18243_v17, %v5664_v31  ;;  %v15183_v42 = vpop.f32.mrb[26].mxu0  ;;  %14206 = vmatprep.subr.bf16.mxu1 %v9929_v44  ;;  %20644 = vst [vmem:[#allocation36_spill] sm:$0xff] %v18504_v27  ;;  %v7996_v44 = vadd.f32 %v18243_v17, %v15763_v63  ;;  %v7987_v24 = vpop.f32.mrb[91].mxu1 }
 0x3e2   : > { %v5676_v38 = vadd.f32 %v18243_v17, %v15183_v42  ;;  %v5667_v3 = vpop.f32.mrb[27].mxu0  ;;  %14207 = vmatpush3.bf16.msra.mxu1 %v18423_v55  ;;  %20643 = vst [vmem:[#allocation34_spill] sm:$0xff] %v18502_v41  ;;  %v8921_v30 = vmax.f32 %v5673_v22, 0.0  ;;  %v7985_v55 = vadd.f32 %v18243_v17, %v7984_v2  ;;  %v9501_v22 = vmax.f32 %v7993_v52, 0.0  ;;  %v16394_v42 = vld [vmem:[%s17145_s25 + $0x628] sm:$0xff]  }
 0x3e3   : > { %v5668_v32 = vadd.f32 %v18243_v17, %v5667_v3  ;;  %14208 = vmatprep.subr.bf16.mxu1 %v9930_v56  ;;  %v8919_v18 = vmax.f32 %v5665_v5, 0.0 }
 0x3e4   : > { %v8922_v53 = vmax.f32 %v5676_v38, 0.0  ;;  %15289 = vmatmul.mubr.bf16.gmra.mrb[132].mxu0 %v16392_v48  ;;  %v9499_v31 = vmax.f32 %v7985_v55, 0.0  ;;  %v7988_v48 = vadd.f32 %v18243_v17, %v7987_v24 }
 0x3e5   : > { %v8920_v4 = vmax.f32 %v5668_v32, 0.0  ;;  %15292 = vmatprep.mubr.bf16.mxu0 %v16393_v28  ;;  %v9502_v28 = vmax.f32 %v7996_v44, 0.0 }
 0x3e6   : > { %14209 = vmatpush3.bf16.msra.mxu1 %v18419_v37  ;;  %v9932_v56 = vpack.c.bf16 %v8922_v53, %v8921_v30  ;;  %v16395_v37 = vld [vmem:[%s17145_s25 + $0x630] sm:$0xff]   ;;  %v9500_v3 = vmax.f32 %v7988_v48, 0.0  ;;  %v15766_v53 = vpop.f32.mrb[92].mxu1 }
 0x3e7   : > { %v15186_v11 = vpop.f32.mrb[28].mxu0  ;;  %v9931_v15 = vpack.c.bf16 %v8920_v4, %v8919_v18  ;;  %v18520_v18 = vpack.c.bf16 %v9502_v28, %v9501_v22  ;;  %v8000_v55 = vpop.f32.mrb[93].mxu1  ;;  %v8009_v24 = vadd.f32 %v18243_v17, %v15766_v53 }
 0x3e8   : > { %v5689_v51 = vadd.f32 %v18243_v17, %v15186_v11  ;;  %v5680_v5 = vpop.f32.mrb[29].mxu0  ;;  %v18518_v2 = vpack.c.bf16 %v9500_v3, %v9499_v31  ;;  %v15767_v11 = vpop.f32.mrb[94].mxu1 }
 0x3e9   : > { %v5681_v1 = vadd.f32 %v18243_v17, %v5680_v5  ;;  %v15187_v38 = vpop.f32.mrb[30].mxu0  ;;  %14210 = vmatprep.subr.bf16.mxu1 %v9931_v15  ;;  %20646 = vst [vmem:[#allocation39_spill] sm:$0xff] %v18520_v18  ;;  %v8012_v15 = vadd.f32 %v18243_v17, %v15767_v11  ;;  %v8003_v22 = vpop.f32.mrb[95].mxu1 }
 0x3ea   : > { %v5692_v32 = vadd.f32 %v18243_v17, %v15187_v38  ;;  %v5683_v36 = vpop.f32.mrb[31].mxu0  ;;  %14211 = vmatpush3.bf16.msra.mxu1 %v18441_v47  ;;  %20645 = vst [vmem:[#allocation35_spill] sm:$0xff] %v18518_v2  ;;  %v8925_v4 = vmax.f32 %v5689_v51, 0.0  ;;  %v8001_v47 = vadd.f32 %v18243_v17, %v8000_v55  ;;  %v9505_v51 = vmax.f32 %v8009_v24, 0.0  ;;  %v16396_v38 = vld [vmem:[%s17145_s25 + $0x638] sm:$0xff]   ;;  %v18536_v55 = vld [vmem:[#allocation5 + $0x240] sm:$0xff] }
 0x3eb   : > { %v5684_v30 = vadd.f32 %v18243_v17, %v5683_v36  ;;  %14212 = vmatprep.subr.bf16.mxu1 %v9932_v56  ;;  %v8923_v63 = vmax.f32 %v5681_v1, 0.0  ;;  %v15770_v24 = vpop.f32.mrb[96].mxu1 }
 0x3ec   : > { %v8926_v52 = vmax.f32 %v5692_v32, 0.0  ;;  %15293 = vmatmul.mubr.bf16.gmra.mrb[136].mxu0 %v16394_v42  ;;  %v9503_v5 = vmax.f32 %v8001_v47, 0.0  ;;  %v8004_v42 = vadd.f32 %v18243_v17, %v8003_v22 }
 0x3ed   : > { %v8924_v44 = vmax.f32 %v5684_v30, 0.0  ;;  %15296 = vmatprep.mubr.bf16.mxu0 %v16395_v37  ;;  %v9506_v37 = vmax.f32 %v8012_v15, 0.0  ;;  %v8016_v15 = vpop.f32.mrb[97].mxu1 }
 0x3ee   : > { %14213 = vmatpush3.bf16.msra.mxu1 %v18439_v8  ;;  %v9934_v56 = vpack.c.bf16 %v8926_v52, %v8925_v4  ;;  %v16397_v8 = vld [vmem:[%s17145_s25 + $0x640] sm:$0xff]   ;;  %v9504_v36 = vmax.f32 %v8004_v42, 0.0 }
 0x3ef   : > { %v15190_v31 = vpop.f32.mrb[32].mxu0  ;;  %v9933_v48 = vpack.c.bf16 %v8924_v44, %v8923_v63  ;;  %v18533_v4 = vpack.c.bf16 %v9506_v37, %v9505_v51  ;;  %v18538_v63 = vld [vmem:[#allocation5 + $0x340] sm:$0xff] }
 0x3f0   : > { %v5705_v28 = vadd.f32 %v18243_v17, %v15190_v31  ;;  %v5696_v1 = vpop.f32.mrb[33].mxu0  ;;  %v18540_v44 = vpack.c.bf16 %v9504_v36, %v9503_v5  ;;  %v13394_v51 = vcombine.high %v18536_v55, %v18538_v63 }
 0x3f1   : > { %v5697_v3 = vadd.f32 %v18243_v17, %v5696_v1  ;;  %v15191_v32 = vpop.f32.mrb[34].mxu0  ;;  %14214 = vmatprep.subr.bf16.mxu1 %v9933_v48  ;;  %20647 = vst [vmem:[#allocation40_spill] sm:$0xff] %v18533_v4  ;;  %v15771_v48 = vpop.f32.mrb[98].mxu1  ;;  %v8025_v1 = vadd.f32 %v18243_v17, %v15770_v24 }
 0x3f2   : > { %v5708_v30 = vadd.f32 %v18243_v17, %v15191_v32  ;;  %v5699_v53 = vpop.f32.mrb[35].mxu0  ;;  %14215 = vmatpush3.bf16.msra.mxu1 %v18459_v50  ;;  %20648 = vst [vmem:[#allocation41_spill] sm:$0xff] %v18540_v44  ;;  %v8929_v47 = vmax.f32 %v5705_v28, 0.0  ;;  %v13329_v50 = vcombine.low %v18409_v60, %v18411_v43  ;;  %v8019_v5 = vpop.f32.mrb[99].mxu1  ;;  %v8028_v37 = vadd.f32 %v18243_v17, %v15771_v48  ;;  %v18556_v32 = vld [vmem:[#allocation8] ss:$0 sm:$0xff] }
 0x3f3   : > { %v5700_v52 = vadd.f32 %v18243_v17, %v5699_v53  ;;  %14216 = vmatprep.subr.bf16.mxu1 %v9934_v56  ;;  %v8927_v22 = vmax.f32 %v5697_v3, 0.0  ;;  %v16398_v3 = vld [vmem:[%s17145_s25 + $0x648] sm:$0xff]   ;;  %v9509_v53 = vmax.f32 %v8025_v1, 0.0 }
 0x3f4   : > { %v8930_v11 = vmax.f32 %v5708_v30, 0.0  ;;  %15297 = vmatmul.mubr.bf16.gmra.mrb[140].mxu0 %v16396_v38  ;;  %v8017_v38 = vadd.f32 %v18243_v17, %v8016_v15  ;;  %v16399_v30 = vld [vmem:[%s17145_s25 + $0x650] sm:$0xff]   ;;  %v9510_v24 = vmax.f32 %v8028_v37, 0.0 }
 0x3f5   : > { %v8928_v31 = vmax.f32 %v5700_v52, 0.0  ;;  %15300 = vmatprep.mubr.bf16.mxu0 %v16397_v8 }
 0x3f6   : > { %v18544_v56 = vpack.c.bf16 %v8930_v11, %v8929_v47  ;;  %14217 = vmatpush3.bf16.msra.mxu1 %v18457_v14  ;;  %v8020_v14 = vadd.f32 %v18556_v32, %v8019_v5  ;;  %v9507_v52 = vmax.f32 %v8017_v38, 0.0  ;;  %v18567_v48 = vpack.c.bf16 %v9510_v24, %v9509_v53  ;;  %v15774_v5 = vpop.f32.mrb[100].mxu1 }
 0x3f7   : > { %v18549_v42 = vpack.c.bf16 %v8928_v31, %v8927_v22  ;;  %v15194_v28 = vpop.f32.mrb[36].mxu0  ;;  %v18563_v22 = vld [vmem:[#allocation5 + $0x48] sm:$0xff]  ;;  %v8032_v1 = vpop.f32.mrb[101].mxu1 }
 0x3f8   : > { %v5721_v60 = vadd.f32 %v18243_v17, %v15194_v28  ;;  %v5712_v43 = vpop.f32.mrb[37].mxu0  ;;  %v9508_v15 = vmax.f32 %v8020_v14, 0.0  ;;  %v18565_v31 = vld [vmem:[#allocation5 + $0x148] sm:$0xff]  ;;  %20649 = vst [vmem:[#allocation42_spill] sm:$0xff] %v18567_v48  ;;  %v15775_v14 = vpop.f32.mrb[102].mxu1 }
 0x3f9   : > { %v5713_v8 = vadd.f32 %v18556_v32, %v5712_v43  ;;  %v15195_v36 = vpop.f32.mrb[38].mxu0  ;;  %11368 = vmatmul.mubr.bf16.vlgmr.msra.gmra.mrb[60].mxu1 %v13329_v50  ;;  %v13332_v53 = vcombine.high %v18563_v22, %v18565_v31 }
 0x3fa   : > { %v5724_v47 = vadd.f32 %v18556_v32, %v15195_v36  ;;  %v5715_v11 = vpop.f32.mrb[39].mxu0  ;;  %11375 = vmatprep.mubr.bf16.mxu1 %v13394_v51  ;;  %v8933_v28 = vmax.f32 %v5721_v60, 0.0  ;;  %v18569_v50 = vpack.c.bf16 %v9508_v15, %v9507_v52  ;;  %v13393_v51 = vcombine.low %v18536_v55, %v18538_v63  ;;  %v8035_v60 = vpop.f32.mrb[103].mxu1  ;;  %v16400_v63 = vld [vmem:[%s17145_s25 + $0x658] sm:$0xff]  }
 0x3fb   : > { %v5716_v17 = vadd.f32 %v18556_v32, %v5715_v11  ;;  %v8931_v38 = vmax.f32 %v5713_v8, 0.0  ;;  %v8041_v52 = vadd.f32 %v18556_v32, %v15774_v5  ;;  %v8033_v8 = vadd.f32 %v18556_v32, %v8032_v1 }
 0x3fc   : > { %v8934_v43 = vmax.f32 %v5724_v47, 0.0  ;;  %15301 = vmatmul.mubr.bf16.gmra.mrb[144].mxu0 %v16398_v3  ;;  %20650 = vst [vmem:[#allocation49_spill] sm:$0xff] %v18569_v50  ;;  %v8036_v11 = vadd.f32 %v18556_v32, %v8035_v60  ;;  %v15778_v50 = vpop.f32.mrb[104].mxu1 }
 0x3fd   : > { %v8932_v37 = vmax.f32 %v5716_v17, 0.0  ;;  %15304 = vmatprep.mubr.bf16.mxu0 %v16399_v30  ;;  %v8044_v30 = vadd.f32 %v18556_v32, %v15775_v14 }
 0x3fe   : > { %v18573_v36 = vpack.c.bf16 %v8934_v43, %v8933_v28  ;;  %v16401_v28 = vld [vmem:[%s17145_s25 + $0x660] sm:$0xff]   ;;  %v9513_v43 = vmax.f32 %v8041_v52, 0.0  ;;  %v9512_v1 = vmax.f32 %v8036_v11, 0.0 }
 0x3ff   : > { %v18577_v24 = vpack.c.bf16 %v8932_v37, %v8931_v38  ;;  %v15198_v3 = vpop.f32.mrb[40].mxu0  ;;  %v9511_v38 = vmax.f32 %v8033_v8, 0.0  ;;  %v9514_v37 = vmax.f32 %v8044_v30, 0.0 }
 0x400   : > { %v5737_v47 = vadd.f32 %v18556_v32, %v15198_v3  ;;  %v5728_v55 = vpop.f32.mrb[41].mxu0 }
 0x401   : > { %v5729_v15 = vadd.f32 %v18556_v32, %v5728_v55  ;;  %v15199_v17 = vpop.f32.mrb[42].mxu0  ;;  %11376 = vmatmul.mubr.bf16.gmra.mrb[64].mxu1 %v13393_v51  ;;  %v18589_v3 = vpack.c.bf16 %v9514_v37, %v9513_v43  ;;  %v18591_v55 = vpack.c.bf16 %v9512_v1, %v9511_v38  ;;  %v8048_v51 = vpop.f32.mrb[105].mxu1  ;;  %v8057_v43 = vadd.f32 %v18556_v32, %v15778_v50  ;;  %v16403_v1 = vld [vmem:[%s17145_s25 + $0x670] sm:$0xff]  }
 0x402   : > { %v5740_v5 = vadd.f32 %v18556_v32, %v15199_v17  ;;  %v5731_v48 = vpop.f32.mrb[43].mxu0  ;;  %11416 = vmatprep.mubr.bf16.mxu1 %v13332_v53  ;;  %v8937_v4 = vmax.f32 %v5737_v47, 0.0  ;;  %v15779_v30 = vpop.f32.mrb[106].mxu1  ;;  %v8049_v47 = vadd.f32 %v18556_v32, %v8048_v51 }
 0x403   : > { %v5732_v14 = vadd.f32 %v18556_v32, %v5731_v48  ;;  %20651 = vst [vmem:[#allocation50_spill] sm:$0xff] %v18589_v3  ;;  %20652 = vst [vmem:[#allocation51_spill] sm:$0xff] %v18591_v55  ;;  %v8935_v52 = vmax.f32 %v5729_v15, 0.0  ;;  %v8051_v53 = vpop.f32.mrb[107].mxu1  ;;  %v16402_v15 = vld [vmem:[%s17145_s25 + $0x668] sm:$0xff]  }
 0x404   : > { %v8938_v60 = vmax.f32 %v5740_v5, 0.0  ;;  %15305 = vmatmul.mubr.bf16.gmra.mrb[148].mxu0 %v16400_v63  ;;  %v8060_v63 = vadd.f32 %v18556_v32, %v15779_v30  ;;  %v8052_v5 = vadd.f32 %v18556_v32, %v8051_v53 }
 0x405   : > { %v8936_v8 = vmax.f32 %v5732_v14, 0.0  ;;  %15308 = vmatprep.mubr.bf16.mxu0 %v16401_v28  ;;  %v9517_v14 = vmax.f32 %v8057_v43, 0.0 }
 0x406   : > { %v18593_v17 = vpack.c.bf16 %v8938_v60, %v8937_v4  ;;  %v9515_v60 = vmax.f32 %v8049_v47, 0.0  ;;  %v9516_v3 = vmax.f32 %v8052_v5, 0.0 }
 0x407   : > { %v18595_v11 = vpack.c.bf16 %v8936_v8, %v8935_v52  ;;  %v15202_v48 = vpop.f32.mrb[44].mxu0  ;;  %v9518_v52 = vmax.f32 %v8060_v63, 0.0 }
 0x408   : > { %v5753_v38 = vadd.f32 %v18556_v32, %v15202_v48  ;;  %v5744_v37 = vpop.f32.mrb[45].mxu0  ;;  %v15782_v48 = vpop.f32.mrb[108].mxu1  ;;  %v18609_v53 = vpack.c.bf16 %v9516_v3, %v9515_v60 }
 0x409   : > { %v5745_v28 = vadd.f32 %v18556_v32, %v5744_v37  ;;  %v15203_v4 = vpop.f32.mrb[46].mxu0  ;;  %v18607_v30 = vpack.c.bf16 %v9518_v52, %v9517_v14  ;;  %v8064_v37 = vpop.f32.mrb[109].mxu1  ;;  %v8073_v52 = vadd.f32 %v18556_v32, %v15782_v48 }
 0x40a   : > { %v5756_v8 = vadd.f32 %v18556_v32, %v15203_v4  ;;  %v5747_v50 = vpop.f32.mrb[47].mxu0  ;;  %v8941_v55 = vmax.f32 %v5753_v38, 0.0  ;;  %20654 = vst [vmem:[#allocation64_spill] sm:$0xff] %v18609_v53  ;;  %v15783_v47 = vpop.f32.mrb[110].mxu1  ;;  %v8065_v38 = vadd.f32 %v18556_v32, %v8064_v37 }
 0x40b   : > { %v5748_v51 = vadd.f32 %v18556_v32, %v5747_v50  ;;  %20653 = vst [vmem:[#allocation52_spill] sm:$0xff] %v18607_v30  ;;  %v8939_v54 = vmax.f32 %v5745_v28, 0.0  ;;  %v8067_v5 = vpop.f32.mrb[111].mxu1  ;;  %v16404_v28 = vld [vmem:[%s17145_s25 + $0x678] sm:$0xff]   ;;  %v9521_v50 = vmax.f32 %v8073_v52, 0.0 }
 0x40c   : > { %v8942_v44 = vmax.f32 %v5756_v8, 0.0  ;;  %15309 = vmatmul.mubr.bf16.gmra.mrb[152].mxu0 %v16402_v15  ;;  %v8076_v15 = vadd.f32 %v18556_v32, %v15783_v47  ;;  %v8068_v8 = vadd.f32 %v18556_v32, %v8067_v5  ;;  %v15786_v47 = vpop.f32.mrb[112].mxu1 }
 0x40d   : > { %v8940_v43 = vmax.f32 %v5748_v51, 0.0  ;;  %15312 = vmatprep.mubr.bf16.mxu0 %v16403_v1  ;;  %v8080_v5 = vpop.f32.mrb[113].mxu1 }
 0x40e   : > { %v18611_v63 = vpack.c.bf16 %v8942_v44, %v8941_v55  ;;  %v16405_v55 = vld [vmem:[%s17145_s25 + $0x680] sm:$0xff]   ;;  %v9522_v51 = vmax.f32 %v8076_v15, 0.0  ;;  %v9520_v30 = vmax.f32 %v8068_v8, 0.0  ;;  %v8081_v15 = vadd.f32 %v18556_v32, %v8080_v5  ;;  %v15787_v8 = vpop.f32.mrb[114].mxu1 }
 0x40f   : > { %v18613_v4 = vpack.c.bf16 %v8940_v43, %v8939_v54  ;;  %v15206_v14 = vpop.f32.mrb[48].mxu0  ;;  %v9519_v54 = vmax.f32 %v8065_v38, 0.0  ;;  %v8089_v38 = vadd.f32 %v18556_v32, %v15786_v47 }
 0x410   : > { %v5769_v3 = vadd.f32 %v18556_v32, %v15206_v14  ;;  %v5760_v60 = vpop.f32.mrb[49].mxu0  ;;  %v18625_v53 = vpack.c.bf16 %v9522_v51, %v9521_v50  ;;  %v8092_v50 = vadd.f32 %v18556_v32, %v15787_v8  ;;  %v8083_v51 = vpop.f32.mrb[115].mxu1 }
 0x411   : > { %v5761_v1 = vadd.f32 %v18556_v32, %v5760_v60  ;;  %v15207_v44 = vpop.f32.mrb[50].mxu0  ;;  %v18627_v62 = vpack.c.bf16 %v9520_v30, %v9519_v54  ;;  %v8084_v30 = vadd.f32 %v18556_v32, %v8083_v51 }
 0x412   : > { %v5772_v43 = vadd.f32 %v18556_v32, %v15207_v44  ;;  %v5763_v48 = vpop.f32.mrb[51].mxu0  ;;  %20655 = vst [vmem:[#allocation65_spill] sm:$0xff] %v18625_v53  ;;  %v8945_v14 = vmax.f32 %v5769_v3, 0.0  ;;  %v16407_v53 = vld [vmem:[%s17145_s25 + $0x690] sm:$0xff]  }
 0x413   : > { %v5764_v37 = vadd.f32 %v18556_v32, %v5763_v48  ;;  %20656 = vst [vmem:[#allocation66_spill] sm:$0xff] %v18627_v62  ;;  %v8943_v60 = vmax.f32 %v5761_v1, 0.0  ;;  %v9523_v48 = vmax.f32 %v8081_v15, 0.0 }
 0x414   : > { %v8946_v18 = vmax.f32 %v5772_v43, 0.0  ;;  %15313 = vmatmul.mubr.bf16.gmra.mrb[156].mxu0 %v16404_v28  ;;  %v9525_v28 = vmax.f32 %v8089_v38, 0.0 }
 0x415   : > { %v8944_v52 = vmax.f32 %v5764_v37, 0.0  ;;  %15316 = vmatprep.mubr.bf16.mxu0 %v16405_v55  ;;  %v16406_v55 = vld [vmem:[%s17145_s25 + $0x688] sm:$0xff]   ;;  %v9526_v37 = vmax.f32 %v8092_v50, 0.0 }
 0x416   : > { %v9944_v44 = vpack.c.bf16 %v8946_v18, %v8945_v14  ;;  %v9524_v18 = vmax.f32 %v8084_v30, 0.0 }
 0x417   : > { %v15210_v3 = vpop.f32.mrb[52].mxu0  ;;  %v9943_v43 = vpack.c.bf16 %v8944_v52, %v8943_v60  ;;  %v15790_v52 = vpop.f32.mrb[116].mxu1  ;;  %v18642_v15 = vpack.c.bf16 %v9526_v37, %v9525_v28 }
 0x418   : > { %v5785_v1 = vadd.f32 %v18556_v32, %v15210_v3  ;;  %v5776_v54 = vpop.f32.mrb[53].mxu0  ;;  %v18640_v38 = vpack.c.bf16 %v9524_v18, %v9523_v48  ;;  %v8096_v3 = vpop.f32.mrb[117].mxu1  ;;  %v8105_v30 = vadd.f32 %v18556_v32, %v15790_v52 }
 0x419   : > { %v5777_v47 = vadd.f32 %v18556_v32, %v5776_v54  ;;  %v15211_v5 = vpop.f32.mrb[54].mxu0  ;;  %14230 = vmatprep.subr.bf16.mxu1 %v9943_v43  ;;  %20658 = vst [vmem:[#allocation68_spill] sm:$0xff] %v18642_v15 }
 0x41a   : > { %v5788_v14 = vadd.f32 %v18556_v32, %v15211_v5  ;;  %v5779_v8 = vpop.f32.mrb[55].mxu0  ;;  %14231 = vmatpush3.bf16.msra.mxu1 %v18549_v42  ;;  %20657 = vst [vmem:[#allocation67_spill] sm:$0xff] %v18640_v38  ;;  %v8949_v50 = vmax.f32 %v5785_v1, 0.0  ;;  %v8097_v42 = vadd.f32 %v18556_v32, %v8096_v3  ;;  %v15791_v5 = vpop.f32.mrb[118].mxu1 }
 0x41b   : > { %v5780_v60 = vadd.f32 %v18556_v32, %v5779_v8  ;;  %14232 = vmatprep.subr.bf16.mxu1 %v9944_v44  ;;  %v8947_v43 = vmax.f32 %v5777_v47, 0.0  ;;  %v8108_v28 = vadd.f32 %v18556_v32, %v15791_v5  ;;  %v8099_v48 = vpop.f32.mrb[119].mxu1  ;;  %v16408_v8 = vld [vmem:[%s17145_s25 + $0x698] sm:$0xff]  }
 0x41c   : > { %v8950_v51 = vmax.f32 %v5788_v14, 0.0  ;;  %15317 = vmatmul.mubr.bf16.gmra.mrb[160].mxu0 %v16406_v55  ;;  %v9529_v55 = vmax.f32 %v8105_v30, 0.0  ;;  %v9527_v18 = vmax.f32 %v8097_v42, 0.0  ;;  %v8100_v47 = vadd.f32 %v18556_v32, %v8099_v48 }
 0x41d   : > { %v8948_v54 = vmax.f32 %v5780_v60, 0.0  ;;  %15320 = vmatprep.mubr.bf16.mxu0 %v16407_v53  ;;  %v9530_v60 = vmax.f32 %v8108_v28, 0.0 }
 0x41e   : > { %14233 = vmatpush3.bf16.msra.mxu1 %v18544_v56  ;;  %v9946_v44 = vpack.c.bf16 %v8950_v51, %v8949_v50  ;;  %v16409_v56 = vld [vmem:[%s17145_s25 + $0x6a0] sm:$0xff]   ;;  %v9528_v50 = vmax.f32 %v8100_v47, 0.0 }
 0x41f   : > { %v15214_v1 = vpop.f32.mrb[56].mxu0  ;;  %v9945_v37 = vpack.c.bf16 %v8948_v54, %v8947_v43  ;;  %v15794_v54 = vpop.f32.mrb[120].mxu1  ;;  %v18658_v42 = vpack.c.bf16 %v9530_v60, %v9529_v55 }
 0x420   : > { %v5801_v53 = vadd.f32 %v18556_v32, %v15214_v1  ;;  %v5792_v14 = vpop.f32.mrb[57].mxu0  ;;  %v18656_v30 = vpack.c.bf16 %v9528_v50, %v9527_v18  ;;  %v8112_v1 = vpop.f32.mrb[121].mxu1  ;;  %v8121_v47 = vadd.f32 %v18556_v32, %v15794_v54 }
 0x421   : > { %v5793_v52 = vadd.f32 %v18556_v32, %v5792_v14  ;;  %v15215_v3 = vpop.f32.mrb[58].mxu0  ;;  %14234 = vmatprep.subr.bf16.mxu1 %v9945_v37  ;;  %20660 = vst [vmem:[#allocation70_spill] sm:$0xff] %v18658_v42 }
 0x422   : > { %v5804_v51 = vadd.f32 %v18556_v32, %v15215_v3  ;;  %v5795_v5 = vpop.f32.mrb[59].mxu0  ;;  %14235 = vmatpush3.bf16.msra.mxu1 %v18577_v24  ;;  %20659 = vst [vmem:[#allocation69_spill] sm:$0xff] %v18656_v30  ;;  %v8953_v28 = vmax.f32 %v5801_v53, 0.0  ;;  %v8113_v24 = vadd.f32 %v18556_v32, %v8112_v1  ;;  %v15795_v3 = vpop.f32.mrb[122].mxu1 }
 0x423   : > { %v5796_v43 = vadd.f32 %v18556_v32, %v5795_v5  ;;  %14236 = vmatprep.subr.bf16.mxu1 %v9946_v44  ;;  %v8951_v37 = vmax.f32 %v5793_v52, 0.0  ;;  %v8124_v55 = vadd.f32 %v18556_v32, %v15795_v3  ;;  %v8115_v18 = vpop.f32.mrb[123].mxu1  ;;  %v16410_v5 = vld [vmem:[%s17145_s25 + $0x6a8] sm:$0xff]  }
 0x424   : > { %v8954_v48 = vmax.f32 %v5804_v51, 0.0  ;;  %15321 = vmatmul.mubr.bf16.gmra.mrb[164].mxu0 %v16408_v8  ;;  %v9533_v8 = vmax.f32 %v8121_v47, 0.0  ;;  %v9531_v50 = vmax.f32 %v8113_v24, 0.0  ;;  %v8116_v52 = vadd.f32 %v18556_v32, %v8115_v18 }
 0x425   : > { %v8952_v14 = vmax.f32 %v5796_v43, 0.0  ;;  %15324 = vmatprep.mubr.bf16.mxu0 %v16409_v56  ;;  %v9534_v43 = vmax.f32 %v8124_v55, 0.0 }
 0x426   : > { %14237 = vmatpush3.bf16.msra.mxu1 %v18573_v36  ;;  %v9948_v44 = vpack.c.bf16 %v8954_v48, %v8953_v28  ;;  %v16411_v36 = vld [vmem:[%s17145_s25 + $0x6b0] sm:$0xff]   ;;  %v9532_v28 = vmax.f32 %v8116_v52, 0.0 }
 0x427   : > { %v15218_v53 = vpop.f32.mrb[60].mxu0  ;;  %v9947_v60 = vpack.c.bf16 %v8952_v14, %v8951_v37  ;;  %v15798_v14 = vpop.f32.mrb[124].mxu1  ;;  %v18674_v24 = vpack.c.bf16 %v9534_v43, %v9533_v8 }
 0x428   : > { %v5817_v56 = vadd.f32 %v18556_v32, %v15218_v53  ;;  %v5808_v51 = vpop.f32.mrb[61].mxu0  ;;  %v18672_v47 = vpack.c.bf16 %v9532_v28, %v9531_v50  ;;  %v8128_v53 = vpop.f32.mrb[125].mxu1  ;;  %v8137_v52 = vadd.f32 %v18556_v32, %v15798_v14 }
 0x429   : > { %v5809_v54 = vadd.f32 %v18556_v32, %v5808_v51  ;;  %v15219_v1 = vpop.f32.mrb[62].mxu0  ;;  %14238 = vmatprep.subr.bf16.mxu1 %v9947_v60  ;;  %20662 = vst [vmem:[#allocation72_spill] sm:$0xff] %v18674_v24 }
 0x42a   : > { %v5820_v48 = vadd.f32 %v18556_v32, %v15219_v1  ;;  %v5811_v3 = vpop.f32.mrb[63].mxu0  ;;  %14239 = vmatpush3.bf16.msra.mxu1 %v18595_v11  ;;  %20661 = vst [vmem:[#allocation71_spill] sm:$0xff] %v18672_v47  ;;  %v8957_v55 = vmax.f32 %v5817_v56, 0.0  ;;  %v8129_v11 = vadd.f32 %v18556_v32, %v8128_v53  ;;  %v15799_v1 = vpop.f32.mrb[126].mxu1 }
 0x42b   : > { %v5812_v37 = vadd.f32 %v18556_v32, %v5811_v3  ;;  %14240 = vmatprep.subr.bf16.mxu1 %v9948_v44  ;;  %v8955_v60 = vmax.f32 %v5809_v54, 0.0  ;;  %v8140_v8 = vadd.f32 %v18556_v32, %v15799_v1  ;;  %v8131_v50 = vpop.f32.mrb[127].mxu1  ;;  %v16412_v3 = vld [vmem:[%s17145_s25 + $0x6b8] sm:$0xff]  }
 0x42c   : > { %v8958_v18 = vmax.f32 %v5820_v48, 0.0  ;;  %15325 = vmatmul.mubr.bf16.gmra.mrb[168].mxu0 %v16410_v5  ;;  %v9537_v5 = vmax.f32 %v8137_v52, 0.0  ;;  %v9535_v28 = vmax.f32 %v8129_v11, 0.0  ;;  %v8132_v54 = vadd.f32 %v18556_v32, %v8131_v50  ;;  %v18690_v52 = vld [vmem:[#allocation5 + $0x248] sm:$0xff]  ;;  %v15802_v50 = vpop.f32.mrb[128].mxu1 }
 0x42d   : > { %v8956_v51 = vmax.f32 %v5812_v37, 0.0  ;;  %15328 = vmatprep.mubr.bf16.mxu0 %v16411_v36  ;;  %v9538_v37 = vmax.f32 %v8140_v8, 0.0  ;;  %v18692_v11 = vld [vmem:[#allocation5 + $0x348] sm:$0xff] }
 0x42e   : > { %14241 = vmatpush3.bf16.msra.mxu1 %v18593_v17  ;;  %v9950_v44 = vpack.c.bf16 %v8958_v18, %v8957_v55  ;;  %v16413_v17 = vld [vmem:[%s17145_s25 + $0x6c0] sm:$0xff]   ;;  %v9536_v55 = vmax.f32 %v8132_v54, 0.0  ;;  %v8144_v54 = vpop.f32.mrb[129].mxu1 }
 0x42f   : > { %v15222_v56 = vpop.f32.mrb[64].mxu0  ;;  %v9949_v43 = vpack.c.bf16 %v8956_v51, %v8955_v60  ;;  %v18687_v60 = vpack.c.bf16 %v9538_v37, %v9537_v5  ;;  %v15803_v5 = vpop.f32.mrb[130].mxu1 }
 0x430   : > { %v5833_v36 = vadd.f32 %v18556_v32, %v15222_v56  ;;  %v5824_v48 = vpop.f32.mrb[65].mxu0  ;;  %v18694_v8 = vpack.c.bf16 %v9536_v55, %v9535_v28  ;;  %v13396_v28 = vcombine.high %v18690_v52, %v18692_v11  ;;  %v8156_v55 = vadd.f32 %v18556_v32, %v15803_v5 }
 0x431   : > { %v5825_v14 = vadd.f32 %v18556_v32, %v5824_v48  ;;  %v15223_v53 = vpop.f32.mrb[66].mxu0  ;;  %14242 = vmatprep.subr.bf16.mxu1 %v9949_v43  ;;  %20663 = vst [vmem:[#allocation73_spill] sm:$0xff] %v18687_v60 }
 0x432   : > { %v5836_v18 = vadd.f32 %v18556_v32, %v15223_v53  ;;  %v5827_v1 = vpop.f32.mrb[67].mxu0  ;;  %14243 = vmatpush3.bf16.msra.mxu1 %v18613_v4  ;;  %20664 = vst [vmem:[#allocation74_spill] sm:$0xff] %v18694_v8  ;;  %v8961_v56 = vmax.f32 %v5833_v36, 0.0  ;;  %v13331_v4 = vcombine.low %v18563_v22, %v18565_v31  ;;  %v8147_v36 = vpop.f32.mrb[131].mxu1  ;;  %v18717_v8 = vld [vmem:[#allocation5 + $0x150] sm:$0xff] }
 0x433   : > { %v5828_v51 = vadd.f32 %v18556_v32, %v5827_v1  ;;  %14244 = vmatprep.subr.bf16.mxu1 %v9950_v44  ;;  %v8959_v48 = vmax.f32 %v5825_v14, 0.0  ;;  %v8153_v14 = vadd.f32 %v18556_v32, %v15802_v50  ;;  %v8148_v1 = vadd.f32 %v18556_v32, %v8147_v36 }
 0x434   : > { %v8962_v43 = vmax.f32 %v5836_v18, 0.0  ;;  %15329 = vmatmul.mubr.bf16.gmra.mrb[172].mxu0 %v16412_v3  ;;  %v16414_v18 = vld [vmem:[%s17145_s25 + $0x6c8] sm:$0xff]  }
 0x435   : > { %v8960_v53 = vmax.f32 %v5828_v51, 0.0  ;;  %15332 = vmatprep.mubr.bf16.mxu0 %v16413_v17  ;;  %v8145_v17 = vadd.f32 %v18556_v32, %v8144_v54  ;;  %v9540_v54 = vmax.f32 %v8148_v1, 0.0 }
 0x436   : > { %v18698_v44 = vpack.c.bf16 %v8962_v43, %v8961_v56  ;;  %14245 = vmatpush3.bf16.msra.mxu1 %v18611_v63  ;;  %v16415_v56 = vld [vmem:[%s17145_s25 + $0x6d0] sm:$0xff]   ;;  %v9541_v43 = vmax.f32 %v8153_v14, 0.0 }
 0x437   : > { %v18703_v37 = vpack.c.bf16 %v8960_v53, %v8959_v48  ;;  %v15226_v3 = vpop.f32.mrb[68].mxu0  ;;  %v9539_v48 = vmax.f32 %v8145_v17, 0.0  ;;  %v9542_v53 = vmax.f32 %v8156_v55, 0.0 }
 0x438   : > { %v5849_v22 = vadd.f32 %v18556_v32, %v15226_v3  ;;  %v5840_v31 = vpop.f32.mrb[69].mxu0  ;;  %v18715_v3 = vld [vmem:[#allocation5 + $0x50] sm:$0xff] }
 0x439   : > { %v5841_v63 = vadd.f32 %v18556_v32, %v5840_v31  ;;  %v15227_v51 = vpop.f32.mrb[70].mxu0  ;;  %11417 = vmatmul.mubr.bf16.vlgmr.msra.gmra.mrb[68].mxu1 %v13331_v4  ;;  %v18719_v36 = vpack.c.bf16 %v9542_v53, %v9541_v43  ;;  %v15806_v31 = vpop.f32.mrb[132].mxu1  ;;  %v18721_v4 = vpack.c.bf16 %v9540_v54, %v9539_v48  ;;  %v16417_v54 = vld [vmem:[%s17145_s25 + $0x6e0] sm:$0xff]  }
 0x43a   : > { %v5852_v50 = vadd.f32 %v18556_v32, %v15227_v51  ;;  %v5843_v60 = vpop.f32.mrb[71].mxu0  ;;  %11424 = vmatprep.mubr.bf16.mxu1 %v13396_v28  ;;  %v8965_v24 = vmax.f32 %v5849_v22, 0.0  ;;  %v8160_v14 = vpop.f32.mrb[133].mxu1  ;;  %v13334_v51 = vcombine.high %v18715_v3, %v18717_v8  ;;  %v8169_v48 = vadd.f32 %v18556_v32, %v15806_v31 }
 0x43b   : > { %v5844_v5 = vadd.f32 %v18556_v32, %v5843_v60  ;;  %20665 = vst [vmem:[#allocation75_spill] sm:$0xff] %v18719_v36  ;;  %20666 = vst [vmem:[#allocation76_spill] sm:$0xff] %v18721_v4  ;;  %v8963_v17 = vmax.f32 %v5841_v63, 0.0  ;;  %v13395_v60 = vcombine.low %v18690_v52, %v18692_v11  ;;  %v15807_v28 = vpop.f32.mrb[134].mxu1  ;;  %v8161_v63 = vadd.f32 %v18556_v32, %v8160_v14  ;;  %v16416_v11 = vld [vmem:[%s17145_s25 + $0x6d8] sm:$0xff]  }
 0x43c   : > { %v8966_v47 = vmax.f32 %v5852_v50, 0.0  ;;  %15333 = vmatmul.mubr.bf16.gmra.mrb[176].mxu0 %v16414_v18  ;;  %v8163_v22 = vpop.f32.mrb[135].mxu1 }
 0x43d   : > { %v8964_v55 = vmax.f32 %v5844_v5, 0.0  ;;  %15336 = vmatprep.mubr.bf16.mxu0 %v16415_v56  ;;  %v8172_v56 = vadd.f32 %v18556_v32, %v15807_v28  ;;  %v9545_v5 = vmax.f32 %v8169_v48, 0.0  ;;  %v15810_v4 = vpop.f32.mrb[136].mxu1 }
 0x43e   : > { %v18725_v1 = vpack.c.bf16 %v8966_v47, %v8965_v24  ;;  %v8164_v47 = vadd.f32 %v18556_v32, %v8163_v22 }
 0x43f   : > { %v18729_v43 = vpack.c.bf16 %v8964_v55, %v8963_v17  ;;  %v15230_v18 = vpop.f32.mrb[72].mxu0  ;;  %v9543_v17 = vmax.f32 %v8161_v63, 0.0  ;;  %v9546_v55 = vmax.f32 %v8172_v56, 0.0 }
 0x440   : > { %v5865_v53 = vadd.f32 %v18556_v32, %v15230_v18  ;;  %v5856_v52 = vpop.f32.mrb[73].mxu0  ;;  %v9544_v14 = vmax.f32 %v8164_v47, 0.0 }
 0x441   : > { %v5857_v24 = vadd.f32 %v18556_v32, %v5856_v52  ;;  %v15231_v50 = vpop.f32.mrb[74].mxu0  ;;  %11425 = vmatmul.mubr.bf16.gmra.mrb[72].mxu1 %v13395_v60  ;;  %v18741_v18 = vpack.c.bf16 %v9546_v55, %v9545_v5  ;;  %v8176_v60 = vpop.f32.mrb[137].mxu1  ;;  %v8185_v5 = vadd.f32 %v18556_v32, %v15810_v4 }
 0x442   : > { %v5868_v31 = vadd.f32 %v18556_v32, %v15231_v50  ;;  %v5859_v36 = vpop.f32.mrb[75].mxu0  ;;  %11465 = vmatprep.mubr.bf16.mxu1 %v13334_v51  ;;  %v8969_v42 = vmax.f32 %v5865_v53, 0.0  ;;  %v18743_v52 = vpack.c.bf16 %v9544_v14, %v9543_v17  ;;  %v15811_v56 = vpop.f32.mrb[138].mxu1  ;;  %v8177_v53 = vadd.f32 %v18556_v32, %v8176_v60  ;;  %v16419_v14 = vld [vmem:[%s17145_s25 + $0x6f0] sm:$0xff]  }
 0x443   : > { %v5860_v28 = vadd.f32 %v18556_v32, %v5859_v36  ;;  %20667 = vst [vmem:[#allocation77_spill] sm:$0xff] %v18741_v18  ;;  %v8967_v48 = vmax.f32 %v5857_v24, 0.0  ;;  %v8179_v51 = vpop.f32.mrb[139].mxu1  ;;  %v16418_v24 = vld [vmem:[%s17145_s25 + $0x6e8] sm:$0xff]  }
 0x444   : > { %v8970_v22 = vmax.f32 %v5868_v31, 0.0  ;;  %15337 = vmatmul.mubr.bf16.gmra.mrb[180].mxu0 %v16416_v11  ;;  %20668 = vst [vmem:[#allocation78_spill] sm:$0xff] %v18743_v52  ;;  %v8188_v11 = vadd.f32 %v18556_v32, %v15811_v56  ;;  %v8180_v31 = vadd.f32 %v18556_v32, %v8179_v51 }
 0x445   : > { %v8968_v63 = vmax.f32 %v5860_v28, 0.0  ;;  %15340 = vmatprep.mubr.bf16.mxu0 %v16417_v54  ;;  %v9549_v28 = vmax.f32 %v8185_v5, 0.0 }
 0x446   : > { %v18745_v50 = vpack.c.bf16 %v8970_v22, %v8969_v42  ;;  %v9547_v22 = vmax.f32 %v8177_v53, 0.0  ;;  %v9548_v18 = vmax.f32 %v8180_v31, 0.0 }
 0x447   : > { %v18747_v47 = vpack.c.bf16 %v8968_v63, %v8967_v48  ;;  %v15234_v36 = vpop.f32.mrb[76].mxu0  ;;  %v9550_v48 = vmax.f32 %v8188_v11, 0.0 }
 0x448   : > { %v5881_v17 = vadd.f32 %v18556_v32, %v15234_v36  ;;  %v5872_v55 = vpop.f32.mrb[77].mxu0  ;;  %v15814_v36 = vpop.f32.mrb[140].mxu1  ;;  %v18761_v51 = vpack.c.bf16 %v9548_v18, %v9547_v22 }
 0x449   : > { %v5873_v54 = vadd.f32 %v18556_v32, %v5872_v55  ;;  %v15235_v42 = vpop.f32.mrb[78].mxu0  ;;  %v18759_v56 = vpack.c.bf16 %v9550_v48, %v9549_v28  ;;  %v8192_v55 = vpop.f32.mrb[141].mxu1  ;;  %v8201_v48 = vadd.f32 %v18556_v32, %v15814_v36 }
 0x44a   : > { %v5884_v63 = vadd.f32 %v18556_v32, %v15235_v42  ;;  %v5875_v4 = vpop.f32.mrb[79].mxu0  ;;  %v8973_v52 = vmax.f32 %v5881_v17, 0.0  ;;  %20670 = vst [vmem:[#allocation80_spill] sm:$0xff] %v18761_v51  ;;  %v15815_v53 = vpop.f32.mrb[142].mxu1  ;;  %v8193_v17 = vadd.f32 %v18556_v32, %v8192_v55 }
 0x44b   : > { %v5876_v60 = vadd.f32 %v18556_v32, %v5875_v4  ;;  %20669 = vst [vmem:[#allocation79_spill] sm:$0xff] %v18759_v56  ;;  %v8971_v15 = vmax.f32 %v5873_v54, 0.0  ;;  %v8195_v31 = vpop.f32.mrb[143].mxu1  ;;  %v16420_v54 = vld [vmem:[%s17145_s25 + $0x6f8] sm:$0xff]   ;;  %v9553_v4 = vmax.f32 %v8201_v48, 0.0 }
 0x44c   : > { %v8974_v30 = vmax.f32 %v5884_v63, 0.0  ;;  %15341 = vmatmul.mubr.bf16.gmra.mrb[184].mxu0 %v16418_v24  ;;  %v8204_v24 = vadd.f32 %v18556_v32, %v15815_v53  ;;  %v8196_v63 = vadd.f32 %v18556_v32, %v8195_v31  ;;  %v15818_v53 = vpop.f32.mrb[144].mxu1 }
 0x44d   : > { %v8972_v5 = vmax.f32 %v5876_v60, 0.0  ;;  %15344 = vmatprep.mubr.bf16.mxu0 %v16419_v14  ;;  %v8208_v31 = vpop.f32.mrb[145].mxu1 }
 0x44e   : > { %v18763_v11 = vpack.c.bf16 %v8974_v30, %v8973_v52  ;;  %v16421_v52 = vld [vmem:[%s17145_s25 + $0x700] sm:$0xff]   ;;  %v9554_v60 = vmax.f32 %v8204_v24, 0.0  ;;  %v9552_v56 = vmax.f32 %v8196_v63, 0.0  ;;  %v8209_v24 = vadd.f32 %v18556_v32, %v8208_v31  ;;  %v15819_v63 = vpop.f32.mrb[146].mxu1 }
 0x44f   : > { %v18765_v42 = vpack.c.bf16 %v8972_v5, %v8971_v15  ;;  %v15238_v28 = vpop.f32.mrb[80].mxu0  ;;  %v9551_v15 = vmax.f32 %v8193_v17, 0.0  ;;  %v8217_v17 = vadd.f32 %v18556_v32, %v15818_v53 }
 0x450   : > { %v5897_v18 = vadd.f32 %v18556_v32, %v15238_v28  ;;  %v5888_v22 = vpop.f32.mrb[81].mxu0  ;;  %v18777_v51 = vpack.c.bf16 %v9554_v60, %v9553_v4  ;;  %v8220_v4 = vadd.f32 %v18556_v32, %v15819_v63  ;;  %v8211_v60 = vpop.f32.mrb[147].mxu1 }
 0x451   : > { %v5889_v14 = vadd.f32 %v18556_v32, %v5888_v22  ;;  %v15239_v30 = vpop.f32.mrb[82].mxu0  ;;  %v18779_v62 = vpack.c.bf16 %v9552_v56, %v9551_v15  ;;  %v8212_v56 = vadd.f32 %v18556_v32, %v8211_v60 }
 0x452   : > { %v5900_v5 = vadd.f32 %v18556_v32, %v15239_v30  ;;  %v5891_v36 = vpop.f32.mrb[83].mxu0  ;;  %20671 = vst [vmem:[#allocation81_spill] sm:$0xff] %v18777_v51  ;;  %v8977_v28 = vmax.f32 %v5897_v18, 0.0  ;;  %v16423_v51 = vld [vmem:[%s17145_s25 + $0x710] sm:$0xff]  }
 0x453   : > { %v5892_v55 = vadd.f32 %v18556_v32, %v5891_v36  ;;  %20672 = vst [vmem:[#allocation82_spill] sm:$0xff] %v18779_v62  ;;  %v8975_v22 = vmax.f32 %v5889_v14, 0.0  ;;  %v9555_v36 = vmax.f32 %v8209_v24, 0.0 }
 0x454   : > { %v8978_v38 = vmax.f32 %v5900_v5, 0.0  ;;  %15345 = vmatmul.mubr.bf16.gmra.mrb[188].mxu0 %v16420_v54  ;;  %v9557_v54 = vmax.f32 %v8217_v17, 0.0 }
 0x455   : > { %v8976_v48 = vmax.f32 %v5892_v55, 0.0  ;;  %15348 = vmatprep.mubr.bf16.mxu0 %v16421_v52  ;;  %v16422_v52 = vld [vmem:[%s17145_s25 + $0x708] sm:$0xff]   ;;  %v9558_v55 = vmax.f32 %v8220_v4, 0.0 }
 0x456   : > { %v9960_v30 = vpack.c.bf16 %v8978_v38, %v8977_v28  ;;  %v9556_v38 = vmax.f32 %v8212_v56, 0.0 }
 0x457   : > { %v15242_v18 = vpop.f32.mrb[84].mxu0  ;;  %v9959_v5 = vpack.c.bf16 %v8976_v48, %v8975_v22  ;;  %v15822_v48 = vpop.f32.mrb[148].mxu1  ;;  %v18794_v24 = vpack.c.bf16 %v9558_v55, %v9557_v54 }
 0x458   : > { %v5913_v14 = vadd.f32 %v18556_v32, %v15242_v18  ;;  %v5904_v15 = vpop.f32.mrb[85].mxu0  ;;  %v18792_v17 = vpack.c.bf16 %v9556_v38, %v9555_v36  ;;  %v8224_v18 = vpop.f32.mrb[149].mxu1  ;;  %v8233_v56 = vadd.f32 %v18556_v32, %v15822_v48 }
 0x459   : > { %v5905_v53 = vadd.f32 %v18556_v32, %v5904_v15  ;;  %v15243_v31 = vpop.f32.mrb[86].mxu0  ;;  %14258 = vmatprep.subr.bf16.mxu1 %v9959_v5  ;;  %20674 = vst [vmem:[#allocation84_spill] sm:$0xff] %v18794_v24 }
 0x45a   : > { %v5916_v28 = vadd.f32 %v18556_v32, %v15243_v31  ;;  %v5907_v63 = vpop.f32.mrb[87].mxu0  ;;  %14259 = vmatpush3.bf16.msra.mxu1 %v18703_v37  ;;  %20673 = vst [vmem:[#allocation83_spill] sm:$0xff] %v18792_v17  ;;  %v8981_v4 = vmax.f32 %v5913_v14, 0.0  ;;  %v8225_v37 = vadd.f32 %v18556_v32, %v8224_v18  ;;  %v15823_v31 = vpop.f32.mrb[150].mxu1 }
 0x45b   : > { %v5908_v22 = vadd.f32 %v18556_v32, %v5907_v63  ;;  %14260 = vmatprep.subr.bf16.mxu1 %v9960_v30  ;;  %v8979_v5 = vmax.f32 %v5905_v53, 0.0  ;;  %v8236_v54 = vadd.f32 %v18556_v32, %v15823_v31  ;;  %v8227_v36 = vpop.f32.mrb[151].mxu1  ;;  %v16424_v63 = vld [vmem:[%s17145_s25 + $0x718] sm:$0xff]  }
 0x45c   : > { %v8982_v60 = vmax.f32 %v5916_v28, 0.0  ;;  %15349 = vmatmul.mubr.bf16.gmra.mrb[192].mxu0 %v16422_v52  ;;  %v9561_v52 = vmax.f32 %v8233_v56, 0.0  ;;  %v9559_v38 = vmax.f32 %v8225_v37, 0.0  ;;  %v8228_v53 = vadd.f32 %v18556_v32, %v8227_v36 }
 0x45d   : > { %v8980_v15 = vmax.f32 %v5908_v22, 0.0  ;;  %15352 = vmatprep.mubr.bf16.mxu0 %v16423_v51  ;;  %v9562_v22 = vmax.f32 %v8236_v54, 0.0 }
 0x45e   : > { %14261 = vmatpush3.bf16.msra.mxu1 %v18698_v44  ;;  %v9962_v30 = vpack.c.bf16 %v8982_v60, %v8981_v4  ;;  %v16425_v44 = vld [vmem:[%s17145_s25 + $0x720] sm:$0xff]   ;;  %v9560_v4 = vmax.f32 %v8228_v53, 0.0 }
 0x45f   : > { %v15246_v14 = vpop.f32.mrb[88].mxu0  ;;  %v9961_v55 = vpack.c.bf16 %v8980_v15, %v8979_v5  ;;  %v15826_v15 = vpop.f32.mrb[152].mxu1  ;;  %v18810_v37 = vpack.c.bf16 %v9562_v22, %v9561_v52 }
 0x460   : > { %v5929_v51 = vadd.f32 %v18556_v32, %v15246_v14  ;;  %v5920_v28 = vpop.f32.mrb[89].mxu0  ;;  %v18808_v56 = vpack.c.bf16 %v9560_v4, %v9559_v38  ;;  %v8240_v14 = vpop.f32.mrb[153].mxu1  ;;  %v8249_v53 = vadd.f32 %v18556_v32, %v15826_v15 }
 0x461   : > { %v5921_v48 = vadd.f32 %v18556_v32, %v5920_v28  ;;  %v15247_v18 = vpop.f32.mrb[90].mxu0  ;;  %14262 = vmatprep.subr.bf16.mxu1 %v9961_v55  ;;  %20676 = vst [vmem:[#allocation86_spill] sm:$0xff] %v18810_v37 }
 0x462   : > { %v5932_v60 = vadd.f32 %v18556_v32, %v15247_v18  ;;  %v5923_v31 = vpop.f32.mrb[91].mxu0  ;;  %14263 = vmatpush3.bf16.msra.mxu1 %v18729_v43  ;;  %20675 = vst [vmem:[#allocation85_spill] sm:$0xff] %v18808_v56  ;;  %v8985_v54 = vmax.f32 %v5929_v51, 0.0  ;;  %v8241_v43 = vadd.f32 %v18556_v32, %v8240_v14  ;;  %v15827_v18 = vpop.f32.mrb[154].mxu1 }
 0x463   : > { %v5924_v5 = vadd.f32 %v18556_v32, %v5923_v31  ;;  %14264 = vmatprep.subr.bf16.mxu1 %v9962_v30  ;;  %v8983_v55 = vmax.f32 %v5921_v48, 0.0  ;;  %v8252_v52 = vadd.f32 %v18556_v32, %v15827_v18  ;;  %v8243_v38 = vpop.f32.mrb[155].mxu1  ;;  %v16426_v31 = vld [vmem:[%s17145_s25 + $0x728] sm:$0xff]  }
 0x464   : > { %v8986_v36 = vmax.f32 %v5932_v60, 0.0  ;;  %15353 = vmatmul.mubr.bf16.gmra.mrb[196].mxu0 %v16424_v63  ;;  %v9565_v63 = vmax.f32 %v8249_v53, 0.0  ;;  %v9563_v4 = vmax.f32 %v8241_v43, 0.0  ;;  %v8244_v48 = vadd.f32 %v18556_v32, %v8243_v38 }
 0x465   : > { %v8984_v28 = vmax.f32 %v5924_v5, 0.0  ;;  %15356 = vmatprep.mubr.bf16.mxu0 %v16425_v44  ;;  %v9566_v5 = vmax.f32 %v8252_v52, 0.0 }
 0x466   : > { %14265 = vmatpush3.bf16.msra.mxu1 %v18725_v1  ;;  %v9964_v30 = vpack.c.bf16 %v8986_v36, %v8985_v54  ;;  %v16427_v1 = vld [vmem:[%s17145_s25 + $0x730] sm:$0xff]   ;;  %v9564_v54 = vmax.f32 %v8244_v48, 0.0  ;;  %v18828_v48 = vld [vmem:[#allocation8] ss:$0 sm:$0xff] }
 0x467   : > { %v15250_v51 = vpop.f32.mrb[92].mxu0  ;;  %v9963_v22 = vpack.c.bf16 %v8984_v28, %v8983_v55  ;;  %v15830_v28 = vpop.f32.mrb[156].mxu1  ;;  %v18826_v43 = vpack.c.bf16 %v9566_v5, %v9565_v63 }
 0x468   : > { %v5945_v44 = vadd.f32 %v18556_v32, %v15250_v51  ;;  %v5936_v60 = vpop.f32.mrb[93].mxu0  ;;  %v18824_v53 = vpack.c.bf16 %v9564_v54, %v9563_v4  ;;  %v8256_v51 = vpop.f32.mrb[157].mxu1 }
 0x469   : > { %v5937_v15 = vadd.f32 %v18556_v32, %v5936_v60  ;;  %v15251_v14 = vpop.f32.mrb[94].mxu0  ;;  %14266 = vmatprep.subr.bf16.mxu1 %v9963_v22  ;;  %20678 = vst [vmem:[#allocation88_spill] sm:$0xff] %v18826_v43 }
 0x46a   : > { %v5948_v36 = vadd.f32 %v18556_v32, %v15251_v14  ;;  %v5939_v18 = vpop.f32.mrb[95].mxu0  ;;  %14267 = vmatpush3.bf16.msra.mxu1 %v18747_v47  ;;  %20677 = vst [vmem:[#allocation87_spill] sm:$0xff] %v18824_v53  ;;  %v8989_v52 = vmax.f32 %v5945_v44, 0.0  ;;  %v8265_v47 = vadd.f32 %v18828_v48, %v15830_v28 }
 0x46b   : > { %v5940_v55 = vadd.f32 %v18556_v32, %v5939_v18  ;;  %14268 = vmatprep.subr.bf16.mxu1 %v9964_v30  ;;  %v8987_v22 = vmax.f32 %v5937_v15, 0.0  ;;  %v8257_v32 = vadd.f32 %v18828_v48, %v8256_v51  ;;  %v15831_v30 = vpop.f32.mrb[158].mxu1  ;;  %v16428_v18 = vld [vmem:[%s17145_s25 + $0x738] sm:$0xff]  }
 0x46c   : > { %v8990_v38 = vmax.f32 %v5948_v36, 0.0  ;;  %15357 = vmatmul.mubr.bf16.gmra.mrb[200].mxu0 %v16426_v31  ;;  %v8268_v4 = vadd.f32 %v18828_v48, %v15831_v30  ;;  %v8259_v44 = vpop.f32.mrb[159].mxu1  ;;  %v9569_v15 = vmax.f32 %v8265_v47, 0.0  ;;  %v18844_v47 = vld [vmem:[#allocation5 + $0x250] sm:$0xff] }
 0x46d   : > { %v8988_v60 = vmax.f32 %v5940_v55, 0.0  ;;  %15360 = vmatprep.mubr.bf16.mxu0 %v16427_v1  ;;  %v9567_v14 = vmax.f32 %v8257_v32, 0.0  ;;  %v8260_v1 = vadd.f32 %v18828_v48, %v8259_v44  ;;  %v18846_v32 = vld [vmem:[#allocation5 + $0x350] sm:$0xff]  ;;  %v15834_v44 = vpop.f32.mrb[160].mxu1 }
 0x46e   : > { %14269 = vmatpush3.bf16.msra.mxu1 %v18745_v50  ;;  %v9966_v63 = vpack.c.bf16 %v8990_v38, %v8989_v52  ;;  %v9570_v55 = vmax.f32 %v8268_v4, 0.0  ;;  %v16429_v50 = vld [vmem:[%s17145_s25 + $0x740] sm:$0xff]  }
 0x46f   : > { %v15254_v31 = vpop.f32.mrb[96].mxu0  ;;  %v9965_v5 = vpack.c.bf16 %v8988_v60, %v8987_v22  ;;  %v9568_v52 = vmax.f32 %v8260_v1, 0.0  ;;  %v8272_v1 = vpop.f32.mrb[161].mxu1 }
 0x470   : > { %v5961_v54 = vadd.f32 %v18828_v48, %v15254_v31  ;;  %v5952_v36 = vpop.f32.mrb[97].mxu0  ;;  %v18841_v22 = vpack.c.bf16 %v9570_v55, %v9569_v15  ;;  %v15835_v15 = vpop.f32.mrb[162].mxu1 }
 0x471   : > { %v5953_v28 = vadd.f32 %v18828_v48, %v5952_v36  ;;  %v15255_v51 = vpop.f32.mrb[98].mxu0  ;;  %14270 = vmatprep.subr.bf16.mxu1 %v9965_v5  ;;  %v18848_v4 = vpack.c.bf16 %v9568_v52, %v9567_v14  ;;  %v13398_v14 = vcombine.high %v18844_v47, %v18846_v32  ;;  %v8284_v52 = vadd.f32 %v18828_v48, %v15835_v15 }
 0x472   : > { %v5964_v38 = vadd.f32 %v18828_v48, %v15255_v51  ;;  %v5955_v30 = vpop.f32.mrb[99].mxu0  ;;  %14271 = vmatpush3.bf16.msra.mxu1 %v18765_v42  ;;  %20679 = vst [vmem:[#allocation89_spill] sm:$0xff] %v18841_v22  ;;  %v8993_v31 = vmax.f32 %v5961_v54, 0.0  ;;  %v13333_v42 = vcombine.low %v18715_v3, %v18717_v8  ;;  %v8275_v54 = vpop.f32.mrb[163].mxu1 }
 0x473   : > { %v5956_v60 = vadd.f32 %v18828_v48, %v5955_v30  ;;  %14272 = vmatprep.subr.bf16.mxu1 %v9966_v63  ;;  %20680 = vst [vmem:[#allocation90_spill] sm:$0xff] %v18848_v4  ;;  %v8991_v36 = vmax.f32 %v5953_v28, 0.0  ;;  %v8281_v28 = vadd.f32 %v18828_v48, %v15834_v44  ;;  %v8276_v30 = vadd.f32 %v18828_v48, %v8275_v54  ;;  %v18871_v4 = vld [vmem:[#allocation5 + $0x158] sm:$0xff] }
 0x474   : > { %v8994_v5 = vmax.f32 %v5964_v38, 0.0  ;;  %15361 = vmatmul.mubr.bf16.gmra.mrb[204].mxu0 %v16428_v18  ;;  %v16430_v38 = vld [vmem:[%s17145_s25 + $0x748] sm:$0xff]  }
 0x475   : > { %v8992_v51 = vmax.f32 %v5956_v60, 0.0  ;;  %15364 = vmatprep.mubr.bf16.mxu0 %v16429_v50  ;;  %v8273_v50 = vadd.f32 %v18828_v48, %v8272_v1  ;;  %v9572_v1 = vmax.f32 %v8276_v30, 0.0 }
 0x476   : > { %v18852_v63 = vpack.c.bf16 %v8994_v5, %v8993_v31  ;;  %14273 = vmatpush3.bf16.msra.mxu1 %v18763_v11  ;;  %v16431_v31 = vld [vmem:[%s17145_s25 + $0x750] sm:$0xff]   ;;  %v9573_v5 = vmax.f32 %v8281_v28, 0.0 }
 0x477   : > { %v18857_v55 = vpack.c.bf16 %v8992_v51, %v8991_v36  ;;  %v15258_v18 = vpop.f32.mrb[100].mxu0  ;;  %v9571_v36 = vmax.f32 %v8273_v50, 0.0  ;;  %v9574_v51 = vmax.f32 %v8284_v52, 0.0 }
 0x478   : > { %v5977_v8 = vadd.f32 %v18828_v48, %v15258_v18  ;;  %v5968_v3 = vpop.f32.mrb[101].mxu0  ;;  %v18869_v18 = vld [vmem:[#allocation5 + $0x58] sm:$0xff] }
 0x479   : > { %v5969_v11 = vadd.f32 %v18828_v48, %v5968_v3  ;;  %v15259_v60 = vpop.f32.mrb[102].mxu0  ;;  %11466 = vmatmul.mubr.bf16.vlgmr.msra.gmra.mrb[76].mxu1 %v13333_v42  ;;  %v18873_v54 = vpack.c.bf16 %v9574_v51, %v9573_v5  ;;  %v15838_v3 = vpop.f32.mrb[164].mxu1  ;;  %v18875_v42 = vpack.c.bf16 %v9572_v1, %v9571_v36  ;;  %v16433_v1 = vld [vmem:[%s17145_s25 + $0x760] sm:$0xff]  }
 0x47a   : > { %v5980_v44 = vadd.f32 %v18828_v48, %v15259_v60  ;;  %v5971_v22 = vpop.f32.mrb[103].mxu0  ;;  %11473 = vmatprep.mubr.bf16.mxu1 %v13398_v14  ;;  %v8997_v43 = vmax.f32 %v5977_v8, 0.0  ;;  %v8288_v28 = vpop.f32.mrb[165].mxu1  ;;  %v13336_v60 = vcombine.high %v18869_v18, %v18871_v4  ;;  %v8297_v36 = vadd.f32 %v18828_v48, %v15838_v3 }
 0x47b   : > { %v5972_v15 = vadd.f32 %v18828_v48, %v5971_v22  ;;  %20681 = vst [vmem:[#allocation91_spill] sm:$0xff] %v18873_v54  ;;  %20682 = vst [vmem:[#allocation92_spill] sm:$0xff] %v18875_v42  ;;  %v8995_v50 = vmax.f32 %v5969_v11, 0.0  ;;  %v13397_v22 = vcombine.low %v18844_v47, %v18846_v32  ;;  %v15839_v14 = vpop.f32.mrb[166].mxu1  ;;  %v8289_v11 = vadd.f32 %v18828_v48, %v8288_v28  ;;  %v16432_v32 = vld [vmem:[%s17145_s25 + $0x758] sm:$0xff]  }
 0x47c   : > { %v8998_v53 = vmax.f32 %v5980_v44, 0.0  ;;  %15365 = vmatmul.mubr.bf16.gmra.mrb[208].mxu0 %v16430_v38  ;;  %v8291_v8 = vpop.f32.mrb[167].mxu1 }
 0x47d   : > { %v8996_v52 = vmax.f32 %v5972_v15, 0.0  ;;  %15368 = vmatprep.mubr.bf16.mxu0 %v16431_v31  ;;  %v8300_v31 = vadd.f32 %v18828_v48, %v15839_v14  ;;  %v9577_v15 = vmax.f32 %v8297_v36, 0.0  ;;  %v15842_v42 = vpop.f32.mrb[168].mxu1 }
 0x47e   : > { %v18879_v30 = vpack.c.bf16 %v8998_v53, %v8997_v43  ;;  %v8292_v53 = vadd.f32 %v18828_v48, %v8291_v8 }
 0x47f   : > { %v18883_v5 = vpack.c.bf16 %v8996_v52, %v8995_v50  ;;  %v15262_v38 = vpop.f32.mrb[104].mxu0  ;;  %v9575_v50 = vmax.f32 %v8289_v11, 0.0  ;;  %v9578_v52 = vmax.f32 %v8300_v31, 0.0 }
 0x480   : > { %v5993_v51 = vadd.f32 %v18828_v48, %v15262_v38  ;;  %v5984_v47 = vpop.f32.mrb[105].mxu0  ;;  %v9576_v28 = vmax.f32 %v8292_v53, 0.0 }
 0x481   : > { %v5985_v43 = vadd.f32 %v18828_v48, %v5984_v47  ;;  %v15263_v44 = vpop.f32.mrb[106].mxu0  ;;  %11474 = vmatmul.mubr.bf16.gmra.mrb[80].mxu1 %v13397_v22  ;;  %v18895_v38 = vpack.c.bf16 %v9578_v52, %v9577_v15  ;;  %v8304_v22 = vpop.f32.mrb[169].mxu1  ;;  %v8313_v15 = vadd.f32 %v18828_v48, %v15842_v42 }
 0x482   : > { %v5996_v3 = vadd.f32 %v18828_v48, %v15263_v44  ;;  %v5987_v54 = vpop.f32.mrb[107].mxu0  ;;  %11514 = vmatprep.mubr.bf16.mxu1 %v13336_v60  ;;  %v9001_v37 = vmax.f32 %v5993_v51, 0.0  ;;  %v18897_v47 = vpack.c.bf16 %v9576_v28, %v9575_v50  ;;  %v15843_v31 = vpop.f32.mrb[170].mxu1  ;;  %v8305_v51 = vadd.f32 %v18828_v48, %v8304_v22  ;;  %v16435_v28 = vld [vmem:[%s17145_s25 + $0x770] sm:$0xff]  }
 0x483   : > { %v5988_v14 = vadd.f32 %v18828_v48, %v5987_v54  ;;  %20683 = vst [vmem:[#allocation93_spill] sm:$0xff] %v18895_v38  ;;  %v8999_v36 = vmax.f32 %v5985_v43, 0.0  ;;  %v8307_v60 = vpop.f32.mrb[171].mxu1  ;;  %v16434_v43 = vld [vmem:[%s17145_s25 + $0x768] sm:$0xff]  }
 0x484   : > { %v9002_v8 = vmax.f32 %v5996_v3, 0.0  ;;  %15369 = vmatmul.mubr.bf16.gmra.mrb[212].mxu0 %v16432_v32  ;;  %20684 = vst [vmem:[#allocation94_spill] sm:$0xff] %v18897_v47  ;;  %v8316_v32 = vadd.f32 %v18828_v48, %v15843_v31  ;;  %v8308_v3 = vadd.f32 %v18828_v48, %v8307_v60 }
 0x485   : > { %v9000_v11 = vmax.f32 %v5988_v14, 0.0  ;;  %15372 = vmatprep.mubr.bf16.mxu0 %v16433_v1  ;;  %v9581_v14 = vmax.f32 %v8313_v15, 0.0 }
 0x486   : > { %v18899_v44 = vpack.c.bf16 %v9002_v8, %v9001_v37  ;;  %v9579_v8 = vmax.f32 %v8305_v51, 0.0  ;;  %v9580_v38 = vmax.f32 %v8308_v3, 0.0 }
 0x487   : > { %v18901_v53 = vpack.c.bf16 %v9000_v11, %v8999_v36  ;;  %v15266_v54 = vpop.f32.mrb[108].mxu0  ;;  %v9582_v36 = vmax.f32 %v8316_v32, 0.0 }
 0x488   : > { %v6009_v50 = vadd.f32 %v18828_v48, %v15266_v54  ;;  %v6000_v52 = vpop.f32.mrb[109].mxu0  ;;  %v15846_v54 = vpop.f32.mrb[172].mxu1  ;;  %v18915_v60 = vpack.c.bf16 %v9580_v38, %v9579_v8 }
 0x489   : > { %v6001_v1 = vadd.f32 %v18828_v48, %v6000_v52  ;;  %v15267_v37 = vpop.f32.mrb[110].mxu0  ;;  %v18913_v31 = vpack.c.bf16 %v9582_v36, %v9581_v14  ;;  %v8320_v52 = vpop.f32.mrb[173].mxu1  ;;  %v8329_v36 = vadd.f32 %v18828_v48, %v15846_v54 }
 0x48a   : > { %v6012_v11 = vadd.f32 %v18828_v48, %v15267_v37  ;;  %v6003_v42 = vpop.f32.mrb[111].mxu0  ;;  %v9005_v47 = vmax.f32 %v6009_v50, 0.0  ;;  %20686 = vst [vmem:[#allocation96_spill] sm:$0xff] %v18915_v60  ;;  %v15847_v51 = vpop.f32.mrb[174].mxu1  ;;  %v8321_v50 = vadd.f32 %v18828_v48, %v8320_v52 }
 0x48b   : > { %v6004_v22 = vadd.f32 %v18828_v48, %v6003_v42  ;;  %20685 = vst [vmem:[#allocation95_spill] sm:$0xff] %v18913_v31  ;;  %v9003_v24 = vmax.f32 %v6001_v1, 0.0  ;;  %v8323_v3 = vpop.f32.mrb[175].mxu1  ;;  %v16436_v1 = vld [vmem:[%s17145_s25 + $0x778] sm:$0xff]   ;;  %v9585_v42 = vmax.f32 %v8329_v36, 0.0 }
 0x48c   : > { %v9006_v56 = vmax.f32 %v6012_v11, 0.0  ;;  %15373 = vmatmul.mubr.bf16.gmra.mrb[216].mxu0 %v16434_v43  ;;  %v8332_v43 = vadd.f32 %v18828_v48, %v15847_v51  ;;  %v8324_v11 = vadd.f32 %v18828_v48, %v8323_v3  ;;  %v15850_v51 = vpop.f32.mrb[176].mxu1 }
 0x48d   : > { %v9004_v15 = vmax.f32 %v6004_v22, 0.0  ;;  %15376 = vmatprep.mubr.bf16.mxu0 %v16435_v28  ;;  %v8336_v3 = vpop.f32.mrb[177].mxu1 }
 0x48e   : > { %v18917_v32 = vpack.c.bf16 %v9006_v56, %v9005_v47  ;;  %v16437_v47 = vld [vmem:[%s17145_s25 + $0x780] sm:$0xff]   ;;  %v9586_v22 = vmax.f32 %v8332_v43, 0.0  ;;  %v9584_v31 = vmax.f32 %v8324_v11, 0.0  ;;  %v8337_v43 = vadd.f32 %v18828_v48, %v8336_v3  ;;  %v15851_v11 = vpop.f32.mrb[178].mxu1 }
 0x48f   : > { %v18919_v37 = vpack.c.bf16 %v9004_v15, %v9003_v24  ;;  %v15270_v14 = vpop.f32.mrb[112].mxu0  ;;  %v9583_v24 = vmax.f32 %v8321_v50, 0.0  ;;  %v8345_v50 = vadd.f32 %v18828_v48, %v15850_v51 }
 0x490   : > { %v6025_v38 = vadd.f32 %v18828_v48, %v15270_v14  ;;  %v6016_v8 = vpop.f32.mrb[113].mxu0  ;;  %v18931_v60 = vpack.c.bf16 %v9586_v22, %v9585_v42  ;;  %v8348_v42 = vadd.f32 %v18828_v48, %v15851_v11  ;;  %v8339_v22 = vpop.f32.mrb[179].mxu1 }
 0x491   : > { %v6017_v28 = vadd.f32 %v18828_v48, %v6016_v8  ;;  %v15271_v56 = vpop.f32.mrb[114].mxu0  ;;  %v18933_v62 = vpack.c.bf16 %v9584_v31, %v9583_v24  ;;  %v8340_v31 = vadd.f32 %v18828_v48, %v8339_v22 }
 0x492   : > { %v6028_v15 = vadd.f32 %v18828_v48, %v15271_v56  ;;  %v6019_v54 = vpop.f32.mrb[115].mxu0  ;;  %20687 = vst [vmem:[#allocation97_spill] sm:$0xff] %v18931_v60  ;;  %v9009_v14 = vmax.f32 %v6025_v38, 0.0  ;;  %v16439_v60 = vld [vmem:[%s17145_s25 + $0x790] sm:$0xff]  }
 0x493   : > { %v6020_v52 = vadd.f32 %v18828_v48, %v6019_v54  ;;  %20688 = vst [vmem:[#allocation98_spill] sm:$0xff] %v18933_v62  ;;  %v9007_v8 = vmax.f32 %v6017_v28, 0.0  ;;  %v9587_v54 = vmax.f32 %v8337_v43, 0.0 }
 0x494   : > { %v9010_v17 = vmax.f32 %v6028_v15, 0.0  ;;  %15377 = vmatmul.mubr.bf16.gmra.mrb[220].mxu0 %v16436_v1  ;;  %v9589_v1 = vmax.f32 %v8345_v50, 0.0 }
 0x495   : > { %v9008_v36 = vmax.f32 %v6020_v52, 0.0  ;;  %15380 = vmatprep.mubr.bf16.mxu0 %v16437_v47  ;;  %v16438_v47 = vld [vmem:[%s17145_s25 + $0x788] sm:$0xff]   ;;  %v9590_v52 = vmax.f32 %v8348_v42, 0.0 }
 0x496   : > { %v9976_v56 = vpack.c.bf16 %v9010_v17, %v9009_v14  ;;  %v9588_v17 = vmax.f32 %v8340_v31, 0.0 }
 0x497   : > { %v15274_v38 = vpop.f32.mrb[116].mxu0  ;;  %v9975_v15 = vpack.c.bf16 %v9008_v36, %v9007_v8  ;;  %v15854_v36 = vpop.f32.mrb[180].mxu1  ;;  %v18948_v43 = vpack.c.bf16 %v9590_v52, %v9589_v1 }
 0x498   : > { %v6041_v28 = vadd.f32 %v18828_v48, %v15274_v38  ;;  %v6032_v24 = vpop.f32.mrb[117].mxu0  ;;  %v18946_v50 = vpack.c.bf16 %v9588_v17, %v9587_v54  ;;  %v8352_v38 = vpop.f32.mrb[181].mxu1  ;;  %v8361_v31 = vadd.f32 %v18828_v48, %v15854_v36 }
 0x499   : > { %v6033_v51 = vadd.f32 %v18828_v48, %v6032_v24  ;;  %v15275_v3 = vpop.f32.mrb[118].mxu0  ;;  %14286 = vmatprep.subr.bf16.mxu1 %v9975_v15  ;;  %20690 = vst [vmem:[#allocation100_spill] sm:$0xff] %v18948_v43 }
 0x49a   : > { %v6044_v14 = vadd.f32 %v18828_v48, %v15275_v3  ;;  %v6035_v11 = vpop.f32.mrb[119].mxu0  ;;  %14287 = vmatpush3.bf16.msra.mxu1 %v18857_v55  ;;  %20689 = vst [vmem:[#allocation99_spill] sm:$0xff] %v18946_v50  ;;  %v9013_v42 = vmax.f32 %v6041_v28, 0.0  ;;  %v8353_v55 = vadd.f32 %v18828_v48, %v8352_v38  ;;  %v15855_v3 = vpop.f32.mrb[182].mxu1 }
 0x49b   : > { %v6036_v8 = vadd.f32 %v18828_v48, %v6035_v11  ;;  %14288 = vmatprep.subr.bf16.mxu1 %v9976_v56  ;;  %v9011_v15 = vmax.f32 %v6033_v51, 0.0  ;;  %v8364_v1 = vadd.f32 %v18828_v48, %v15855_v3  ;;  %v8355_v54 = vpop.f32.mrb[183].mxu1  ;;  %v16440_v11 = vld [vmem:[%s17145_s25 + $0x798] sm:$0xff]  }
 0x49c   : > { %v9014_v22 = vmax.f32 %v6044_v14, 0.0  ;;  %15381 = vmatmul.mubr.bf16.gmra.mrb[224].mxu0 %v16438_v47  ;;  %v9593_v47 = vmax.f32 %v8361_v31, 0.0  ;;  %v9591_v17 = vmax.f32 %v8353_v55, 0.0  ;;  %v8356_v51 = vadd.f32 %v18828_v48, %v8355_v54 }
 0x49d   : > { %v9012_v24 = vmax.f32 %v6036_v8, 0.0  ;;  %15384 = vmatprep.mubr.bf16.mxu0 %v16439_v60  ;;  %v9594_v8 = vmax.f32 %v8364_v1, 0.0 }
 0x49e   : > { %14289 = vmatpush3.bf16.msra.mxu1 %v18852_v63  ;;  %v9978_v56 = vpack.c.bf16 %v9014_v22, %v9013_v42  ;;  %v16441_v63 = vld [vmem:[%s17145_s25 + $0x7a0] sm:$0xff]   ;;  %v9592_v42 = vmax.f32 %v8356_v51, 0.0 }
 0x49f   : > { %v15278_v28 = vpop.f32.mrb[120].mxu0  ;;  %v9977_v52 = vpack.c.bf16 %v9012_v24, %v9011_v15  ;;  %v15858_v24 = vpop.f32.mrb[184].mxu1  ;;  %v18964_v55 = vpack.c.bf16 %v9594_v8, %v9593_v47 }
 0x4a0   : > { %v6057_v60 = vadd.f32 %v18828_v48, %v15278_v28  ;;  %v6048_v14 = vpop.f32.mrb[121].mxu0  ;;  %v18962_v31 = vpack.c.bf16 %v9592_v42, %v9591_v17  ;;  %v8368_v28 = vpop.f32.mrb[185].mxu1  ;;  %v8377_v51 = vadd.f32 %v18828_v48, %v15858_v24 }
 0x4a1   : > { %v6049_v36 = vadd.f32 %v18828_v48, %v6048_v14  ;;  %v15279_v38 = vpop.f32.mrb[122].mxu0  ;;  %14290 = vmatprep.subr.bf16.mxu1 %v9977_v52  ;;  %20692 = vst [vmem:[#allocation102_spill] sm:$0xff] %v18964_v55 }
 0x4a2   : > { %v6060_v22 = vadd.f32 %v18828_v48, %v15279_v38  ;;  %v6051_v3 = vpop.f32.mrb[123].mxu0  ;;  %14291 = vmatpush3.bf16.msra.mxu1 %v18883_v5  ;;  %20691 = vst [vmem:[#allocation101_spill] sm:$0xff] %v18962_v31  ;;  %v9017_v1 = vmax.f32 %v6057_v60, 0.0  ;;  %v8369_v5 = vadd.f32 %v18828_v48, %v8368_v28  ;;  %v15859_v38 = vpop.f32.mrb[186].mxu1 }
 0x4a3   : > { %v6052_v15 = vadd.f32 %v18828_v48, %v6051_v3  ;;  %14292 = vmatprep.subr.bf16.mxu1 %v9978_v56  ;;  %v9015_v52 = vmax.f32 %v6049_v36, 0.0  ;;  %v8380_v17 = vadd.f32 %v18828_v48, %v15859_v38  ;;  %v8371_v47 = vpop.f32.mrb[187].mxu1  ;;  %v16442_v3 = vld [vmem:[%s17145_s25 + $0x7a8] sm:$0xff]   ;;  %v16443_v38 = vld [vmem:[%s17145_s25 + $0x7b0] sm:$0xff]  }
 0x4a4   : > { %v9018_v54 = vmax.f32 %v6060_v22, 0.0  ;;  %15385 = vmatmul.mubr.bf16.gmra.mrb[228].mxu0 %v16440_v11  ;;  %v9595_v11 = vmax.f32 %v8369_v5, 0.0  ;;  %v8372_v36 = vadd.f32 %v18828_v48, %v8371_v47  ;;  %v15862_v42 = vpop.f32.mrb[188].mxu1 }
 0x4a5   : > { %v9016_v14 = vmax.f32 %v6052_v15, 0.0  ;;  %15388 = vmatprep.mubr.bf16.mxu0 %v16441_v63  ;;  %v9597_v15 = vmax.f32 %v8377_v51, 0.0  ;;  %v9598_v24 = vmax.f32 %v8380_v17, 0.0  ;;  %v8393_v28 = vadd.f32 %v18828_v48, %v15862_v42 }
 0x4a6   : > { %14293 = vmatpush3.bf16.msra.mxu1 %v18879_v30  ;;  %v9980_v56 = vpack.c.bf16 %v9018_v54, %v9017_v1  ;;  %v8384_v30 = vpop.f32.mrb[189].mxu1  ;;  %v9596_v55 = vmax.f32 %v8372_v36, 0.0 }
 0x4a7   : > { %v15282_v60 = vpop.f32.mrb[124].mxu0  ;;  %v9979_v8 = vpack.c.bf16 %v9016_v14, %v9015_v52  ;;  %v15863_v52 = vpop.f32.mrb[190].mxu1  ;;  %v8385_v51 = vadd.f32 %v18828_v48, %v8384_v30 }
 0x4a8   : > { %v6073_v63 = vadd.f32 %v18828_v48, %v15282_v60  ;;  %v6064_v22 = vpop.f32.mrb[125].mxu0  ;;  %v9601_v60 = vmax.f32 %v8393_v28, 0.0  ;;  %v8387_v17 = vpop.f32.mrb[191].mxu1  ;;  %v18981_v43 = vpack.c.bf16 %v9596_v55, %v9595_v11 }
 0x4a9   : > { %v6065_v1 = vadd.f32 %v18828_v48, %v6064_v22  ;;  %v15283_v54 = vpop.f32.mrb[126].mxu0  ;;  %14294 = vmatprep.subr.bf16.mxu1 %v9979_v8  ;;  %v8396_v22 = vadd.f32 %v18828_v48, %v15863_v52  ;;  %v15866_v8 = vpop.f32.mrb[192].mxu1 }
 0x4aa   : > { %v9021_v14 = vmax.f32 %v6073_v63, 0.0  ;;  %v6076_v5 = vadd.f32 %v18828_v48, %v15283_v54  ;;  %v6067_v47 = vpop.f32.mrb[127].mxu0  ;;  %14295 = vmatpush3.bf16.msra.mxu1 %v18901_v53  ;;  %20693 = vst [vmem:[#allocation103_spill] sm:$0xff] %v18981_v43  ;;  %v9599_v63 = vmax.f32 %v8385_v51, 0.0  ;;  %v8388_v54 = vadd.f32 %v18828_v48, %v8387_v17  ;;  %v8400_v50 = vpop.f32.mrb[193].mxu1 }
 0x4ab   : > { %v9019_v31 = vmax.f32 %v6065_v1, 0.0  ;;  %v6068_v42 = vadd.f32 %v18828_v48, %v6067_v47  ;;  %14296 = vmatprep.subr.bf16.mxu1 %v9980_v56  ;;  %v18984_v53 = vpack.c.bf16 %v9598_v24, %v9597_v15  ;;  %v9602_v30 = vmax.f32 %v8396_v22, 0.0  ;;  %v15867_v52 = vpop.f32.mrb[194].mxu1 }
 0x4ac   : > { %v9022_v36 = vmax.f32 %v6076_v5, 0.0  ;;  %15389 = vmatmul.mubr.bf16.gmra.mrb[232].mxu0 %v16442_v3  ;;  %v8409_v1 = vadd.f32 %v18828_v48, %v15866_v8  ;;  %v8401_v56 = vadd.f32 %v18828_v48, %v8400_v50  ;;  %v9600_v11 = vmax.f32 %v8388_v54, 0.0  ;;  %v8403_v5 = vpop.f32.mrb[195].mxu1  ;;  %v16444_v50 = vld [vmem:[%s17145_s25 + $0x7b8] sm:$0xff]  }
 0x4ad   : > { %20694 = vst [vmem:[#allocation104_spill] sm:$0xff] %v18984_v53  ;;  %v9020_v28 = vmax.f32 %v6068_v42, 0.0  ;;  %15392 = vmatprep.mubr.bf16.mxu0 %v16443_v38  ;;  %v8412_v3 = vadd.f32 %v18828_v48, %v15867_v52  ;;  %v18990_v24 = vpack.c.bf16 %v9602_v30, %v9601_v60  ;;  %v15870_v17 = vpop.f32.mrb[196].mxu1 }
 0x4ae   : > { %14297 = vmatpush3.bf16.msra.mxu1 %v18899_v44  ;;  %v9982_v55 = vpack.c.bf16 %v9022_v36, %v9021_v14  ;;  %v9605_v38 = vmax.f32 %v8409_v1, 0.0  ;;  %v9603_v51 = vmax.f32 %v8401_v56, 0.0  ;;  %v18994_v8 = vpack.c.bf16 %v9600_v11, %v9599_v63  ;;  %v8416_v36 = vpop.f32.mrb[197].mxu1  ;;  %v19002_v56 = vld [vmem:[#allocation5 + $0x258] sm:$0xff] }
 0x4af   : > { %v15286_v47 = vpop.f32.mrb[128].mxu0  ;;  %v9981_v15 = vpack.c.bf16 %v9020_v28, %v9019_v31  ;;  %20695 = vst [vmem:[#allocation105_spill] sm:$0xff] %v18990_v24  ;;  %v9606_v44 = vmax.f32 %v8412_v3, 0.0  ;;  %v8404_v14 = vadd.f32 %v18828_v48, %v8403_v5  ;;  %v16445_v31 = vld [vmem:[%s17145_s25 + $0x7c0] sm:$0xff]   ;;  %v8425_v60 = vadd.f32 %v18828_v48, %v15870_v17  ;;  %v15871_v28 = vpop.f32.mrb[198].mxu1  ;;  %v19004_v63 = vld [vmem:[#allocation5 + $0x358] sm:$0xff] }
 0x4b0   : > { %v6089_v42 = vadd.f32 %v18828_v48, %v15286_v47  ;;  %v6080_v22 = vpop.f32.mrb[129].mxu0  ;;  %20696 = vst [vmem:[#allocation106_spill] sm:$0xff] %v18994_v8  ;;  %v8419_v5 = vpop.f32.mrb[199].mxu1  ;;  %v8417_v17 = vadd.f32 %v18828_v48, %v8416_v36  ;;  %v8428_v8 = vadd.f32 %v18828_v48, %v15871_v28 }
 0x4b1   : > { %v6081_v54 = vadd.f32 %v18828_v48, %v6080_v22  ;;  %v15287_v52 = vpop.f32.mrb[130].mxu0  ;;  %14298 = vmatprep.subr.bf16.mxu1 %v9981_v15  ;;  %v19006_v11 = vpack.c.bf16 %v9606_v44, %v9605_v38  ;;  %v9604_v3 = vmax.f32 %v8404_v14, 0.0  ;;  %v15874_v22 = vpop.f32.mrb[200].mxu1  ;;  %v8420_v36 = vadd.f32 %v18828_v48, %v8419_v5 }
 0x4b2   : > { %v6092_v30 = vadd.f32 %v18828_v48, %v15287_v52  ;;  %v6083_v1 = vpop.f32.mrb[131].mxu0  ;;  %14299 = vmatpush3.bf16.msra.mxu1 %v18919_v37  ;;  %v9025_v47 = vmax.f32 %v6089_v42, 0.0  ;;  %v9609_v37 = vmax.f32 %v8425_v60, 0.0  ;;  %v8432_v53 = vpop.f32.mrb[201].mxu1  ;;  %v13335_v42 = vcombine.low %v18869_v18, %v18871_v4 }
 0x4b3   : > { %20697 = vst [vmem:[#allocation107_spill] sm:$0xff] %v19006_v11  ;;  %v6084_v15 = vadd.f32 %v18828_v48, %v6083_v1  ;;  %14300 = vmatprep.subr.bf16.mxu1 %v9982_v55  ;;  %v19010_v52 = vpack.c.bf16 %v9604_v3, %v9603_v51  ;;  %v9023_v43 = vmax.f32 %v6081_v54, 0.0  ;;  %v13400_v55 = vcombine.high %v19002_v56, %v19004_v63  ;;  %v15875_v44 = vpop.f32.mrb[202].mxu1  ;;  %v16446_v1 = vld [vmem:[%s17145_s25 + $0x7c8] sm:$0xff]  }
 0x4b4   : > { %v9026_v24 = vmax.f32 %v6092_v30, 0.0  ;;  %15393 = vmatmul.mubr.bf16.gmra.mrb[236].mxu0 %v16444_v50  ;;  %v9607_v51 = vmax.f32 %v8417_v17, 0.0  ;;  %v9610_v50 = vmax.f32 %v8428_v8, 0.0  ;;  %v8435_v60 = vpop.f32.mrb[203].mxu1  ;;  %v8441_v4 = vadd.f32 %v18828_v48, %v15874_v22  ;;  %v16447_v17 = vld [vmem:[%s17145_s25 + $0x7d0] sm:$0xff]  }
 0x4b5   : > { %20698 = vst [vmem:[#allocation108_spill] sm:$0xff] %v19010_v52  ;;  %v9024_v38 = vmax.f32 %v6084_v15, 0.0  ;;  %15396 = vmatprep.mubr.bf16.mxu0 %v16445_v31  ;;  %v8433_v18 = vadd.f32 %v18828_v48, %v8432_v53  ;;  %v8444_v28 = vadd.f32 %v18828_v48, %v15875_v44  ;;  %v19026_v30 = vpop.f32.mrb[204].mxu1  ;;  %v9608_v3 = vmax.f32 %v8420_v36, 0.0 }
 0x4b6   : > { %v19017_v14 = vpack.c.bf16 %v9026_v24, %v9025_v47  ;;  %14301 = vmatpush3.bf16.msra.mxu1 %v18917_v32  ;;  %v19030_v8 = vpack.c.bf16 %v9610_v50, %v9609_v37  ;;  %v8436_v5 = vadd.f32 %v18828_v48, %v8435_v60  ;;  %v9613_v53 = vmax.f32 %v8441_v4, 0.0  ;;  %v19039_v60 = vld [vmem:[#allocation5 + $0x60] sm:$0xff] }
 0x4b7   : > { %v19021_v54 = vpack.c.bf16 %v9024_v38, %v9023_v43  ;;  %v15290_v31 = vpop.f32.mrb[132].mxu0  ;;  %v8448_v43 = vpop.f32.mrb[205].mxu1  ;;  %v9611_v22 = vmax.f32 %v8433_v18, 0.0  ;;  %v9614_v38 = vmax.f32 %v8444_v28, 0.0  ;;  %v19036_v52 = vpack.c.bf16 %v9608_v3, %v9607_v51 }
 0x4b8   : > { %v6105_v24 = vadd.f32 %v18828_v48, %v15290_v31  ;;  %v6096_v32 = vpop.f32.mrb[133].mxu0  ;;  %20699 = vst [vmem:[#allocation109_spill] sm:$0xff] %v19030_v8  ;;  %v15879_v44 = vpop.f32.mrb[206].mxu1  ;;  %v9612_v37 = vmax.f32 %v8436_v5, 0.0  ;;  %v13399_v5 = vcombine.low %v19002_v56, %v19004_v63 }
 0x4b9   : > { %v6097_v47 = vadd.f32 %v18828_v48, %v6096_v32  ;;  %v15291_v15 = vpop.f32.mrb[134].mxu0  ;;  %11515 = vmatmul.mubr.bf16.vlgmr.msra.gmra.mrb[84].mxu1 %v13335_v42  ;;  %20700 = vst [vmem:[#allocation110_spill] sm:$0xff] %v19036_v52  ;;  %v8451_v50 = vpop.f32.mrb[207].mxu1  ;;  %v19041_v32 = vld [vmem:[#allocation5 + $0x160] sm:$0xff]  ;;  %v19043_v8 = vpack.c.bf16 %v9614_v38, %v9613_v53 }
 0x4ba   : > { %v6108_v11 = vadd.f32 %v18828_v48, %v15291_v15  ;;  %v6099_v31 = vpop.f32.mrb[135].mxu0  ;;  %11522 = vmatprep.mubr.bf16.mxu1 %v13400_v55  ;;  %v19045_v42 = vpop.f32.mrb[208].mxu1  ;;  %v9029_v4 = vmax.f32 %v6105_v24, 0.0  ;;  %v19047_v28 = vpack.c.bf16 %v9612_v37, %v9611_v22  ;;  %v19106_v41 = vadd.f32 %v18828_v48, %v8451_v50 }
 0x4bb   : > { %v6100_v36 = vadd.f32 %v18828_v48, %v6099_v31  ;;  %20701 = vst [vmem:[#allocation111_spill] sm:$0xff] %v19043_v8  ;;  %v19049_v55 = vpop.f32.mrb[209].mxu1  ;;  %v9027_v51 = vmax.f32 %v6097_v47, 0.0  ;;  %v16448_v31 = vld [vmem:[%s17145_s25 + $0x7d8] sm:$0xff]  }
 0x4bc   : > { %v9030_v18 = vmax.f32 %v6108_v11, 0.0  ;;  %15397 = vmatmul.mubr.bf16.gmra.mrb[240].mxu0 %v16446_v1  ;;  %20702 = vst [vmem:[#allocation112_spill] sm:$0xff] %v19047_v28  ;;  %v19053_v15 = vpop.f32.mrb[210].mxu1  ;;  %v13338_v11 = vcombine.high %v19039_v60, %v19041_v32 }
 0x4bd   : > { %v9028_v3 = vmax.f32 %v6100_v36, 0.0  ;;  %15400 = vmatprep.mubr.bf16.mxu0 %v16447_v17  ;;  %v19059_v24 = vpop.f32.mrb[211].mxu1  ;;  %v16449_v36 = vld [vmem:[%s17145_s25 + $0x7e0] sm:$0xff]  }
 0x4be   : > { %v19055_v53 = vpack.c.bf16 %v9030_v18, %v9029_v4  ;;  %v19063_v38 = vpop.f32.mrb[212].mxu1 }
 0x4bf   : > { %v19061_v1 = vpack.c.bf16 %v9028_v3, %v9027_v51  ;;  %v15294_v22 = vpop.f32.mrb[136].mxu0  ;;  %v19067_v37 = vpop.f32.mrb[213].mxu1 }
 0x4c0   : > { %v6121_v47 = vadd.f32 %v18828_v48, %v15294_v22  ;;  %v6112_v17 = vpop.f32.mrb[137].mxu0  ;;  %v19071_v4 = vpop.f32.mrb[214].mxu1 }
 0x4c1   : > { %v6113_v56 = vadd.f32 %v18828_v48, %v6112_v17  ;;  %v15295_v63 = vpop.f32.mrb[138].mxu0  ;;  %11523 = vmatmul.mubr.bf16.gmra.mrb[88].mxu1 %v13399_v5  ;;  %v19074_v3 = vpop.f32.mrb[215].mxu1 }
 0x4c2   : > { %v6124_v18 = vadd.f32 %v18828_v48, %v15295_v63  ;;  %v6115_v51 = vpop.f32.mrb[139].mxu0  ;;  %11563 = vmatprep.mubr.bf16.mxu1 %v13338_v11  ;;  %v19077_v22 = vpop.f32.mrb[216].mxu1  ;;  %v9033_v28 = vmax.f32 %v6121_v47, 0.0  ;;  %v19083_v63 = vadd.f32 %v18828_v48, %v19026_v30  ;;  %v19093_v47 = vadd.f32 %v18828_v48, %v15879_v44 }
 0x4c3   : > { %v6116_v8 = vadd.f32 %v18828_v48, %v6115_v51  ;;  %v19079_v17 = vpop.f32.mrb[217].mxu1  ;;  %v9031_v62 = vmax.f32 %v6113_v56, 0.0  ;;  %v19090_v51 = vadd.f32 %v18828_v48, %v8448_v43 }
 0x4c4   : > { %v9034_v52 = vmax.f32 %v6124_v18, 0.0  ;;  %15401 = vmatmul.mubr.bf16.gmra.mrb[244].mxu0 %v16448_v31  ;;  %v19085_v11 = vpop.f32.mrb[218].mxu1 }
 0x4c5   : > { %v9032_v5 = vmax.f32 %v6116_v8, 0.0  ;;  %15404 = vmatprep.mubr.bf16.mxu0 %v16449_v36  ;;  %v19095_v31 = vpop.f32.mrb[219].mxu1 }
 0x4c6   : > { %v19087_v2 = vpack.c.bf16 %v9034_v52, %v9033_v28  ;;  %v15894_v36 = vpop.f32.mrb[220].mxu1 }
 0x4c7   : > { %v19097_v56 = vpack.c.bf16 %v9032_v5, %v9031_v62  ;;  %v15298_v8 = vpop.f32.mrb[140].mxu0  ;;  %v8521_v27 = vadd.f32 %v18828_v48, %v15894_v36  ;;  %v8512_v52 = vpop.f32.mrb[221].mxu1  ;;  %v19113_v36 = vadd.f32 %v18828_v48, %v19045_v42  ;;  %v19124_v42 = vadd.f32 %v18828_v48, %v19053_v15 }
 0x4c8   : > { %v6137_v30 = vadd.f32 %v18828_v48, %v15298_v8  ;;  %v6128_v18 = vpop.f32.mrb[141].mxu0  ;;  %v15895_v62 = vpop.f32.mrb[222].mxu1  ;;  %v8513_v44 = vadd.f32 %v18828_v48, %v8512_v52  ;;  %v19120_v8 = vadd.f32 %v18828_v48, %v19049_v55 }
 0x4c9   : > { %v6129_v28 = vadd.f32 %v18828_v48, %v6128_v18  ;;  %v15299_v43 = vpop.f32.mrb[142].mxu0  ;;  %v8515_v18 = vpop.f32.mrb[223].mxu1  ;;  %v9633_v19 = vmax.f32 %v8521_v27, 0.0  ;;  %v8524_v50 = vadd.f32 %v18828_v48, %v15895_v62 }
 0x4ca   : > { %v6140_v5 = vadd.f32 %v18828_v48, %v15299_v43  ;;  %v6131_v9 = vpop.f32.mrb[143].mxu0  ;;  %v15898_v40 = vpop.f32.mrb[224].mxu1  ;;  %v9037_v25 = vmax.f32 %v6137_v30, 0.0  ;;  %v9631_v55 = vmax.f32 %v8513_v44, 0.0 }
 0x4cb   : > { %v6132_v21 = vadd.f32 %v18828_v48, %v6131_v9  ;;  %v8528_v34 = vpop.f32.mrb[225].mxu1  ;;  %v9035_v16 = vmax.f32 %v6129_v28, 0.0  ;;  %v9634_v52 = vmax.f32 %v8524_v50, 0.0  ;;  %v8537_v28 = vadd.f32 %v18828_v48, %v15898_v40 }
 0x4cc   : > { %v9038_v43 = vmax.f32 %v6140_v5, 0.0  ;;  %15405 = vmatmul.mubr.bf16.gmra.mrb[248].mxu0 %v16450_v26  ;;  %v15899_v62 = vpop.f32.mrb[226].mxu1  ;;  %v19131_v26 = vadd.f32 %v18828_v48, %v19059_v24  ;;  %v8516_v5 = vadd.f32 %v18828_v48, %v8515_v18  ;;  %v8529_v50 = vadd.f32 %v18828_v48, %v8528_v34  ;;  %v16452_v24 = vld [vmem:[%s17145_s25 + $0x7f8] sm:$0xff]  }
 0x4cd   : > { %v9036_v9 = vmax.f32 %v6132_v21, 0.0  ;;  %15408 = vmatprep.mubr.bf16.mxu0 %v16451_v59  ;;  %v8531_v15 = vpop.f32.mrb[227].mxu1  ;;  %v19136_v59 = vpack.c.bf16 %v9634_v52, %v9633_v19  ;;  %v8540_v44 = vadd.f32 %v18828_v48, %v15899_v62  ;;  %v16453_v19 = vld [vmem:[%s17145_s25 + $0x800] sm:$0xff]   ;;  %v9637_v52 = vmax.f32 %v8537_v28, 0.0 }
 0x4ce   : > { %v19127_v30 = vpack.c.bf16 %v9038_v43, %v9037_v25  ;;  %v15902_v25 = vpop.f32.mrb[228].mxu1  ;;  %v9632_v7 = vmax.f32 %v8516_v5, 0.0  ;;  %v8532_v18 = vadd.f32 %v18828_v48, %v8531_v15 }
 0x4cf   : > { %v19134_v58 = vpack.c.bf16 %v9036_v9, %v9035_v16  ;;  %v15302_v21 = vpop.f32.mrb[144].mxu0  ;;  %20703 = vst [vmem:[#allocation113_spill] sm:$0xff] %v19136_v59  ;;  %v8544_v0 = vpop.f32.mrb[229].mxu1  ;;  %v9635_v59 = vmax.f32 %v8529_v50, 0.0  ;;  %v8553_v40 = vadd.f32 %v18828_v48, %v15902_v25  ;;  %v9638_v5 = vmax.f32 %v8540_v44, 0.0 }
 0x4d0   : > { %v6153_v43 = vadd.f32 %v18828_v48, %v15302_v21  ;;  %v6144_v27 = vpop.f32.mrb[145].mxu0  ;;  %v15903_v34 = vpop.f32.mrb[230].mxu1  ;;  %v19148_v61 = vpack.c.bf16 %v9632_v7, %v9631_v55  ;;  %v9636_v6 = vmax.f32 %v8532_v18, 0.0  ;;  %v8545_v50 = vadd.f32 %v18828_v48, %v8544_v0  ;;  %v19158_v44 = vld [vmem:[#allocation8] ss:$0 sm:$0xff] }
 0x4d1   : > { %v6145_v16 = vadd.f32 %v18828_v48, %v6144_v27  ;;  %v15303_v9 = vpop.f32.mrb[146].mxu0  ;;  %v8547_v62 = vpop.f32.mrb[231].mxu1  ;;  %v9641_v27 = vmax.f32 %v8553_v40, 0.0  ;;  %v19151_v28 = vpack.c.bf16 %v9638_v5, %v9637_v52  ;;  %v8556_v25 = vadd.f32 %v18828_v48, %v15903_v34 }
 0x4d2   : > { %v9041_v12 = vmax.f32 %v6153_v43, 0.0  ;;  %v6156_v21 = vadd.f32 %v18828_v48, %v15303_v9  ;;  %v6147_v57 = vpop.f32.mrb[147].mxu0  ;;  %20704 = vst [vmem:[#allocation114_spill] sm:$0xff] %v19148_v61  ;;  %v15906_v45 = vpop.f32.mrb[232].mxu1  ;;  %v19155_v7 = vpack.c.bf16 %v9636_v6, %v9635_v59  ;;  %v8548_v55 = vadd.f32 %v18828_v48, %v8547_v62  ;;  %v16463_v61 = vld [vmem:[%s17145_s25 + $0x850] sm:$0xff]  }
 0x4d3   : > { %v9039_v13 = vmax.f32 %v6145_v16, 0.0  ;;  %v6148_v15 = vadd.f32 %v18828_v48, %v6147_v57  ;;  %20705 = vst [vmem:[#allocation115_spill] sm:$0xff] %v19151_v28  ;;  %v8560_v43 = vpop.f32.mrb[233].mxu1  ;;  %v8569_v57 = vadd.f32 %v19158_v44, %v15906_v45  ;;  %v9639_v16 = vmax.f32 %v8545_v50, 0.0  ;;  %v16454_v45 = vld [vmem:[%s17145_s25 + $0x808] sm:$0xff]  }
 0x4d4   : > { %v9042_v39 = vmax.f32 %v6156_v21, 0.0  ;;  %15409 = vmatmul.mubr.bf16.gmra.mrb[252].mxu0 %v16452_v24  ;;  %20706 = vst [vmem:[#allocation116_spill] sm:$0xff] %v19155_v7  ;;  %v15907_v18 = vpop.f32.mrb[234].mxu1  ;;  %v9642_v52 = vmax.f32 %v8556_v25, 0.0  ;;  %v8561_v0 = vadd.f32 %v19158_v44, %v8560_v43  ;;  %v16455_v43 = vld [vmem:[%s17145_s25 + $0x810] sm:$0xff]  }
 0x4d5   : > { %v9040_v9 = vmax.f32 %v6148_v15, 0.0  ;;  %15412 = vmatprep.mubr.bf16.mxu0 %v16453_v19  ;;  %v8563_v40 = vpop.f32.mrb[235].mxu1  ;;  %v9640_v19 = vmax.f32 %v8548_v55, 0.0  ;;  %v9645_v6 = vmax.f32 %v8569_v57, 0.0  ;;  %v8572_v59 = vadd.f32 %v19158_v44, %v15907_v18 }
 0x4d6   : > { %v9992_v24 = vpack.c.bf16 %v9042_v39, %v9041_v12  ;;  %v19163_v48 = vpop.f32.mrb[236].mxu1  ;;  %v19167_v15 = vpack.c.bf16 %v9642_v52, %v9641_v27  ;;  %v9643_v39 = vmax.f32 %v8561_v0, 0.0  ;;  %v8564_v12 = vadd.f32 %v19158_v44, %v8563_v40 }
 0x4d7   : > { %v15306_v34 = vpop.f32.mrb[148].mxu0  ;;  %v9991_v21 = vpack.c.bf16 %v9040_v9, %v9039_v13  ;;  %v19170_v50 = vpop.f32.mrb[237].mxu1  ;;  %v19176_v9 = vadd.f32 %v19158_v44, %v19063_v38  ;;  %v19178_v55 = vpack.c.bf16 %v9640_v19, %v9639_v16  ;;  %v9646_v57 = vmax.f32 %v8572_v59, 0.0 }
 0x4d8   : > { %v6169_v5 = vadd.f32 %v19158_v44, %v15306_v34  ;;  %v6160_v62 = vpop.f32.mrb[149].mxu0  ;;  %20707 = vst [vmem:[#allocation117_spill] sm:$0xff] %v19167_v15  ;;  %v19180_v18 = vpop.f32.mrb[238].mxu1  ;;  %v9621_v0 = vmax.f32 %v19113_v36, 0.0  ;;  %v9619_v40 = vmax.f32 %v19120_v8, 0.0  ;;  %v9644_v34 = vmax.f32 %v8564_v12, 0.0 }
 0x4d9   : > { %v6161_v25 = vadd.f32 %v19158_v44, %v6160_v62  ;;  %v15307_v13 = vpop.f32.mrb[150].mxu0  ;;  %14314 = vmatprep.subr.bf16.mxu1 %v9991_v21  ;;  %20708 = vst [vmem:[#allocation118_spill] sm:$0xff] %v19178_v55  ;;  %v19186_v21 = vpop.f32.mrb[239].mxu1  ;;  %v8481_v16 = vadd.f32 %v19158_v44, %v19067_v37  ;;  %v8492_v19 = vadd.f32 %v19158_v44, %v19071_v4  ;;  %v9622_v4 = vmax.f32 %v19124_v42, 0.0 }
 0x4da   : > { %v6172_v27 = vadd.f32 %v19158_v44, %v15307_v13  ;;  %v6163_v52 = vpop.f32.mrb[151].mxu0  ;;  %14315 = vmatpush3.bf16.msra.mxu1 %v19021_v54  ;;  %v19193_v59 = vpack.c.bf16 %v9646_v57, %v9645_v6  ;;  %v19195_v62 = vpop.f32.mrb[240].mxu1  ;;  %v9045_v54 = vmax.f32 %v6169_v5, 0.0  ;;  %v8484_v8 = vadd.f32 %v19158_v44, %v19074_v3 }
 0x4db   : > { %v6164_v38 = vadd.f32 %v19158_v44, %v6163_v52  ;;  %14316 = vmatprep.subr.bf16.mxu1 %v9992_v24  ;;  %v19199_v12 = vpack.c.bf16 %v9644_v34, %v9643_v39  ;;  %v19201_v13 = vpop.f32.mrb[241].mxu1  ;;  %v9043_v24 = vmax.f32 %v6161_v25, 0.0  ;;  %v9620_v6 = vmax.f32 %v19131_v26, 0.0 }
 0x4dc   : > { %20709 = vst [vmem:[#allocation119_spill] sm:$0xff] %v19193_v59  ;;  %v9046_v36 = vmax.f32 %v6172_v27, 0.0  ;;  %15413 = vmatmul.mubr.bf16.gmra.mrb[0].mxu0 %v16454_v45  ;;  %v19205_v57 = vpop.f32.mrb[242].mxu1  ;;  %v20711_v3 = vmax.f32 %v19090_v51, 0.0  ;;  %v20712_v39 = vmax.f32 %v19106_v41, 0.0  ;;  %v9625_v42 = vmax.f32 %v19176_v9, 0.0 }
 0x4dd   : > { %20710 = vst [vmem:[#allocation120_spill] sm:$0xff] %v19199_v12  ;;  %v9044_v37 = vmax.f32 %v6164_v38, 0.0  ;;  %15416 = vmatprep.mubr.bf16.mxu0 %v16455_v43  ;;  %v19208_v45 = vpop.f32.mrb[243].mxu1  ;;  %v9623_v38 = vmax.f32 %v8481_v16, 0.0  ;;  %v20714_v9 = vmax.f32 %v19083_v63, 0.0  ;;  %v19235_v16 = vpack.c.bf16 %v9622_v4, %v9621_v0 }
 0x4de   : > { %14317 = vmatpush3.bf16.msra.mxu1 %v19017_v14  ;;  %v9994_v5 = vpack.c.bf16 %v9046_v36, %v9045_v54  ;;  %v19214_v25 = vpack.c.bf16 %v20712_v39, %v20711_v3  ;;  %v19217_v52 = vpop.f32.mrb[244].mxu1  ;;  %v16456_v14 = vld [vmem:[%s17145_s25 + $0x818] sm:$0xff]   ;;  %v9626_v54 = vmax.f32 %v8492_v19, 0.0  ;;  %v9624_v36 = vmax.f32 %v8484_v8, 0.0  ;;  %v16457_v3 = vld [vmem:[%s17145_s25 + $0x820] sm:$0xff]  }
 0x4df   : > { %v15310_v27 = vpop.f32.mrb[152].mxu0  ;;  %v9993_v43 = vpack.c.bf16 %v9044_v37, %v9043_v24  ;;  %v19221_v59 = vpop.f32.mrb[245].mxu1  ;;  %v20715_v24 = vmax.f32 %v19093_v47, 0.0  ;;  %20718 = vst [vmem:[#allocation124_spill] sm:$0xff] %v19235_v16  ;;  %v8497_v47 = vadd.f32 %v19158_v44, %v19079_v17  ;;  %v8508_v0 = vadd.f32 %v19158_v44, %v19085_v11 }
 0x4e0   : > { %20713 = vst [vmem:[#allocation121_spill] sm:$0xff] %v19214_v25  ;;  %v6185_v26 = vadd.f32 %v19158_v44, %v15310_v27  ;;  %v6176_v34 = vpop.f32.mrb[153].mxu0  ;;  %v19225_v39 = vpop.f32.mrb[246].mxu1  ;;  %v19233_v27 = vpack.c.bf16 %v9620_v6, %v9619_v40  ;;  %v8500_v40 = vadd.f32 %v19158_v44, %v19095_v31 }
 0x4e1   : > { %v6177_v41 = vadd.f32 %v19158_v44, %v6176_v34  ;;  %v15311_v51 = vpop.f32.mrb[154].mxu0  ;;  %14318 = vmatprep.subr.bf16.mxu1 %v9993_v43  ;;  %v19231_v37 = vpack.c.bf16 %v20715_v24, %v20714_v9  ;;  %v8505_v43 = vadd.f32 %v19158_v44, %v19077_v22  ;;  %v19241_v34 = vpop.f32.mrb[247].mxu1  ;;  %v19256_v9 = vpack.c.bf16 %v9626_v54, %v9625_v42 }
 0x4e2   : > { %20717 = vst [vmem:[#allocation123_spill] sm:$0xff] %v19233_v27  ;;  %v6188_v19 = vadd.f32 %v19158_v44, %v15311_v51  ;;  %v6179_v8 = vpop.f32.mrb[155].mxu0  ;;  %14319 = vmatpush3.bf16.msra.mxu1 %v19061_v1  ;;  %v19250_v4 = vpop.f32.mrb[248].mxu1  ;;  %v9049_v1 = vmax.f32 %v6185_v26, 0.0  ;;  %v19254_v51 = vpack.c.bf16 %v9624_v36, %v9623_v38  ;;  %v9630_v38 = vmax.f32 %v8508_v0, 0.0 }
 0x4e3   : > { %20716 = vst [vmem:[#allocation122_spill] sm:$0xff] %v19231_v37  ;;  %v6180_v63 = vadd.f32 %v19158_v44, %v6179_v8  ;;  %14320 = vmatprep.subr.bf16.mxu1 %v9994_v5  ;;  %v19252_v22 = vpop.f32.mrb[249].mxu1  ;;  %20720 = vst [vmem:[#allocation126_spill] sm:$0xff] %v19256_v9  ;;  %v9047_v5 = vmax.f32 %v6177_v41, 0.0  ;;  %v9629_v31 = vmax.f32 %v8505_v43, 0.0  ;;  %v9627_v8 = vmax.f32 %v8497_v47, 0.0 }
 0x4e4   : > { %v9050_v6 = vmax.f32 %v6188_v19, 0.0  ;;  %15417 = vmatmul.mubr.bf16.gmra.mrb[4].mxu0 %v16456_v14  ;;  %20719 = vst [vmem:[#allocation125_spill] sm:$0xff] %v19254_v51  ;;  %v19258_v24 = vpop.f32.mrb[250].mxu1  ;;  %v9628_v36 = vmax.f32 %v8500_v40, 0.0 }
 0x4e5   : > { %v9048_v17 = vmax.f32 %v6180_v63, 0.0  ;;  %15420 = vmatprep.mubr.bf16.mxu0 %v16457_v3  ;;  %v19261_v26 = vpop.f32.mrb[251].mxu1  ;;  %v16458_v63 = vld [vmem:[%s17145_s25 + $0x828] sm:$0xff]  }
 0x4e6   : > { %14321 = vmatpush3.bf16.msra.mxu1 %v19055_v53  ;;  %v9996_v11 = vpack.c.bf16 %v9050_v6, %v9049_v1  ;;  %v13994_v42 = vpop.f32.mrb[252].mxu1  ;;  %v16459_v53 = vld [vmem:[%s17145_s25 + $0x830] sm:$0xff]  }
 0x4e7   : > { %v15314_v14 = vpop.f32.mrb[156].mxu0  ;;  %v9995_v19 = vpack.c.bf16 %v9048_v17, %v9047_v5  ;;  %v13995_v3 = vpop.f32.mrb[253].mxu1  ;;  %v19270_v17 = vpack.c.bf16 %v9628_v36, %v9627_v8 }
 0x4e8   : > { %v6201_v54 = vadd.f32 %v19158_v44, %v15314_v14  ;;  %v6192_v41 = vpop.f32.mrb[157].mxu0  ;;  %v13997_v1 = vpop.f32.mrb[254].mxu1  ;;  %v13996_v47 = vadd.f32 %v13995_v3, %v13994_v42  ;;  %v19272_v14 = vpack.c.bf16 %v9630_v38, %v9629_v31 }
 0x4e9   : > { %v6193_v12 = vadd.f32 %v19158_v44, %v6192_v41  ;;  %v15315_v15 = vpop.f32.mrb[158].mxu0  ;;  %14322 = vmatprep.subr.bf16.mxu1 %v9995_v19  ;;  %v13998_v0 = vpop.f32.mrb[255].mxu1  ;;  %20721 = vst [vmem:[#allocation127_spill] sm:$0xff] %v19270_v17  ;;  %v16465_v17 = vld [vmem:[%s17145_s25 + $0x860] sm:$0xff]  }
 0x4ea   : > { %v6204_v43 = vadd.f32 %v19158_v44, %v15315_v15  ;;  %v6195_v6 = vpop.f32.mrb[159].mxu0  ;;  %14323 = vmatpush3.bf16.msra.mxu1 %v19097_v56  ;;  %v14000_v5 = vpop.f32.mrb[0].mxu1  ;;  %20722 = vst [vmem:[#allocation128_spill] sm:$0xff] %v19272_v14  ;;  %v9053_v41 = vmax.f32 %v6201_v54, 0.0  ;;  %v13999_v19 = vadd.f32 %v13998_v0, %v13997_v1  ;;  %v16460_v1 = vld [vmem:[%s17145_s25 + $0x838] sm:$0xff]  }
 0x4eb   : > { %v6196_v40 = vadd.f32 %v19158_v44, %v6195_v6  ;;  %14324 = vmatprep.subr.bf16.mxu1 %v9996_v11  ;;  %v14001_v28 = vpop.f32.mrb[1].mxu1  ;;  %v9051_v15 = vmax.f32 %v6193_v12, 0.0 }
 0x4ec   : > { %v9054_v55 = vmax.f32 %v6204_v43, 0.0  ;;  %15421 = vmatmul.mubr.bf16.gmra.mrb[8].mxu0 %v16458_v63  ;;  %v14002_v56 = vadd.f32 %v14001_v28, %v14000_v5  ;;  %v14003_v42 = vpop.f32.mrb[2].mxu1  ;;  %v16461_v28 = vld [vmem:[%s17145_s25 + $0x840] sm:$0xff]  }
 0x4ed   : > { %v9052_v7 = vmax.f32 %v6196_v40, 0.0  ;;  %15424 = vmatprep.mubr.bf16.mxu0 %v16459_v53  ;;  %v14004_v3 = vpop.f32.mrb[3].mxu1  ;;  %v19282_v5 = vld [vmem:[#allocation5 + $0x260] sm:$0xff] }
 0x4ee   : > { %14325 = vmatpush3.bf16.msra.mxu1 %v19087_v2  ;;  %v9998_v11 = vpack.c.bf16 %v9054_v55, %v9053_v41  ;;  %v14005_v31 = vadd.f32 %v14004_v3, %v14003_v42  ;;  %v14022_v38 = vpop.f32.mrb[4].mxu1  ;;  %v19284_v41 = vld [vmem:[#allocation5 + $0x360] sm:$0xff] }
 0x4ef   : > { %v15318_v8 = vpop.f32.mrb[160].mxu0  ;;  %v9997_v36 = vpack.c.bf16 %v9052_v7, %v9051_v15  ;;  %v14023_v43 = vpop.f32.mrb[5].mxu1 }
 0x4f0   : > { %v6217_v54 = vadd.f32 %v19158_v44, %v15318_v8  ;;  %v6208_v63 = vpop.f32.mrb[161].mxu0  ;;  %v14025_v53 = vpop.f32.mrb[6].mxu1  ;;  %v14024_v55 = vadd.f32 %v14023_v43, %v14022_v38 }
 0x4f1   : > { %v6209_v12 = vadd.f32 %v19158_v44, %v6208_v63  ;;  %v15319_v6 = vpop.f32.mrb[162].mxu0  ;;  %14326 = vmatprep.subr.bf16.mxu1 %v9997_v36  ;;  %v14026_v7 = vpop.f32.mrb[7].mxu1 }
 0x4f2   : > { %v6220_v0 = vadd.f32 %v19158_v44, %v15319_v6  ;;  %v6211_v2 = vpop.f32.mrb[163].mxu0  ;;  %14327 = vmatpush3.bf16.msra.mxu1 %v19134_v58  ;;  %v14028_v15 = vpop.f32.mrb[8].mxu1  ;;  %v9057_v42 = vmax.f32 %v6217_v54, 0.0  ;;  %v11027_v8 = vadd.f32 %v14024_v55, %v13996_v47  ;;  %v13337_v58 = vcombine.low %v19039_v60, %v19041_v32 }
 0x4f3   : > { %v6212_v40 = vadd.f32 %v19158_v44, %v6211_v2  ;;  %14328 = vmatprep.subr.bf16.mxu1 %v9998_v11  ;;  %v14029_v36 = vpop.f32.mrb[9].mxu1  ;;  %v9055_v63 = vmax.f32 %v6209_v12, 0.0  ;;  %v13402_v11 = vcombine.high %v19282_v5, %v19284_v41  ;;  %v14027_v54 = vadd.f32 %v14026_v7, %v14025_v53 }
 0x4f4   : > { %v9058_v3 = vmax.f32 %v6220_v0, 0.0  ;;  %15425 = vmatmul.mubr.bf16.gmra.mrb[12].mxu0 %v16460_v1  ;;  %v14031_v38 = vpop.f32.mrb[10].mxu1  ;;  %v14030_v0 = vadd.f32 %v14029_v36, %v14028_v15 }
 0x4f5   : > { %v9056_v6 = vmax.f32 %v6212_v40, 0.0  ;;  %15428 = vmatprep.mubr.bf16.mxu0 %v16461_v28  ;;  %v14032_v1 = vpop.f32.mrb[11].mxu1  ;;  %v16462_v28 = vld [vmem:[%s17145_s25 + $0x848] sm:$0xff]   ;;  %v11030_v40 = vadd.f32 %v14027_v54, %v13999_v19 }
 0x4f6   : > { %v19288_v43 = vpack.c.bf16 %v9058_v3, %v9057_v42  ;;  %14329 = vmatpush3.bf16.msra.mxu1 %v19127_v30  ;;  %v14033_v2 = vadd.f32 %v14032_v1, %v14031_v38  ;;  %v14050_v55 = vpop.f32.mrb[12].mxu1  ;;  %v11035_v14 = vadd.f32 %v14030_v0, %v14002_v56  ;;  %v19301_v1 = vld [vmem:[#allocation5 + $0x68] sm:$0xff] }
 0x4f7   : > { %v19293_v47 = vpack.c.bf16 %v9056_v6, %v9055_v63  ;;  %v15322_v12 = vpop.f32.mrb[164].mxu0  ;;  %v14051_v42 = vpop.f32.mrb[13].mxu1  ;;  %v19303_v19 = vld [vmem:[#allocation5 + $0x168] sm:$0xff] }
 0x4f8   : > { %v6233_v60 = vadd.f32 %v19158_v44, %v15322_v12  ;;  %v6224_v32 = vpop.f32.mrb[165].mxu0  ;;  %v11038_v53 = vadd.f32 %v14033_v2, %v14005_v31  ;;  %v14053_v7 = vpop.f32.mrb[14].mxu1  ;;  %v14052_v15 = vadd.f32 %v14051_v42, %v14050_v55  ;;  %v13340_v42 = vcombine.high %v19301_v1, %v19303_v19 }
 0x4f9   : > { %v6225_v30 = vadd.f32 %v19158_v44, %v6224_v32  ;;  %v15323_v3 = vpop.f32.mrb[166].mxu0  ;;  %11564 = vmatmul.mubr.bf16.vlgmr.msra.gmra.mrb[92].mxu1 %v13337_v58  ;;  %v14054_v36 = vpop.f32.mrb[15].mxu1 }
 0x4fa   : > { %v6236_v63 = vadd.f32 %v19158_v44, %v15323_v3  ;;  %v6227_v6 = vpop.f32.mrb[167].mxu0  ;;  %11571 = vmatprep.mubr.bf16.mxu1 %v13402_v11  ;;  %v14056_v54 = vpop.f32.mrb[16].mxu1  ;;  %v9061_v12 = vmax.f32 %v6233_v60, 0.0  ;;  %v11076_v58 = vadd.f32 %v14052_v15, %v11027_v8  ;;  %v13401_v11 = vcombine.low %v19282_v5, %v19284_v41 }
 0x4fb   : > { %v6228_v38 = vadd.f32 %v19158_v44, %v6227_v6  ;;  %v14057_v56 = vpop.f32.mrb[17].mxu1  ;;  %v9059_v31 = vmax.f32 %v6225_v30, 0.0  ;;  %v14055_v3 = vadd.f32 %v14054_v36, %v14053_v7 }
 0x4fc   : > { %v9062_v32 = vmax.f32 %v6236_v63, 0.0  ;;  %15429 = vmatmul.mubr.bf16.gmra.mrb[16].mxu0 %v16462_v28  ;;  %v14059_v2 = vpop.f32.mrb[18].mxu1  ;;  %v14058_v28 = vadd.f32 %v14057_v56, %v14056_v54 }
 0x4fd   : > { %v9060_v0 = vmax.f32 %v6228_v38, 0.0  ;;  %15432 = vmatprep.mubr.bf16.mxu0 %v16463_v61  ;;  %v14060_v60 = vpop.f32.mrb[19].mxu1  ;;  %v16464_v38 = vld [vmem:[%s17145_s25 + $0x858] sm:$0xff]   ;;  %v11079_v5 = vadd.f32 %v14055_v3, %v11030_v40 }
 0x4fe   : > { %v19307_v55 = vpack.c.bf16 %v9062_v32, %v9061_v12  ;;  %v14061_v30 = vadd.f32 %v14060_v60, %v14059_v2  ;;  %v14078_v6 = vpop.f32.mrb[20].mxu1  ;;  %v11084_v9 = vadd.f32 %v14058_v28, %v11035_v14 }
 0x4ff   : > { %v19311_v63 = vpack.c.bf16 %v9060_v0, %v9059_v31  ;;  %v15326_v8 = vpop.f32.mrb[168].mxu0  ;;  %v14079_v41 = vpop.f32.mrb[21].mxu1 }
 0x500   : > { %v6249_v61 = vadd.f32 %v19158_v44, %v15326_v8  ;;  %v6240_v15 = vpop.f32.mrb[169].mxu0  ;;  %v11087_v7 = vadd.f32 %v14061_v30, %v11038_v53  ;;  %v14081_v36 = vpop.f32.mrb[22].mxu1  ;;  %v14080_v54 = vadd.f32 %v14079_v41, %v14078_v6 }
 0x501   : > { %v6241_v12 = vadd.f32 %v19158_v44, %v6240_v15  ;;  %v15327_v32 = vpop.f32.mrb[170].mxu0  ;;  %11572 = vmatmul.mubr.bf16.gmra.mrb[96].mxu1 %v13401_v11  ;;  %v14082_v56 = vpop.f32.mrb[23].mxu1 }
 0x502   : > { %v6252_v31 = vadd.f32 %v19158_v44, %v15327_v32  ;;  %v6243_v0 = vpop.f32.mrb[171].mxu0  ;;  %11612 = vmatprep.mubr.bf16.mxu1 %v13340_v42  ;;  %v14084_v60 = vpop.f32.mrb[24].mxu1  ;;  %v9065_v8 = vmax.f32 %v6249_v61, 0.0  ;;  %v11125_v3 = vadd.f32 %v14080_v54, %v11076_v58  ;;  %v14083_v28 = vadd.f32 %v14082_v56, %v14081_v36 }
 0x503   : > { %v6244_v2 = vadd.f32 %v19158_v44, %v6243_v0  ;;  %v14085_v15 = vpop.f32.mrb[25].mxu1  ;;  %v9063_v11 = vmax.f32 %v6241_v12, 0.0  ;;  %v8585_v36 = vadd.f32 %v19158_v44, %v19163_v48 }
 0x504   : > { %v9066_v40 = vmax.f32 %v6252_v31, 0.0  ;;  %15433 = vmatmul.mubr.bf16.gmra.mrb[20].mxu0 %v16464_v38  ;;  %v14087_v14 = vpop.f32.mrb[26].mxu1  ;;  %v14086_v41 = vadd.f32 %v14085_v15, %v14084_v60  ;;  %v16466_v31 = vld [vmem:[%s17145_s25 + $0x868] sm:$0xff]   ;;  %v11128_v0 = vadd.f32 %v14083_v28, %v11079_v5  ;;  %v8577_v15 = vadd.f32 %v19158_v44, %v19170_v50 }
 0x505   : > { %v9064_v51 = vmax.f32 %v6244_v2, 0.0  ;;  %15436 = vmatprep.mubr.bf16.mxu0 %v16465_v17  ;;  %v14088_v42 = vpop.f32.mrb[27].mxu1  ;;  %v16467_v2 = vld [vmem:[%s17145_s25 + $0x870] sm:$0xff]   ;;  %v8588_v5 = vadd.f32 %v19158_v44, %v19180_v18  ;;  %v9649_v50 = vmax.f32 %v8585_v36, 0.0 }
 0x506   : > { %v19319_v53 = vpack.c.bf16 %v9066_v40, %v9065_v8  ;;  %v14089_v32 = vadd.f32 %v14088_v42, %v14087_v14  ;;  %v14106_v61 = vpop.f32.mrb[28].mxu1  ;;  %v11133_v56 = vadd.f32 %v14086_v41, %v11084_v9  ;;  %v8580_v42 = vadd.f32 %v19158_v44, %v19186_v21 }
 0x507   : > { %v19321_v30 = vpack.c.bf16 %v9064_v51, %v9063_v11  ;;  %v15330_v6 = vpop.f32.mrb[172].mxu0  ;;  %v14107_v12 = vpop.f32.mrb[29].mxu1 }
 0x508   : > { %v6265_v38 = vadd.f32 %v19158_v44, %v15330_v6  ;;  %v6256_v58 = vpop.f32.mrb[173].mxu0  ;;  %v11136_v51 = vadd.f32 %v14089_v32, %v11087_v7  ;;  %v14109_v8 = vpop.f32.mrb[30].mxu1  ;;  %v14108_v11 = vadd.f32 %v14107_v12, %v14106_v61  ;;  %v9647_v61 = vmax.f32 %v8577_v15, 0.0 }
 0x509   : > { %v6257_v17 = vadd.f32 %v19158_v44, %v6256_v58  ;;  %v15331_v54 = vpop.f32.mrb[174].mxu0  ;;  %v14110_v14 = vpop.f32.mrb[31].mxu1  ;;  %v9650_v12 = vmax.f32 %v8588_v5, 0.0  ;;  %v16469_v5 = vld [vmem:[%s17145_s25 + $0x880] sm:$0xff]  }
 0x50a   : > { %v6268_v60 = vadd.f32 %v19158_v44, %v15331_v54  ;;  %v6259_v40 = vpop.f32.mrb[175].mxu0  ;;  %v14112_v48 = vpop.f32.mrb[32].mxu1  ;;  %v9069_v9 = vmax.f32 %v6265_v38, 0.0  ;;  %v11174_v6 = vadd.f32 %v14108_v11, %v11125_v3 }
 0x50b   : > { %v6260_v28 = vadd.f32 %v19158_v44, %v6259_v40  ;;  %v14113_v41 = vpop.f32.mrb[33].mxu1  ;;  %v9067_v32 = vmax.f32 %v6257_v17, 0.0  ;;  %v14111_v40 = vadd.f32 %v14110_v14, %v14109_v8  ;;  %v8601_v8 = vadd.f32 %v19158_v44, %v19195_v62 }
 0x50c   : > { %v9070_v7 = vmax.f32 %v6268_v60, 0.0  ;;  %15437 = vmatmul.mubr.bf16.gmra.mrb[24].mxu0 %v16466_v31  ;;  %v14115_v54 = vpop.f32.mrb[34].mxu1  ;;  %v9648_v60 = vmax.f32 %v8580_v42, 0.0  ;;  %v14114_v31 = vadd.f32 %v14113_v41, %v14112_v48  ;;  %v8593_v48 = vadd.f32 %v19158_v44, %v19201_v13 }
 0x50d   : > { %v9068_v58 = vmax.f32 %v6260_v28, 0.0  ;;  %15440 = vmatprep.mubr.bf16.mxu0 %v16467_v2  ;;  %v14116_v16 = vpop.f32.mrb[35].mxu1  ;;  %v16468_v28 = vld [vmem:[%s17145_s25 + $0x878] sm:$0xff]   ;;  %v11177_v36 = vadd.f32 %v14111_v40, %v11128_v0  ;;  %v8604_v0 = vadd.f32 %v19158_v44, %v19205_v57  ;;  %v8596_v40 = vadd.f32 %v19158_v44, %v19208_v45 }
 0x50e   : > { %v19337_v18 = vpack.c.bf16 %v9070_v7, %v9069_v9  ;;  %v14117_v3 = vadd.f32 %v14116_v16, %v14115_v54  ;;  %v14134_v11 = vpop.f32.mrb[36].mxu1  ;;  %v11182_v14 = vadd.f32 %v14114_v31, %v11133_v56  ;;  %v19355_v56 = vpack.c.bf16 %v9648_v60, %v9647_v61 }
 0x50f   : > { %v19339_v21 = vpack.c.bf16 %v9068_v58, %v9067_v32  ;;  %v15334_v38 = vpop.f32.mrb[176].mxu0  ;;  %v14135_v27 = vpop.f32.mrb[37].mxu1  ;;  %v9651_v45 = vmax.f32 %v8593_v48, 0.0  ;;  %v9654_v25 = vmax.f32 %v8604_v0, 0.0  ;;  %v16471_v48 = vld [vmem:[%s17145_s25 + $0x890] sm:$0xff]  }
 0x510   : > { %v6281_v17 = vadd.f32 %v19158_v44, %v15334_v38  ;;  %v6272_v2 = vpop.f32.mrb[177].mxu0  ;;  %v11185_v7 = vadd.f32 %v14117_v3, %v11136_v51  ;;  %v14137_v32 = vpop.f32.mrb[38].mxu1  ;;  %v14136_v41 = vadd.f32 %v14135_v27, %v14134_v11  ;;  %v19357_v51 = vpack.c.bf16 %v9650_v12, %v9649_v50 }
 0x511   : > { %v6273_v9 = vadd.f32 %v19158_v44, %v6272_v2  ;;  %v15335_v15 = vpop.f32.mrb[178].mxu0  ;;  %v14138_v58 = vpop.f32.mrb[39].mxu1  ;;  %v9653_v27 = vmax.f32 %v8601_v8, 0.0 }
 0x512   : > { %v6284_v42 = vadd.f32 %v19158_v44, %v15335_v15  ;;  %v6275_v16 = vpop.f32.mrb[179].mxu0  ;;  %v14140_v62 = vpop.f32.mrb[40].mxu1  ;;  %v9073_v38 = vmax.f32 %v6281_v17, 0.0  ;;  %v11223_v3 = vadd.f32 %v14136_v41, %v11174_v6  ;;  %v14139_v13 = vadd.f32 %v14138_v58, %v14137_v32 }
 0x513   : > { %v6276_v54 = vadd.f32 %v19158_v44, %v6275_v16  ;;  %v14141_v2 = vpop.f32.mrb[41].mxu1  ;;  %v9071_v15 = vmax.f32 %v6273_v9, 0.0  ;;  %v9652_v17 = vmax.f32 %v8596_v40, 0.0 }
 0x514   : > { %v9074_v31 = vmax.f32 %v6284_v42, 0.0  ;;  %15441 = vmatmul.mubr.bf16.gmra.mrb[28].mxu0 %v16468_v28  ;;  %v14142_v11 = vadd.f32 %v14141_v2, %v14140_v62  ;;  %v14143_v16 = vpop.f32.mrb[42].mxu1  ;;  %v11226_v61 = vadd.f32 %v14139_v13, %v11177_v36  ;;  %v19365_v36 = vadd.f32 %v19158_v44, %v19217_v52 }
 0x515   : > { %v9072_v57 = vmax.f32 %v6276_v54, 0.0  ;;  %15444 = vmatprep.mubr.bf16.mxu0 %v16469_v5  ;;  %v14144_v50 = vpop.f32.mrb[43].mxu1  ;;  %v16470_v5 = vld [vmem:[%s17145_s25 + $0x888] sm:$0xff]   ;;  %v8609_v62 = vadd.f32 %v19158_v44, %v19221_v59  ;;  %v8612_v52 = vadd.f32 %v19158_v44, %v19241_v34 }
 0x516   : > { %v10008_v37 = vpack.c.bf16 %v9074_v31, %v9073_v38  ;;  %v11231_v28 = vadd.f32 %v14142_v11, %v11182_v14  ;;  %v14145_v6 = vadd.f32 %v14144_v50, %v14143_v16  ;;  %v14162_v32 = vpop.f32.mrb[44].mxu1  ;;  %v8620_v38 = vadd.f32 %v19158_v44, %v19225_v39 }
 0x517   : > { %v15338_v12 = vpop.f32.mrb[180].mxu0  ;;  %v10007_v60 = vpack.c.bf16 %v9072_v57, %v9071_v15  ;;  %v14163_v8 = vpop.f32.mrb[45].mxu1  ;;  %v19376_v15 = vpack.c.bf16 %v9652_v17, %v9651_v45  ;;  %v19378_v57 = vpack.c.bf16 %v9654_v25, %v9653_v27  ;;  %v9655_v45 = vmax.f32 %v8609_v62, 0.0 }
 0x518   : > { %v6297_v9 = vadd.f32 %v19158_v44, %v15338_v12  ;;  %v6288_v42 = vpop.f32.mrb[181].mxu0  ;;  %v11234_v0 = vadd.f32 %v14145_v6, %v11185_v7  ;;  %v14165_v54 = vpop.f32.mrb[46].mxu1  ;;  %v14164_v31 = vadd.f32 %v14163_v8, %v14162_v32  ;;  %v9658_v25 = vmax.f32 %v8620_v38, 0.0 }
 0x519   : > { %v6289_v41 = vadd.f32 %v19158_v44, %v6288_v42  ;;  %v15339_v58 = vpop.f32.mrb[182].mxu0  ;;  %14342 = vmatprep.subr.bf16.mxu1 %v10007_v60  ;;  %v14166_v13 = vpop.f32.mrb[47].mxu1  ;;  %v9657_v60 = vmax.f32 %v19365_v36, 0.0 }
 0x51a   : > { %v6300_v14 = vadd.f32 %v19158_v44, %v15339_v58  ;;  %v6291_v40 = vpop.f32.mrb[183].mxu0  ;;  %14343 = vmatpush3.bf16.msra.mxu1 %v19293_v47  ;;  %v14168_v7 = vpop.f32.mrb[48].mxu1  ;;  %v9077_v47 = vmax.f32 %v6297_v9, 0.0  ;;  %v11272_v59 = vadd.f32 %v14164_v31, %v11223_v3  ;;  %v14167_v16 = vadd.f32 %v14166_v13, %v14165_v54 }
 0x51b   : > { %v6292_v2 = vadd.f32 %v19158_v44, %v6291_v40  ;;  %14344 = vmatprep.subr.bf16.mxu1 %v10008_v37  ;;  %v14169_v50 = vpop.f32.mrb[49].mxu1  ;;  %v9075_v39 = vmax.f32 %v6289_v41, 0.0  ;;  %v9656_v9 = vmax.f32 %v8612_v52, 0.0  ;;  %v8625_v31 = vadd.f32 %v19158_v44, %v19252_v22 }
 0x51c   : > { %v9078_v11 = vmax.f32 %v6300_v14, 0.0  ;;  %15445 = vmatmul.mubr.bf16.gmra.mrb[32].mxu0 %v16470_v5  ;;  %v14170_v37 = vadd.f32 %v14169_v50, %v14168_v7  ;;  %v14171_v6 = vpop.f32.mrb[50].mxu1  ;;  %v11275_v27 = vadd.f32 %v14167_v16, %v11226_v61  ;;  %v16473_v14 = vld [vmem:[%s17145_s25 + $0x8a0] sm:$0xff]   ;;  %v8633_v61 = vadd.f32 %v19158_v44, %v19250_v4 }
 0x51d   : > { %v9076_v12 = vmax.f32 %v6292_v2, 0.0  ;;  %15448 = vmatprep.mubr.bf16.mxu0 %v16471_v48  ;;  %v14172_v17 = vpop.f32.mrb[51].mxu1  ;;  %v16472_v48 = vld [vmem:[%s17145_s25 + $0x898] sm:$0xff]   ;;  %v8636_v13 = vadd.f32 %v19158_v44, %v19258_v24  ;;  %v8628_v4 = vadd.f32 %v19158_v44, %v19261_v26 }
 0x51e   : > { %14345 = vmatpush3.bf16.msra.mxu1 %v19288_v43  ;;  %v10010_v34 = vpack.c.bf16 %v9078_v11, %v9077_v47  ;;  %v11280_v42 = vadd.f32 %v14170_v37, %v11231_v28  ;;  %v14173_v5 = vadd.f32 %v14172_v17, %v14171_v6  ;;  %v14190_v8 = vpop.f32.mrb[52].mxu1  ;;  %v19397_v47 = vpack.c.bf16 %v9656_v9, %v9655_v45 }
 0x51f   : > { %v15342_v32 = vpop.f32.mrb[184].mxu0  ;;  %v10009_v3 = vpack.c.bf16 %v9076_v12, %v9075_v39  ;;  %v14191_v36 = vpop.f32.mrb[53].mxu1  ;;  %v19399_v11 = vpack.c.bf16 %v9658_v25, %v9657_v60  ;;  %v9661_v37 = vmax.f32 %v8633_v61, 0.0  ;;  %v9659_v45 = vmax.f32 %v8625_v31, 0.0 }
 0x520   : > { %v6313_v41 = vadd.f32 %v19158_v44, %v15342_v32  ;;  %v6304_v58 = vpop.f32.mrb[185].mxu0  ;;  %v11283_v40 = vadd.f32 %v14173_v5, %v11234_v0  ;;  %v14193_v62 = vpop.f32.mrb[54].mxu1  ;;  %v14192_v2 = vadd.f32 %v14191_v36, %v14190_v8  ;;  %v9662_v17 = vmax.f32 %v8636_v13, 0.0 }
 0x521   : > { %v6305_v54 = vadd.f32 %v19158_v44, %v6304_v58  ;;  %v15343_v43 = vpop.f32.mrb[186].mxu0  ;;  %14346 = vmatprep.subr.bf16.mxu1 %v10009_v3  ;;  %v14194_v52 = vpop.f32.mrb[55].mxu1 }
 0x522   : > { %v6316_v38 = vadd.f32 %v19158_v44, %v15343_v43  ;;  %v6307_v28 = vpop.f32.mrb[187].mxu0  ;;  %14347 = vmatpush3.bf16.msra.mxu1 %v19311_v63  ;;  %v14196_v0 = vpop.f32.mrb[56].mxu1  ;;  %v9081_v63 = vmax.f32 %v6313_v41, 0.0  ;;  %v11321_v22 = vadd.f32 %v14192_v2, %v11272_v59  ;;  %v14195_v50 = vadd.f32 %v14194_v52, %v14193_v62  ;;  %v16475_v43 = vld [vmem:[%s17145_s25 + $0x8b0] sm:$0xff]  }
 0x523   : > { %v6308_v7 = vadd.f32 %v19158_v44, %v6307_v28  ;;  %14348 = vmatprep.subr.bf16.mxu1 %v10010_v34  ;;  %v14197_v39 = vpop.f32.mrb[57].mxu1  ;;  %v9079_v24 = vmax.f32 %v6305_v54, 0.0  ;;  %v9660_v59 = vmax.f32 %v8628_v4, 0.0  ;;  %v19411_v2 = vpack.c.bf16 %v9662_v17, %v9661_v37 }
 0x524   : > { %v9082_v16 = vmax.f32 %v6316_v38, 0.0  ;;  %15449 = vmatmul.mubr.bf16.gmra.mrb[36].mxu0 %v16472_v48  ;;  %v14198_v6 = vadd.f32 %v14197_v39, %v14196_v0  ;;  %v14199_v34 = vpop.f32.mrb[58].mxu1  ;;  %v11324_v60 = vadd.f32 %v14195_v50, %v11275_v27  ;;  %v16474_v48 = vld [vmem:[%s17145_s25 + $0x8a8] sm:$0xff]  }
 0x525   : > { %v9080_v12 = vmax.f32 %v6308_v7, 0.0  ;;  %15452 = vmatprep.mubr.bf16.mxu0 %v16473_v14  ;;  %v14200_v25 = vpop.f32.mrb[59].mxu1  ;;  %v19409_v13 = vpack.c.bf16 %v9660_v59, %v9659_v45 }
 0x526   : > { %14349 = vmatpush3.bf16.msra.mxu1 %v19307_v55  ;;  %v10012_v26 = vpack.c.bf16 %v9082_v16, %v9081_v63  ;;  %v11329_v9 = vadd.f32 %v14198_v6, %v11280_v42  ;;  %v14201_v5 = vadd.f32 %v14200_v25, %v14199_v34  ;;  %v14218_v8 = vpop.f32.mrb[60].mxu1  ;;  %v16476_v25 = vld [vmem:[%s17145_s25 + $0x8b8] sm:$0xff]  }
 0x527   : > { %v15346_v32 = vpop.f32.mrb[188].mxu0  ;;  %v10011_v3 = vpack.c.bf16 %v9080_v12, %v9079_v24  ;;  %v14219_v36 = vpop.f32.mrb[61].mxu1 }
 0x528   : > { %v6329_v41 = vadd.f32 %v19158_v44, %v15346_v32  ;;  %v6320_v58 = vpop.f32.mrb[189].mxu0  ;;  %v11332_v14 = vadd.f32 %v14201_v5, %v11283_v40  ;;  %v14221_v61 = vpop.f32.mrb[62].mxu1  ;;  %v14220_v42 = vadd.f32 %v14219_v36, %v14218_v8  ;;  %v16477_v5 = vld [vmem:[%s17145_s25 + $0x8c0] sm:$0xff]   ;;  %v9740_v36 = vld [vmem:[#allocation5 + $0x268] sm:$0xff] }
 0x529   : > { %v6321_v54 = vadd.f32 %v19158_v44, %v6320_v58  ;;  %v15347_v55 = vpop.f32.mrb[190].mxu0  ;;  %14350 = vmatprep.subr.bf16.mxu1 %v10011_v3  ;;  %v14222_v38 = vpop.f32.mrb[63].mxu1 }
 0x52a   : > { %v6332_v27 = vadd.f32 %v19158_v44, %v15347_v55  ;;  %v6323_v62 = vpop.f32.mrb[191].mxu0  ;;  %14351 = vmatpush3.bf16.msra.mxu1 %v19321_v30  ;;  %v14224_v31 = vpop.f32.mrb[64].mxu1  ;;  %v9085_v52 = vmax.f32 %v6329_v41, 0.0  ;;  %v11370_v40 = vadd.f32 %v14220_v42, %v11321_v22  ;;  %v14223_v4 = vadd.f32 %v14222_v38, %v14221_v61 }
 0x52b   : > { %v6324_v28 = vadd.f32 %v19158_v44, %v6323_v62  ;;  %14352 = vmatprep.subr.bf16.mxu1 %v10012_v26  ;;  %v14225_v0 = vpop.f32.mrb[65].mxu1  ;;  %v9083_v63 = vmax.f32 %v6321_v54, 0.0  ;;  %v9772_v54 = vld [vmem:[#allocation5 + $0x368] sm:$0xff] }
 0x52c   : > { %v9086_v7 = vmax.f32 %v6332_v27, 0.0  ;;  %15453 = vmatmul.mubr.bf16.gmra.mrb[40].mxu0 %v16474_v48  ;;  %v14226_v30 = vadd.f32 %v14225_v0, %v14224_v31  ;;  %v14227_v50 = vpop.f32.mrb[66].mxu1  ;;  %v11373_v24 = vadd.f32 %v14223_v4, %v11324_v60 }
 0x52d   : > { %v9084_v16 = vmax.f32 %v6324_v28, 0.0  ;;  %15456 = vmatprep.mubr.bf16.mxu0 %v16475_v43  ;;  %v14228_v12 = vpop.f32.mrb[67].mxu1 }
 0x52e   : > { %14353 = vmatpush3.bf16.msra.mxu1 %v19319_v53  ;;  %v10014_v39 = vpack.c.bf16 %v9086_v7, %v9085_v52  ;;  %v11378_v34 = vadd.f32 %v14226_v30, %v11329_v9  ;;  %v14229_v26 = vadd.f32 %v14228_v12, %v14227_v50  ;;  %v14246_v45 = vpop.f32.mrb[68].mxu1 }
 0x52f   : > { %v15350_v37 = vpop.f32.mrb[192].mxu0  ;;  %v10013_v6 = vpack.c.bf16 %v9084_v16, %v9083_v63  ;;  %v14247_v32 = vpop.f32.mrb[69].mxu1  ;;  %v19430_v63 = vld [vmem:[#allocation8] ss:$0 sm:$0xff] }
 0x530   : > { %v6345_v22 = vadd.f32 %v19158_v44, %v15350_v37  ;;  %v6336_v17 = vpop.f32.mrb[193].mxu0  ;;  %v11381_v53 = vadd.f32 %v14229_v26, %v11332_v14  ;;  %v14249_v8 = vpop.f32.mrb[70].mxu1  ;;  %v14248_v9 = vadd.f32 %v14247_v32, %v14246_v45 }
 0x531   : > { %v6337_v3 = vadd.f32 %v19158_v44, %v6336_v17  ;;  %v15351_v59 = vpop.f32.mrb[194].mxu0  ;;  %14354 = vmatprep.subr.bf16.mxu1 %v10013_v6  ;;  %v14250_v58 = vpop.f32.mrb[71].mxu1 }
 0x532   : > { %v6348_v60 = vadd.f32 %v19158_v44, %v15351_v59  ;;  %v6339_v41 = vpop.f32.mrb[195].mxu0  ;;  %14355 = vmatpush3.bf16.msra.mxu1 %v19339_v21  ;;  %v14252_v55 = vpop.f32.mrb[72].mxu1  ;;  %v9089_v43 = vmax.f32 %v6345_v22, 0.0  ;;  %v19421_v27 = vadd.f32 %v14248_v9, %v11370_v40  ;;  %v13339_v21 = vcombine.low %v19301_v1, %v19303_v19  ;;  %v16478_v19 = vld [vmem:[%s17145_s25 + $0x8c8] sm:$0xff]   ;;  %v19444_v22 = vld [vmem:[#allocation5 + $0x70] sm:$0xff]  ;;  %v16480_v9 = vld [vmem:[%s17145_s25 + $0x8d8] sm:$0xff]  }
 0x533   : > { %v6340_v48 = vadd.f32 %v19158_v44, %v6339_v41  ;;  %14356 = vmatprep.subr.bf16.mxu1 %v10014_v39  ;;  %v14253_v14 = vpop.f32.mrb[73].mxu1  ;;  %v9087_v62 = vmax.f32 %v6337_v3, 0.0  ;;  %v13404_v44 = vcombine.high %v9740_v36, %v9772_v54  ;;  %v14251_v31 = vadd.f32 %v14250_v58, %v14249_v8  ;;  %v16479_v39 = vld [vmem:[%s17145_s25 + $0x8d0] sm:$0xff]  }
 0x534   : > { %v9090_v61 = vmax.f32 %v6348_v60, 0.0  ;;  %15457 = vmatmul.mubr.bf16.gmra.mrb[44].mxu0 %v16476_v25  ;;  %v14255_v38 = vpop.f32.mrb[74].mxu1  ;;  %v14254_v4 = vadd.f32 %v14253_v14, %v14252_v55  ;;  %v13403_v3 = vcombine.low %v9740_v36, %v9772_v54  ;;  %v16481_v55 = vld [vmem:[%s17145_s25 + $0x8e0] sm:$0xff]  }
 0x535   : > { %v9088_v42 = vmax.f32 %v6340_v48, 0.0  ;;  %15460 = vmatprep.mubr.bf16.mxu0 %v16477_v5  ;;  %v14256_v52 = vpop.f32.mrb[75].mxu1  ;;  %v19434_v30 = vadd.f32 %v14251_v31, %v11373_v24  ;;  %v19446_v24 = vld [vmem:[#allocation5 + $0x170] sm:$0xff] }
 0x536   : > { %v19425_v28 = vpack.c.bf16 %v9090_v61, %v9089_v43  ;;  %14357 = vmatpush3.bf16.msra.mxu1 %v19337_v18  ;;  %v14257_v0 = vadd.f32 %v14256_v52, %v14255_v38  ;;  %v19438_v12 = vadd.f32 %v14254_v4, %v11378_v34  ;;  %v13342_v5 = vcombine.high %v19444_v22, %v19446_v24 }
 0x537   : > { %v19428_v7 = vpack.c.bf16 %v9088_v42, %v9087_v62  ;;  %v15354_v40 = vpop.f32.mrb[196].mxu0 }
 0x538   : > { %v6361_v16 = vadd.f32 %v19430_v63, %v15354_v40  ;;  %v6352_v1 = vpop.f32.mrb[197].mxu0  ;;  %v19440_v37 = vadd.f32 %v14257_v0, %v11381_v53  ;;  %v16482_v40 = vld [vmem:[%s17145_s25 + $0x8e8] sm:$0xff]  }
 0x539   : > { %v6353_v50 = vadd.f32 %v19430_v63, %v6352_v1  ;;  %v15355_v18 = vpop.f32.mrb[198].mxu0  ;;  %11613 = vmatmul.mubr.bf16.vlgmr.msra.gmra.mrb[100].mxu1 %v13339_v21 }
 0x53a   : > { %v6364_v6 = vadd.f32 %v19430_v63, %v15355_v18  ;;  %v6355_v26 = vpop.f32.mrb[199].mxu0  ;;  %11620 = vmatprep.mubr.bf16.mxu1 %v13404_v44  ;;  %v9093_v17 = vmax.f32 %v6361_v16, 0.0  ;;  %v16483_v16 = vld [vmem:[%s17145_s25 + $0x8f0] sm:$0xff]  }
 0x53b   : > { %v6356_v45 = vadd.f32 %v19430_v63, %v6355_v26  ;;  %v9091_v32 = vmax.f32 %v6353_v50, 0.0 }
 0x53c   : > { %v9094_v25 = vmax.f32 %v6364_v6, 0.0  ;;  %15461 = vmatmul.mubr.bf16.gmra.mrb[48].mxu0 %v16478_v19 }
 0x53d   : > { %v9092_v34 = vmax.f32 %v6356_v45, 0.0  ;;  %15464 = vmatprep.mubr.bf16.mxu0 %v16479_v39 }
 0x53e   : > { %v19448_v59 = vpack.c.bf16 %v9094_v25, %v9093_v17 }
 0x53f   : > { %v19452_v53 = vpack.c.bf16 %v9092_v34, %v9091_v32  ;;  %v15358_v8 = vpop.f32.mrb[200].mxu0 }
 0x540   : > { %v6377_v60 = vadd.f32 %v19430_v63, %v15358_v8  ;;  %v6368_v41 = vpop.f32.mrb[201].mxu0 }
 0x541   : > { %v6369_v58 = vadd.f32 %v19430_v63, %v6368_v41  ;;  %v15359_v48 = vpop.f32.mrb[202].mxu0  ;;  %11621 = vmatmul.mubr.bf16.gmra.mrb[104].mxu1 %v13403_v3 }
 0x542   : > { %v6380_v36 = vadd.f32 %v19430_v63, %v15359_v48  ;;  %v6371_v54 = vpop.f32.mrb[203].mxu0  ;;  %11661 = vmatprep.mubr.bf16.mxu1 %v13342_v5  ;;  %v9097_v61 = vmax.f32 %v6377_v60, 0.0 }
 0x543   : > { %v6372_v43 = vadd.f32 %v19430_v63, %v6371_v54  ;;  %v9095_v62 = vmax.f32 %v6369_v58, 0.0  ;;  %v16485_v54 = vld [vmem:[%s17145_s25 + $0x900] sm:$0xff]  }
 0x544   : > { %v9098_v14 = vmax.f32 %v6380_v36, 0.0  ;;  %15465 = vmatmul.mubr.bf16.gmra.mrb[52].mxu0 %v16480_v9  ;;  %v16484_v9 = vld [vmem:[%s17145_s25 + $0x8f8] sm:$0xff]  }
 0x545   : > { %v9096_v42 = vmax.f32 %v6372_v43, 0.0  ;;  %15468 = vmatprep.mubr.bf16.mxu0 %v16481_v55 }
 0x546   : > { %v19460_v21 = vpack.c.bf16 %v9098_v14, %v9097_v61 }
 0x547   : > { %v19462_v38 = vpack.c.bf16 %v9096_v42, %v9095_v62  ;;  %v15362_v44 = vpop.f32.mrb[204].mxu0 }
 0x548   : > { %v6393_v31 = vadd.f32 %v19430_v63, %v15362_v44  ;;  %v6384_v52 = vpop.f32.mrb[205].mxu0 }
 0x549   : > { %v6385_v4 = vadd.f32 %v19430_v63, %v6384_v52  ;;  %v15363_v0 = vpop.f32.mrb[206].mxu0 }
 0x54a   : > { %v6396_v1 = vadd.f32 %v19430_v63, %v15363_v0  ;;  %v6387_v19 = vpop.f32.mrb[207].mxu0  ;;  %v9101_v18 = vmax.f32 %v6393_v31, 0.0 }
 0x54b   : > { %v6388_v50 = vadd.f32 %v19430_v63, %v6387_v19  ;;  %v9099_v26 = vmax.f32 %v6385_v4, 0.0 }
 0x54c   : > { %v9102_v39 = vmax.f32 %v6396_v1, 0.0  ;;  %15469 = vmatmul.mubr.bf16.gmra.mrb[56].mxu0 %v16482_v40  ;;  %v14274_v6 = vpop.f32.mrb[76].mxu1 }
 0x54d   : > { %v9100_v45 = vmax.f32 %v6388_v50, 0.0  ;;  %15472 = vmatprep.mubr.bf16.mxu0 %v16483_v16  ;;  %v14275_v17 = vpop.f32.mrb[77].mxu1 }
 0x54e   : > { %v19470_v25 = vpack.c.bf16 %v9102_v39, %v9101_v18  ;;  %v14276_v32 = vadd.f32 %v14275_v17, %v14274_v6  ;;  %v14277_v34 = vpop.f32.mrb[78].mxu1  ;;  %v16486_v39 = vld [vmem:[%s17145_s25 + $0x908] sm:$0xff]  }
 0x54f   : > { %v19472_v3 = vpack.c.bf16 %v9100_v45, %v9099_v26  ;;  %v15366_v5 = vpop.f32.mrb[208].mxu0  ;;  %v14278_v8 = vpop.f32.mrb[79].mxu1 }
 0x550   : > { %v6409_v60 = vadd.f32 %v19430_v63, %v15366_v5  ;;  %v6400_v41 = vpop.f32.mrb[209].mxu0  ;;  %v19477_v58 = vadd.f32 %v14276_v32, %v19421_v27  ;;  %v14279_v48 = vadd.f32 %v14278_v8, %v14277_v34  ;;  %v16487_v32 = vld [vmem:[%s17145_s25 + $0x910] sm:$0xff]  }
 0x551   : > { %v6401_v55 = vadd.f32 %v19430_v63, %v6400_v41  ;;  %v15367_v36 = vpop.f32.mrb[210].mxu0 }
 0x552   : > { %v6412_v43 = vadd.f32 %v19430_v63, %v15367_v36  ;;  %v6403_v61 = vpop.f32.mrb[211].mxu0  ;;  %v19483_v14 = vadd.f32 %v14279_v48, %v19434_v30  ;;  %v9105_v42 = vmax.f32 %v6409_v60, 0.0 }
 0x553   : > { %v6404_v62 = vadd.f32 %v19430_v63, %v6403_v61  ;;  %v9103_v27 = vmax.f32 %v6401_v55, 0.0 }
 0x554   : > { %v9106_v44 = vmax.f32 %v6412_v43, 0.0  ;;  %15473 = vmatmul.mubr.bf16.gmra.mrb[60].mxu0 %v16484_v9  ;;  %v14280_v31 = vpop.f32.mrb[80].mxu1 }
 0x555   : > { %v9104_v52 = vmax.f32 %v6404_v62, 0.0  ;;  %15476 = vmatprep.mubr.bf16.mxu0 %v16485_v54  ;;  %v14281_v40 = vpop.f32.mrb[81].mxu1 }
 0x556   : > { %v10024_v4 = vpack.c.bf16 %v9106_v44, %v9105_v42  ;;  %v14282_v0 = vadd.f32 %v14281_v40, %v14280_v31  ;;  %v14283_v16 = vpop.f32.mrb[82].mxu1  ;;  %v16489_v42 = vld [vmem:[%s17145_s25 + $0x920] sm:$0xff]  }
 0x557   : > { %v15370_v1 = vpop.f32.mrb[212].mxu0  ;;  %v10023_v19 = vpack.c.bf16 %v9104_v52, %v9103_v27  ;;  %v14284_v50 = vpop.f32.mrb[83].mxu1 }
 0x558   : > { %v6425_v30 = vadd.f32 %v19430_v63, %v15370_v1  ;;  %v6416_v18 = vpop.f32.mrb[213].mxu0  ;;  %v19489_v6 = vadd.f32 %v14282_v0, %v19438_v12  ;;  %v14285_v26 = vadd.f32 %v14284_v50, %v14283_v16 }
 0x559   : > { %v6417_v45 = vadd.f32 %v19430_v63, %v6416_v18  ;;  %v15371_v17 = vpop.f32.mrb[214].mxu0  ;;  %14370 = vmatprep.subr.bf16.mxu1 %v10023_v19 }
 0x55a   : > { %v6428_v34 = vadd.f32 %v19430_v63, %v15371_v17  ;;  %v6419_v5 = vpop.f32.mrb[215].mxu0  ;;  %14371 = vmatpush3.bf16.msra.mxu1 %v19428_v7  ;;  %v19496_v8 = vadd.f32 %v14285_v26, %v19440_v37  ;;  %v9109_v12 = vmax.f32 %v6425_v30, 0.0  ;;  %v16488_v37 = vld [vmem:[%s17145_s25 + $0x918] sm:$0xff]   ;;  %v16490_v30 = vld [vmem:[%s17145_s25 + $0x928] sm:$0xff]  }
 0x55b   : > { %v6420_v60 = vadd.f32 %v19430_v63, %v6419_v5  ;;  %14372 = vmatprep.subr.bf16.mxu1 %v10024_v4  ;;  %v9107_v9 = vmax.f32 %v6417_v45, 0.0 }
 0x55c   : > { %v9110_v41 = vmax.f32 %v6428_v34, 0.0  ;;  %15477 = vmatmul.mubr.bf16.gmra.mrb[64].mxu0 %v16486_v39  ;;  %v16491_v39 = vld [vmem:[%s17145_s25 + $0x930] sm:$0xff]  }
 0x55d   : > { %v9108_v48 = vmax.f32 %v6420_v60, 0.0  ;;  %15480 = vmatprep.mubr.bf16.mxu0 %v16487_v32 }
 0x55e   : > { %14373 = vmatpush3.bf16.msra.mxu1 %v19425_v28  ;;  %v10026_v55 = vpack.c.bf16 %v9110_v41, %v9109_v12 }
 0x55f   : > { %v15374_v36 = vpop.f32.mrb[216].mxu0  ;;  %v10025_v54 = vpack.c.bf16 %v9108_v48, %v9107_v9 }
 0x560   : > { %v6441_v7 = vadd.f32 %v19430_v63, %v15374_v36  ;;  %v6432_v43 = vpop.f32.mrb[217].mxu0 }
 0x561   : > { %v6433_v61 = vadd.f32 %v19430_v63, %v6432_v43  ;;  %v15375_v62 = vpop.f32.mrb[218].mxu0  ;;  %14374 = vmatprep.subr.bf16.mxu1 %v10025_v54  ;;  %v16493_v54 = vld [vmem:[%s17145_s25 + $0x940] sm:$0xff]  }
 0x562   : > { %v6444_v44 = vadd.f32 %v19430_v63, %v15375_v62  ;;  %v6435_v31 = vpop.f32.mrb[219].mxu0  ;;  %14375 = vmatpush3.bf16.msra.mxu1 %v19452_v53  ;;  %v9113_v27 = vmax.f32 %v6441_v7, 0.0 }
 0x563   : > { %v6436_v28 = vadd.f32 %v19430_v63, %v6435_v31  ;;  %14376 = vmatprep.subr.bf16.mxu1 %v10026_v55  ;;  %v9111_v40 = vmax.f32 %v6433_v61, 0.0  ;;  %v16492_v55 = vld [vmem:[%s17145_s25 + $0x938] sm:$0xff]   ;;  %v9773_v61 = vld [vmem:[#allocation5 + $0x370] sm:$0xff] }
 0x564   : > { %v9114_v52 = vmax.f32 %v6444_v44, 0.0  ;;  %15481 = vmatmul.mubr.bf16.gmra.mrb[68].mxu0 %v16488_v37 }
 0x565   : > { %v9112_v4 = vmax.f32 %v6436_v28, 0.0  ;;  %15484 = vmatprep.mubr.bf16.mxu0 %v16489_v42  ;;  %v13341_v28 = vcombine.low %v19444_v22, %v19446_v24 }
 0x566   : > { %14377 = vmatpush3.bf16.msra.mxu1 %v19448_v59  ;;  %v10028_v0 = vpack.c.bf16 %v9114_v52, %v9113_v27 }
 0x567   : > { %v15378_v16 = vpop.f32.mrb[220].mxu0  ;;  %v10027_v1 = vpack.c.bf16 %v9112_v4, %v9111_v40 }
 0x568   : > { %v6457_v19 = vadd.f32 %v19430_v63, %v15378_v16  ;;  %v6448_v50 = vpop.f32.mrb[221].mxu0  ;;  %v16494_v16 = vld [vmem:[%s17145_s25 + $0x948] sm:$0xff]  }
 0x569   : > { %v6449_v53 = vadd.f32 %v19430_v63, %v6448_v50  ;;  %v15379_v18 = vpop.f32.mrb[222].mxu0  ;;  %14378 = vmatprep.subr.bf16.mxu1 %v10027_v1  ;;  %v16495_v50 = vld [vmem:[%s17145_s25 + $0x950] sm:$0xff]  }
 0x56a   : > { %v6460_v26 = vadd.f32 %v19430_v63, %v15379_v18  ;;  %v6451_v45 = vpop.f32.mrb[223].mxu0  ;;  %14379 = vmatpush3.bf16.msra.mxu1 %v19462_v38  ;;  %v9117_v17 = vmax.f32 %v6457_v19, 0.0 }
 0x56b   : > { %v6452_v59 = vadd.f32 %v19430_v63, %v6451_v45  ;;  %14380 = vmatprep.subr.bf16.mxu1 %v10028_v0  ;;  %v9115_v34 = vmax.f32 %v6449_v53, 0.0  ;;  %v19538_v53 = vld [vmem:[#allocation5 + $0x178] sm:$0xff] }
 0x56c   : > { %v9118_v32 = vmax.f32 %v6460_v26, 0.0  ;;  %15485 = vmatmul.mubr.bf16.gmra.mrb[72].mxu0 %v16490_v30 }
 0x56d   : > { %v9116_v5 = vmax.f32 %v6452_v59, 0.0  ;;  %15488 = vmatprep.mubr.bf16.mxu0 %v16491_v39 }
 0x56e   : > { %14381 = vmatpush3.bf16.msra.mxu1 %v19460_v21  ;;  %v10030_v60 = vpack.c.bf16 %v9118_v32, %v9117_v17  ;;  %v9741_v21 = vld [vmem:[#allocation5 + $0x270] sm:$0xff] }
 0x56f   : > { %v15382_v12 = vpop.f32.mrb[224].mxu0  ;;  %v10029_v41 = vpack.c.bf16 %v9116_v5, %v9115_v34  ;;  %v13405_v59 = vcombine.low %v9741_v21, %v9773_v61 }
 0x570   : > { %v6473_v9 = vadd.f32 %v19430_v63, %v15382_v12  ;;  %v6464_v48 = vpop.f32.mrb[225].mxu0 }
 0x571   : > { %v6465_v38 = vadd.f32 %v19430_v63, %v6464_v48  ;;  %v15383_v36 = vpop.f32.mrb[226].mxu0  ;;  %14382 = vmatprep.subr.bf16.mxu1 %v10029_v41  ;;  %v16496_v41 = vld [vmem:[%s17145_s25 + $0x958] sm:$0xff]  }
 0x572   : > { %v6476_v7 = vadd.f32 %v19430_v63, %v15383_v36  ;;  %v6467_v43 = vpop.f32.mrb[227].mxu0  ;;  %14383 = vmatpush3.bf16.msra.mxu1 %v19472_v3  ;;  %v9121_v62 = vmax.f32 %v6473_v9, 0.0  ;;  %v13406_v3 = vcombine.high %v9741_v21, %v9773_v61 }
 0x573   : > { %v6468_v37 = vadd.f32 %v19430_v63, %v6467_v43  ;;  %14384 = vmatprep.subr.bf16.mxu1 %v10030_v60  ;;  %v9119_v44 = vmax.f32 %v6465_v38, 0.0 }
 0x574   : > { %v9122_v42 = vmax.f32 %v6476_v7, 0.0  ;;  %15489 = vmatmul.mubr.bf16.gmra.mrb[76].mxu0 %v16492_v55  ;;  %v16497_v55 = vld [vmem:[%s17145_s25 + $0x960] sm:$0xff]  }
 0x575   : > { %v9120_v31 = vmax.f32 %v6468_v37, 0.0  ;;  %15492 = vmatprep.mubr.bf16.mxu0 %v16493_v54 }
 0x576   : > { %v19525_v27 = vpack.c.bf16 %v9122_v42, %v9121_v62  ;;  %14385 = vmatpush3.bf16.msra.mxu1 %v19470_v25  ;;  %v19536_v25 = vld [vmem:[#allocation5 + $0x78] sm:$0xff] }
 0x577   : > { %v19528_v52 = vpack.c.bf16 %v9120_v31, %v9119_v44  ;;  %v15386_v40 = vpop.f32.mrb[228].mxu0  ;;  %v13344_v32 = vcombine.high %v19536_v25, %v19538_v53 }
 0x578   : > { %v6489_v4 = vadd.f32 %v19430_v63, %v15386_v40  ;;  %v6480_v0 = vpop.f32.mrb[229].mxu0 }
 0x579   : > { %v6481_v1 = vadd.f32 %v19430_v63, %v6480_v0  ;;  %v15387_v19 = vpop.f32.mrb[230].mxu0  ;;  %11662 = vmatmul.mubr.bf16.vlgmr.msra.gmra.mrb[108].mxu1 %v13341_v28  ;;  %v16498_v28 = vld [vmem:[%s17145_s25 + $0x968] sm:$0xff]  }
 0x57a   : > { %v6492_v22 = vadd.f32 %v19430_v63, %v15387_v19  ;;  %v6483_v24 = vpop.f32.mrb[231].mxu0  ;;  %11669 = vmatprep.mubr.bf16.mxu1 %v13406_v3  ;;  %v9125_v18 = vmax.f32 %v6489_v4, 0.0  ;;  %v16499_v4 = vld [vmem:[%s17145_s25 + $0x970] sm:$0xff]  }
 0x57b   : > { %v6484_v30 = vadd.f32 %v19430_v63, %v6483_v24  ;;  %v9123_v26 = vmax.f32 %v6481_v1, 0.0 }
 0x57c   : > { %v9126_v39 = vmax.f32 %v6492_v22, 0.0  ;;  %15493 = vmatmul.mubr.bf16.gmra.mrb[80].mxu0 %v16494_v16 }
 0x57d   : > { %v9124_v45 = vmax.f32 %v6484_v30, 0.0  ;;  %15496 = vmatprep.mubr.bf16.mxu0 %v16495_v50 }
 0x57e   : > { %v19540_v17 = vpack.c.bf16 %v9126_v39, %v9125_v18 }
 0x57f   : > { %v19544_v34 = vpack.c.bf16 %v9124_v45, %v9123_v26  ;;  %v15390_v5 = vpop.f32.mrb[232].mxu0 }
 0x580   : > { %v6505_v60 = vadd.f32 %v19430_v63, %v15390_v5  ;;  %v6496_v12 = vpop.f32.mrb[233].mxu0 }
 0x581   : > { %v6497_v9 = vadd.f32 %v19430_v63, %v6496_v12  ;;  %v15391_v48 = vpop.f32.mrb[234].mxu0  ;;  %11670 = vmatmul.mubr.bf16.gmra.mrb[112].mxu1 %v13405_v59 }
 0x582   : > { %v6508_v38 = vadd.f32 %v19430_v63, %v15391_v48  ;;  %v6499_v36 = vpop.f32.mrb[235].mxu0  ;;  %11710 = vmatprep.mubr.bf16.mxu1 %v13344_v32  ;;  %v9129_v7 = vmax.f32 %v6505_v60, 0.0 }
 0x583   : > { %v6500_v54 = vadd.f32 %v19430_v63, %v6499_v36  ;;  %v9127_v37 = vmax.f32 %v6497_v9, 0.0  ;;  %v16501_v36 = vld [vmem:[%s17145_s25 + $0x980] sm:$0xff]  }
 0x584   : > { %v9130_v43 = vmax.f32 %v6508_v38, 0.0  ;;  %15497 = vmatmul.mubr.bf16.gmra.mrb[84].mxu0 %v16496_v41  ;;  %v16500_v41 = vld [vmem:[%s17145_s25 + $0x978] sm:$0xff]  }
 0x585   : > { %v9128_v21 = vmax.f32 %v6500_v54, 0.0  ;;  %15500 = vmatprep.mubr.bf16.mxu0 %v16497_v55 }
 0x586   : > { %v19552_v61 = vpack.c.bf16 %v9130_v43, %v9129_v7 }
 0x587   : > { %v19554_v62 = vpack.c.bf16 %v9128_v21, %v9127_v37  ;;  %v15394_v42 = vpop.f32.mrb[236].mxu0 }
 0x588   : > { %v6521_v44 = vadd.f32 %v19430_v63, %v15394_v42  ;;  %v6512_v31 = vpop.f32.mrb[237].mxu0 }
 0x589   : > { %v6513_v3 = vadd.f32 %v19430_v63, %v6512_v31  ;;  %v15395_v40 = vpop.f32.mrb[238].mxu0 }
 0x58a   : > { %v6524_v0 = vadd.f32 %v19430_v63, %v15395_v40  ;;  %v6515_v16 = vpop.f32.mrb[239].mxu0  ;;  %v9133_v19 = vmax.f32 %v6521_v44, 0.0 }
 0x58b   : > { %v6516_v1 = vadd.f32 %v19430_v63, %v6515_v16  ;;  %v9131_v24 = vmax.f32 %v6513_v3, 0.0 }
 0x58c   : > { %v9134_v50 = vmax.f32 %v6524_v0, 0.0  ;;  %15501 = vmatmul.mubr.bf16.gmra.mrb[88].mxu0 %v16498_v28  ;;  %v14302_v22 = vpop.f32.mrb[84].mxu1 }
 0x58d   : > { %v9132_v30 = vmax.f32 %v6516_v1, 0.0  ;;  %15504 = vmatprep.mubr.bf16.mxu0 %v16499_v4  ;;  %v14303_v18 = vpop.f32.mrb[85].mxu1 }
 0x58e   : > { %v19562_v39 = vpack.c.bf16 %v9134_v50, %v9133_v19  ;;  %v14304_v26 = vadd.f32 %v14303_v18, %v14302_v22  ;;  %v14305_v45 = vpop.f32.mrb[86].mxu1  ;;  %v16502_v50 = vld [vmem:[%s17145_s25 + $0x988] sm:$0xff]  }
 0x58f   : > { %v19564_v59 = vpack.c.bf16 %v9132_v30, %v9131_v24  ;;  %v15398_v32 = vpop.f32.mrb[240].mxu0  ;;  %v14306_v5 = vpop.f32.mrb[87].mxu1 }
 0x590   : > { %v6537_v60 = vadd.f32 %v19430_v63, %v15398_v32  ;;  %v6528_v12 = vpop.f32.mrb[241].mxu0  ;;  %v19569_v9 = vadd.f32 %v14304_v26, %v19477_v58  ;;  %v14307_v48 = vadd.f32 %v14306_v5, %v14305_v45  ;;  %v16503_v26 = vld [vmem:[%s17145_s25 + $0x990] sm:$0xff]  }
 0x591   : > { %v6529_v55 = vadd.f32 %v19430_v63, %v6528_v12  ;;  %v15399_v38 = vpop.f32.mrb[242].mxu0 }
 0x592   : > { %v6540_v54 = vadd.f32 %v19430_v63, %v15399_v38  ;;  %v6531_v7 = vpop.f32.mrb[243].mxu0  ;;  %v19575_v43 = vadd.f32 %v14307_v48, %v19483_v14  ;;  %v9137_v21 = vmax.f32 %v6537_v60, 0.0 }
 0x593   : > { %v6532_v37 = vadd.f32 %v19430_v63, %v6531_v7  ;;  %v9135_v58 = vmax.f32 %v6529_v55, 0.0 }
 0x594   : > { %v9138_v42 = vmax.f32 %v6540_v54, 0.0  ;;  %15505 = vmatmul.mubr.bf16.gmra.mrb[92].mxu0 %v16500_v41  ;;  %v14308_v44 = vpop.f32.mrb[88].mxu1 }
 0x595   : > { %v9136_v31 = vmax.f32 %v6532_v37, 0.0  ;;  %15508 = vmatprep.mubr.bf16.mxu0 %v16501_v36  ;;  %v14309_v28 = vpop.f32.mrb[89].mxu1 }
 0x596   : > { %v10040_v3 = vpack.c.bf16 %v9138_v42, %v9137_v21  ;;  %v14310_v40 = vadd.f32 %v14309_v28, %v14308_v44  ;;  %v14311_v4 = vpop.f32.mrb[90].mxu1  ;;  %v16505_v21 = vld [vmem:[%s17145_s25 + $0x9a0] sm:$0xff]  }
 0x597   : > { %v15402_v0 = vpop.f32.mrb[244].mxu0  ;;  %v10039_v16 = vpack.c.bf16 %v9136_v31, %v9135_v58  ;;  %v14312_v1 = vpop.f32.mrb[91].mxu1 }
 0x598   : > { %v6553_v14 = vadd.f32 %v19430_v63, %v15402_v0  ;;  %v6544_v19 = vpop.f32.mrb[245].mxu0  ;;  %v19581_v22 = vadd.f32 %v14310_v40, %v19489_v6  ;;  %v14313_v24 = vadd.f32 %v14312_v1, %v14311_v4 }
 0x599   : > { %v6545_v30 = vadd.f32 %v19430_v63, %v6544_v19  ;;  %v15403_v18 = vpop.f32.mrb[246].mxu0  ;;  %14398 = vmatprep.subr.bf16.mxu1 %v10039_v16 }
 0x59a   : > { %v6556_v45 = vadd.f32 %v19430_v63, %v15403_v18  ;;  %v6547_v32 = vpop.f32.mrb[247].mxu0  ;;  %14399 = vmatpush3.bf16.msra.mxu1 %v19528_v52  ;;  %v19588_v5 = vadd.f32 %v14313_v24, %v19496_v8  ;;  %v9141_v6 = vmax.f32 %v6553_v14, 0.0  ;;  %v16504_v8 = vld [vmem:[%s17145_s25 + $0x998] sm:$0xff]   ;;  %v16506_v14 = vld [vmem:[%s17145_s25 + $0x9a8] sm:$0xff]  }
 0x59b   : > { %v6548_v60 = vadd.f32 %v19430_v63, %v6547_v32  ;;  %14400 = vmatprep.subr.bf16.mxu1 %v10040_v3  ;;  %v9139_v41 = vmax.f32 %v6545_v30, 0.0 }
 0x59c   : > { %v9142_v12 = vmax.f32 %v6556_v45, 0.0  ;;  %15509 = vmatmul.mubr.bf16.gmra.mrb[96].mxu0 %v16502_v50  ;;  %v16507_v50 = vld [vmem:[%s17145_s25 + $0x9b0] sm:$0xff]  }
 0x59d   : > { %v9140_v48 = vmax.f32 %v6548_v60, 0.0  ;;  %15512 = vmatprep.mubr.bf16.mxu0 %v16503_v26 }
 0x59e   : > { %14401 = vmatpush3.bf16.msra.mxu1 %v19525_v27  ;;  %v10042_v55 = vpack.c.bf16 %v9142_v12, %v9141_v6 }
 0x59f   : > { %v15406_v38 = vpop.f32.mrb[248].mxu0  ;;  %v10041_v36 = vpack.c.bf16 %v9140_v48, %v9139_v41 }
 0x5a0   : > { %v6569_v52 = vadd.f32 %v19430_v63, %v15406_v38  ;;  %v6560_v54 = vpop.f32.mrb[249].mxu0 }
 0x5a1   : > { %v6561_v7 = vadd.f32 %v19430_v63, %v6560_v54  ;;  %v15407_v37 = vpop.f32.mrb[250].mxu0  ;;  %14402 = vmatprep.subr.bf16.mxu1 %v10041_v36  ;;  %v16509_v36 = vld [vmem:[%s17145_s25 + $0x9c0] sm:$0xff]  }
 0x5a2   : > { %v6572_v42 = vadd.f32 %v19430_v63, %v15407_v37  ;;  %v6563_v44 = vpop.f32.mrb[251].mxu0  ;;  %14403 = vmatpush3.bf16.msra.mxu1 %v19544_v34  ;;  %v9145_v58 = vmax.f32 %v6569_v52, 0.0 }
 0x5a3   : > { %v6564_v27 = vadd.f32 %v19430_v63, %v6563_v44  ;;  %14404 = vmatprep.subr.bf16.mxu1 %v10042_v55  ;;  %v9143_v28 = vmax.f32 %v6561_v7, 0.0  ;;  %v16508_v55 = vld [vmem:[%s17145_s25 + $0x9b8] sm:$0xff]  }
 0x5a4   : > { %v9146_v31 = vmax.f32 %v6572_v42, 0.0  ;;  %15513 = vmatmul.mubr.bf16.gmra.mrb[100].mxu0 %v16504_v8  ;;  %v9774_v7 = vld [vmem:[#allocation5 + $0x378] sm:$0xff] }
 0x5a5   : > { %v9144_v3 = vmax.f32 %v6564_v27, 0.0  ;;  %15516 = vmatprep.mubr.bf16.mxu0 %v16505_v21  ;;  %v13343_v27 = vcombine.low %v19536_v25, %v19538_v53 }
 0x5a6   : > { %14405 = vmatpush3.bf16.msra.mxu1 %v19540_v17  ;;  %v10044_v40 = vpack.c.bf16 %v9146_v31, %v9145_v58 }
 0x5a7   : > { %v15410_v4 = vpop.f32.mrb[252].mxu0  ;;  %v10043_v0 = vpack.c.bf16 %v9144_v3, %v9143_v28 }
 0x5a8   : > { %v6585_v16 = vadd.f32 %v19430_v63, %v15410_v4  ;;  %v6576_v1 = vpop.f32.mrb[253].mxu0  ;;  %v16510_v4 = vld [vmem:[%s17145_s25 + $0x9c8] sm:$0xff]  }
 0x5a9   : > { %v6577_v34 = vadd.f32 %v19430_v63, %v6576_v1  ;;  %v15411_v19 = vpop.f32.mrb[254].mxu0  ;;  %14406 = vmatprep.subr.bf16.mxu1 %v10043_v0  ;;  %v16511_v1 = vld [vmem:[%s17145_s25 + $0x9d0] sm:$0xff]  }
 0x5aa   : > { %v6588_v24 = vadd.f32 %v19430_v63, %v15411_v19  ;;  %v6579_v30 = vpop.f32.mrb[255].mxu0  ;;  %14407 = vmatpush3.bf16.msra.mxu1 %v19554_v62  ;;  %v9149_v18 = vmax.f32 %v6585_v16, 0.0 }
 0x5ab   : > { %v6580_v17 = vadd.f32 %v19430_v63, %v6579_v30  ;;  %14408 = vmatprep.subr.bf16.mxu1 %v10044_v40  ;;  %v9147_v45 = vmax.f32 %v6577_v34, 0.0  ;;  %v19630_v34 = vld [vmem:[#allocation5 + $0x180] sm:$0xff] }
 0x5ac   : > { %v9150_v26 = vmax.f32 %v6588_v24, 0.0  ;;  %15517 = vmatmul.mubr.bf16.gmra.mrb[104].mxu0 %v16506_v14 }
 0x5ad   : > { %v9148_v32 = vmax.f32 %v6580_v17, 0.0  ;;  %15520 = vmatprep.mubr.bf16.mxu0 %v16507_v50 }
 0x5ae   : > { %14409 = vmatpush3.bf16.msra.mxu1 %v19552_v61  ;;  %v10046_v60 = vpack.c.bf16 %v9150_v26, %v9149_v18  ;;  %v9742_v61 = vld [vmem:[#allocation5 + $0x278] sm:$0xff] }
 0x5af   : > { %v15414_v6 = vpop.f32.mrb[0].mxu0  ;;  %v10045_v12 = vpack.c.bf16 %v9148_v32, %v9147_v45  ;;  %v13407_v17 = vcombine.low %v9742_v61, %v9774_v7 }
 0x5b0   : > { %v6601_v41 = vadd.f32 %v19430_v63, %v15414_v6  ;;  %v6592_v48 = vpop.f32.mrb[1].mxu0 }
 0x5b1   : > { %v6593_v62 = vadd.f32 %v19430_v63, %v6592_v48  ;;  %v15415_v38 = vpop.f32.mrb[2].mxu0  ;;  %14410 = vmatprep.subr.bf16.mxu1 %v10045_v12  ;;  %v16512_v12 = vld [vmem:[%s17145_s25 + $0x9d8] sm:$0xff]  }
 0x5b2   : > { %v6604_v52 = vadd.f32 %v19430_v63, %v15415_v38  ;;  %v6595_v54 = vpop.f32.mrb[3].mxu0  ;;  %14411 = vmatpush3.bf16.msra.mxu1 %v19564_v59  ;;  %v9153_v37 = vmax.f32 %v6601_v41, 0.0  ;;  %v13408_v59 = vcombine.high %v9742_v61, %v9774_v7 }
 0x5b3   : > { %v6596_v8 = vadd.f32 %v19430_v63, %v6595_v54  ;;  %14412 = vmatprep.subr.bf16.mxu1 %v10046_v60  ;;  %v9151_v42 = vmax.f32 %v6593_v62, 0.0 }
 0x5b4   : > { %v9154_v21 = vmax.f32 %v6604_v52, 0.0  ;;  %15521 = vmatmul.mubr.bf16.gmra.mrb[108].mxu0 %v16508_v55  ;;  %v16513_v55 = vld [vmem:[%s17145_s25 + $0x9e0] sm:$0xff]  }
 0x5b5   : > { %v9152_v44 = vmax.f32 %v6596_v8, 0.0  ;;  %15524 = vmatprep.mubr.bf16.mxu0 %v16509_v36 }
 0x5b6   : > { %v19617_v58 = vpack.c.bf16 %v9154_v21, %v9153_v37  ;;  %14413 = vmatpush3.bf16.msra.mxu1 %v19562_v39  ;;  %v19628_v39 = vld [vmem:[#allocation5 + $0x80] sm:$0xff] }
 0x5b7   : > { %v19620_v31 = vpack.c.bf16 %v9152_v44, %v9151_v42  ;;  %v15418_v28 = vpop.f32.mrb[4].mxu0  ;;  %v13346_v26 = vcombine.high %v19628_v39, %v19630_v34 }
 0x5b8   : > { %v6617_v3 = vadd.f32 %v19430_v63, %v15418_v28  ;;  %v6608_v40 = vpop.f32.mrb[5].mxu0 }
 0x5b9   : > { %v6609_v0 = vadd.f32 %v19430_v63, %v6608_v40  ;;  %v15419_v16 = vpop.f32.mrb[6].mxu0  ;;  %11711 = vmatmul.mubr.bf16.vlgmr.msra.gmra.mrb[116].mxu1 %v13343_v27  ;;  %v16514_v27 = vld [vmem:[%s17145_s25 + $0x9e8] sm:$0xff]  }
 0x5ba   : > { %v6620_v25 = vadd.f32 %v19430_v63, %v15419_v16  ;;  %v6611_v53 = vpop.f32.mrb[7].mxu0  ;;  %11718 = vmatprep.mubr.bf16.mxu1 %v13408_v59  ;;  %v9157_v19 = vmax.f32 %v6617_v3, 0.0  ;;  %v16515_v3 = vld [vmem:[%s17145_s25 + $0x9f0] sm:$0xff]  }
 0x5bb   : > { %v6612_v14 = vadd.f32 %v19430_v63, %v6611_v53  ;;  %v9155_v24 = vmax.f32 %v6609_v0, 0.0 }
 0x5bc   : > { %v9158_v50 = vmax.f32 %v6620_v25, 0.0  ;;  %15525 = vmatmul.mubr.bf16.gmra.mrb[112].mxu0 %v16510_v4 }
 0x5bd   : > { %v9156_v30 = vmax.f32 %v6612_v14, 0.0  ;;  %15528 = vmatprep.mubr.bf16.mxu0 %v16511_v1 }
 0x5be   : > { %v19632_v18 = vpack.c.bf16 %v9158_v50, %v9157_v19 }
 0x5bf   : > { %v19636_v45 = vpack.c.bf16 %v9156_v30, %v9155_v24  ;;  %v15422_v32 = vpop.f32.mrb[8].mxu0 }
 0x5c0   : > { %v6633_v60 = vadd.f32 %v19430_v63, %v15422_v32  ;;  %v6624_v6 = vpop.f32.mrb[9].mxu0 }
 0x5c1   : > { %v6625_v41 = vadd.f32 %v19430_v63, %v6624_v6  ;;  %v15423_v48 = vpop.f32.mrb[10].mxu0  ;;  %11719 = vmatmul.mubr.bf16.gmra.mrb[120].mxu1 %v13407_v17 }
 0x5c2   : > { %v6636_v62 = vadd.f32 %v19430_v63, %v15423_v48  ;;  %v6627_v38 = vpop.f32.mrb[11].mxu0  ;;  %11759 = vmatprep.mubr.bf16.mxu1 %v13346_v26  ;;  %v9161_v52 = vmax.f32 %v6633_v60, 0.0  ;;  %v16516_v48 = vld [vmem:[%s17145_s25 + $0x9f8] sm:$0xff]  }
 0x5c3   : > { %v6628_v36 = vadd.f32 %v19430_v63, %v6627_v38  ;;  %v9159_v8 = vmax.f32 %v6625_v41, 0.0  ;;  %v16517_v38 = vld [vmem:[%s17145_s25 + $0xa00] sm:$0xff]  }
 0x5c4   : > { %v9162_v54 = vmax.f32 %v6636_v62, 0.0  ;;  %15529 = vmatmul.mubr.bf16.gmra.mrb[116].mxu0 %v16512_v12 }
 0x5c5   : > { %v9160_v61 = vmax.f32 %v6628_v36, 0.0  ;;  %15532 = vmatprep.mubr.bf16.mxu0 %v16513_v55 }
 0x5c6   : > { %v19644_v7 = vpack.c.bf16 %v9162_v54, %v9161_v52 }
 0x5c7   : > { %v19646_v37 = vpack.c.bf16 %v9160_v61, %v9159_v8  ;;  %v15426_v21 = vpop.f32.mrb[12].mxu0 }
 0x5c8   : > { %v6649_v42 = vadd.f32 %v19430_v63, %v15426_v21  ;;  %v6640_v44 = vpop.f32.mrb[13].mxu0 }
 0x5c9   : > { %v6641_v59 = vadd.f32 %v19430_v63, %v6640_v44  ;;  %v15427_v28 = vpop.f32.mrb[14].mxu0 }
 0x5ca   : > { %v6652_v40 = vadd.f32 %v19430_v63, %v15427_v28  ;;  %v6643_v4 = vpop.f32.mrb[15].mxu0  ;;  %v9165_v16 = vmax.f32 %v6649_v42, 0.0 }
 0x5cb   : > { %v6644_v0 = vadd.f32 %v19430_v63, %v6643_v4  ;;  %v9163_v53 = vmax.f32 %v6641_v59, 0.0 }
 0x5cc   : > { %v9166_v1 = vmax.f32 %v6652_v40, 0.0  ;;  %15533 = vmatmul.mubr.bf16.gmra.mrb[120].mxu0 %v16514_v27  ;;  %v14330_v25 = vpop.f32.mrb[92].mxu1 }
 0x5cd   : > { %v9164_v14 = vmax.f32 %v6644_v0, 0.0  ;;  %v14331_v19 = vpop.f32.mrb[93].mxu1  ;;  %15536 = vmatprep.mubr.bf16.mxu0 %v16515_v3 }
 0x5ce   : > { %v19654_v50 = vpack.c.bf16 %v9166_v1, %v9165_v16  ;;  %v14332_v24 = vadd.f32 %v14331_v19, %v14330_v25  ;;  %v14333_v30 = vpop.f32.mrb[94].mxu1 }
 0x5cf   : > { %v19656_v17 = vpack.c.bf16 %v9164_v14, %v9163_v53  ;;  %v15430_v26 = vpop.f32.mrb[16].mxu0  ;;  %v14334_v32 = vpop.f32.mrb[95].mxu1  ;;  %v16518_v53 = vld [vmem:[%s17145_s25 + $0xa08] sm:$0xff]  }
 0x5d0   : > { %v19659_v60 = vadd.f32 %v14332_v24, %v19569_v9  ;;  %v6665_v6 = vadd.f32 %v19430_v63, %v15430_v26  ;;  %v14335_v12 = vadd.f32 %v14334_v32, %v14333_v30  ;;  %v6656_v41 = vpop.f32.mrb[17].mxu0  ;;  %v16519_v24 = vld [vmem:[%s17145_s25 + $0xa10] sm:$0xff]  }
 0x5d1   : > { %v6657_v55 = vadd.f32 %v19430_v63, %v6656_v41  ;;  %v15431_v62 = vpop.f32.mrb[18].mxu0 }
 0x5d2   : > { %v19666_v36 = vadd.f32 %v14335_v12, %v19575_v43  ;;  %v6668_v52 = vadd.f32 %v19430_v63, %v15431_v62  ;;  %v6659_v54 = vpop.f32.mrb[19].mxu0  ;;  %v9169_v61 = vmax.f32 %v6665_v6, 0.0 }
 0x5d3   : > { %v6660_v8 = vadd.f32 %v19430_v63, %v6659_v54  ;;  %v9167_v42 = vmax.f32 %v6657_v55, 0.0 }
 0x5d4   : > { %v9170_v9 = vmax.f32 %v6668_v52, 0.0  ;;  %15537 = vmatmul.mubr.bf16.gmra.mrb[124].mxu0 %v16516_v48  ;;  %v14336_v21 = vpop.f32.mrb[96].mxu1 }
 0x5d5   : > { %v9168_v44 = vmax.f32 %v6660_v8, 0.0  ;;  %v14337_v27 = vpop.f32.mrb[97].mxu1  ;;  %15540 = vmatprep.mubr.bf16.mxu0 %v16517_v38 }
 0x5d6   : > { %v10056_v59 = vpack.c.bf16 %v9170_v9, %v9169_v61  ;;  %v14338_v28 = vadd.f32 %v14337_v27, %v14336_v21  ;;  %v14339_v3 = vpop.f32.mrb[98].mxu1  ;;  %v16521_v61 = vld [vmem:[%s17145_s25 + $0xa20] sm:$0xff]  }
 0x5d7   : > { %v10055_v43 = vpack.c.bf16 %v9168_v44, %v9167_v42  ;;  %v15434_v40 = vpop.f32.mrb[20].mxu0  ;;  %v14340_v4 = vpop.f32.mrb[99].mxu1 }
 0x5d8   : > { %v6681_v0 = vadd.f32 %v19430_v63, %v15434_v40  ;;  %v6672_v16 = vpop.f32.mrb[21].mxu0  ;;  %v19672_v1 = vadd.f32 %v14338_v28, %v19581_v22  ;;  %v14341_v25 = vadd.f32 %v14340_v4, %v14339_v3  ;;  %v19692_v40 = vld [vmem:[#allocation8] ss:$0 sm:$0xff] }
 0x5d9   : > { %v6673_v14 = vadd.f32 %v19430_v63, %v6672_v16  ;;  %v15435_v19 = vpop.f32.mrb[22].mxu0  ;;  %14426 = vmatprep.subr.bf16.mxu1 %v10055_v43 }
 0x5da   : > { %v6684_v30 = vadd.f32 %v19430_v63, %v15435_v19  ;;  %v6675_v26 = vpop.f32.mrb[23].mxu0  ;;  %14427 = vmatpush3.bf16.msra.mxu1 %v19620_v31  ;;  %v19680_v32 = vadd.f32 %v14341_v25, %v19588_v5  ;;  %v9173_v22 = vmax.f32 %v6681_v0, 0.0  ;;  %v16520_v5 = vld [vmem:[%s17145_s25 + $0xa18] sm:$0xff]   ;;  %v16522_v0 = vld [vmem:[%s17145_s25 + $0xa28] sm:$0xff]   ;;  %v16523_v25 = vld [vmem:[%s17145_s25 + $0xa30] sm:$0xff]  }
 0x5db   : > { %v6676_v6 = vadd.f32 %v19430_v63, %v6675_v26  ;;  %14428 = vmatprep.subr.bf16.mxu1 %v10056_v59  ;;  %v9171_v41 = vmax.f32 %v6673_v14, 0.0 }
 0x5dc   : > { %v9174_v12 = vmax.f32 %v6684_v30, 0.0  ;;  %15541 = vmatmul.mubr.bf16.gmra.mrb[128].mxu0 %v16518_v53 }
 0x5dd   : > { %v9172_v48 = vmax.f32 %v6676_v6, 0.0  ;;  %15544 = vmatprep.mubr.bf16.mxu0 %v16519_v24 }
 0x5de   : > { %v10058_v55 = vpack.c.bf16 %v9174_v12, %v9173_v22  ;;  %14429 = vmatpush3.bf16.msra.mxu1 %v19617_v58 }
 0x5df   : > { %v10057_v62 = vpack.c.bf16 %v9172_v48, %v9171_v41  ;;  %v15438_v38 = vpop.f32.mrb[24].mxu0 }
 0x5e0   : > { %v6697_v31 = vadd.f32 %v19430_v63, %v15438_v38  ;;  %v6688_v52 = vpop.f32.mrb[25].mxu0  ;;  %v16525_v38 = vld [vmem:[%s17145_s25 + $0xa40] sm:$0xff]  }
 0x5e1   : > { %v6689_v54 = vadd.f32 %v19430_v63, %v6688_v52  ;;  %v15439_v8 = vpop.f32.mrb[26].mxu0  ;;  %14430 = vmatprep.subr.bf16.mxu1 %v10057_v62 }
 0x5e2   : > { %v6700_v9 = vadd.f32 %v19430_v63, %v15439_v8  ;;  %v6691_v21 = vpop.f32.mrb[27].mxu0  ;;  %14431 = vmatpush3.bf16.msra.mxu1 %v19636_v45  ;;  %v9177_v58 = vmax.f32 %v6697_v31, 0.0 }
 0x5e3   : > { %v6692_v42 = vadd.f32 %v19430_v63, %v6691_v21  ;;  %14432 = vmatprep.subr.bf16.mxu1 %v10058_v55  ;;  %v9175_v27 = vmax.f32 %v6689_v54, 0.0  ;;  %v16524_v55 = vld [vmem:[%s17145_s25 + $0xa38] sm:$0xff]   ;;  %v9775_v54 = vld [vmem:[#allocation5 + $0x380] sm:$0xff] }
 0x5e4   : > { %v9178_v44 = vmax.f32 %v6700_v9, 0.0  ;;  %15545 = vmatmul.mubr.bf16.gmra.mrb[132].mxu0 %v16520_v5 }
 0x5e5   : > { %v9176_v59 = vmax.f32 %v6692_v42, 0.0  ;;  %15548 = vmatprep.mubr.bf16.mxu0 %v16521_v61  ;;  %v13345_v42 = vcombine.low %v19628_v39, %v19630_v34 }
 0x5e6   : > { %v10060_v28 = vpack.c.bf16 %v9178_v44, %v9177_v58  ;;  %14433 = vmatpush3.bf16.msra.mxu1 %v19632_v18 }
 0x5e7   : > { %v10059_v3 = vpack.c.bf16 %v9176_v59, %v9175_v27  ;;  %v15442_v43 = vpop.f32.mrb[28].mxu0 }
 0x5e8   : > { %v6713_v45 = vadd.f32 %v19692_v40, %v15442_v43  ;;  %v6704_v4 = vpop.f32.mrb[29].mxu0 }
 0x5e9   : > { %v6705_v63 = vadd.f32 %v19692_v40, %v6704_v4  ;;  %v15443_v16 = vpop.f32.mrb[30].mxu0  ;;  %14434 = vmatprep.subr.bf16.mxu1 %v10059_v3  ;;  %v16526_v3 = vld [vmem:[%s17145_s25 + $0xa48] sm:$0xff]   ;;  %v16527_v4 = vld [vmem:[%s17145_s25 + $0xa50] sm:$0xff]  }
 0x5ea   : > { %v6716_v53 = vadd.f32 %v19692_v40, %v15443_v16  ;;  %v6707_v14 = vpop.f32.mrb[31].mxu0  ;;  %14435 = vmatpush3.bf16.msra.mxu1 %v19646_v37  ;;  %v9181_v19 = vmax.f32 %v6713_v45, 0.0 }
 0x5eb   : > { %v6708_v18 = vadd.f32 %v19692_v40, %v6707_v14  ;;  %14436 = vmatprep.subr.bf16.mxu1 %v10060_v28  ;;  %v9179_v30 = vmax.f32 %v6705_v63, 0.0  ;;  %v19724_v63 = vld [vmem:[#allocation5 + $0x188] sm:$0xff] }
 0x5ec   : > { %v9182_v24 = vmax.f32 %v6716_v53, 0.0  ;;  %15549 = vmatmul.mubr.bf16.gmra.mrb[136].mxu0 %v16522_v0 }
 0x5ed   : > { %v9180_v26 = vmax.f32 %v6708_v18, 0.0  ;;  %15552 = vmatprep.mubr.bf16.mxu0 %v16523_v25 }
 0x5ee   : > { %v10062_v6 = vpack.c.bf16 %v9182_v24, %v9181_v19  ;;  %14437 = vmatpush3.bf16.msra.mxu1 %v19644_v7  ;;  %v9743_v7 = vld [vmem:[#allocation5 + $0x280] sm:$0xff] }
 0x5ef   : > { %v10061_v22 = vpack.c.bf16 %v9180_v26, %v9179_v30  ;;  %v15446_v12 = vpop.f32.mrb[32].mxu0  ;;  %v13409_v18 = vcombine.low %v9743_v7, %v9775_v54 }
 0x5f0   : > { %v6729_v41 = vadd.f32 %v19692_v40, %v15446_v12  ;;  %v6720_v48 = vpop.f32.mrb[33].mxu0  ;;  %v16528_v12 = vld [vmem:[%s17145_s25 + $0xa58] sm:$0xff]  }
 0x5f1   : > { %v6721_v37 = vadd.f32 %v19692_v40, %v6720_v48  ;;  %v15447_v62 = vpop.f32.mrb[34].mxu0  ;;  %14438 = vmatprep.subr.bf16.mxu1 %v10061_v22 }
 0x5f2   : > { %v6732_v31 = vadd.f32 %v19692_v40, %v15447_v62  ;;  %v6723_v52 = vpop.f32.mrb[35].mxu0  ;;  %14439 = vmatpush3.bf16.msra.mxu1 %v19656_v17  ;;  %v9185_v8 = vmax.f32 %v6729_v41, 0.0  ;;  %v13410_v17 = vcombine.high %v9743_v7, %v9775_v54 }
 0x5f3   : > { %v6724_v5 = vadd.f32 %v19692_v40, %v6723_v52  ;;  %14440 = vmatprep.subr.bf16.mxu1 %v10062_v6  ;;  %v9183_v9 = vmax.f32 %v6721_v37, 0.0 }
 0x5f4   : > { %v9186_v61 = vmax.f32 %v6732_v31, 0.0  ;;  %15553 = vmatmul.mubr.bf16.gmra.mrb[140].mxu0 %v16524_v55  ;;  %v16529_v55 = vld [vmem:[%s17145_s25 + $0xa60] sm:$0xff]  }
 0x5f5   : > { %v9184_v21 = vmax.f32 %v6724_v5, 0.0  ;;  %15556 = vmatprep.mubr.bf16.mxu0 %v16525_v38 }
 0x5f6   : > { %v19711_v58 = vpack.c.bf16 %v9186_v61, %v9185_v8  ;;  %14441 = vmatpush3.bf16.msra.mxu1 %v19654_v50  ;;  %v19722_v50 = vld [vmem:[#allocation5 + $0x88] sm:$0xff] }
 0x5f7   : > { %v19714_v44 = vpack.c.bf16 %v9184_v21, %v9183_v9  ;;  %v15450_v27 = vpop.f32.mrb[36].mxu0  ;;  %v13348_v24 = vcombine.high %v19722_v50, %v19724_v63 }
 0x5f8   : > { %v6745_v59 = vadd.f32 %v19692_v40, %v15450_v27  ;;  %v6736_v28 = vpop.f32.mrb[37].mxu0 }
 0x5f9   : > { %v6737_v43 = vadd.f32 %v19692_v40, %v6736_v28  ;;  %v15451_v45 = vpop.f32.mrb[38].mxu0  ;;  %11760 = vmatmul.mubr.bf16.vlgmr.msra.gmra.mrb[124].mxu1 %v13345_v42  ;;  %v16530_v42 = vld [vmem:[%s17145_s25 + $0xa68] sm:$0xff]  }
 0x5fa   : > { %v6748_v39 = vadd.f32 %v19692_v40, %v15451_v45  ;;  %v6739_v34 = vpop.f32.mrb[39].mxu0  ;;  %11767 = vmatprep.mubr.bf16.mxu1 %v13410_v17  ;;  %v9189_v16 = vmax.f32 %v6745_v59, 0.0  ;;  %v16531_v59 = vld [vmem:[%s17145_s25 + $0xa70] sm:$0xff]  }
 0x5fb   : > { %v6740_v0 = vadd.f32 %v19692_v40, %v6739_v34  ;;  %v9187_v53 = vmax.f32 %v6737_v43, 0.0 }
 0x5fc   : > { %v9190_v25 = vmax.f32 %v6748_v39, 0.0  ;;  %15557 = vmatmul.mubr.bf16.gmra.mrb[144].mxu0 %v16526_v3 }
 0x5fd   : > { %v9188_v14 = vmax.f32 %v6740_v0, 0.0  ;;  %15560 = vmatprep.mubr.bf16.mxu0 %v16527_v4 }
 0x5fe   : > { %v19726_v19 = vpack.c.bf16 %v9190_v25, %v9189_v16 }
 0x5ff   : > { %v19730_v30 = vpack.c.bf16 %v9188_v14, %v9187_v53  ;;  %v15454_v26 = vpop.f32.mrb[40].mxu0 }
 0x600   : > { %v6761_v6 = vadd.f32 %v19692_v40, %v15454_v26  ;;  %v6752_v22 = vpop.f32.mrb[41].mxu0 }
 0x601   : > { %v6753_v41 = vadd.f32 %v19692_v40, %v6752_v22  ;;  %v15455_v48 = vpop.f32.mrb[42].mxu0  ;;  %11768 = vmatmul.mubr.bf16.gmra.mrb[128].mxu1 %v13409_v18 }
 0x602   : > { %v6764_v37 = vadd.f32 %v19692_v40, %v15455_v48  ;;  %v6755_v62 = vpop.f32.mrb[43].mxu0  ;;  %11808 = vmatprep.mubr.bf16.mxu1 %v13348_v24  ;;  %v9193_v31 = vmax.f32 %v6761_v6, 0.0  ;;  %v16532_v48 = vld [vmem:[%s17145_s25 + $0xa78] sm:$0xff]  }
 0x603   : > { %v6756_v38 = vadd.f32 %v19692_v40, %v6755_v62  ;;  %v9191_v5 = vmax.f32 %v6753_v41, 0.0  ;;  %v16533_v62 = vld [vmem:[%s17145_s25 + $0xa80] sm:$0xff]  }
 0x604   : > { %v9194_v52 = vmax.f32 %v6764_v37, 0.0  ;;  %15561 = vmatmul.mubr.bf16.gmra.mrb[148].mxu0 %v16528_v12 }
 0x605   : > { %v9192_v7 = vmax.f32 %v6756_v38, 0.0  ;;  %15564 = vmatprep.mubr.bf16.mxu0 %v16529_v55 }
 0x606   : > { %v19738_v54 = vpack.c.bf16 %v9194_v52, %v9193_v31 }
 0x607   : > { %v19740_v8 = vpack.c.bf16 %v9192_v7, %v9191_v5  ;;  %v15458_v61 = vpop.f32.mrb[44].mxu0 }
 0x608   : > { %v6777_v9 = vadd.f32 %v19692_v40, %v15458_v61  ;;  %v6768_v21 = vpop.f32.mrb[45].mxu0 }
 0x609   : > { %v6769_v17 = vadd.f32 %v19692_v40, %v6768_v21  ;;  %v15459_v27 = vpop.f32.mrb[46].mxu0 }
 0x60a   : > { %v6780_v28 = vadd.f32 %v19692_v40, %v15459_v27  ;;  %v6771_v3 = vpop.f32.mrb[47].mxu0  ;;  %v9197_v45 = vmax.f32 %v6777_v9, 0.0 }
 0x60b   : > { %v6772_v43 = vadd.f32 %v19692_v40, %v6771_v3  ;;  %v9195_v34 = vmax.f32 %v6769_v17, 0.0 }
 0x60c   : > { %v9198_v4 = vmax.f32 %v6780_v28, 0.0  ;;  %15565 = vmatmul.mubr.bf16.gmra.mrb[152].mxu0 %v16530_v42  ;;  %v14358_v39 = vpop.f32.mrb[100].mxu1 }
 0x60d   : > { %v9196_v0 = vmax.f32 %v6772_v43, 0.0  ;;  %v14359_v16 = vpop.f32.mrb[101].mxu1  ;;  %15568 = vmatprep.mubr.bf16.mxu0 %v16531_v59 }
 0x60e   : > { %v19748_v25 = vpack.c.bf16 %v9198_v4, %v9197_v45  ;;  %v14360_v53 = vadd.f32 %v14359_v16, %v14358_v39  ;;  %v14361_v14 = vpop.f32.mrb[102].mxu1 }
 0x60f   : > { %v19750_v18 = vpack.c.bf16 %v9196_v0, %v9195_v34  ;;  %v15462_v24 = vpop.f32.mrb[48].mxu0  ;;  %v14362_v26 = vpop.f32.mrb[103].mxu1  ;;  %v16534_v34 = vld [vmem:[%s17145_s25 + $0xa88] sm:$0xff]  }
 0x610   : > { %v19753_v6 = vadd.f32 %v14360_v53, %v19659_v60  ;;  %v6793_v22 = vadd.f32 %v19692_v40, %v15462_v24  ;;  %v14363_v12 = vadd.f32 %v14362_v26, %v14361_v14  ;;  %v6784_v41 = vpop.f32.mrb[49].mxu0  ;;  %v16535_v53 = vld [vmem:[%s17145_s25 + $0xa90] sm:$0xff]  }
 0x611   : > { %v6785_v55 = vadd.f32 %v19692_v40, %v6784_v41  ;;  %v15463_v37 = vpop.f32.mrb[50].mxu0 }
 0x612   : > { %v19760_v38 = vadd.f32 %v14363_v12, %v19666_v36  ;;  %v6796_v31 = vadd.f32 %v19692_v40, %v15463_v37  ;;  %v6787_v52 = vpop.f32.mrb[51].mxu0  ;;  %v9201_v7 = vmax.f32 %v6793_v22, 0.0 }
 0x613   : > { %v6788_v5 = vadd.f32 %v19692_v40, %v6787_v52  ;;  %v9199_v9 = vmax.f32 %v6785_v55, 0.0  ;;  %v16536_v52 = vld [vmem:[%s17145_s25 + $0xa98] sm:$0xff]  }
 0x614   : > { %v9202_v60 = vmax.f32 %v6796_v31, 0.0  ;;  %15569 = vmatmul.mubr.bf16.gmra.mrb[156].mxu0 %v16532_v48  ;;  %v14364_v61 = vpop.f32.mrb[104].mxu1 }
 0x615   : > { %v9200_v21 = vmax.f32 %v6788_v5, 0.0  ;;  %v14365_v42 = vpop.f32.mrb[105].mxu1  ;;  %15572 = vmatprep.mubr.bf16.mxu0 %v16533_v62 }
 0x616   : > { %v10072_v17 = vpack.c.bf16 %v9202_v60, %v9201_v7  ;;  %v14366_v27 = vadd.f32 %v14365_v42, %v14364_v61  ;;  %v14367_v59 = vpop.f32.mrb[106].mxu1  ;;  %v16537_v7 = vld [vmem:[%s17145_s25 + $0xaa0] sm:$0xff]  }
 0x617   : > { %v10071_v36 = vpack.c.bf16 %v9200_v21, %v9199_v9  ;;  %v15466_v28 = vpop.f32.mrb[52].mxu0  ;;  %v14368_v3 = vpop.f32.mrb[107].mxu1 }
 0x618   : > { %v19765_v43 = vadd.f32 %v14366_v27, %v19672_v1  ;;  %v6809_v45 = vadd.f32 %v19692_v40, %v15466_v28  ;;  %v14369_v4 = vadd.f32 %v14368_v3, %v14367_v59  ;;  %v6800_v39 = vpop.f32.mrb[53].mxu0 }
 0x619   : > { %v6801_v0 = vadd.f32 %v19692_v40, %v6800_v39  ;;  %v15467_v16 = vpop.f32.mrb[54].mxu0  ;;  %14454 = vmatprep.subr.bf16.mxu1 %v10071_v36  ;;  %v16539_v39 = vld [vmem:[%s17145_s25 + $0xab0] sm:$0xff]  }
 0x61a   : > { %v19772_v14 = vadd.f32 %v14369_v4, %v19680_v32  ;;  %v6812_v24 = vadd.f32 %v19692_v40, %v15467_v16  ;;  %v6803_v26 = vpop.f32.mrb[55].mxu0  ;;  %14455 = vmatpush3.bf16.msra.mxu1 %v19714_v44  ;;  %v9205_v22 = vmax.f32 %v6809_v45, 0.0  ;;  %v16538_v45 = vld [vmem:[%s17145_s25 + $0xaa8] sm:$0xff]  }
 0x61b   : > { %v6804_v1 = vadd.f32 %v19692_v40, %v6803_v26  ;;  %14456 = vmatprep.subr.bf16.mxu1 %v10072_v17  ;;  %v9203_v41 = vmax.f32 %v6801_v0, 0.0 }
 0x61c   : > { %v9206_v12 = vmax.f32 %v6812_v24, 0.0  ;;  %15573 = vmatmul.mubr.bf16.gmra.mrb[160].mxu0 %v16534_v34 }
 0x61d   : > { %v9204_v48 = vmax.f32 %v6804_v1, 0.0  ;;  %15576 = vmatprep.mubr.bf16.mxu0 %v16535_v53 }
 0x61e   : > { %v10074_v55 = vpack.c.bf16 %v9206_v12, %v9205_v22  ;;  %14457 = vmatpush3.bf16.msra.mxu1 %v19711_v58 }
 0x61f   : > { %v10073_v32 = vpack.c.bf16 %v9204_v48, %v9203_v41  ;;  %v15470_v37 = vpop.f32.mrb[56].mxu0 }
 0x620   : > { %v6825_v62 = vadd.f32 %v19692_v40, %v15470_v37  ;;  %v6816_v31 = vpop.f32.mrb[57].mxu0  ;;  %v16541_v37 = vld [vmem:[%s17145_s25 + $0xac0] sm:$0xff]  }
 0x621   : > { %v6817_v44 = vadd.f32 %v19692_v40, %v6816_v31  ;;  %v15471_v5 = vpop.f32.mrb[58].mxu0  ;;  %14458 = vmatprep.subr.bf16.mxu1 %v10073_v32 }
 0x622   : > { %v6828_v60 = vadd.f32 %v19692_v40, %v15471_v5  ;;  %v6819_v61 = vpop.f32.mrb[59].mxu0  ;;  %14459 = vmatpush3.bf16.msra.mxu1 %v19730_v30  ;;  %v9209_v58 = vmax.f32 %v6825_v62, 0.0 }
 0x623   : > { %v6820_v9 = vadd.f32 %v19692_v40, %v6819_v61  ;;  %14460 = vmatprep.subr.bf16.mxu1 %v10074_v55  ;;  %v9207_v42 = vmax.f32 %v6817_v44, 0.0  ;;  %v16540_v55 = vld [vmem:[%s17145_s25 + $0xab8] sm:$0xff]   ;;  %v9776_v44 = vld [vmem:[#allocation5 + $0x388] sm:$0xff] }
 0x624   : > { %v9210_v21 = vmax.f32 %v6828_v60, 0.0  ;;  %15577 = vmatmul.mubr.bf16.gmra.mrb[164].mxu0 %v16536_v52 }
 0x625   : > { %v9208_v17 = vmax.f32 %v6820_v9, 0.0  ;;  %15580 = vmatprep.mubr.bf16.mxu0 %v16537_v7  ;;  %v13347_v9 = vcombine.low %v19722_v50, %v19724_v63 }
 0x626   : > { %v10076_v27 = vpack.c.bf16 %v9210_v21, %v9209_v58  ;;  %14461 = vmatpush3.bf16.msra.mxu1 %v19726_v19 }
 0x627   : > { %v10075_v59 = vpack.c.bf16 %v9208_v17, %v9207_v42  ;;  %v15474_v36 = vpop.f32.mrb[60].mxu0 }
 0x628   : > { %v6841_v28 = vadd.f32 %v19692_v40, %v15474_v36  ;;  %v6832_v3 = vpop.f32.mrb[61].mxu0 }
 0x629   : > { %v6833_v30 = vadd.f32 %v19692_v40, %v6832_v3  ;;  %v15475_v4 = vpop.f32.mrb[62].mxu0  ;;  %14462 = vmatprep.subr.bf16.mxu1 %v10075_v59  ;;  %v16542_v59 = vld [vmem:[%s17145_s25 + $0xac8] sm:$0xff]   ;;  %v16543_v3 = vld [vmem:[%s17145_s25 + $0xad0] sm:$0xff]  }
 0x62a   : > { %v6844_v34 = vadd.f32 %v19692_v40, %v15475_v4  ;;  %v6835_v0 = vpop.f32.mrb[63].mxu0  ;;  %14463 = vmatpush3.bf16.msra.mxu1 %v19740_v8  ;;  %v9213_v19 = vmax.f32 %v6841_v28, 0.0 }
 0x62b   : > { %v6836_v16 = vadd.f32 %v19692_v40, %v6835_v0  ;;  %14464 = vmatprep.subr.bf16.mxu1 %v10076_v27  ;;  %v9211_v24 = vmax.f32 %v6833_v30, 0.0  ;;  %v19816_v30 = vld [vmem:[#allocation5 + $0x190] sm:$0xff] }
 0x62c   : > { %v9214_v53 = vmax.f32 %v6844_v34, 0.0  ;;  %15581 = vmatmul.mubr.bf16.gmra.mrb[168].mxu0 %v16538_v45 }
 0x62d   : > { %v9212_v26 = vmax.f32 %v6836_v16, 0.0  ;;  %15584 = vmatprep.mubr.bf16.mxu0 %v16539_v39 }
 0x62e   : > { %v10078_v1 = vpack.c.bf16 %v9214_v53, %v9213_v19  ;;  %14465 = vmatpush3.bf16.msra.mxu1 %v19738_v54  ;;  %v9744_v54 = vld [vmem:[#allocation5 + $0x288] sm:$0xff] }
 0x62f   : > { %v10077_v22 = vpack.c.bf16 %v9212_v26, %v9211_v24  ;;  %v15478_v12 = vpop.f32.mrb[64].mxu0  ;;  %v13411_v16 = vcombine.low %v9744_v54, %v9776_v44 }
 0x630   : > { %v6857_v41 = vadd.f32 %v19692_v40, %v15478_v12  ;;  %v6848_v48 = vpop.f32.mrb[65].mxu0  ;;  %v16544_v12 = vld [vmem:[%s17145_s25 + $0xad8] sm:$0xff]  }
 0x631   : > { %v6849_v8 = vadd.f32 %v19692_v40, %v6848_v48  ;;  %v15479_v32 = vpop.f32.mrb[66].mxu0  ;;  %14466 = vmatprep.subr.bf16.mxu1 %v10077_v22 }
 0x632   : > { %v6860_v62 = vadd.f32 %v19692_v40, %v15479_v32  ;;  %v6851_v31 = vpop.f32.mrb[67].mxu0  ;;  %14467 = vmatpush3.bf16.msra.mxu1 %v19750_v18  ;;  %v9217_v5 = vmax.f32 %v6857_v41, 0.0  ;;  %v13412_v18 = vcombine.high %v9744_v54, %v9776_v44 }
 0x633   : > { %v6852_v52 = vadd.f32 %v19692_v40, %v6851_v31  ;;  %14468 = vmatprep.subr.bf16.mxu1 %v10078_v1  ;;  %v9215_v60 = vmax.f32 %v6849_v8, 0.0 }
 0x634   : > { %v9218_v7 = vmax.f32 %v6860_v62, 0.0  ;;  %15585 = vmatmul.mubr.bf16.gmra.mrb[172].mxu0 %v16540_v55  ;;  %v16545_v55 = vld [vmem:[%s17145_s25 + $0xae0] sm:$0xff]  }
 0x635   : > { %v9216_v61 = vmax.f32 %v6852_v52, 0.0  ;;  %15588 = vmatprep.mubr.bf16.mxu0 %v16541_v37 }
 0x636   : > { %v19803_v58 = vpack.c.bf16 %v9218_v7, %v9217_v5  ;;  %14469 = vmatpush3.bf16.msra.mxu1 %v19748_v25  ;;  %v19814_v25 = vld [vmem:[#allocation5 + $0x90] sm:$0xff] }
 0x637   : > { %v19806_v21 = vpack.c.bf16 %v9216_v61, %v9215_v60  ;;  %v15482_v42 = vpop.f32.mrb[68].mxu0  ;;  %v13350_v53 = vcombine.high %v19814_v25, %v19816_v30 }
 0x638   : > { %v6873_v17 = vadd.f32 %v19692_v40, %v15482_v42  ;;  %v6864_v27 = vpop.f32.mrb[69].mxu0 }
 0x639   : > { %v6865_v36 = vadd.f32 %v19692_v40, %v6864_v27  ;;  %v15483_v28 = vpop.f32.mrb[70].mxu0  ;;  %11809 = vmatmul.mubr.bf16.vlgmr.msra.gmra.mrb[132].mxu1 %v13347_v9  ;;  %v16546_v9 = vld [vmem:[%s17145_s25 + $0xae8] sm:$0xff]  }
 0x63a   : > { %v6876_v50 = vadd.f32 %v19692_v40, %v15483_v28  ;;  %v6867_v63 = vpop.f32.mrb[71].mxu0  ;;  %11816 = vmatprep.mubr.bf16.mxu1 %v13412_v18  ;;  %v9221_v4 = vmax.f32 %v6873_v17, 0.0  ;;  %v16547_v17 = vld [vmem:[%s17145_s25 + $0xaf0] sm:$0xff]  }
 0x63b   : > { %v6868_v45 = vadd.f32 %v19692_v40, %v6867_v63  ;;  %v9219_v34 = vmax.f32 %v6865_v36, 0.0 }
 0x63c   : > { %v9222_v39 = vmax.f32 %v6876_v50, 0.0  ;;  %15589 = vmatmul.mubr.bf16.gmra.mrb[176].mxu0 %v16542_v59 }
 0x63d   : > { %v9220_v0 = vmax.f32 %v6868_v45, 0.0  ;;  %15592 = vmatprep.mubr.bf16.mxu0 %v16543_v3 }
 0x63e   : > { %v19818_v19 = vpack.c.bf16 %v9222_v39, %v9221_v4 }
 0x63f   : > { %v19822_v24 = vpack.c.bf16 %v9220_v0, %v9219_v34  ;;  %v15486_v26 = vpop.f32.mrb[72].mxu0 }
 0x640   : > { %v6889_v1 = vadd.f32 %v19692_v40, %v15486_v26  ;;  %v6880_v22 = vpop.f32.mrb[73].mxu0 }
 0x641   : > { %v6881_v41 = vadd.f32 %v19692_v40, %v6880_v22  ;;  %v15487_v48 = vpop.f32.mrb[74].mxu0  ;;  %11817 = vmatmul.mubr.bf16.gmra.mrb[136].mxu1 %v13411_v16 }
 0x642   : > { %v6892_v8 = vadd.f32 %v19692_v40, %v15487_v48  ;;  %v6883_v32 = vpop.f32.mrb[75].mxu0  ;;  %11857 = vmatprep.mubr.bf16.mxu1 %v13350_v53  ;;  %v9225_v62 = vmax.f32 %v6889_v1, 0.0  ;;  %v16548_v48 = vld [vmem:[%s17145_s25 + $0xaf8] sm:$0xff]  }
 0x643   : > { %v6884_v37 = vadd.f32 %v19692_v40, %v6883_v32  ;;  %v9223_v52 = vmax.f32 %v6881_v41, 0.0  ;;  %v16549_v32 = vld [vmem:[%s17145_s25 + $0xb00] sm:$0xff]  }
 0x644   : > { %v9226_v31 = vmax.f32 %v6892_v8, 0.0  ;;  %15593 = vmatmul.mubr.bf16.gmra.mrb[180].mxu0 %v16544_v12 }
 0x645   : > { %v9224_v54 = vmax.f32 %v6884_v37, 0.0  ;;  %15596 = vmatprep.mubr.bf16.mxu0 %v16545_v55 }
 0x646   : > { %v19830_v44 = vpack.c.bf16 %v9226_v31, %v9225_v62 }
 0x647   : > { %v19832_v5 = vpack.c.bf16 %v9224_v54, %v9223_v52  ;;  %v15490_v7 = vpop.f32.mrb[76].mxu0 }
 0x648   : > { %v6905_v60 = vadd.f32 %v19692_v40, %v15490_v7  ;;  %v6896_v61 = vpop.f32.mrb[77].mxu0 }
 0x649   : > { %v6897_v18 = vadd.f32 %v19692_v40, %v6896_v61  ;;  %v15491_v42 = vpop.f32.mrb[78].mxu0 }
 0x64a   : > { %v6908_v27 = vadd.f32 %v19692_v40, %v15491_v42  ;;  %v6899_v59 = vpop.f32.mrb[79].mxu0  ;;  %v9229_v28 = vmax.f32 %v6905_v60, 0.0 }
 0x64b   : > { %v6900_v36 = vadd.f32 %v19692_v40, %v6899_v59  ;;  %v9227_v63 = vmax.f32 %v6897_v18, 0.0 }
 0x64c   : > { %v9230_v3 = vmax.f32 %v6908_v27, 0.0  ;;  %15597 = vmatmul.mubr.bf16.gmra.mrb[184].mxu0 %v16546_v9  ;;  %v14386_v50 = vpop.f32.mrb[108].mxu1 }
 0x64d   : > { %v9228_v45 = vmax.f32 %v6900_v36, 0.0  ;;  %v14387_v4 = vpop.f32.mrb[109].mxu1  ;;  %15600 = vmatprep.mubr.bf16.mxu0 %v16547_v17 }
 0x64e   : > { %v19840_v39 = vpack.c.bf16 %v9230_v3, %v9229_v28  ;;  %v14388_v34 = vadd.f32 %v14387_v4, %v14386_v50  ;;  %v14389_v0 = vpop.f32.mrb[110].mxu1 }
 0x64f   : > { %v19842_v16 = vpack.c.bf16 %v9228_v45, %v9227_v63  ;;  %v15494_v53 = vpop.f32.mrb[80].mxu0  ;;  %v14390_v26 = vpop.f32.mrb[111].mxu1  ;;  %v16550_v63 = vld [vmem:[%s17145_s25 + $0xb08] sm:$0xff]  }
 0x650   : > { %v19845_v1 = vadd.f32 %v14388_v34, %v19753_v6  ;;  %v6921_v22 = vadd.f32 %v19692_v40, %v15494_v53  ;;  %v14391_v12 = vadd.f32 %v14390_v26, %v14389_v0  ;;  %v6912_v41 = vpop.f32.mrb[81].mxu0  ;;  %v16551_v34 = vld [vmem:[%s17145_s25 + $0xb10] sm:$0xff]  }
 0x651   : > { %v6913_v55 = vadd.f32 %v19692_v40, %v6912_v41  ;;  %v15495_v8 = vpop.f32.mrb[82].mxu0 }
 0x652   : > { %v19852_v37 = vadd.f32 %v14391_v12, %v19760_v38  ;;  %v6924_v62 = vadd.f32 %v19692_v40, %v15495_v8  ;;  %v6915_v31 = vpop.f32.mrb[83].mxu0  ;;  %v9233_v54 = vmax.f32 %v6921_v22, 0.0 }
 0x653   : > { %v6916_v52 = vadd.f32 %v19692_v40, %v6915_v31  ;;  %v9231_v60 = vmax.f32 %v6913_v55, 0.0  ;;  %v16552_v31 = vld [vmem:[%s17145_s25 + $0xb18] sm:$0xff]  }
 0x654   : > { %v9234_v6 = vmax.f32 %v6924_v62, 0.0  ;;  %15601 = vmatmul.mubr.bf16.gmra.mrb[188].mxu0 %v16548_v48  ;;  %v14392_v7 = vpop.f32.mrb[112].mxu1 }
 0x655   : > { %v9232_v61 = vmax.f32 %v6916_v52, 0.0  ;;  %v14393_v9 = vpop.f32.mrb[113].mxu1  ;;  %15604 = vmatprep.mubr.bf16.mxu0 %v16549_v32 }
 0x656   : > { %v10088_v18 = vpack.c.bf16 %v9234_v6, %v9233_v54  ;;  %v14394_v42 = vadd.f32 %v14393_v9, %v14392_v7  ;;  %v14395_v17 = vpop.f32.mrb[114].mxu1  ;;  %v16553_v54 = vld [vmem:[%s17145_s25 + $0xb20] sm:$0xff]  }
 0x657   : > { %v10087_v38 = vpack.c.bf16 %v9232_v61, %v9231_v60  ;;  %v15498_v27 = vpop.f32.mrb[84].mxu0  ;;  %v14396_v59 = vpop.f32.mrb[115].mxu1 }
 0x658   : > { %v19857_v36 = vadd.f32 %v14394_v42, %v19765_v43  ;;  %v6937_v28 = vadd.f32 %v19692_v40, %v15498_v27  ;;  %v14397_v3 = vadd.f32 %v14396_v59, %v14395_v17  ;;  %v6928_v50 = vpop.f32.mrb[85].mxu0 }
 0x659   : > { %v6929_v45 = vadd.f32 %v19692_v40, %v6928_v50  ;;  %v15499_v4 = vpop.f32.mrb[86].mxu0  ;;  %14482 = vmatprep.subr.bf16.mxu1 %v10087_v38  ;;  %v16555_v50 = vld [vmem:[%s17145_s25 + $0xb30] sm:$0xff]  }
 0x65a   : > { %v19864_v0 = vadd.f32 %v14397_v3, %v19772_v14  ;;  %v6940_v53 = vadd.f32 %v19692_v40, %v15499_v4  ;;  %v6931_v26 = vpop.f32.mrb[87].mxu0  ;;  %14483 = vmatpush3.bf16.msra.mxu1 %v19806_v21  ;;  %v9237_v22 = vmax.f32 %v6937_v28, 0.0  ;;  %v16554_v28 = vld [vmem:[%s17145_s25 + $0xb28] sm:$0xff]  }
 0x65b   : > { %v6932_v43 = vadd.f32 %v19692_v40, %v6931_v26  ;;  %14484 = vmatprep.subr.bf16.mxu1 %v10088_v18  ;;  %v9235_v41 = vmax.f32 %v6929_v45, 0.0 }
 0x65c   : > { %v9238_v12 = vmax.f32 %v6940_v53, 0.0  ;;  %15605 = vmatmul.mubr.bf16.gmra.mrb[192].mxu0 %v16550_v63 }
 0x65d   : > { %v9236_v48 = vmax.f32 %v6932_v43, 0.0  ;;  %15608 = vmatprep.mubr.bf16.mxu0 %v16551_v34 }
 0x65e   : > { %v10090_v55 = vpack.c.bf16 %v9238_v12, %v9237_v22  ;;  %14485 = vmatpush3.bf16.msra.mxu1 %v19803_v58 }
 0x65f   : > { %v10089_v14 = vpack.c.bf16 %v9236_v48, %v9235_v41  ;;  %v15502_v8 = vpop.f32.mrb[88].mxu0 }
 0x660   : > { %v6953_v32 = vadd.f32 %v19692_v40, %v15502_v8  ;;  %v6944_v62 = vpop.f32.mrb[89].mxu0  ;;  %v16557_v8 = vld [vmem:[%s17145_s25 + $0xb40] sm:$0xff]  }
 0x661   : > { %v6945_v21 = vadd.f32 %v19692_v40, %v6944_v62  ;;  %v15503_v52 = vpop.f32.mrb[90].mxu0  ;;  %14486 = vmatprep.subr.bf16.mxu1 %v10089_v14 }
 0x662   : > { %v6956_v6 = vadd.f32 %v19692_v40, %v15503_v52  ;;  %v6947_v7 = vpop.f32.mrb[91].mxu0  ;;  %14487 = vmatpush3.bf16.msra.mxu1 %v19822_v24  ;;  %v9241_v58 = vmax.f32 %v6953_v32, 0.0 }
 0x663   : > { %v6948_v60 = vadd.f32 %v19692_v40, %v6947_v7  ;;  %14488 = vmatprep.subr.bf16.mxu1 %v10090_v55  ;;  %v9239_v9 = vmax.f32 %v6945_v21, 0.0  ;;  %v16556_v55 = vld [vmem:[%s17145_s25 + $0xb38] sm:$0xff]   ;;  %v9777_v21 = vld [vmem:[#allocation5 + $0x390] sm:$0xff] }
 0x664   : > { %v9242_v61 = vmax.f32 %v6956_v6, 0.0  ;;  %15609 = vmatmul.mubr.bf16.gmra.mrb[196].mxu0 %v16552_v31 }
 0x665   : > { %v9240_v18 = vmax.f32 %v6948_v60, 0.0  ;;  %15612 = vmatprep.mubr.bf16.mxu0 %v16553_v54  ;;  %v13349_v60 = vcombine.low %v19814_v25, %v19816_v30 }
 0x666   : > { %v10092_v42 = vpack.c.bf16 %v9242_v61, %v9241_v58  ;;  %14489 = vmatpush3.bf16.msra.mxu1 %v19818_v19 }
 0x667   : > { %v10091_v17 = vpack.c.bf16 %v9240_v18, %v9239_v9  ;;  %v15506_v38 = vpop.f32.mrb[92].mxu0 }
 0x668   : > { %v6969_v27 = vadd.f32 %v19692_v40, %v15506_v38  ;;  %v6960_v59 = vpop.f32.mrb[93].mxu0 }
 0x669   : > { %v6961_v24 = vadd.f32 %v19692_v40, %v6960_v59  ;;  %v15507_v3 = vpop.f32.mrb[94].mxu0  ;;  %14490 = vmatprep.subr.bf16.mxu1 %v10091_v17  ;;  %v16558_v17 = vld [vmem:[%s17145_s25 + $0xb48] sm:$0xff]   ;;  %v16559_v59 = vld [vmem:[%s17145_s25 + $0xb50] sm:$0xff]  }
 0x66a   : > { %v6972_v63 = vadd.f32 %v19692_v40, %v15507_v3  ;;  %v6963_v45 = vpop.f32.mrb[95].mxu0  ;;  %14491 = vmatpush3.bf16.msra.mxu1 %v19832_v5  ;;  %v9245_v19 = vmax.f32 %v6969_v27, 0.0 }
 0x66b   : > { %v6964_v4 = vadd.f32 %v19692_v40, %v6963_v45  ;;  %14492 = vmatprep.subr.bf16.mxu1 %v10092_v42  ;;  %v9243_v53 = vmax.f32 %v6961_v24, 0.0  ;;  %v19908_v24 = vld [vmem:[#allocation5 + $0x198] sm:$0xff] }
 0x66c   : > { %v9246_v34 = vmax.f32 %v6972_v63, 0.0  ;;  %15613 = vmatmul.mubr.bf16.gmra.mrb[200].mxu0 %v16554_v28 }
 0x66d   : > { %v9244_v26 = vmax.f32 %v6964_v4, 0.0  ;;  %15616 = vmatprep.mubr.bf16.mxu0 %v16555_v50 }
 0x66e   : > { %v10094_v43 = vpack.c.bf16 %v9246_v34, %v9245_v19  ;;  %14493 = vmatpush3.bf16.msra.mxu1 %v19830_v44  ;;  %v9745_v44 = vld [vmem:[#allocation5 + $0x290] sm:$0xff] }
 0x66f   : > { %v10093_v22 = vpack.c.bf16 %v9244_v26, %v9243_v53  ;;  %v15510_v12 = vpop.f32.mrb[96].mxu0  ;;  %v13413_v4 = vcombine.low %v9745_v44, %v9777_v21 }
 0x670   : > { %v6985_v41 = vadd.f32 %v19692_v40, %v15510_v12  ;;  %v6976_v48 = vpop.f32.mrb[97].mxu0  ;;  %v16560_v12 = vld [vmem:[%s17145_s25 + $0xb58] sm:$0xff]  }
 0x671   : > { %v6977_v5 = vadd.f32 %v19692_v40, %v6976_v48  ;;  %v15511_v14 = vpop.f32.mrb[98].mxu0  ;;  %14494 = vmatprep.subr.bf16.mxu1 %v10093_v22 }
 0x672   : > { %v6988_v32 = vadd.f32 %v19692_v40, %v15511_v14  ;;  %v6979_v62 = vpop.f32.mrb[99].mxu0  ;;  %14495 = vmatpush3.bf16.msra.mxu1 %v19842_v16  ;;  %v9249_v52 = vmax.f32 %v6985_v41, 0.0  ;;  %v13414_v16 = vcombine.high %v9745_v44, %v9777_v21 }
 0x673   : > { %v6980_v31 = vadd.f32 %v19692_v40, %v6979_v62  ;;  %14496 = vmatprep.subr.bf16.mxu1 %v10094_v43  ;;  %v9247_v6 = vmax.f32 %v6977_v5, 0.0 }
 0x674   : > { %v9250_v54 = vmax.f32 %v6988_v32, 0.0  ;;  %15617 = vmatmul.mubr.bf16.gmra.mrb[204].mxu0 %v16556_v55  ;;  %v16561_v55 = vld [vmem:[%s17145_s25 + $0xb60] sm:$0xff]  }
 0x675   : > { %v9248_v7 = vmax.f32 %v6980_v31, 0.0  ;;  %15620 = vmatprep.mubr.bf16.mxu0 %v16557_v8 }
 0x676   : > { %v19895_v58 = vpack.c.bf16 %v9250_v54, %v9249_v52  ;;  %14497 = vmatpush3.bf16.msra.mxu1 %v19840_v39  ;;  %v19906_v39 = vld [vmem:[#allocation5 + $0x98] sm:$0xff] }
 0x677   : > { %v19898_v61 = vpack.c.bf16 %v9248_v7, %v9247_v6  ;;  %v15514_v9 = vpop.f32.mrb[100].mxu0  ;;  %v13352_v34 = vcombine.high %v19906_v39, %v19908_v24 }
 0x678   : > { %v7001_v18 = vadd.f32 %v19692_v40, %v15514_v9  ;;  %v6992_v42 = vpop.f32.mrb[101].mxu0 }
 0x679   : > { %v6993_v38 = vadd.f32 %v19692_v40, %v6992_v42  ;;  %v15515_v27 = vpop.f32.mrb[102].mxu0  ;;  %11858 = vmatmul.mubr.bf16.vlgmr.msra.gmra.mrb[140].mxu1 %v13349_v60  ;;  %v16562_v60 = vld [vmem:[%s17145_s25 + $0xb68] sm:$0xff]  }
 0x67a   : > { %v7004_v25 = vadd.f32 %v19692_v40, %v15515_v27  ;;  %v6995_v30 = vpop.f32.mrb[103].mxu0  ;;  %11865 = vmatprep.mubr.bf16.mxu1 %v13414_v16  ;;  %v9253_v3 = vmax.f32 %v7001_v18, 0.0  ;;  %v16563_v18 = vld [vmem:[%s17145_s25 + $0xb70] sm:$0xff]  }
 0x67b   : > { %v6996_v28 = vadd.f32 %v19692_v40, %v6995_v30  ;;  %v9251_v63 = vmax.f32 %v6993_v38, 0.0 }
 0x67c   : > { %v9254_v50 = vmax.f32 %v7004_v25, 0.0  ;;  %15621 = vmatmul.mubr.bf16.gmra.mrb[208].mxu0 %v16558_v17 }
 0x67d   : > { %v9252_v45 = vmax.f32 %v6996_v28, 0.0  ;;  %15624 = vmatprep.mubr.bf16.mxu0 %v16559_v59 }
 0x67e   : > { %v19910_v19 = vpack.c.bf16 %v9254_v50, %v9253_v3 }
 0x67f   : > { %v19914_v53 = vpack.c.bf16 %v9252_v45, %v9251_v63  ;;  %v15518_v26 = vpop.f32.mrb[104].mxu0 }
 0x680   : > { %v7017_v43 = vadd.f32 %v19692_v40, %v15518_v26  ;;  %v7008_v22 = vpop.f32.mrb[105].mxu0 }
 0x681   : > { %v7009_v41 = vadd.f32 %v19692_v40, %v7008_v22  ;;  %v15519_v48 = vpop.f32.mrb[106].mxu0  ;;  %11866 = vmatmul.mubr.bf16.gmra.mrb[144].mxu1 %v13413_v4 }
 0x682   : > { %v7020_v5 = vadd.f32 %v19692_v40, %v15519_v48  ;;  %v7011_v14 = vpop.f32.mrb[107].mxu0  ;;  %11906 = vmatprep.mubr.bf16.mxu1 %v13352_v34  ;;  %v9257_v32 = vmax.f32 %v7017_v43, 0.0  ;;  %v16564_v48 = vld [vmem:[%s17145_s25 + $0xb78] sm:$0xff]  }
 0x683   : > { %v7012_v8 = vadd.f32 %v19692_v40, %v7011_v14  ;;  %v9255_v31 = vmax.f32 %v7009_v41, 0.0  ;;  %v16565_v14 = vld [vmem:[%s17145_s25 + $0xb80] sm:$0xff]  }
 0x684   : > { %v9258_v62 = vmax.f32 %v7020_v5, 0.0  ;;  %15625 = vmatmul.mubr.bf16.gmra.mrb[212].mxu0 %v16560_v12 }
 0x685   : > { %v9256_v44 = vmax.f32 %v7012_v8, 0.0  ;;  %15628 = vmatprep.mubr.bf16.mxu0 %v16561_v55 }
 0x686   : > { %v19922_v21 = vpack.c.bf16 %v9258_v62, %v9257_v32 }
 0x687   : > { %v19924_v52 = vpack.c.bf16 %v9256_v44, %v9255_v31  ;;  %v15522_v54 = vpop.f32.mrb[108].mxu0 }
 0x688   : > { %v7033_v6 = vadd.f32 %v19692_v40, %v15522_v54  ;;  %v7024_v7 = vpop.f32.mrb[109].mxu0 }
 0x689   : > { %v7025_v16 = vadd.f32 %v19692_v40, %v7024_v7  ;;  %v15523_v9 = vpop.f32.mrb[110].mxu0 }
 0x68a   : > { %v7036_v42 = vadd.f32 %v19692_v40, %v15523_v9  ;;  %v7027_v17 = vpop.f32.mrb[111].mxu0  ;;  %v9261_v27 = vmax.f32 %v7033_v6, 0.0 }
 0x68b   : > { %v7028_v38 = vadd.f32 %v19692_v40, %v7027_v17  ;;  %v9259_v30 = vmax.f32 %v7025_v16, 0.0 }
 0x68c   : > { %v9262_v59 = vmax.f32 %v7036_v42, 0.0  ;;  %15629 = vmatmul.mubr.bf16.gmra.mrb[216].mxu0 %v16562_v60  ;;  %v14414_v25 = vpop.f32.mrb[116].mxu1 }
 0x68d   : > { %v9260_v28 = vmax.f32 %v7028_v38, 0.0  ;;  %v14415_v3 = vpop.f32.mrb[117].mxu1  ;;  %15632 = vmatprep.mubr.bf16.mxu0 %v16563_v18 }
 0x68e   : > { %v19932_v50 = vpack.c.bf16 %v9262_v59, %v9261_v27  ;;  %v14416_v63 = vadd.f32 %v14415_v3, %v14414_v25  ;;  %v14417_v45 = vpop.f32.mrb[118].mxu1 }
 0x68f   : > { %v19934_v4 = vpack.c.bf16 %v9260_v28, %v9259_v30  ;;  %v15526_v34 = vpop.f32.mrb[112].mxu0  ;;  %v14418_v26 = vpop.f32.mrb[119].mxu1  ;;  %v16566_v30 = vld [vmem:[%s17145_s25 + $0xb88] sm:$0xff]  }
 0x690   : > { %v19937_v43 = vadd.f32 %v14416_v63, %v19845_v1  ;;  %v7049_v22 = vadd.f32 %v19692_v40, %v15526_v34  ;;  %v14419_v12 = vadd.f32 %v14418_v26, %v14417_v45  ;;  %v7040_v41 = vpop.f32.mrb[113].mxu0  ;;  %v16567_v63 = vld [vmem:[%s17145_s25 + $0xb90] sm:$0xff]  }
 0x691   : > { %v7041_v55 = vadd.f32 %v19692_v40, %v7040_v41  ;;  %v15527_v5 = vpop.f32.mrb[114].mxu0 }
 0x692   : > { %v19944_v8 = vadd.f32 %v14419_v12, %v19852_v37  ;;  %v7052_v32 = vadd.f32 %v19692_v40, %v15527_v5  ;;  %v7043_v62 = vpop.f32.mrb[115].mxu0  ;;  %v9265_v44 = vmax.f32 %v7049_v22, 0.0 }
 0x693   : > { %v7044_v31 = vadd.f32 %v19692_v40, %v7043_v62  ;;  %v9263_v6 = vmax.f32 %v7041_v55, 0.0  ;;  %v19951_v40 = vld [vmem:[#allocation8] ss:$0 sm:$0xff]  ;;  %v16568_v62 = vld [vmem:[%s17145_s25 + $0xb98] sm:$0xff]  }
 0x694   : > { %v9266_v1 = vmax.f32 %v7052_v32, 0.0  ;;  %15633 = vmatmul.mubr.bf16.gmra.mrb[220].mxu0 %v16564_v48  ;;  %v14420_v54 = vpop.f32.mrb[120].mxu1 }
 0x695   : > { %v9264_v7 = vmax.f32 %v7044_v31, 0.0  ;;  %v14421_v60 = vpop.f32.mrb[121].mxu1  ;;  %15636 = vmatprep.mubr.bf16.mxu0 %v16565_v14 }
 0x696   : > { %v10104_v16 = vpack.c.bf16 %v9266_v1, %v9265_v44  ;;  %v14422_v9 = vadd.f32 %v14421_v60, %v14420_v54  ;;  %v14423_v18 = vpop.f32.mrb[122].mxu1  ;;  %v16569_v44 = vld [vmem:[%s17145_s25 + $0xba0] sm:$0xff]  }
 0x697   : > { %v10103_v37 = vpack.c.bf16 %v9264_v7, %v9263_v6  ;;  %v15530_v42 = vpop.f32.mrb[116].mxu0  ;;  %v14424_v17 = vpop.f32.mrb[123].mxu1 }
 0x698   : > { %v19949_v38 = vadd.f32 %v14422_v9, %v19857_v36  ;;  %v7065_v27 = vadd.f32 %v19951_v40, %v15530_v42  ;;  %v14425_v59 = vadd.f32 %v14424_v17, %v14423_v18  ;;  %v7056_v25 = vpop.f32.mrb[117].mxu0 }
 0x699   : > { %v7057_v28 = vadd.f32 %v19951_v40, %v7056_v25  ;;  %v15531_v3 = vpop.f32.mrb[118].mxu0  ;;  %14510 = vmatprep.subr.bf16.mxu1 %v10103_v37  ;;  %v16571_v25 = vld [vmem:[%s17145_s25 + $0xbb0] sm:$0xff]  }
 0x69a   : > { %v19958_v45 = vadd.f32 %v14425_v59, %v19864_v0  ;;  %v7068_v34 = vadd.f32 %v19951_v40, %v15531_v3  ;;  %v7059_v26 = vpop.f32.mrb[119].mxu0  ;;  %14511 = vmatpush3.bf16.msra.mxu1 %v19898_v61  ;;  %v9269_v22 = vmax.f32 %v7065_v27, 0.0  ;;  %v16570_v27 = vld [vmem:[%s17145_s25 + $0xba8] sm:$0xff]  }
 0x69b   : > { %v7060_v36 = vadd.f32 %v19951_v40, %v7059_v26  ;;  %14512 = vmatprep.subr.bf16.mxu1 %v10104_v16  ;;  %v9267_v41 = vmax.f32 %v7057_v28, 0.0 }
 0x69c   : > { %v9270_v12 = vmax.f32 %v7068_v34, 0.0  ;;  %15637 = vmatmul.mubr.bf16.gmra.mrb[224].mxu0 %v16566_v30 }
 0x69d   : > { %v9268_v48 = vmax.f32 %v7060_v36, 0.0  ;;  %15640 = vmatprep.mubr.bf16.mxu0 %v16567_v63 }
 0x69e   : > { %v10106_v55 = vpack.c.bf16 %v9270_v12, %v9269_v22  ;;  %14513 = vmatpush3.bf16.msra.mxu1 %v19895_v58 }
 0x69f   : > { %v10105_v0 = vpack.c.bf16 %v9268_v48, %v9267_v41  ;;  %v15534_v5 = vpop.f32.mrb[120].mxu0 }
 0x6a0   : > { %v7081_v14 = vadd.f32 %v19951_v40, %v15534_v5  ;;  %v7072_v32 = vpop.f32.mrb[121].mxu0  ;;  %v16573_v5 = vld [vmem:[%s17145_s25 + $0xbc0] sm:$0xff]  }
 0x6a1   : > { %v7073_v61 = vadd.f32 %v19951_v40, %v7072_v32  ;;  %v15535_v31 = vpop.f32.mrb[122].mxu0  ;;  %14514 = vmatprep.subr.bf16.mxu1 %v10105_v0 }
 0x6a2   : > { %v7084_v1 = vadd.f32 %v19951_v40, %v15535_v31  ;;  %v7075_v54 = vpop.f32.mrb[123].mxu0  ;;  %14515 = vmatpush3.bf16.msra.mxu1 %v19914_v53  ;;  %v9273_v58 = vmax.f32 %v7081_v14, 0.0 }
 0x6a3   : > { %v7076_v6 = vadd.f32 %v19951_v40, %v7075_v54  ;;  %14516 = vmatprep.subr.bf16.mxu1 %v10106_v55  ;;  %v9271_v60 = vmax.f32 %v7073_v61, 0.0  ;;  %v16572_v55 = vld [vmem:[%s17145_s25 + $0xbb8] sm:$0xff]  }
 0x6a4   : > { %v9274_v7 = vmax.f32 %v7084_v1, 0.0  ;;  %15641 = vmatmul.mubr.bf16.gmra.mrb[228].mxu0 %v16568_v62  ;;  %v9778_v61 = vld [vmem:[#allocation5 + $0x398] sm:$0xff] }
 0x6a5   : > { %v9272_v16 = vmax.f32 %v7076_v6, 0.0  ;;  %15644 = vmatprep.mubr.bf16.mxu0 %v16569_v44  ;;  %v13351_v6 = vcombine.low %v19906_v39, %v19908_v24 }
 0x6a6   : > { %v10108_v9 = vpack.c.bf16 %v9274_v7, %v9273_v58  ;;  %14517 = vmatpush3.bf16.msra.mxu1 %v19910_v19 }
 0x6a7   : > { %v10107_v18 = vpack.c.bf16 %v9272_v16, %v9271_v60  ;;  %v15538_v37 = vpop.f32.mrb[124].mxu0 }
 0x6a8   : > { %v7097_v42 = vadd.f32 %v19951_v40, %v15538_v37  ;;  %v7088_v17 = vpop.f32.mrb[125].mxu0 }
 0x6a9   : > { %v7089_v53 = vadd.f32 %v19951_v40, %v7088_v17  ;;  %v15539_v59 = vpop.f32.mrb[126].mxu0  ;;  %14518 = vmatprep.subr.bf16.mxu1 %v10107_v18  ;;  %v16574_v18 = vld [vmem:[%s17145_s25 + $0xbc8] sm:$0xff]   ;;  %v16575_v17 = vld [vmem:[%s17145_s25 + $0xbd0] sm:$0xff]  }
 0x6aa   : > { %v7100_v30 = vadd.f32 %v19951_v40, %v15539_v59  ;;  %v7091_v28 = vpop.f32.mrb[127].mxu0  ;;  %14519 = vmatpush3.bf16.msra.mxu1 %v19924_v52  ;;  %v9277_v19 = vmax.f32 %v7097_v42, 0.0 }
 0x6ab   : > { %v7092_v3 = vadd.f32 %v19951_v40, %v7091_v28  ;;  %14520 = vmatprep.subr.bf16.mxu1 %v10108_v9  ;;  %v9275_v34 = vmax.f32 %v7089_v53, 0.0  ;;  %v20002_v53 = vld [vmem:[#allocation5 + $0x1a0] sm:$0xff] }
 0x6ac   : > { %v9278_v63 = vmax.f32 %v7100_v30, 0.0  ;;  %15645 = vmatmul.mubr.bf16.gmra.mrb[232].mxu0 %v16570_v27 }
 0x6ad   : > { %v9276_v26 = vmax.f32 %v7092_v3, 0.0  ;;  %15648 = vmatprep.mubr.bf16.mxu0 %v16571_v25 }
 0x6ae   : > { %v10110_v36 = vpack.c.bf16 %v9278_v63, %v9277_v19  ;;  %14521 = vmatpush3.bf16.msra.mxu1 %v19922_v21  ;;  %v9746_v21 = vld [vmem:[#allocation5 + $0x298] sm:$0xff] }
 0x6af   : > { %v10109_v22 = vpack.c.bf16 %v9276_v26, %v9275_v34  ;;  %v15542_v12 = vpop.f32.mrb[128].mxu0  ;;  %v13415_v3 = vcombine.low %v9746_v21, %v9778_v61 }
 0x6b0   : > { %v7113_v41 = vadd.f32 %v19951_v40, %v15542_v12  ;;  %v7104_v48 = vpop.f32.mrb[129].mxu0  ;;  %v16576_v12 = vld [vmem:[%s17145_s25 + $0xbd8] sm:$0xff]  }
 0x6b1   : > { %v7105_v52 = vadd.f32 %v19951_v40, %v7104_v48  ;;  %v15543_v0 = vpop.f32.mrb[130].mxu0  ;;  %14522 = vmatprep.subr.bf16.mxu1 %v10109_v22 }
 0x6b2   : > { %v7116_v14 = vadd.f32 %v19951_v40, %v15543_v0  ;;  %v7107_v32 = vpop.f32.mrb[131].mxu0  ;;  %14523 = vmatpush3.bf16.msra.mxu1 %v19934_v4  ;;  %v9281_v31 = vmax.f32 %v7113_v41, 0.0  ;;  %v13416_v4 = vcombine.high %v9746_v21, %v9778_v61 }
 0x6b3   : > { %v7108_v62 = vadd.f32 %v19951_v40, %v7107_v32  ;;  %14524 = vmatprep.subr.bf16.mxu1 %v10110_v36  ;;  %v9279_v1 = vmax.f32 %v7105_v52, 0.0 }
 0x6b4   : > { %v9282_v44 = vmax.f32 %v7116_v14, 0.0  ;;  %15649 = vmatmul.mubr.bf16.gmra.mrb[236].mxu0 %v16572_v55  ;;  %v16577_v55 = vld [vmem:[%s17145_s25 + $0xbe0] sm:$0xff]  }
 0x6b5   : > { %v9280_v54 = vmax.f32 %v7108_v62, 0.0  ;;  %15652 = vmatprep.mubr.bf16.mxu0 %v16573_v5 }
 0x6b6   : > { %v19989_v58 = vpack.c.bf16 %v9282_v44, %v9281_v31  ;;  %14525 = vmatpush3.bf16.msra.mxu1 %v19932_v50  ;;  %v20000_v50 = vld [vmem:[#allocation5 + $0xa0] sm:$0xff] }
 0x6b7   : > { %v19992_v7 = vpack.c.bf16 %v9280_v54, %v9279_v1  ;;  %v15546_v60 = vpop.f32.mrb[132].mxu0  ;;  %v13354_v63 = vcombine.high %v20000_v50, %v20002_v53 }
 0x6b8   : > { %v7129_v16 = vadd.f32 %v19951_v40, %v15546_v60  ;;  %v7120_v9 = vpop.f32.mrb[133].mxu0 }
 0x6b9   : > { %v7121_v37 = vadd.f32 %v19951_v40, %v7120_v9  ;;  %v15547_v42 = vpop.f32.mrb[134].mxu0  ;;  %11907 = vmatmul.mubr.bf16.vlgmr.msra.gmra.mrb[148].mxu1 %v13351_v6  ;;  %v16578_v6 = vld [vmem:[%s17145_s25 + $0xbe8] sm:$0xff]  }
 0x6ba   : > { %v7132_v39 = vadd.f32 %v19951_v40, %v15547_v42  ;;  %v7123_v24 = vpop.f32.mrb[135].mxu0  ;;  %11914 = vmatprep.mubr.bf16.mxu1 %v13416_v4  ;;  %v9285_v59 = vmax.f32 %v7129_v16, 0.0  ;;  %v16579_v16 = vld [vmem:[%s17145_s25 + $0xbf0] sm:$0xff]  }
 0x6bb   : > { %v7124_v27 = vadd.f32 %v19951_v40, %v7123_v24  ;;  %v9283_v30 = vmax.f32 %v7121_v37, 0.0 }
 0x6bc   : > { %v9286_v25 = vmax.f32 %v7132_v39, 0.0  ;;  %15653 = vmatmul.mubr.bf16.gmra.mrb[240].mxu0 %v16574_v18 }
 0x6bd   : > { %v9284_v28 = vmax.f32 %v7124_v27, 0.0  ;;  %15656 = vmatprep.mubr.bf16.mxu0 %v16575_v17 }
 0x6be   : > { %v20004_v19 = vpack.c.bf16 %v9286_v25, %v9285_v59 }
 0x6bf   : > { %v20008_v34 = vpack.c.bf16 %v9284_v28, %v9283_v30  ;;  %v15550_v26 = vpop.f32.mrb[136].mxu0 }
 0x6c0   : > { %v7145_v36 = vadd.f32 %v19951_v40, %v15550_v26  ;;  %v7136_v22 = vpop.f32.mrb[137].mxu0 }
 0x6c1   : > { %v7137_v41 = vadd.f32 %v19951_v40, %v7136_v22  ;;  %v15551_v48 = vpop.f32.mrb[138].mxu0  ;;  %11915 = vmatmul.mubr.bf16.gmra.mrb[152].mxu1 %v13415_v3 }
 0x6c2   : > { %v7148_v52 = vadd.f32 %v19951_v40, %v15551_v48  ;;  %v7139_v0 = vpop.f32.mrb[139].mxu0  ;;  %11955 = vmatprep.mubr.bf16.mxu1 %v13354_v63  ;;  %v9289_v14 = vmax.f32 %v7145_v36, 0.0  ;;  %v16580_v48 = vld [vmem:[%s17145_s25 + $0xbf8] sm:$0xff]  }
 0x6c3   : > { %v7140_v5 = vadd.f32 %v19951_v40, %v7139_v0  ;;  %v9287_v62 = vmax.f32 %v7137_v41, 0.0  ;;  %v16581_v0 = vld [vmem:[%s17145_s25 + $0xc00] sm:$0xff]  }
 0x6c4   : > { %v9290_v32 = vmax.f32 %v7148_v52, 0.0  ;;  %15657 = vmatmul.mubr.bf16.gmra.mrb[244].mxu0 %v16576_v12 }
 0x6c5   : > { %v9288_v21 = vmax.f32 %v7140_v5, 0.0  ;;  %15660 = vmatprep.mubr.bf16.mxu0 %v16577_v55 }
 0x6c6   : > { %v20016_v61 = vpack.c.bf16 %v9290_v32, %v9289_v14 }
 0x6c7   : > { %v20018_v31 = vpack.c.bf16 %v9288_v21, %v9287_v62  ;;  %v15554_v44 = vpop.f32.mrb[140].mxu0 }
 0x6c8   : > { %v7161_v1 = vadd.f32 %v19951_v40, %v15554_v44  ;;  %v7152_v54 = vpop.f32.mrb[141].mxu0 }
 0x6c9   : > { %v7153_v4 = vadd.f32 %v19951_v40, %v7152_v54  ;;  %v15555_v60 = vpop.f32.mrb[142].mxu0 }
 0x6ca   : > { %v7164_v9 = vadd.f32 %v19951_v40, %v15555_v60  ;;  %v7155_v18 = vpop.f32.mrb[143].mxu0  ;;  %v9293_v42 = vmax.f32 %v7161_v1, 0.0 }
 0x6cb   : > { %v7156_v37 = vadd.f32 %v19951_v40, %v7155_v18  ;;  %v9291_v24 = vmax.f32 %v7153_v4, 0.0 }
 0x6cc   : > { %v9294_v17 = vmax.f32 %v7164_v9, 0.0  ;;  %15661 = vmatmul.mubr.bf16.gmra.mrb[248].mxu0 %v16578_v6  ;;  %v14442_v39 = vpop.f32.mrb[124].mxu1 }
 0x6cd   : > { %v9292_v27 = vmax.f32 %v7156_v37, 0.0  ;;  %v14443_v59 = vpop.f32.mrb[125].mxu1  ;;  %15664 = vmatprep.mubr.bf16.mxu0 %v16579_v16 }
 0x6ce   : > { %v20026_v25 = vpack.c.bf16 %v9294_v17, %v9293_v42  ;;  %v14444_v30 = vadd.f32 %v14443_v59, %v14442_v39  ;;  %v14445_v28 = vpop.f32.mrb[126].mxu1 }
 0x6cf   : > { %v20028_v3 = vpack.c.bf16 %v9292_v27, %v9291_v24  ;;  %v15558_v63 = vpop.f32.mrb[144].mxu0  ;;  %v14446_v26 = vpop.f32.mrb[127].mxu1  ;;  %v16582_v24 = vld [vmem:[%s17145_s25 + $0xc08] sm:$0xff]  }
 0x6d0   : > { %v20031_v36 = vadd.f32 %v14444_v30, %v19937_v43  ;;  %v7177_v22 = vadd.f32 %v19951_v40, %v15558_v63  ;;  %v14447_v12 = vadd.f32 %v14446_v26, %v14445_v28  ;;  %v7168_v41 = vpop.f32.mrb[145].mxu0 }
 0x6d1   : > { %v7169_v55 = vadd.f32 %v19951_v40, %v7168_v41  ;;  %v15559_v52 = vpop.f32.mrb[146].mxu0 }
 0x6d2   : > { %v20038_v5 = vadd.f32 %v14447_v12, %v19944_v8  ;;  %v7180_v14 = vadd.f32 %v19951_v40, %v15559_v52  ;;  %v7171_v32 = vpop.f32.mrb[147].mxu0  ;;  %v9297_v21 = vmax.f32 %v7177_v22, 0.0 }
 0x6d3   : > { %v7172_v62 = vadd.f32 %v19951_v40, %v7171_v32  ;;  %v9295_v1 = vmax.f32 %v7169_v55, 0.0 }
 0x6d4   : > { %v9298_v43 = vmax.f32 %v7180_v14, 0.0  ;;  %15665 = vmatmul.mubr.bf16.gmra.mrb[252].mxu0 %v16580_v48  ;;  %v14448_v44 = vpop.f32.mrb[128].mxu1 }
 0x6d5   : > { %v9296_v54 = vmax.f32 %v7172_v62, 0.0  ;;  %v14449_v6 = vpop.f32.mrb[129].mxu1  ;;  %15668 = vmatprep.mubr.bf16.mxu0 %v16581_v0 }
 0x6d6   : > { %v10120_v4 = vpack.c.bf16 %v9298_v43, %v9297_v21  ;;  %v14450_v60 = vadd.f32 %v14449_v6, %v14448_v44  ;;  %v14451_v16 = vpop.f32.mrb[130].mxu1 }
 0x6d7   : > { %v10119_v9 = vpack.c.bf16 %v9296_v54, %v9295_v1  ;;  %v15562_v8 = vpop.f32.mrb[148].mxu0  ;;  %v14452_v18 = vpop.f32.mrb[131].mxu1 }
 0x6d8   : > { %v20043_v37 = vadd.f32 %v14450_v60, %v19949_v38  ;;  %v7193_v42 = vadd.f32 %v19951_v40, %v15562_v8  ;;  %v14453_v17 = vadd.f32 %v14452_v18, %v14451_v16  ;;  %v7184_v39 = vpop.f32.mrb[149].mxu0 }
 0x6d9   : > { %v7185_v27 = vadd.f32 %v19951_v40, %v7184_v39  ;;  %v15563_v59 = vpop.f32.mrb[150].mxu0  ;;  %14538 = vmatprep.subr.bf16.mxu1 %v10119_v9 }
 0x6da   : > { %v20049_v30 = vadd.f32 %v14453_v17, %v19958_v45  ;;  %v7196_v28 = vadd.f32 %v19951_v40, %v15563_v59  ;;  %v7187_v63 = vpop.f32.mrb[151].mxu0  ;;  %14539 = vmatpush3.bf16.msra.mxu1 %v19992_v7  ;;  %v9301_v26 = vmax.f32 %v7193_v42, 0.0 }
 0x6db   : > { %v7188_v38 = vadd.f32 %v19951_v40, %v7187_v63  ;;  %14540 = vmatprep.subr.bf16.mxu1 %v10120_v4  ;;  %v9299_v12 = vmax.f32 %v7185_v27, 0.0 }
 0x6dc   : > { %v9302_v22 = vmax.f32 %v7196_v28, 0.0  ;;  %15669 = vmatmul.mubr.bf16.gmra.mrb[0].mxu0 %v16582_v24 }
 0x6dd   : > { %v9300_v41 = vmax.f32 %v7188_v38, 0.0 }
 0x6de   : > { %v10122_v48 = vpack.c.bf16 %v9302_v22, %v9301_v26  ;;  %14541 = vmatpush3.bf16.msra.mxu1 %v19989_v58 }
 0x6df   : > { %v10121_v55 = vpack.c.bf16 %v9300_v41, %v9299_v12  ;;  %v15566_v52 = vpop.f32.mrb[152].mxu0 }
 0x6e0   : > { %v7209_v45 = vadd.f32 %v19951_v40, %v15566_v52  ;;  %v7200_v0 = vpop.f32.mrb[153].mxu0 }
 0x6e1   : > { %v7201_v14 = vadd.f32 %v19951_v40, %v7200_v0  ;;  %v15567_v32 = vpop.f32.mrb[154].mxu0  ;;  %14542 = vmatprep.subr.bf16.mxu1 %v10121_v55  ;;  %v9779_v55 = vld [vmem:[#allocation5 + $0x3a0] sm:$0xff] }
 0x6e2   : > { %v7212_v7 = vadd.f32 %v19951_v40, %v15567_v32  ;;  %v7203_v62 = vpop.f32.mrb[155].mxu0  ;;  %14543 = vmatpush3.bf16.msra.mxu1 %v20008_v34  ;;  %v9305_v43 = vmax.f32 %v7209_v45, 0.0 }
 0x6e3   : > { %v7204_v21 = vadd.f32 %v19951_v40, %v7203_v62  ;;  %14544 = vmatprep.subr.bf16.mxu1 %v10122_v48  ;;  %v9303_v58 = vmax.f32 %v7201_v14, 0.0  ;;  %v9747_v48 = vld [vmem:[#allocation5 + $0x2a0] sm:$0xff]  ;;  %v13353_v14 = vcombine.low %v20000_v50, %v20002_v53  ;;  %v20083_v53 = vld [vmem:[#allocation5 + $0xa8] sm:$0xff] }
 0x6e4   : > { %v9306_v44 = vmax.f32 %v7212_v7, 0.0  ;;  %v13418_v7 = vcombine.high %v9747_v48, %v9779_v55 }
 0x6e5   : > { %v9304_v1 = vmax.f32 %v7204_v21, 0.0 }
 0x6e6   : > { %v10124_v54 = vpack.c.bf16 %v9306_v44, %v9305_v43  ;;  %14545 = vmatpush3.bf16.msra.mxu1 %v20004_v19 }
 0x6e7   : > { %v10123_v6 = vpack.c.bf16 %v9304_v1, %v9303_v58  ;;  %v15570_v4 = vpop.f32.mrb[156].mxu0 }
 0x6e8   : > { %v7225_v60 = vadd.f32 %v19951_v40, %v15570_v4  ;;  %v7216_v16 = vpop.f32.mrb[157].mxu0 }
 0x6e9   : > { %v7217_v9 = vadd.f32 %v19951_v40, %v7216_v16  ;;  %v15571_v8 = vpop.f32.mrb[158].mxu0  ;;  %14546 = vmatprep.subr.bf16.mxu1 %v10123_v6 }
 0x6ea   : > { %v7228_v34 = vadd.f32 %v19951_v40, %v15571_v8  ;;  %v7219_v18 = vpop.f32.mrb[159].mxu0  ;;  %14547 = vmatpush3.bf16.msra.mxu1 %v20018_v31  ;;  %v9309_v17 = vmax.f32 %v7225_v60, 0.0 }
 0x6eb   : > { %v7220_v42 = vadd.f32 %v19951_v40, %v7219_v18  ;;  %14548 = vmatprep.subr.bf16.mxu1 %v10124_v54  ;;  %v9307_v19 = vmax.f32 %v7217_v9, 0.0  ;;  %v13417_v9 = vcombine.low %v9747_v48, %v9779_v55 }
 0x6ec   : > { %v9310_v39 = vmax.f32 %v7228_v34, 0.0 }
 0x6ed   : > { %v9308_v24 = vmax.f32 %v7220_v42, 0.0 }
 0x6ee   : > { %v10126_v27 = vpack.c.bf16 %v9310_v39, %v9309_v17  ;;  %14549 = vmatpush3.bf16.msra.mxu1 %v20016_v61 }
 0x6ef   : > { %v10125_v59 = vpack.c.bf16 %v9308_v24, %v9307_v19  ;;  %v15574_v28 = vpop.f32.mrb[160].mxu0 }
 0x6f0   : > { %v7241_v63 = vadd.f32 %v19951_v40, %v15574_v28  ;;  %v7232_v38 = vpop.f32.mrb[161].mxu0 }
 0x6f1   : > { %v7233_v26 = vadd.f32 %v19951_v40, %v7232_v38  ;;  %v15575_v22 = vpop.f32.mrb[162].mxu0  ;;  %14550 = vmatprep.subr.bf16.mxu1 %v10125_v59 }
 0x6f2   : > { %v7244_v31 = vadd.f32 %v19951_v40, %v15575_v22  ;;  %v7235_v12 = vpop.f32.mrb[163].mxu0  ;;  %14551 = vmatpush3.bf16.msra.mxu1 %v20028_v3  ;;  %v9313_v61 = vmax.f32 %v7241_v63, 0.0 }
 0x6f3   : > { %v7236_v41 = vadd.f32 %v19951_v40, %v7235_v12  ;;  %14552 = vmatprep.subr.bf16.mxu1 %v10126_v27  ;;  %v9311_v45 = vmax.f32 %v7233_v26, 0.0 }
 0x6f4   : > { %v9314_v52 = vmax.f32 %v7244_v31, 0.0 }
 0x6f5   : > { %v9312_v0 = vmax.f32 %v7236_v41, 0.0 }
 0x6f6   : > { %v20074_v32 = vpack.c.bf16 %v9314_v52, %v9313_v61  ;;  %14553 = vmatpush3.bf16.msra.mxu1 %v20026_v25  ;;  %v20085_v25 = vld [vmem:[#allocation5 + $0x1a8] sm:$0xff] }
 0x6f7   : > { %v20077_v62 = vpack.c.bf16 %v9312_v0, %v9311_v45  ;;  %v15578_v3 = vpop.f32.mrb[164].mxu0  ;;  %v13356_v34 = vcombine.high %v20083_v53, %v20085_v25 }
 0x6f8   : > { %v7257_v21 = vadd.f32 %v19951_v40, %v15578_v3  ;;  %v7248_v43 = vpop.f32.mrb[165].mxu0 }
 0x6f9   : > { %v7249_v44 = vadd.f32 %v19951_v40, %v7248_v43  ;;  %v15579_v58 = vpop.f32.mrb[166].mxu0  ;;  %11956 = vmatmul.mubr.bf16.vlgmr.msra.gmra.mrb[156].mxu1 %v13353_v14 }
 0x6fa   : > { %v7260_v1 = vadd.f32 %v19951_v40, %v15579_v58  ;;  %v7251_v54 = vpop.f32.mrb[167].mxu0  ;;  %11963 = vmatprep.mubr.bf16.mxu1 %v13418_v7  ;;  %v9317_v6 = vmax.f32 %v7257_v21, 0.0 }
 0x6fb   : > { %v7252_v50 = vadd.f32 %v19951_v40, %v7251_v54  ;;  %v9315_v60 = vmax.f32 %v7249_v44, 0.0 }
 0x6fc   : > { %v9318_v4 = vmax.f32 %v7260_v1, 0.0 }
 0x6fd   : > { %v9316_v16 = vmax.f32 %v7252_v50, 0.0 }
 0x6fe   : > { %v20087_v8 = vpack.c.bf16 %v9318_v4, %v9317_v6 }
 0x6ff   : > { %v20091_v18 = vpack.c.bf16 %v9316_v16, %v9315_v60  ;;  %v15582_v42 = vpop.f32.mrb[168].mxu0 }
 0x700   : > { %v7273_v17 = vadd.f32 %v19951_v40, %v15582_v42  ;;  %v7264_v39 = vpop.f32.mrb[169].mxu0 }
 0x701   : > { %v7265_v19 = vadd.f32 %v19951_v40, %v7264_v39  ;;  %v15583_v24 = vpop.f32.mrb[170].mxu0  ;;  %11964 = vmatmul.mubr.bf16.gmra.mrb[160].mxu1 %v13417_v9 }
 0x702   : > { %v7276_v27 = vadd.f32 %v19951_v40, %v15583_v24  ;;  %v7267_v59 = vpop.f32.mrb[171].mxu0  ;;  %12004 = vmatprep.mubr.bf16.mxu1 %v13356_v34  ;;  %v9321_v63 = vmax.f32 %v7273_v17, 0.0 }
 0x703   : > { %v7268_v28 = vadd.f32 %v19951_v40, %v7267_v59  ;;  %v9319_v26 = vmax.f32 %v7265_v19, 0.0 }
 0x704   : > { %v9322_v38 = vmax.f32 %v7276_v27, 0.0 }
 0x705   : > { %v9320_v22 = vmax.f32 %v7268_v28, 0.0 }
 0x706   : > { %v20097_v31 = vpack.c.bf16 %v9322_v38, %v9321_v63 }
 0x707   : > { %v20099_v12 = vpack.c.bf16 %v9320_v22, %v9319_v26  ;;  %v15586_v41 = vpop.f32.mrb[172].mxu0 }
 0x708   : > { %v7289_v48 = vadd.f32 %v19951_v40, %v15586_v41  ;;  %v7280_v55 = vpop.f32.mrb[173].mxu0 }
 0x709   : > { %v7281_v61 = vadd.f32 %v19951_v40, %v7280_v55  ;;  %v15587_v52 = vpop.f32.mrb[174].mxu0 }
 0x70a   : > { %v7292_v45 = vadd.f32 %v19951_v40, %v15587_v52  ;;  %v7283_v0 = vpop.f32.mrb[175].mxu0  ;;  %v9325_v7 = vmax.f32 %v7289_v48, 0.0 }
 0x70b   : > { %v7284_v14 = vadd.f32 %v19951_v40, %v7283_v0  ;;  %v9323_v43 = vmax.f32 %v7281_v61, 0.0 }
 0x70c   : > { %v9326_v3 = vmax.f32 %v7292_v45, 0.0  ;;  %v14470_v21 = vpop.f32.mrb[132].mxu1 }
 0x70d   : > { %v9324_v44 = vmax.f32 %v7284_v14, 0.0  ;;  %v14471_v58 = vpop.f32.mrb[133].mxu1 }
 0x70e   : > { %v20105_v1 = vpack.c.bf16 %v9326_v3, %v9325_v7  ;;  %v14472_v54 = vadd.f32 %v14471_v58, %v14470_v21  ;;  %v14473_v50 = vpop.f32.mrb[134].mxu1 }
 0x70f   : > { %v20107_v6 = vpack.c.bf16 %v9324_v44, %v9323_v43  ;;  %v15590_v4 = vpop.f32.mrb[176].mxu0  ;;  %v14474_v60 = vpop.f32.mrb[135].mxu1 }
 0x710   : > { %v20110_v16 = vadd.f32 %v14472_v54, %v20031_v36  ;;  %v7305_v9 = vadd.f32 %v19951_v40, %v15590_v4  ;;  %v14475_v34 = vadd.f32 %v14474_v60, %v14473_v50  ;;  %v7296_v42 = vpop.f32.mrb[177].mxu0 }
 0x711   : > { %v7297_v17 = vadd.f32 %v19951_v40, %v7296_v42  ;;  %v15591_v39 = vpop.f32.mrb[178].mxu0 }
 0x712   : > { %v20115_v19 = vadd.f32 %v14475_v34, %v20038_v5  ;;  %v7308_v24 = vadd.f32 %v19951_v40, %v15591_v39  ;;  %v7299_v27 = vpop.f32.mrb[179].mxu0  ;;  %v9329_v28 = vmax.f32 %v7305_v9, 0.0 }
 0x713   : > { %v7300_v59 = vadd.f32 %v19951_v40, %v7299_v27  ;;  %v9327_v36 = vmax.f32 %v7297_v17, 0.0 }
 0x714   : > { %v9330_v63 = vmax.f32 %v7308_v24, 0.0  ;;  %v14476_v38 = vpop.f32.mrb[136].mxu1 }
 0x715   : > { %v9328_v26 = vmax.f32 %v7300_v59, 0.0  ;;  %v14477_v22 = vpop.f32.mrb[137].mxu1 }
 0x716   : > { %v10136_v41 = vpack.c.bf16 %v9330_v63, %v9329_v28  ;;  %v14478_v48 = vadd.f32 %v14477_v22, %v14476_v38  ;;  %v14479_v55 = vpop.f32.mrb[138].mxu1 }
 0x717   : > { %v10135_v61 = vpack.c.bf16 %v9328_v26, %v9327_v36  ;;  %v15594_v52 = vpop.f32.mrb[180].mxu0  ;;  %v14480_v45 = vpop.f32.mrb[139].mxu1 }
 0x718   : > { %v20120_v5 = vadd.f32 %v14478_v48, %v20043_v37  ;;  %v7321_v0 = vadd.f32 %v19951_v40, %v15594_v52  ;;  %v14481_v14 = vadd.f32 %v14480_v45, %v14479_v55  ;;  %v7312_v7 = vpop.f32.mrb[181].mxu0 }
 0x719   : > { %v7313_v3 = vadd.f32 %v19951_v40, %v7312_v7  ;;  %v15595_v21 = vpop.f32.mrb[182].mxu0  ;;  %14566 = vmatprep.subr.bf16.mxu1 %v10135_v61 }
 0x71a   : > { %v20125_v43 = vadd.f32 %v14481_v14, %v20049_v30  ;;  %v7324_v44 = vadd.f32 %v19951_v40, %v15595_v21  ;;  %v7315_v58 = vpop.f32.mrb[183].mxu0  ;;  %14567 = vmatpush3.bf16.msra.mxu1 %v20077_v62  ;;  %v9333_v37 = vmax.f32 %v7321_v0, 0.0 }
 0x71b   : > { %v7316_v54 = vadd.f32 %v19951_v40, %v7315_v58  ;;  %14568 = vmatprep.subr.bf16.mxu1 %v10136_v41  ;;  %v9331_v4 = vmax.f32 %v7313_v3, 0.0 }
 0x71c   : > { %v9334_v50 = vmax.f32 %v7324_v44, 0.0 }
 0x71d   : > { %v9332_v60 = vmax.f32 %v7316_v54, 0.0 }
 0x71e   : > { %v10138_v9 = vpack.c.bf16 %v9334_v50, %v9333_v37  ;;  %14569 = vmatpush3.bf16.msra.mxu1 %v20074_v32 }
 0x71f   : > { %v10137_v34 = vpack.c.bf16 %v9332_v60, %v9331_v4  ;;  %v15598_v42 = vpop.f32.mrb[184].mxu0 }
 0x720   : > { %v7337_v30 = vadd.f32 %v19951_v40, %v15598_v42  ;;  %v7328_v17 = vpop.f32.mrb[185].mxu0 }
 0x721   : > { %v7329_v39 = vadd.f32 %v19951_v40, %v7328_v17  ;;  %v15599_v24 = vpop.f32.mrb[186].mxu0  ;;  %14570 = vmatprep.subr.bf16.mxu1 %v10137_v34  ;;  %v9780_v34 = vld [vmem:[#allocation5 + $0x3a8] sm:$0xff] }
 0x722   : > { %v7340_v62 = vadd.f32 %v19951_v40, %v15599_v24  ;;  %v7331_v27 = vpop.f32.mrb[187].mxu0  ;;  %14571 = vmatpush3.bf16.msra.mxu1 %v20091_v18  ;;  %v9337_v28 = vmax.f32 %v7337_v30, 0.0 }
 0x723   : > { %v7332_v59 = vadd.f32 %v19951_v40, %v7331_v27  ;;  %14572 = vmatprep.subr.bf16.mxu1 %v10138_v9  ;;  %v9335_v32 = vmax.f32 %v7329_v39, 0.0  ;;  %v9748_v9 = vld [vmem:[#allocation5 + $0x2a8] sm:$0xff]  ;;  %v13355_v39 = vcombine.low %v20083_v53, %v20085_v25  ;;  %v20159_v25 = vld [vmem:[#allocation5 + $0xb0] sm:$0xff] }
 0x724   : > { %v9338_v63 = vmax.f32 %v7340_v62, 0.0  ;;  %v13420_v62 = vcombine.high %v9748_v9, %v9780_v34 }
 0x725   : > { %v9336_v38 = vmax.f32 %v7332_v59, 0.0 }
 0x726   : > { %v10140_v36 = vpack.c.bf16 %v9338_v63, %v9337_v28  ;;  %14573 = vmatpush3.bf16.msra.mxu1 %v20087_v8 }
 0x727   : > { %v10139_v26 = vpack.c.bf16 %v9336_v38, %v9335_v32  ;;  %v15602_v22 = vpop.f32.mrb[188].mxu0 }
 0x728   : > { %v7353_v41 = vadd.f32 %v19951_v40, %v15602_v22  ;;  %v7344_v48 = vpop.f32.mrb[189].mxu0 }
 0x729   : > { %v7345_v55 = vadd.f32 %v19951_v40, %v7344_v48  ;;  %v15603_v61 = vpop.f32.mrb[190].mxu0  ;;  %14574 = vmatprep.subr.bf16.mxu1 %v10139_v26 }
 0x72a   : > { %v7356_v18 = vadd.f32 %v19951_v40, %v15603_v61  ;;  %v7347_v52 = vpop.f32.mrb[191].mxu0  ;;  %14575 = vmatpush3.bf16.msra.mxu1 %v20099_v12  ;;  %v9341_v0 = vmax.f32 %v7353_v41, 0.0 }
 0x72b   : > { %v7348_v45 = vadd.f32 %v19951_v40, %v7347_v52  ;;  %14576 = vmatprep.subr.bf16.mxu1 %v10140_v36  ;;  %v9339_v8 = vmax.f32 %v7345_v55, 0.0  ;;  %v13419_v55 = vcombine.low %v9748_v9, %v9780_v34 }
 0x72c   : > { %v9342_v14 = vmax.f32 %v7356_v18, 0.0 }
 0x72d   : > { %v9340_v7 = vmax.f32 %v7348_v45, 0.0 }
 0x72e   : > { %v10142_v3 = vpack.c.bf16 %v9342_v14, %v9341_v0  ;;  %14577 = vmatpush3.bf16.msra.mxu1 %v20097_v31 }
 0x72f   : > { %v10141_v21 = vpack.c.bf16 %v9340_v7, %v9339_v8  ;;  %v15606_v44 = vpop.f32.mrb[192].mxu0 }
 0x730   : > { %v7369_v58 = vadd.f32 %v19951_v40, %v15606_v44  ;;  %v7360_v54 = vpop.f32.mrb[193].mxu0 }
 0x731   : > { %v7361_v37 = vadd.f32 %v19951_v40, %v7360_v54  ;;  %v15607_v50 = vpop.f32.mrb[194].mxu0  ;;  %14578 = vmatprep.subr.bf16.mxu1 %v10141_v21 }
 0x732   : > { %v7372_v12 = vadd.f32 %v19951_v40, %v15607_v50  ;;  %v7363_v4 = vpop.f32.mrb[195].mxu0  ;;  %14579 = vmatpush3.bf16.msra.mxu1 %v20107_v6  ;;  %v9345_v31 = vmax.f32 %v7369_v58, 0.0 }
 0x733   : > { %v7364_v60 = vadd.f32 %v19951_v40, %v7363_v4  ;;  %14580 = vmatprep.subr.bf16.mxu1 %v10142_v3  ;;  %v9343_v30 = vmax.f32 %v7361_v37, 0.0 }
 0x734   : > { %v9346_v42 = vmax.f32 %v7372_v12, 0.0 }
 0x735   : > { %v9344_v17 = vmax.f32 %v7364_v60, 0.0 }
 0x736   : > { %v20150_v24 = vpack.c.bf16 %v9346_v42, %v9345_v31  ;;  %14581 = vmatpush3.bf16.msra.mxu1 %v20105_v1  ;;  %v20161_v1 = vld [vmem:[#allocation5 + $0x1b0] sm:$0xff] }
 0x737   : > { %v20153_v27 = vpack.c.bf16 %v9344_v17, %v9343_v30  ;;  %v15610_v6 = vpop.f32.mrb[196].mxu0  ;;  %v13358_v18 = vcombine.high %v20159_v25, %v20161_v1 }
 0x738   : > { %v7385_v59 = vadd.f32 %v19951_v40, %v15610_v6  ;;  %v7376_v28 = vpop.f32.mrb[197].mxu0 }
 0x739   : > { %v7377_v63 = vadd.f32 %v19951_v40, %v7376_v28  ;;  %v15611_v32 = vpop.f32.mrb[198].mxu0  ;;  %12005 = vmatmul.mubr.bf16.vlgmr.msra.gmra.mrb[164].mxu1 %v13355_v39 }
 0x73a   : > { %v7388_v38 = vadd.f32 %v19951_v40, %v15611_v32  ;;  %v7379_v36 = vpop.f32.mrb[199].mxu0  ;;  %12012 = vmatprep.mubr.bf16.mxu1 %v13420_v62  ;;  %v9349_v26 = vmax.f32 %v7385_v59, 0.0 }
 0x73b   : > { %v7380_v53 = vadd.f32 %v19951_v40, %v7379_v36  ;;  %v9347_v41 = vmax.f32 %v7377_v63, 0.0 }
 0x73c   : > { %v9350_v22 = vmax.f32 %v7388_v38, 0.0 }
 0x73d   : > { %v9348_v48 = vmax.f32 %v7380_v53, 0.0 }
 0x73e   : > { %v20163_v61 = vpack.c.bf16 %v9350_v22, %v9349_v26 }
 0x73f   : > { %v20167_v52 = vpack.c.bf16 %v9348_v48, %v9347_v41  ;;  %v15614_v45 = vpop.f32.mrb[200].mxu0 }
 0x740   : > { %v7401_v0 = vadd.f32 %v19951_v40, %v15614_v45  ;;  %v7392_v14 = vpop.f32.mrb[201].mxu0 }
 0x741   : > { %v7393_v8 = vadd.f32 %v19951_v40, %v7392_v14  ;;  %v15615_v7 = vpop.f32.mrb[202].mxu0  ;;  %12013 = vmatmul.mubr.bf16.gmra.mrb[168].mxu1 %v13419_v55 }
 0x742   : > { %v7404_v3 = vadd.f32 %v19951_v40, %v15615_v7  ;;  %v7395_v21 = vpop.f32.mrb[203].mxu0  ;;  %12053 = vmatprep.mubr.bf16.mxu1 %v13358_v18  ;;  %v9353_v58 = vmax.f32 %v7401_v0, 0.0 }
 0x743   : > { %v7396_v44 = vadd.f32 %v19951_v40, %v7395_v21  ;;  %v9351_v37 = vmax.f32 %v7393_v8, 0.0 }
 0x744   : > { %v9354_v54 = vmax.f32 %v7404_v3, 0.0 }
 0x745   : > { %v9352_v50 = vmax.f32 %v7396_v44, 0.0 }
 0x746   : > { %v20173_v12 = vpack.c.bf16 %v9354_v54, %v9353_v58 }
 0x747   : > { %v20175_v4 = vpack.c.bf16 %v9352_v50, %v9351_v37  ;;  %v15618_v60 = vpop.f32.mrb[204].mxu0 }
 0x748   : > { %v7417_v9 = vadd.f32 %v19951_v40, %v15618_v60  ;;  %v7408_v34 = vpop.f32.mrb[205].mxu0 }
 0x749   : > { %v7409_v31 = vadd.f32 %v19951_v40, %v7408_v34  ;;  %v15619_v42 = vpop.f32.mrb[206].mxu0 }
 0x74a   : > { %v7420_v30 = vadd.f32 %v19951_v40, %v15619_v42  ;;  %v7411_v17 = vpop.f32.mrb[207].mxu0  ;;  %v9357_v62 = vmax.f32 %v7417_v9, 0.0 }
 0x74b   : > { %v7412_v39 = vadd.f32 %v19951_v40, %v7411_v17  ;;  %v9355_v28 = vmax.f32 %v7409_v31, 0.0 }
 0x74c   : > { %v9358_v6 = vmax.f32 %v7420_v30, 0.0  ;;  %v14498_v59 = vpop.f32.mrb[140].mxu1 }
 0x74d   : > { %v9356_v63 = vmax.f32 %v7412_v39, 0.0  ;;  %v14499_v32 = vpop.f32.mrb[141].mxu1 }
 0x74e   : > { %v20181_v38 = vpack.c.bf16 %v9358_v6, %v9357_v62  ;;  %v14500_v36 = vadd.f32 %v14499_v32, %v14498_v59  ;;  %v14501_v53 = vpop.f32.mrb[142].mxu1 }
 0x74f   : > { %v20183_v26 = vpack.c.bf16 %v9356_v63, %v9355_v28  ;;  %v15622_v22 = vpop.f32.mrb[208].mxu0  ;;  %v14502_v41 = vpop.f32.mrb[143].mxu1 }
 0x750   : > { %v20186_v48 = vadd.f32 %v14500_v36, %v20110_v16  ;;  %v7433_v55 = vadd.f32 %v19951_v40, %v15622_v22  ;;  %v14503_v18 = vadd.f32 %v14502_v41, %v14501_v53  ;;  %v7424_v45 = vpop.f32.mrb[209].mxu0  ;;  %v20205_v36 = vld [vmem:[#allocation8] ss:$0 sm:$0xff] }
 0x751   : > { %v7425_v0 = vadd.f32 %v19951_v40, %v7424_v45  ;;  %v15623_v14 = vpop.f32.mrb[210].mxu0 }
 0x752   : > { %v20191_v8 = vadd.f32 %v14503_v18, %v20115_v19  ;;  %v7436_v7 = vadd.f32 %v19951_v40, %v15623_v14  ;;  %v7427_v3 = vpop.f32.mrb[211].mxu0  ;;  %v9361_v44 = vmax.f32 %v7433_v55, 0.0 }
 0x753   : > { %v7428_v21 = vadd.f32 %v19951_v40, %v7427_v3  ;;  %v9359_v16 = vmax.f32 %v7425_v0, 0.0 }
 0x754   : > { %v9362_v58 = vmax.f32 %v7436_v7, 0.0  ;;  %v14504_v54 = vpop.f32.mrb[144].mxu1 }
 0x755   : > { %v9360_v37 = vmax.f32 %v7428_v21, 0.0  ;;  %v14505_v50 = vpop.f32.mrb[145].mxu1 }
 0x756   : > { %v10152_v60 = vpack.c.bf16 %v9362_v58, %v9361_v44  ;;  %v14506_v9 = vadd.f32 %v14505_v50, %v14504_v54  ;;  %v14507_v34 = vpop.f32.mrb[146].mxu1 }
 0x757   : > { %v10151_v31 = vpack.c.bf16 %v9360_v37, %v9359_v16  ;;  %v15626_v42 = vpop.f32.mrb[212].mxu0  ;;  %v14508_v30 = vpop.f32.mrb[147].mxu1 }
 0x758   : > { %v20196_v19 = vadd.f32 %v14506_v9, %v20120_v5  ;;  %v7449_v17 = vadd.f32 %v19951_v40, %v15626_v42  ;;  %v14509_v39 = vadd.f32 %v14508_v30, %v14507_v34  ;;  %v7440_v62 = vpop.f32.mrb[213].mxu0 }
 0x759   : > { %v7441_v6 = vadd.f32 %v19951_v40, %v7440_v62  ;;  %v15627_v59 = vpop.f32.mrb[214].mxu0  ;;  %14594 = vmatprep.subr.bf16.mxu1 %v10151_v31 }
 0x75a   : > { %v20201_v28 = vadd.f32 %v14509_v39, %v20125_v43  ;;  %v7452_v63 = vadd.f32 %v19951_v40, %v15627_v59  ;;  %v7443_v32 = vpop.f32.mrb[215].mxu0  ;;  %14595 = vmatpush3.bf16.msra.mxu1 %v20153_v27  ;;  %v9365_v53 = vmax.f32 %v7449_v17, 0.0 }
 0x75b   : > { %v7444_v5 = vadd.f32 %v20205_v36, %v7443_v32  ;;  %14596 = vmatprep.subr.bf16.mxu1 %v10152_v60  ;;  %v9363_v41 = vmax.f32 %v7441_v6, 0.0 }
 0x75c   : > { %v9366_v22 = vmax.f32 %v7452_v63, 0.0 }
 0x75d   : > { %v9364_v55 = vmax.f32 %v7444_v5, 0.0 }
 0x75e   : > { %v10154_v18 = vpack.c.bf16 %v9366_v22, %v9365_v53  ;;  %14597 = vmatpush3.bf16.msra.mxu1 %v20150_v24 }
 0x75f   : > { %v10153_v45 = vpack.c.bf16 %v9364_v55, %v9363_v41  ;;  %v15630_v43 = vpop.f32.mrb[216].mxu0 }
 0x760   : > { %v7465_v0 = vadd.f32 %v20205_v36, %v15630_v43  ;;  %v7456_v40 = vpop.f32.mrb[217].mxu0 }
 0x761   : > { %v7457_v14 = vadd.f32 %v20205_v36, %v7456_v40  ;;  %v15631_v27 = vpop.f32.mrb[218].mxu0  ;;  %14598 = vmatprep.subr.bf16.mxu1 %v10153_v45  ;;  %v9781_v45 = vld [vmem:[#allocation5 + $0x3b0] sm:$0xff] }
 0x762   : > { %v7468_v7 = vadd.f32 %v20205_v36, %v15631_v27  ;;  %v7459_v3 = vpop.f32.mrb[219].mxu0  ;;  %14599 = vmatpush3.bf16.msra.mxu1 %v20167_v52  ;;  %v9369_v44 = vmax.f32 %v7465_v0, 0.0 }
 0x763   : > { %v7460_v21 = vadd.f32 %v20205_v36, %v7459_v3  ;;  %14600 = vmatprep.subr.bf16.mxu1 %v10154_v18  ;;  %v9367_v24 = vmax.f32 %v7457_v14, 0.0  ;;  %v9749_v18 = vld [vmem:[#allocation5 + $0x2b0] sm:$0xff]  ;;  %v13357_v14 = vcombine.low %v20159_v25, %v20161_v1  ;;  %v20237_v1 = vld [vmem:[#allocation5 + $0xb8] sm:$0xff] }
 0x764   : > { %v9370_v58 = vmax.f32 %v7468_v7, 0.0  ;;  %v13422_v7 = vcombine.high %v9749_v18, %v9781_v45 }
 0x765   : > { %v9368_v54 = vmax.f32 %v7460_v21, 0.0 }
 0x766   : > { %v10156_v16 = vpack.c.bf16 %v9370_v58, %v9369_v44  ;;  %14601 = vmatpush3.bf16.msra.mxu1 %v20163_v61 }
 0x767   : > { %v10155_v37 = vpack.c.bf16 %v9368_v54, %v9367_v24  ;;  %v15634_v50 = vpop.f32.mrb[220].mxu0 }
 0x768   : > { %v7481_v60 = vadd.f32 %v20205_v36, %v15634_v50  ;;  %v7472_v9 = vpop.f32.mrb[221].mxu0 }
 0x769   : > { %v7473_v34 = vadd.f32 %v20205_v36, %v7472_v9  ;;  %v15635_v31 = vpop.f32.mrb[222].mxu0  ;;  %14602 = vmatprep.subr.bf16.mxu1 %v10155_v37 }
 0x76a   : > { %v7484_v52 = vadd.f32 %v20205_v36, %v15635_v31  ;;  %v7475_v42 = vpop.f32.mrb[223].mxu0  ;;  %14603 = vmatpush3.bf16.msra.mxu1 %v20175_v4  ;;  %v9373_v17 = vmax.f32 %v7481_v60, 0.0 }
 0x76b   : > { %v7476_v30 = vadd.f32 %v20205_v36, %v7475_v42  ;;  %14604 = vmatprep.subr.bf16.mxu1 %v10156_v16  ;;  %v9371_v61 = vmax.f32 %v7473_v34, 0.0  ;;  %v13421_v34 = vcombine.low %v9749_v18, %v9781_v45 }
 0x76c   : > { %v9374_v39 = vmax.f32 %v7484_v52, 0.0 }
 0x76d   : > { %v9372_v62 = vmax.f32 %v7476_v30, 0.0 }
 0x76e   : > { %v10158_v6 = vpack.c.bf16 %v9374_v39, %v9373_v17  ;;  %14605 = vmatpush3.bf16.msra.mxu1 %v20173_v12 }
 0x76f   : > { %v10157_v59 = vpack.c.bf16 %v9372_v62, %v9371_v61  ;;  %v15638_v63 = vpop.f32.mrb[224].mxu0 }
 0x770   : > { %v7497_v32 = vadd.f32 %v20205_v36, %v15638_v63  ;;  %v7488_v5 = vpop.f32.mrb[225].mxu0 }
 0x771   : > { %v7489_v53 = vadd.f32 %v20205_v36, %v7488_v5  ;;  %v15639_v22 = vpop.f32.mrb[226].mxu0  ;;  %14606 = vmatprep.subr.bf16.mxu1 %v10157_v59 }
 0x772   : > { %v7500_v4 = vadd.f32 %v20205_v36, %v15639_v22  ;;  %v7491_v41 = vpop.f32.mrb[227].mxu0  ;;  %14607 = vmatpush3.bf16.msra.mxu1 %v20183_v26  ;;  %v9377_v12 = vmax.f32 %v7497_v32, 0.0 }
 0x773   : > { %v7492_v55 = vadd.f32 %v20205_v36, %v7491_v41  ;;  %14608 = vmatprep.subr.bf16.mxu1 %v10158_v6  ;;  %v9375_v0 = vmax.f32 %v7489_v53, 0.0 }
 0x774   : > { %v9378_v43 = vmax.f32 %v7500_v4, 0.0 }
 0x775   : > { %v9376_v40 = vmax.f32 %v7492_v55, 0.0 }
 0x776   : > { %v20228_v27 = vpack.c.bf16 %v9378_v43, %v9377_v12  ;;  %14609 = vmatpush3.bf16.msra.mxu1 %v20181_v38  ;;  %v20239_v38 = vld [vmem:[#allocation5 + $0x1b8] sm:$0xff] }
 0x777   : > { %v20231_v3 = vpack.c.bf16 %v9376_v40, %v9375_v0  ;;  %v15642_v26 = vpop.f32.mrb[228].mxu0  ;;  %v13360_v52 = vcombine.high %v20237_v1, %v20239_v38 }
 0x778   : > { %v7513_v21 = vadd.f32 %v20205_v36, %v15642_v26  ;;  %v7504_v44 = vpop.f32.mrb[229].mxu0 }
 0x779   : > { %v7505_v58 = vadd.f32 %v20205_v36, %v7504_v44  ;;  %v15643_v24 = vpop.f32.mrb[230].mxu0  ;;  %12054 = vmatmul.mubr.bf16.vlgmr.msra.gmra.mrb[172].mxu1 %v13357_v14 }
 0x77a   : > { %v7516_v54 = vadd.f32 %v20205_v36, %v15643_v24  ;;  %v7507_v16 = vpop.f32.mrb[231].mxu0  ;;  %12061 = vmatprep.mubr.bf16.mxu1 %v13422_v7  ;;  %v9381_v37 = vmax.f32 %v7513_v21, 0.0 }
 0x77b   : > { %v7508_v25 = vadd.f32 %v20205_v36, %v7507_v16  ;;  %v9379_v60 = vmax.f32 %v7505_v58, 0.0 }
 0x77c   : > { %v9382_v50 = vmax.f32 %v7516_v54, 0.0 }
 0x77d   : > { %v9380_v9 = vmax.f32 %v7508_v25, 0.0 }
 0x77e   : > { %v20241_v31 = vpack.c.bf16 %v9382_v50, %v9381_v37 }
 0x77f   : > { %v20245_v42 = vpack.c.bf16 %v9380_v9, %v9379_v60  ;;  %v15646_v30 = vpop.f32.mrb[232].mxu0 }
 0x780   : > { %v7529_v17 = vadd.f32 %v20205_v36, %v15646_v30  ;;  %v7520_v39 = vpop.f32.mrb[233].mxu0 }
 0x781   : > { %v7521_v61 = vadd.f32 %v20205_v36, %v7520_v39  ;;  %v15647_v62 = vpop.f32.mrb[234].mxu0  ;;  %12062 = vmatmul.mubr.bf16.gmra.mrb[176].mxu1 %v13421_v34 }
 0x782   : > { %v7532_v6 = vadd.f32 %v20205_v36, %v15647_v62  ;;  %v7523_v59 = vpop.f32.mrb[235].mxu0  ;;  %12102 = vmatprep.mubr.bf16.mxu1 %v13360_v52  ;;  %v9385_v32 = vmax.f32 %v7529_v17, 0.0 }
 0x783   : > { %v7524_v63 = vadd.f32 %v20205_v36, %v7523_v59  ;;  %v9383_v53 = vmax.f32 %v7521_v61, 0.0 }
 0x784   : > { %v9386_v5 = vmax.f32 %v7532_v6, 0.0 }
 0x785   : > { %v9384_v22 = vmax.f32 %v7524_v63, 0.0 }
 0x786   : > { %v20251_v4 = vpack.c.bf16 %v9386_v5, %v9385_v32 }
 0x787   : > { %v20253_v41 = vpack.c.bf16 %v9384_v22, %v9383_v53  ;;  %v15650_v55 = vpop.f32.mrb[236].mxu0 }
 0x788   : > { %v7545_v18 = vadd.f32 %v20205_v36, %v15650_v55  ;;  %v7536_v45 = vpop.f32.mrb[237].mxu0 }
 0x789   : > { %v7537_v12 = vadd.f32 %v20205_v36, %v7536_v45  ;;  %v15651_v43 = vpop.f32.mrb[238].mxu0 }
 0x78a   : > { %v7548_v0 = vadd.f32 %v20205_v36, %v15651_v43  ;;  %v7539_v40 = vpop.f32.mrb[239].mxu0  ;;  %v9389_v7 = vmax.f32 %v7545_v18, 0.0 }
 0x78b   : > { %v7540_v14 = vadd.f32 %v20205_v36, %v7539_v40  ;;  %v9387_v44 = vmax.f32 %v7537_v12, 0.0 }
 0x78c   : > { %v9390_v26 = vmax.f32 %v7548_v0, 0.0  ;;  %v14526_v21 = vpop.f32.mrb[148].mxu1 }
 0x78d   : > { %v9388_v58 = vmax.f32 %v7540_v14, 0.0  ;;  %v14527_v24 = vpop.f32.mrb[149].mxu1 }
 0x78e   : > { %v20259_v54 = vpack.c.bf16 %v9390_v26, %v9389_v7  ;;  %v14528_v16 = vadd.f32 %v14527_v24, %v14526_v21  ;;  %v14529_v25 = vpop.f32.mrb[150].mxu1 }
 0x78f   : > { %v20261_v37 = vpack.c.bf16 %v9388_v58, %v9387_v44  ;;  %v15654_v50 = vpop.f32.mrb[240].mxu0  ;;  %v14530_v60 = vpop.f32.mrb[151].mxu1 }
 0x790   : > { %v20264_v9 = vadd.f32 %v14528_v16, %v20186_v48  ;;  %v7561_v34 = vadd.f32 %v20205_v36, %v15654_v50  ;;  %v14531_v52 = vadd.f32 %v14530_v60, %v14529_v25  ;;  %v7552_v30 = vpop.f32.mrb[241].mxu0 }
 0x791   : > { %v7553_v17 = vadd.f32 %v20205_v36, %v7552_v30  ;;  %v15655_v39 = vpop.f32.mrb[242].mxu0 }
 0x792   : > { %v20269_v61 = vadd.f32 %v14531_v52, %v20191_v8  ;;  %v7564_v62 = vadd.f32 %v20205_v36, %v15655_v39  ;;  %v7555_v6 = vpop.f32.mrb[243].mxu0  ;;  %v9393_v63 = vmax.f32 %v7561_v34, 0.0 }
 0x793   : > { %v7556_v59 = vadd.f32 %v20205_v36, %v7555_v6  ;;  %v9391_v48 = vmax.f32 %v7553_v17, 0.0 }
 0x794   : > { %v9394_v32 = vmax.f32 %v7564_v62, 0.0  ;;  %v14532_v5 = vpop.f32.mrb[152].mxu1 }
 0x795   : > { %v9392_v53 = vmax.f32 %v7556_v59, 0.0  ;;  %v14533_v22 = vpop.f32.mrb[153].mxu1 }
 0x796   : > { %v10168_v55 = vpack.c.bf16 %v9394_v32, %v9393_v63  ;;  %v14534_v18 = vadd.f32 %v14533_v22, %v14532_v5  ;;  %v14535_v45 = vpop.f32.mrb[154].mxu1 }
 0x797   : > { %v10167_v12 = vpack.c.bf16 %v9392_v53, %v9391_v48  ;;  %v15658_v43 = vpop.f32.mrb[244].mxu0  ;;  %v14536_v0 = vpop.f32.mrb[155].mxu1 }
 0x798   : > { %v20274_v8 = vadd.f32 %v14534_v18, %v20196_v19  ;;  %v7577_v40 = vadd.f32 %v20205_v36, %v15658_v43  ;;  %v14537_v14 = vadd.f32 %v14536_v0, %v14535_v45  ;;  %v7568_v7 = vpop.f32.mrb[245].mxu0 }
 0x799   : > { %v7569_v26 = vadd.f32 %v20205_v36, %v7568_v7  ;;  %v15659_v21 = vpop.f32.mrb[246].mxu0  ;;  %14622 = vmatprep.subr.bf16.mxu1 %v10167_v12 }
 0x79a   : > { %v20279_v44 = vadd.f32 %v14537_v14, %v20201_v28  ;;  %v7580_v58 = vadd.f32 %v20205_v36, %v15659_v21  ;;  %v7571_v24 = vpop.f32.mrb[247].mxu0  ;;  %14623 = vmatpush3.bf16.msra.mxu1 %v20231_v3  ;;  %v9397_v19 = vmax.f32 %v7577_v40, 0.0 }
 0x79b   : > { %v7572_v16 = vadd.f32 %v20205_v36, %v7571_v24  ;;  %14624 = vmatprep.subr.bf16.mxu1 %v10168_v55  ;;  %v9395_v50 = vmax.f32 %v7569_v26, 0.0 }
 0x79c   : > { %v9398_v25 = vmax.f32 %v7580_v58, 0.0 }
 0x79d   : > { %v9396_v60 = vmax.f32 %v7572_v16, 0.0 }
 0x79e   : > { %v10170_v34 = vpack.c.bf16 %v9398_v25, %v9397_v19  ;;  %14625 = vmatpush3.bf16.msra.mxu1 %v20228_v27 }
 0x79f   : > { %v10169_v52 = vpack.c.bf16 %v9396_v60, %v9395_v50  ;;  %v15662_v30 = vpop.f32.mrb[248].mxu0 }
 0x7a0   : > { %v7593_v28 = vadd.f32 %v20205_v36, %v15662_v30  ;;  %v7584_v17 = vpop.f32.mrb[249].mxu0 }
 0x7a1   : > { %v7585_v39 = vadd.f32 %v20205_v36, %v7584_v17  ;;  %v15663_v62 = vpop.f32.mrb[250].mxu0  ;;  %14626 = vmatprep.subr.bf16.mxu1 %v10169_v52  ;;  %v9750_v52 = vld [vmem:[#allocation5 + $0x2b8] sm:$0xff] }
 0x7a2   : > { %v7596_v3 = vadd.f32 %v20205_v36, %v15663_v62  ;;  %v7587_v6 = vpop.f32.mrb[251].mxu0  ;;  %14627 = vmatpush3.bf16.msra.mxu1 %v20245_v42  ;;  %v9401_v63 = vmax.f32 %v7593_v28, 0.0 }
 0x7a3   : > { %v7588_v59 = vadd.f32 %v20205_v36, %v7587_v6  ;;  %14628 = vmatprep.subr.bf16.mxu1 %v10170_v34  ;;  %v9399_v27 = vmax.f32 %v7585_v39, 0.0  ;;  %v13359_v39 = vcombine.low %v20237_v1, %v20239_v38  ;;  %v20723_v1 = vld [vmem:[#allocation20_spill] sm:$0xff]  ;;  %v20724_v38 = vld [vmem:[#allocation19_spill] sm:$0xff] }
 0x7a4   : > { %v9402_v32 = vmax.f32 %v7596_v3, 0.0 }
 0x7a5   : > { %v9400_v5 = vmax.f32 %v7588_v59, 0.0 }
 0x7a6   : > { %v10172_v48 = vpack.c.bf16 %v9402_v32, %v9401_v63  ;;  %14629 = vmatpush3.bf16.msra.mxu1 %v20241_v31 }
 0x7a7   : > { %v10171_v53 = vpack.c.bf16 %v9400_v5, %v9399_v27  ;;  %v15666_v22 = vpop.f32.mrb[252].mxu0  ;;  %v20726_v5 = vld [vmem:[#allocation21_spill] sm:$0xff] }
 0x7a8   : > { %v7609_v55 = vadd.f32 %v20205_v36, %v15666_v22  ;;  %v7600_v18 = vpop.f32.mrb[253].mxu0  ;;  %v9783_v22 = vld [vmem:[#allocation5 + $0x3c0] sm:$0xff] }
 0x7a9   : > { %v7601_v45 = vadd.f32 %v20205_v36, %v7600_v18  ;;  %v15667_v12 = vpop.f32.mrb[254].mxu0  ;;  %14630 = vmatprep.subr.bf16.mxu1 %v10171_v53 }
 0x7aa   : > { %v7612_v42 = vadd.f32 %v20205_v36, %v15667_v12  ;;  %v7603_v43 = vpop.f32.mrb[255].mxu0  ;;  %14631 = vmatpush3.bf16.msra.mxu1 %v20253_v41  ;;  %v9405_v40 = vmax.f32 %v7609_v55, 0.0 }
 0x7ab   : > { %v7604_v0 = vadd.f32 %v20205_v36, %v7603_v43  ;;  %14632 = vmatprep.subr.bf16.mxu1 %v10172_v48  ;;  %v9403_v31 = vmax.f32 %v7601_v45, 0.0  ;;  %v20728_v43 = vld [vmem:[#allocation27_spill] sm:$0xff] }
 0x7ac   : > { %v9406_v14 = vmax.f32 %v7612_v42, 0.0 }
 0x7ad   : > { %v9404_v7 = vmax.f32 %v7604_v0, 0.0  ;;  %v20729_v0 = vld [vmem:[#allocation32_spill] sm:$0xff] }
 0x7ae   : > { %v10174_v26 = vpack.c.bf16 %v9406_v14, %v9405_v40  ;;  %14633 = vmatpush3.bf16.msra.mxu1 %v20251_v4  ;;  %v9782_v4 = vld [vmem:[#allocation5 + $0x3b8] sm:$0xff] }
 0x7af   : > { %v10173_v21 = vpack.c.bf16 %v9404_v7, %v9403_v31  ;;  %v15670_v58 = vpop.f32.mrb[0].mxu0  ;;  %v13424_v3 = vcombine.high %v9750_v52, %v9782_v4  ;;  %v13423_v59 = vcombine.low %v9750_v52, %v9782_v4  ;;  %v20730_v14 = vld [vmem:[#allocation57_spill] sm:$0xff]  ;;  %v20731_v31 = vld [vmem:[#allocation23_spill] sm:$0xff]  ;;  %v20743_v4 = vld [vmem:[#allocation46_spill] sm:$0xff] }
 0x7b0   : > { %v7625_v24 = vadd.f32 %v20205_v36, %v15670_v58  ;;  %v7616_v16 = vpop.f32.mrb[1].mxu0  ;;  %v9688_v7 = vld [vmem:[#allocation5 + $0xc8] sm:$0xff] }
 0x7b1   : > { %v7617_v19 = vadd.f32 %v20205_v36, %v7616_v16  ;;  %v15671_v25 = vpop.f32.mrb[2].mxu0  ;;  %14634 = vmatprep.subr.bf16.mxu1 %v10173_v21  ;;  %v20732_v58 = vld [vmem:[#allocation56_spill] sm:$0xff]  ;;  %v20733_v16 = vld [vmem:[#allocation38_spill] sm:$0xff]  ;;  %v20742_v52 = vld [vmem:[#allocation63_spill] sm:$0xff] }
 0x7b2   : > { %v9409_v41 = vmax.f32 %v7625_v24, 0.0  ;;  %v7628_v50 = vadd.f32 %v20205_v36, %v15671_v25  ;;  %v7619_v60 = vpop.f32.mrb[3].mxu0  ;;  %14635 = vmatpush3.bf16.msra.mxu1 %v20261_v37  ;;  %v9719_v37 = vld [vmem:[#allocation5 + $0x1c0] sm:$0xff]  ;;  %v20737_v25 = vld [vmem:[#allocation44_spill] sm:$0xff] }
 0x7b3   : > { %v7620_v34 = vadd.f32 %v20205_v36, %v7619_v60  ;;  %14636 = vmatprep.subr.bf16.mxu1 %v10174_v26  ;;  %v9407_v28 = vmax.f32 %v7617_v19, 0.0  ;;  %v9687_v36 = vld [vmem:[#allocation5 + $0xc0] sm:$0xff]  ;;  %v9720_v26 = vld [vmem:[#allocation5 + $0x1c8] sm:$0xff]  ;;  %v20735_v19 = vld [vmem:[#allocation25_spill] sm:$0xff] }
 0x7b4   : > { %v9410_v30 = vmax.f32 %v7628_v50, 0.0  ;;  %v13362_v63 = vcombine.high %v9687_v36, %v9719_v37  ;;  %v13361_v45 = vcombine.low %v9687_v36, %v9719_v37  ;;  %v13364_v24 = vcombine.high %v9688_v7, %v9720_v26  ;;  %v20739_v50 = vld [vmem:[#allocation55_spill] sm:$0xff]  ;;  %v20740_v60 = vld [vmem:[#allocation60_spill] sm:$0xff]  ;;  %v20747_v36 = vld [vmem:[#allocation30_spill] sm:$0xff] }
 0x7b5   : > { %v9408_v17 = vmax.f32 %v7620_v34, 0.0  ;;  %v20741_v34 = vld [vmem:[#allocation43_spill] sm:$0xff]  ;;  %v9689_v37 = vld [vmem:[#allocation5 + $0xd0] sm:$0xff] }
 0x7b6   : > { %v10176_v62 = vpack.c.bf16 %v9410_v30, %v9409_v41  ;;  %14637 = vmatpush3.bf16.msra.mxu1 %v20259_v54  ;;  %v20738_v41 = vld [vmem:[#allocation61_spill] sm:$0xff]  ;;  %v9752_v30 = vld [vmem:[#allocation5 + $0x2c8] sm:$0xff] }
 0x7b7   : > { %v10175_v6 = vpack.c.bf16 %v9408_v17, %v9407_v28  ;;  %14650 = vmatprep.subr.bf16.mxu1 %v18104_v29  ;;  %v20725_v29 = vld [vmem:[#allocation22_spill] sm:$0xff]  ;;  %v9784_v28 = vld [vmem:[#allocation5 + $0x3c8] sm:$0xff]  ;;  %v13363_v17 = vcombine.low %v9688_v7, %v9720_v26 }
 0x7b9   : > { %12103 = vmatmul.mubr.bf16.vlgmr.msra.gmra.mrb[180].mxu1 %v13359_v39  ;;  %v20744_v39 = vld [vmem:[#allocation62_spill] sm:$0xff] }
 0x7ba   : > { %14651 = vmatpush3.bf16.msra.mxu1 %v10175_v6  ;;  %12110 = vmatprep.mubr.bf16.mxu1 %v13424_v3  ;;  %v20745_v3 = vld [vmem:[#allocation54_spill] sm:$0xff]  ;;  %v20746_v6 = vld [vmem:[#allocation24_spill] sm:$0xff] }
 0x7bb   : > { %14652 = vmatprep.subr.bf16.mxu1 %v18108_v20 }
 0x7be   : > { %14653 = vmatpush3.bf16.msra.mxu1 %v10176_v62  ;;  %v13428_v62 = vcombine.high %v9752_v30, %v9784_v28 }
 0x7bf   : > { %14654 = vmatprep.subr.bf16.mxu1 %v18148_v10 }
 0x7c1   : > { %12111 = vmatmul.mubr.bf16.gmra.mrb[184].mxu1 %v13423_v59  ;;  %v9721_v59 = vld [vmem:[#allocation5 + $0x1d0] sm:$0xff] }
 0x7c2   : > { %14655 = vmatpush3.bf16.msra.mxu1 %v20723_v1  ;;  %12151 = vmatprep.mubr.bf16.mxu1 %v13362_v63  ;;  %v13427_v63 = vcombine.low %v9752_v30, %v9784_v28  ;;  %v20748_v1 = vld [vmem:[#allocation37_spill] sm:$0xff]  ;;  %v13365_v7 = vcombine.low %v9689_v37, %v9721_v59  ;;  %v20767_v30 = vld [vmem:[#allocation68_spill] sm:$0xff] }
 0x7c3   : > { %14656 = vmatprep.subr.bf16.mxu1 %v18150_v33  ;;  %v20769_v28 = vld [vmem:[#allocation69_spill] sm:$0xff] }
 0x7c6   : > { %14657 = vmatpush3.bf16.msra.mxu1 %v20724_v38  ;;  %v13366_v38 = vcombine.high %v9689_v37, %v9721_v59  ;;  %v9754_v37 = vld [vmem:[#allocation5 + $0x2d8] sm:$0xff] }
 0x7c7   : > { %14658 = vmatprep.subr.bf16.mxu1 %v18174_v23  ;;  %v20727_v23 = vld [vmem:[#allocation28_spill] sm:$0xff]  ;;  %v9786_v59 = vld [vmem:[#allocation5 + $0x3d8] sm:$0xff] }
 0x7ca   : > { %14659 = vmatpush3.bf16.msra.mxu1 %v20725_v29  ;;  %v20749_v29 = vld [vmem:[#allocation53_spill] sm:$0xff] }
 0x7cb   : > { %14660 = vmatprep.subr.bf16.mxu1 %v18176_v49  ;;  %v9751_v49 = vld [vmem:[#allocation5 + $0x2c0] sm:$0xff] }
 0x7cc   : > { %v14554_v20 = vpop.f32.mrb[156].mxu1  ;;  %v13425_v21 = vcombine.low %v9751_v49, %v9783_v22 }
 0x7cd   : > { %v14555_v54 = vpop.f32.mrb[157].mxu1 }
 0x7ce   : > { %v14556_v32 = vadd.f32 %v14555_v54, %v14554_v20  ;;  %v14557_v27 = vpop.f32.mrb[158].mxu1  ;;  %14661 = vmatpush3.bf16.msra.mxu1 %v20726_v5  ;;  %v20750_v20 = vld [vmem:[#allocation48_spill] sm:$0xff]  ;;  %v20751_v54 = vld [vmem:[#allocation33_spill] sm:$0xff] }
 0x7cf   : > { %v14558_v10 = vpop.f32.mrb[159].mxu1  ;;  %14662 = vmatprep.subr.bf16.mxu1 %v18192_v46  ;;  %v13426_v46 = vcombine.high %v9751_v49, %v9783_v22  ;;  %v20754_v5 = vld [vmem:[#allocation29_spill] sm:$0xff] }
 0x7d0   : > { %v20317_v48 = vadd.f32 %v14556_v32, %v20264_v9  ;;  %v14559_v33 = vadd.f32 %v14558_v10, %v14557_v27  ;;  %v20752_v32 = vld [vmem:[#allocation45_spill] sm:$0xff]  ;;  %v20753_v27 = vld [vmem:[#allocation34_spill] sm:$0xff]  ;;  %v20755_v10 = vld [vmem:[#allocation36_spill] sm:$0xff] }
 0x7d2   : > { %v20320_v53 = vadd.f32 %v14559_v33, %v20269_v61  ;;  %14663 = vmatpush3.bf16.msra.mxu1 %v20727_v23 }
 0x7d3   : > { %14664 = vmatprep.subr.bf16.mxu1 %v18194_v35 }
 0x7d4   : > { %v14560_v55 = vpop.f32.mrb[160].mxu1 }
 0x7d5   : > { %v14561_v18 = vpop.f32.mrb[161].mxu1 }
 0x7d6   : > { %v14562_v12 = vadd.f32 %v14561_v18, %v14560_v55  ;;  %v14563_v42 = vpop.f32.mrb[162].mxu1  ;;  %14665 = vmatpush3.bf16.msra.mxu1 %v20728_v43  ;;  %v20756_v55 = vld [vmem:[#allocation47_spill] sm:$0xff] }
 0x7d7   : > { %v14564_v9 = vpop.f32.mrb[163].mxu1  ;;  %14678 = vmatprep.subr.bf16.mxu1 %v20729_v0  ;;  %v9753_v0 = vld [vmem:[#allocation5 + $0x2d0] sm:$0xff] }
 0x7d8   : > { %v20327_v61 = vadd.f32 %v14562_v12, %v20274_v8  ;;  %v14565_v40 = vadd.f32 %v14564_v9, %v14563_v42  ;;  %v20734_v8 = vld [vmem:[#allocation59_spill] sm:$0xff] }
 0x7d9   : > { %12152 = vmatmul.mubr.bf16.vlgmr.msra.gmra.mrb[188].mxu1 %v13361_v45  ;;  %v20757_v45 = vld [vmem:[#allocation35_spill] sm:$0xff] }
 0x7da   : > { %v20330_v35 = vadd.f32 %v14565_v40, %v20279_v44  ;;  %14679 = vmatpush3.bf16.msra.mxu1 %v20730_v14  ;;  %12159 = vmatprep.mubr.bf16.mxu1 %v13426_v46  ;;  %v20736_v44 = vld [vmem:[#allocation58_spill] sm:$0xff]  ;;  %v20759_v9 = vld [vmem:[#allocation39_spill] sm:$0xff]  ;;  %v9785_v40 = vld [vmem:[#allocation5 + $0x3d0] sm:$0xff] }
 0x7db   : > { %14680 = vmatprep.subr.bf16.mxu1 %v20731_v31  ;;  %v20758_v46 = vld [vmem:[#allocation26_spill] sm:$0xff] }
 0x7de   : > { %14681 = vmatpush3.bf16.msra.mxu1 %v20732_v58  ;;  %v20760_v58 = vld [vmem:[#allocation31_spill] sm:$0xff] }
 0x7df   : > { %14682 = vmatprep.subr.bf16.mxu1 %v20733_v16  ;;  %v20761_v16 = vld [vmem:[#allocation66_spill] sm:$0xff] }
 0x7e1   : > { %12160 = vmatmul.mubr.bf16.gmra.mrb[192].mxu1 %v13425_v21 }
 0x7e2   : > { %14683 = vmatpush3.bf16.msra.mxu1 %v20734_v8  ;;  %12200 = vmatprep.mubr.bf16.mxu1 %v13364_v24  ;;  %v13430_v24 = vcombine.high %v9753_v0, %v9785_v40 }
 0x7e3   : > { %14684 = vmatprep.subr.bf16.mxu1 %v20735_v19 }
 0x7e6   : > { %14685 = vmatpush3.bf16.msra.mxu1 %v20736_v44  ;;  %v20762_v44 = vld [vmem:[#allocation41_spill] sm:$0xff] }
 0x7e7   : > { %14686 = vmatprep.subr.bf16.mxu1 %v20737_v25  ;;  %v20763_v25 = vld [vmem:[#allocation65_spill] sm:$0xff] }
 0x7ea   : > { %14687 = vmatpush3.bf16.msra.mxu1 %v20738_v41  ;;  %v9690_v41 = vld [vmem:[#allocation5 + $0xd8] sm:$0xff] }
 0x7eb   : > { %14688 = vmatprep.subr.bf16.mxu1 %v20739_v50  ;;  %v9722_v50 = vld [vmem:[#allocation5 + $0x1d8] sm:$0xff] }
 0x7ee   : > { %14689 = vmatpush3.bf16.msra.mxu1 %v20740_v60  ;;  %v13429_v60 = vcombine.low %v9753_v0, %v9785_v40 }
 0x7ef   : > { %14690 = vmatprep.subr.bf16.mxu1 %v20741_v34  ;;  %v20764_v34 = vld [vmem:[#allocation40_spill] sm:$0xff] }
 0x7f2   : > { %14691 = vmatpush3.bf16.msra.mxu1 %v20742_v52  ;;  %v13368_v52 = vcombine.high %v9690_v41, %v9722_v50 }
 0x7f3   : > { %14692 = vmatprep.subr.bf16.mxu1 %v20743_v4  ;;  %v20765_v4 = vld [vmem:[#allocation67_spill] sm:$0xff] }
 0x7f6   : > { %14693 = vmatpush3.bf16.msra.mxu1 %v20744_v39  ;;  %v20771_v39 = vld [vmem:[#allocation70_spill] sm:$0xff] }
 0x7f7   : > { %14706 = vmatprep.subr.bf16.mxu1 %v20745_v3  ;;  %v20773_v3 = vld [vmem:[#allocation71_spill] sm:$0xff] }
 0x7f9   : > { %12201 = vmatmul.mubr.bf16.vlgmr.msra.gmra.mrb[196].mxu1 %v13363_v17  ;;  %v20770_v17 = vld [vmem:[#allocation51_spill] sm:$0xff] }
 0x7fa   : > { %14707 = vmatpush3.bf16.msra.mxu1 %v20746_v6  ;;  %12208 = vmatprep.mubr.bf16.mxu1 %v13428_v62  ;;  %v20772_v62 = vld [vmem:[#allocation50_spill] sm:$0xff]  ;;  %v20774_v6 = vld [vmem:[#allocation64_spill] sm:$0xff] }
 0x7fb   : > { %14708 = vmatprep.subr.bf16.mxu1 %v20747_v36  ;;  %v20775_v36 = vld [vmem:[#allocation72_spill] sm:$0xff] }
 0x7fe   : > { %14709 = vmatpush3.bf16.msra.mxu1 %v20748_v1  ;;  %v20776_v1 = vld [vmem:[#allocation52_spill] sm:$0xff] }
 0x7ff   : > { %14710 = vmatprep.subr.bf16.mxu1 %v20749_v29  ;;  %v20777_v29 = vld [vmem:[#allocation82_spill] sm:$0xff] }
 0x801   : > { %12209 = vmatmul.mubr.bf16.gmra.mrb[200].mxu1 %v13427_v63  ;;  %v13367_v63 = vcombine.low %v9690_v41, %v9722_v50 }
 0x802   : > { %14711 = vmatpush3.bf16.msra.mxu1 %v20750_v20  ;;  %12249 = vmatprep.mubr.bf16.mxu1 %v13366_v38  ;;  %v13432_v38 = vcombine.high %v9754_v37, %v9786_v59  ;;  %v20778_v20 = vld [vmem:[#allocation74_spill] sm:$0xff] }
 0x803   : > { %14712 = vmatprep.subr.bf16.mxu1 %v20751_v54  ;;  %v20779_v54 = vld [vmem:[#allocation81_spill] sm:$0xff] }
 0x806   : > { %14713 = vmatpush3.bf16.msra.mxu1 %v20752_v32  ;;  %v9691_v32 = vld [vmem:[#allocation5 + $0xe0] sm:$0xff] }
 0x807   : > { %14714 = vmatprep.subr.bf16.mxu1 %v20753_v27  ;;  %v9723_v27 = vld [vmem:[#allocation5 + $0x1e0] sm:$0xff] }
 0x808   : > { %v13369_v41 = vcombine.low %v9691_v32, %v9723_v27 }
 0x80a   : > { %14715 = vmatpush3.bf16.msra.mxu1 %v20754_v5  ;;  %v13431_v5 = vcombine.low %v9754_v37, %v9786_v59  ;;  %v20799_v37 = vld [vmem:[#allocation100_spill] sm:$0xff]  ;;  %v20801_v59 = vld [vmem:[#allocation101_spill] sm:$0xff] }
 0x80b   : > { %14716 = vmatprep.subr.bf16.mxu1 %v20755_v10  ;;  %v20780_v10 = vld [vmem:[#allocation73_spill] sm:$0xff] }
 0x80c   : > { %v14582_v33 = vpop.f32.mrb[164].mxu1 }
 0x80d   : > { %v14583_v23 = vpop.f32.mrb[165].mxu1 }
 0x80e   : > { %v14584_v49 = vadd.f32 %v14583_v23, %v14582_v33  ;;  %v14585_v22 = vpop.f32.mrb[166].mxu1  ;;  %14717 = vmatpush3.bf16.msra.mxu1 %v20756_v55  ;;  %v13370_v33 = vcombine.high %v9691_v32, %v9723_v27  ;;  %v20781_v23 = vld [vmem:[#allocation83_spill] sm:$0xff] }
 0x80f   : > { %v14586_v18 = vpop.f32.mrb[167].mxu1  ;;  %14718 = vmatprep.subr.bf16.mxu1 %v20757_v45  ;;  %v20784_v55 = vld [vmem:[#allocation75_spill] sm:$0xff]  ;;  %v20786_v45 = vld [vmem:[#allocation78_spill] sm:$0xff] }
 0x810   : > { %v20361_v12 = vadd.f32 %v14584_v49, %v20317_v48  ;;  %v14587_v42 = vadd.f32 %v14586_v18, %v14585_v22  ;;  %v20782_v49 = vld [vmem:[#allocation76_spill] sm:$0xff]  ;;  %v20785_v18 = vld [vmem:[#allocation85_spill] sm:$0xff] }
 0x811   : > { %v20783_v22 = vld [vmem:[#allocation84_spill] sm:$0xff] }
 0x812   : > { %v20364_v43 = vadd.f32 %v14587_v42, %v20320_v53  ;;  %14719 = vmatpush3.bf16.msra.mxu1 %v20758_v46  ;;  %v20787_v42 = vld [vmem:[#allocation86_spill] sm:$0xff]  ;;  %v9756_v32 = vld [vmem:[#allocation5 + $0x2e8] sm:$0xff] }
 0x813   : > { %14720 = vmatprep.subr.bf16.mxu1 %v20759_v9  ;;  %v9788_v27 = vld [vmem:[#allocation5 + $0x3e8] sm:$0xff] }
 0x814   : > { %v14588_v14 = vpop.f32.mrb[168].mxu1 }
 0x815   : > { %v14589_v31 = vpop.f32.mrb[169].mxu1 }
 0x816   : > { %v14590_v26 = vadd.f32 %v14589_v31, %v14588_v14  ;;  %v14591_v21 = vpop.f32.mrb[170].mxu1  ;;  %14721 = vmatpush3.bf16.msra.mxu1 %v20760_v58  ;;  %v20788_v14 = vld [vmem:[#allocation77_spill] sm:$0xff] }
 0x817   : > { %v14592_v48 = vpop.f32.mrb[171].mxu1  ;;  %14734 = vmatprep.subr.bf16.mxu1 %v20761_v16  ;;  %v9755_v16 = vld [vmem:[#allocation5 + $0x2e0] sm:$0xff] }
 0x818   : > { %v20371_v53 = vadd.f32 %v14590_v26, %v20327_v61  ;;  %v14593_v8 = vadd.f32 %v14592_v48, %v14591_v21  ;;  %v20766_v61 = vld [vmem:[#allocation49_spill] sm:$0xff]  ;;  %v20791_v48 = vld [vmem:[#allocation88_spill] sm:$0xff] }
 0x819   : > { %12250 = vmatmul.mubr.bf16.vlgmr.msra.gmra.mrb[204].mxu1 %v13365_v7  ;;  %v20789_v7 = vld [vmem:[#allocation87_spill] sm:$0xff] }
 0x81a   : > { %v20374_v19 = vadd.f32 %v14593_v8, %v20330_v35  ;;  %14735 = vmatpush3.bf16.msra.mxu1 %v20762_v44  ;;  %12257 = vmatprep.mubr.bf16.mxu1 %v13430_v24  ;;  %v20768_v35 = vld [vmem:[#allocation42_spill] sm:$0xff]  ;;  %v20790_v24 = vld [vmem:[#allocation80_spill] sm:$0xff] }
 0x81b   : > { %14736 = vmatprep.subr.bf16.mxu1 %v20763_v25  ;;  %v9787_v8 = vld [vmem:[#allocation5 + $0x3e0] sm:$0xff] }
 0x81e   : > { %14737 = vmatpush3.bf16.msra.mxu1 %v20764_v34  ;;  %v20792_v34 = vld [vmem:[#allocation79_spill] sm:$0xff] }
 0x81f   : > { %14738 = vmatprep.subr.bf16.mxu1 %v20765_v4  ;;  %v20793_v4 = vld [vmem:[#allocation98_spill] sm:$0xff] }
 0x821   : > { %12258 = vmatmul.mubr.bf16.gmra.mrb[208].mxu1 %v13429_v60 }
 0x822   : > { %14739 = vmatpush3.bf16.msra.mxu1 %v20766_v61  ;;  %12298 = vmatprep.mubr.bf16.mxu1 %v13368_v52  ;;  %v13434_v52 = vcombine.high %v9755_v16, %v9787_v8 }
 0x823   : > { %14740 = vmatprep.subr.bf16.mxu1 %v20767_v30 }
 0x826   : > { %14741 = vmatpush3.bf16.msra.mxu1 %v20768_v35  ;;  %v20794_v35 = vld [vmem:[#allocation90_spill] sm:$0xff] }
 0x827   : > { %14742 = vmatprep.subr.bf16.mxu1 %v20769_v28  ;;  %v20795_v28 = vld [vmem:[#allocation97_spill] sm:$0xff] }
 0x82a   : > { %14743 = vmatpush3.bf16.msra.mxu1 %v20770_v17  ;;  %v9692_v17 = vld [vmem:[#allocation5 + $0xe8] sm:$0xff] }
 0x82b   : > { %14744 = vmatprep.subr.bf16.mxu1 %v20771_v39  ;;  %v9724_v39 = vld [vmem:[#allocation5 + $0x1e8] sm:$0xff] }
 0x82e   : > { %14745 = vmatpush3.bf16.msra.mxu1 %v20772_v62  ;;  %v13433_v62 = vcombine.low %v9755_v16, %v9787_v8 }
 0x82f   : > { %14746 = vmatprep.subr.bf16.mxu1 %v20773_v3  ;;  %v20796_v3 = vld [vmem:[#allocation89_spill] sm:$0xff] }
 0x832   : > { %14747 = vmatpush3.bf16.msra.mxu1 %v20774_v6  ;;  %v13372_v6 = vcombine.high %v9692_v17, %v9724_v39 }
 0x833   : > { %14748 = vmatprep.subr.bf16.mxu1 %v20775_v36  ;;  %v20797_v36 = vld [vmem:[#allocation99_spill] sm:$0xff] }
 0x836   : > { %14749 = vmatpush3.bf16.msra.mxu1 %v20776_v1  ;;  %v20803_v1 = vld [vmem:[#allocation102_spill] sm:$0xff] }
 0x837   : > { %14762 = vmatprep.subr.bf16.mxu1 %v20777_v29  ;;  %v20805_v29 = vld [vmem:[#allocation103_spill] sm:$0xff] }
 0x839   : > { %12299 = vmatmul.mubr.bf16.vlgmr.msra.gmra.mrb[212].mxu1 %v13367_v63  ;;  %v20802_v63 = vld [vmem:[#allocation94_spill] sm:$0xff] }
 0x83a   : > { %14763 = vmatpush3.bf16.msra.mxu1 %v20778_v20  ;;  %12306 = vmatprep.mubr.bf16.mxu1 %v13432_v38  ;;  %v20804_v38 = vld [vmem:[#allocation93_spill] sm:$0xff]  ;;  %v20806_v20 = vld [vmem:[#allocation96_spill] sm:$0xff] }
 0x83b   : > { %14764 = vmatprep.subr.bf16.mxu1 %v20779_v54  ;;  %v20807_v54 = vld [vmem:[#allocation104_spill] sm:$0xff] }
 0x83e   : > { %14765 = vmatpush3.bf16.msra.mxu1 %v20780_v10  ;;  %v20808_v10 = vld [vmem:[#allocation95_spill] sm:$0xff] }
 0x83f   : > { %14766 = vmatprep.subr.bf16.mxu1 %v20781_v23  ;;  %v20809_v23 = vld [vmem:[#allocation121_spill] sm:$0xff] }
 0x841   : > { %12307 = vmatmul.mubr.bf16.gmra.mrb[216].mxu1 %v13431_v5  ;;  %v13371_v5 = vcombine.low %v9692_v17, %v9724_v39 }
 0x842   : > { %14767 = vmatpush3.bf16.msra.mxu1 %v20782_v49  ;;  %12347 = vmatprep.mubr.bf16.mxu1 %v13370_v33  ;;  %v13436_v33 = vcombine.high %v9756_v32, %v9788_v27  ;;  %v20810_v49 = vld [vmem:[#allocation106_spill] sm:$0xff] }
 0x843   : > { %14768 = vmatprep.subr.bf16.mxu1 %v20783_v22  ;;  %v20811_v22 = vld [vmem:[#allocation122_spill] sm:$0xff] }
 0x846   : > { %14769 = vmatpush3.bf16.msra.mxu1 %v20784_v55  ;;  %v9693_v55 = vld [vmem:[#allocation5 + $0xf0] sm:$0xff] }
 0x847   : > { %14770 = vmatprep.subr.bf16.mxu1 %v20785_v18  ;;  %v9725_v18 = vld [vmem:[#allocation5 + $0x1f0] sm:$0xff] }
 0x848   : > { %v13373_v17 = vcombine.low %v9693_v55, %v9725_v18 }
 0x84a   : > { %14771 = vmatpush3.bf16.msra.mxu1 %v20786_v45  ;;  %v13435_v45 = vcombine.low %v9756_v32, %v9788_v27  ;;  %v20830_v32 = vld [vmem:[#allocation117_spill] sm:$0xff] }
 0x84b   : > { %14772 = vmatprep.subr.bf16.mxu1 %v20787_v42  ;;  %v20812_v42 = vld [vmem:[#allocation105_spill] sm:$0xff] }
 0x84c   : > { %v14610_v46 = vpop.f32.mrb[172].mxu1 }
 0x84d   : > { %v14611_v9 = vpop.f32.mrb[173].mxu1 }
 0x84e   : > { %v14612_v0 = vadd.f32 %v14611_v9, %v14610_v46  ;;  %v14613_v40 = vpop.f32.mrb[174].mxu1  ;;  %14773 = vmatpush3.bf16.msra.mxu1 %v20788_v14  ;;  %v13374_v46 = vcombine.high %v9693_v55, %v9725_v18  ;;  %v20813_v9 = vld [vmem:[#allocation123_spill] sm:$0xff] }
 0x84f   : > { %v14614_v31 = vpop.f32.mrb[175].mxu1  ;;  %14774 = vmatprep.subr.bf16.mxu1 %v20789_v7  ;;  %v20816_v14 = vld [vmem:[#allocation107_spill] sm:$0xff]  ;;  %v20818_v7 = vld [vmem:[#allocation110_spill] sm:$0xff] }
 0x850   : > { %v20405_v26 = vadd.f32 %v14612_v0, %v20361_v12  ;;  %v14615_v21 = vadd.f32 %v14614_v31, %v14613_v40  ;;  %v20814_v0 = vld [vmem:[#allocation108_spill] sm:$0xff]  ;;  %v20817_v31 = vld [vmem:[#allocation125_spill] sm:$0xff]  ;;  %v20832_v18 = vld [vmem:[#allocation119_spill] sm:$0xff] }
 0x851   : > { %v20815_v40 = vld [vmem:[#allocation124_spill] sm:$0xff] }
 0x852   : > { %v20408_v58 = vadd.f32 %v14615_v21, %v20364_v43  ;;  %14775 = vmatpush3.bf16.msra.mxu1 %v20790_v24  ;;  %v20819_v21 = vld [vmem:[#allocation126_spill] sm:$0xff] }
 0x853   : > { %14776 = vmatprep.subr.bf16.mxu1 %v20791_v48 }
 0x854   : > { %v14616_v44 = vpop.f32.mrb[176].mxu1 }
 0x855   : > { %v14617_v25 = vpop.f32.mrb[177].mxu1 }
 0x856   : > { %v14618_v50 = vadd.f32 %v14617_v25, %v14616_v44  ;;  %v14619_v60 = vpop.f32.mrb[178].mxu1  ;;  %14777 = vmatpush3.bf16.msra.mxu1 %v20792_v34  ;;  %v20820_v44 = vld [vmem:[#allocation109_spill] sm:$0xff] }
 0x857   : > { %v14620_v12 = vpop.f32.mrb[179].mxu1  ;;  %14790 = vmatprep.subr.bf16.mxu1 %v20793_v4  ;;  %v9757_v4 = vld [vmem:[#allocation5 + $0x2f0] sm:$0xff] }
 0x858   : > { %v20415_v43 = vadd.f32 %v14618_v50, %v20371_v53  ;;  %v14621_v61 = vadd.f32 %v14620_v12, %v14619_v60  ;;  %v20798_v53 = vld [vmem:[#allocation92_spill] sm:$0xff] }
 0x859   : > { %12348 = vmatmul.mubr.bf16.vlgmr.msra.gmra.mrb[220].mxu1 %v13369_v41  ;;  %v20821_v41 = vld [vmem:[#allocation127_spill] sm:$0xff]  ;;  %v20823_v12 = vld [vmem:[#allocation128_spill] sm:$0xff] }
 0x85a   : > { %v20418_v30 = vadd.f32 %v14621_v61, %v20374_v19  ;;  %14791 = vmatpush3.bf16.msra.mxu1 %v20794_v35  ;;  %12355 = vmatprep.mubr.bf16.mxu1 %v13434_v52  ;;  %v20800_v19 = vld [vmem:[#allocation91_spill] sm:$0xff]  ;;  %v20822_v52 = vld [vmem:[#allocation112_spill] sm:$0xff] }
 0x85b   : > { %14792 = vmatprep.subr.bf16.mxu1 %v20795_v28  ;;  %v9789_v61 = vld [vmem:[#allocation5 + $0x3f0] sm:$0xff] }
 0x85e   : > { %14793 = vmatpush3.bf16.msra.mxu1 %v20796_v3  ;;  %v20824_v3 = vld [vmem:[#allocation111_spill] sm:$0xff] }
 0x85f   : > { %14794 = vmatprep.subr.bf16.mxu1 %v20797_v36 }
 0x861   : > { %12356 = vmatmul.mubr.bf16.gmra.mrb[224].mxu1 %v13433_v62 }
 0x862   : > { %14795 = vmatpush3.bf16.msra.mxu1 %v20798_v53  ;;  %12396 = vmatprep.mubr.bf16.mxu1 %v13372_v6  ;;  %v13438_v6 = vcombine.high %v9757_v4, %v9789_v61 }
 0x863   : > { %14796 = vmatprep.subr.bf16.mxu1 %v20799_v37  ;;  %v20825_v37 = vld [vmem:[#allocation114_spill] sm:$0xff] }
 0x866   : > { %14797 = vmatpush3.bf16.msra.mxu1 %v20800_v19  ;;  %v9694_v19 = vld [vmem:[#allocation5 + $0xf8] sm:$0xff] }
 0x867   : > { %14798 = vmatprep.subr.bf16.mxu1 %v20801_v59  ;;  %v9726_v59 = vld [vmem:[#allocation5 + $0x1f8] sm:$0xff] }
 0x86a   : > { %14799 = vmatpush3.bf16.msra.mxu1 %v20802_v63  ;;  %v13437_v63 = vcombine.low %v9757_v4, %v9789_v61 }
 0x86b   : > { %14800 = vmatprep.subr.bf16.mxu1 %v20803_v1  ;;  %v20826_v1 = vld [vmem:[#allocation113_spill] sm:$0xff] }
 0x86e   : > { %14801 = vmatpush3.bf16.msra.mxu1 %v20804_v38  ;;  %v13376_v38 = vcombine.high %v9694_v19, %v9726_v59 }
 0x86f   : > { %14802 = vmatprep.subr.bf16.mxu1 %v20805_v29 }
 0x872   : > { %14803 = vmatpush3.bf16.msra.mxu1 %v20806_v20 }
 0x873   : > { %14804 = vmatprep.subr.bf16.mxu1 %v20807_v54 }
 0x876   : > { %14805 = vmatpush3.bf16.msra.mxu1 %v20808_v10  ;;  %v20831_v10 = vld [vmem:[#allocation120_spill] sm:$0xff] }
 0x877   : > { %14818 = vmatprep.subr.bf16.mxu1 %v20809_v23 }
 0x879   : > { %12397 = vmatmul.mubr.bf16.vlgmr.msra.gmra.mrb[228].mxu1 %v13371_v5 }
 0x87a   : > { %14819 = vmatpush3.bf16.msra.mxu1 %v20810_v49  ;;  %12404 = vmatprep.mubr.bf16.mxu1 %v13436_v33  ;;  %v9790_v33 = vld [vmem:[#allocation5 + $0x3f8] sm:$0xff]  ;;  %v13375_v49 = vcombine.low %v9694_v19, %v9726_v59  ;;  %v16583_v19 = vld [vmem:[#allocation10] sm:$0xff]   ;;  %v16584_v59 = vld [vmem:[#allocation10 + $0x8] sm:$0xff]  }
 0x87b   : > { %14820 = vmatprep.subr.bf16.mxu1 %v20811_v22 }
 0x87e   : > { %14821 = vmatpush3.bf16.msra.mxu1 %v20812_v42 }
 0x87f   : > { %14822 = vmatprep.subr.bf16.mxu1 %v20813_v9 }
 0x881   : > { %12405 = vmatmul.mubr.bf16.gmra.mrb[232].mxu1 %v13435_v45 }
 0x882   : > { %14823 = vmatpush3.bf16.msra.mxu1 %v20814_v0  ;;  %12445 = vmatprep.mubr.bf16.mxu1 %v13374_v46 }
 0x883   : > { %14824 = vmatprep.subr.bf16.mxu1 %v20815_v40 }
 0x886   : > { %14825 = vmatpush3.bf16.msra.mxu1 %v20816_v14 }
 0x887   : > { %14826 = vmatprep.subr.bf16.mxu1 %v20817_v31 }
 0x88a   : > { %14827 = vmatpush3.bf16.msra.mxu1 %v20818_v7 }
 0x88b   : > { %14828 = vmatprep.subr.bf16.mxu1 %v20819_v21 }
 0x88c   : > { %v14638_v24 = vpop.f32.mrb[180].mxu1 }
 0x88d   : > { %v14639_v48 = vpop.f32.mrb[181].mxu1 }
 0x88e   : > { %v14640_v16 = vadd.f32 %v14639_v48, %v14638_v24  ;;  %v14641_v8 = vpop.f32.mrb[182].mxu1  ;;  %14829 = vmatpush3.bf16.msra.mxu1 %v20820_v44 }
 0x88f   : > { %v14642_v25 = vpop.f32.mrb[183].mxu1  ;;  %14830 = vmatprep.subr.bf16.mxu1 %v20821_v41 }
 0x890   : > { %v12105_v50 = vadd.f32 %v14640_v16, %v20405_v26  ;;  %v14643_v60 = vadd.f32 %v14642_v25, %v14641_v8 }
 0x892   : > { %v12108_v34 = vadd.f32 %v14643_v60, %v20408_v58  ;;  %14831 = vmatpush3.bf16.msra.mxu1 %v20822_v52 }
 0x893   : > { %14832 = vmatprep.subr.bf16.mxu1 %v20823_v12 }
 0x894   : > { %v14644_v35 = vpop.f32.mrb[184].mxu1 }
 0x895   : > { %v14645_v28 = vpop.f32.mrb[185].mxu1 }
 0x896   : > { %v14646_v39 = vadd.f32 %v14645_v28, %v14644_v35  ;;  %v14647_v62 = vpop.f32.mrb[186].mxu1  ;;  %14833 = vmatpush3.bf16.msra.mxu1 %v20824_v3 }
 0x897   : > { %v14648_v36 = vpop.f32.mrb[187].mxu1  ;;  %14846 = vmatprep.subr.bf16.mxu1 %v19355_v56  ;;  %v20827_v56 = vld [vmem:[#allocation116_spill] sm:$0xff] }
 0x898   : > { %v12113_v26 = vadd.f32 %v14646_v39, %v20415_v43  ;;  %v14649_v58 = vadd.f32 %v14648_v36, %v14647_v62  ;;  %v20828_v43 = vld [vmem:[#allocation115_spill] sm:$0xff] }
 0x899   : > { %12446 = vmatmul.mubr.bf16.vlgmr.msra.gmra.mrb[236].mxu1 %v13373_v17 }
 0x89a   : > { %v12116_v53 = vadd.f32 %v14649_v58, %v20418_v30  ;;  %14847 = vmatpush3.bf16.msra.mxu1 %v20825_v37  ;;  %12453 = vmatprep.mubr.bf16.mxu1 %v13438_v6  ;;  %v20829_v30 = vld [vmem:[#allocation118_spill] sm:$0xff] }
 0x89b   : > { %14848 = vmatprep.subr.bf16.mxu1 %v19357_v51 }
 0x89e   : > { %14849 = vmatpush3.bf16.msra.mxu1 %v20826_v1  ;;  %v16586_v1 = vld [vmem:[#allocation10 + $0x18] sm:$0xff]  }
 0x89f   : > { %14850 = vmatprep.subr.bf16.mxu1 %v19376_v15 }
 0x8a1   : > { %12454 = vmatmul.mubr.bf16.gmra.mrb[240].mxu1 %v13437_v63  ;;  %v16585_v63 = vld [vmem:[#allocation10 + $0x10] sm:$0xff]  }
 0x8a2   : > { %14851 = vmatpush3.bf16.msra.mxu1 %v20827_v56  ;;  %12494 = vmatprep.mubr.bf16.mxu1 %v13376_v38 }
 0x8a3   : > { %14852 = vmatprep.subr.bf16.mxu1 %v19378_v57 }
 0x8a6   : > { %14853 = vmatpush3.bf16.msra.mxu1 %v20828_v43  ;;  %v16587_v43 = vld [vmem:[#allocation10 + $0x20] sm:$0xff]  }
 0x8a7   : > { %14854 = vmatprep.subr.bf16.mxu1 %v19397_v47  ;;  %v9758_v47 = vld [vmem:[#allocation5 + $0x2f8] sm:$0xff] }
 0x8a8   : > { %v13440_v45 = vcombine.high %v9758_v47, %v9790_v33  ;;  %v13439_v0 = vcombine.low %v9758_v47, %v9790_v33 }
 0x8aa   : > { %14855 = vmatpush3.bf16.msra.mxu1 %v20829_v30 }
 0x8ab   : > { %14856 = vmatprep.subr.bf16.mxu1 %v19399_v11 }
 0x8ac   : > { %v14666_v51 = vpop.f32.mrb[188].mxu1 }
 0x8ad   : > { %v14667_v29 = vpop.f32.mrb[189].mxu1 }
 0x8ae   : > { %v14668_v20 = vadd.f32 %v14667_v29, %v14666_v51  ;;  %v14669_v54 = vpop.f32.mrb[190].mxu1  ;;  %14857 = vmatpush3.bf16.msra.mxu1 %v20830_v32  ;;  %v16588_v32 = vld [vmem:[#allocation10 + $0x28] sm:$0xff]  }
 0x8af   : > { %v14670_v15 = vpop.f32.mrb[191].mxu1  ;;  %14858 = vmatprep.subr.bf16.mxu1 %v19409_v13 }
 0x8b0   : > { %v12154_v27 = vadd.f32 %v14668_v20, %v12105_v50  ;;  %v14671_v5 = vadd.f32 %v14670_v15, %v14669_v54 }
 0x8b2   : > { %v12157_v57 = vadd.f32 %v14671_v5, %v12108_v34  ;;  %14859 = vmatpush3.bf16.msra.mxu1 %v20831_v10 }
 0x8b3   : > { %14860 = vmatprep.subr.bf16.mxu1 %v19411_v2 }
 0x8b4   : > { %v14672_v23 = vpop.f32.mrb[192].mxu1 }
 0x8b5   : > { %v14673_v11 = vpop.f32.mrb[193].mxu1 }
 0x8b6   : > { %v14674_v22 = vadd.f32 %v14673_v11, %v14672_v23  ;;  %v14675_v55 = vpop.f32.mrb[194].mxu1  ;;  %14861 = vmatpush3.bf16.msra.mxu1 %v20832_v18 }
 0x8b7   : > { %v14676_v42 = vpop.f32.mrb[195].mxu1  ;;  %15924 = vmatprep.subr.bf16.mxu1 %v16583_v19 }
 0x8b8   : > { %v12162_v46 = vadd.f32 %v14674_v22, %v12113_v26  ;;  %v14677_v13 = vadd.f32 %v14676_v42, %v14675_v55 }
 0x8b9   : > { %12495 = vmatmul.mubr.bf16.vlgmr.msra.gmra.mrb[244].mxu1 %v13375_v49  ;;  %v16590_v49 = vld [vmem:[#allocation10 + $0x38] sm:$0xff]  }
 0x8ba   : > { %v12165_v9 = vadd.f32 %v14677_v13, %v12116_v53  ;;  %12502 = vmatprep.mubr.bf16.mxu1 %v13440_v45  ;;  %15925 = vmatpush3.bf16.msra.mxu1 %v16583_v19 }
 0x8bb   : > { %15926 = vmatprep.subr.bf16.mxu1 %v16584_v59 }
 0x8be   : > { %15927 = vmatpush3.bf16.msra.mxu1 %v16584_v59 }
 0x8bf   : > { %15928 = vmatprep.subr.bf16.mxu1 %v16585_v63 }
 0x8c1   : > { %12503 = vmatmul.mubr.bf16.gmra.mrb[248].mxu1 %v13439_v0 }
 0x8c2   : > { %15929 = vmatpush3.bf16.msra.mxu1 %v16585_v63 }
 0x8c3   : > { %15930 = vmatprep.subr.bf16.mxu1 %v16586_v1 }
 0x8c6   : > { %15931 = vmatpush3.bf16.msra.mxu1 %v16586_v1 }
 0x8c7   : > { %15932 = vmatprep.subr.bf16.mxu1 %v16587_v43 }
 0x8ca   : > { %15933 = vmatpush3.bf16.msra.mxu1 %v16587_v43 }
 0x8cb   : > { %15934 = vmatprep.subr.bf16.mxu1 %v16588_v32 }
 0x8cc   : > { %v14694_v40 = vpop.f32.mrb[196].mxu1 }
 0x8cd   : > { %v14695_v2 = vpop.f32.mrb[197].mxu1 }
 0x8ce   : > { %v14696_v14 = vadd.f32 %v14695_v2, %v14694_v40  ;;  %v14697_v31 = vpop.f32.mrb[198].mxu1  ;;  %15935 = vmatpush3.bf16.msra.mxu1 %v16588_v32 }
 0x8cf   : > { %v14698_v7 = vpop.f32.mrb[199].mxu1 }
 0x8d0   : > { %v12203_v21 = vadd.f32 %v14696_v14, %v12154_v27  ;;  %v14699_v24 = vadd.f32 %v14698_v7, %v14697_v31 }
 0x8d2   : > { %v12206_v48 = vadd.f32 %v14699_v24, %v12157_v57  ;;  %v16589_v57 = vld [vmem:[#allocation10 + $0x30] sm:$0xff]  }
 0x8d3   : > { %15936 = vmatprep.subr.bf16.mxu1 %v16589_v57 }
 0x8d4   : > { %v14700_v16 = vpop.f32.mrb[200].mxu1  ;;  %15937 = vmatpush3.bf16.msra.mxu1 %v16589_v57 }
 0x8d5   : > { %v14701_v8 = vpop.f32.mrb[201].mxu1  ;;  %15938 = vmatprep.subr.bf16.mxu1 %v16590_v49 }
 0x8d6   : > { %v14702_v44 = vadd.f32 %v14701_v8, %v14700_v16  ;;  %v14703_v25 = vpop.f32.mrb[202].mxu1 }
 0x8d7   : > { %v14704_v41 = vpop.f32.mrb[203].mxu1 }
 0x8d8   : > { %v12211_v50 = vadd.f32 %v14702_v44, %v12162_v46  ;;  %v14705_v60 = vadd.f32 %v14704_v41, %v14703_v25  ;;  %15939 = vmatpush3.bf16.msra.mxu1 %v16590_v49 }
 0x8da   : > { %v12214_v34 = vadd.f32 %v14705_v60, %v12165_v9 }
 0x8ec   : > { %v14722_v52 = vpop.f32.mrb[204].mxu1 }
 0x8ed   : > { %v14723_v12 = vpop.f32.mrb[205].mxu1 }
 0x8ee   : > { %v14724_v4 = vadd.f32 %v14723_v12, %v14722_v52  ;;  %v14725_v61 = vpop.f32.mrb[206].mxu1 }
 0x8ef   : > { %v14726_v35 = vpop.f32.mrb[207].mxu1 }
 0x8f0   : > { %v12252_v28 = vadd.f32 %v14724_v4, %v12203_v21  ;;  %v14727_v17 = vadd.f32 %v14726_v35, %v14725_v61 }
 0x8f2   : > { %v12255_v39 = vadd.f32 %v14727_v17, %v12206_v48 }
 0x8f4   : > { %v14728_v62 = vpop.f32.mrb[208].mxu1 }
 0x8f5   : > { %v14729_v3 = vpop.f32.mrb[209].mxu1 }
 0x8f6   : > { %v14730_v6 = vadd.f32 %v14729_v3, %v14728_v62  ;;  %v14731_v36 = vpop.f32.mrb[210].mxu1 }
 0x8f7   : > { %v14732_v26 = vpop.f32.mrb[211].mxu1 }
 0x8f8   : > { %v12260_v58 = vadd.f32 %v14730_v6, %v12211_v50  ;;  %v14733_v53 = vadd.f32 %v14732_v26, %v14731_v36 }
 0x8fa   : > { %v12263_v37 = vadd.f32 %v14733_v53, %v12214_v34 }
 0x90c   : > { %v14750_v38 = vpop.f32.mrb[212].mxu1 }
 0x90d   : > { %v14751_v56 = vpop.f32.mrb[213].mxu1 }
 0x90e   : > { %v14752_v30 = vadd.f32 %v14751_v56, %v14750_v38  ;;  %v14753_v51 = vpop.f32.mrb[214].mxu1 }
 0x90f   : > { %v14754_v29 = vpop.f32.mrb[215].mxu1 }
 0x910   : > { %v12301_v20 = vadd.f32 %v14752_v30, %v12252_v28  ;;  %v14755_v54 = vadd.f32 %v14754_v29, %v14753_v51 }
 0x912   : > { %v12304_v15 = vadd.f32 %v14755_v54, %v12255_v39 }
 0x914   : > { %v14756_v27 = vpop.f32.mrb[216].mxu1 }
 0x915   : > { %v14757_v5 = vpop.f32.mrb[217].mxu1 }
 0x916   : > { %v14758_v10 = vadd.f32 %v14757_v5, %v14756_v27  ;;  %v14759_v47 = vpop.f32.mrb[218].mxu1 }
 0x917   : > { %v14760_v33 = vpop.f32.mrb[219].mxu1 }
 0x918   : > { %v12309_v23 = vadd.f32 %v14758_v10, %v12260_v58  ;;  %v14761_v11 = vadd.f32 %v14760_v33, %v14759_v47 }
 0x91a   : > { %v12312_v22 = vadd.f32 %v14761_v11, %v12263_v37 }
 0x92c   : > { %v14778_v55 = vpop.f32.mrb[220].mxu1 }
 0x92d   : > { %v14779_v18 = vpop.f32.mrb[221].mxu1 }
 0x92e   : > { %v14780_v45 = vadd.f32 %v14779_v18, %v14778_v55  ;;  %v14781_v42 = vpop.f32.mrb[222].mxu1 }
 0x92f   : > { %v14782_v46 = vpop.f32.mrb[223].mxu1 }
 0x930   : > { %v12350_v13 = vadd.f32 %v14780_v45, %v12301_v20  ;;  %v14783_v9 = vadd.f32 %v14782_v46, %v14781_v42  ;;  %v13441_v45 = vld [vmem:[#allocation11] ss:$0 sm:$0xff] }
 0x932   : > { %v12353_v0 = vadd.f32 %v14783_v9, %v12304_v15 }
 0x934   : > { %v14784_v40 = vpop.f32.mrb[224].mxu1 }
 0x935   : > { %v14785_v2 = vpop.f32.mrb[225].mxu1 }
 0x936   : > { %v14786_v14 = vadd.f32 %v14785_v2, %v14784_v40  ;;  %v14787_v31 = vpop.f32.mrb[226].mxu1 }
 0x937   : > { %v14788_v7 = vpop.f32.mrb[227].mxu1 }
 0x938   : > { %v12358_v21 = vadd.f32 %v14786_v14, %v12309_v23  ;;  %v14789_v24 = vadd.f32 %v14788_v7, %v14787_v31 }
 0x93a   : > { %v12361_v48 = vadd.f32 %v14789_v24, %v12312_v22 }
 0x94c   : > { %v14806_v16 = vpop.f32.mrb[228].mxu1 }
 0x94d   : > { %v14807_v8 = vpop.f32.mrb[229].mxu1 }
 0x94e   : > { %v14808_v44 = vadd.f32 %v14807_v8, %v14806_v16  ;;  %v14809_v25 = vpop.f32.mrb[230].mxu1 }
 0x94f   : > { %v14810_v41 = vpop.f32.mrb[231].mxu1 }
 0x950   : > { %v12399_v50 = vadd.f32 %v14808_v44, %v12350_v13  ;;  %v14811_v60 = vadd.f32 %v14810_v41, %v14809_v25 }
 0x952   : > { %v12402_v34 = vadd.f32 %v14811_v60, %v12353_v0 }
 0x954   : > { %v14812_v52 = vpop.f32.mrb[232].mxu1 }
 0x955   : > { %v14813_v12 = vpop.f32.mrb[233].mxu1 }
 0x956   : > { %v14814_v4 = vadd.f32 %v14813_v12, %v14812_v52  ;;  %v14815_v61 = vpop.f32.mrb[234].mxu1 }
 0x957   : > { %v14816_v35 = vpop.f32.mrb[235].mxu1 }
 0x958   : > { %v12407_v28 = vadd.f32 %v14814_v4, %v12358_v21  ;;  %v14817_v17 = vadd.f32 %v14816_v35, %v14815_v61 }
 0x95a   : > { %v12410_v39 = vadd.f32 %v14817_v17, %v12361_v48 }
 0x96c   : > { %v14834_v62 = vpop.f32.mrb[236].mxu1 }
 0x96d   : > { %v14835_v3 = vpop.f32.mrb[237].mxu1 }
 0x96e   : > { %v14836_v6 = vadd.f32 %v14835_v3, %v14834_v62  ;;  %v14837_v36 = vpop.f32.mrb[238].mxu1 }
 0x96f   : > { %v14838_v26 = vpop.f32.mrb[239].mxu1 }
 0x970   : > { %v12448_v58 = vadd.f32 %v14836_v6, %v12399_v50  ;;  %v14839_v53 = vadd.f32 %v14838_v26, %v14837_v36 }
 0x972   : > { %v12451_v37 = vadd.f32 %v14839_v53, %v12402_v34 }
 0x974   : > { %v14840_v19 = vpop.f32.mrb[240].mxu1 }
 0x975   : > { %v14841_v59 = vpop.f32.mrb[241].mxu1 }
 0x976   : > { %v14842_v63 = vadd.f32 %v14841_v59, %v14840_v19  ;;  %v14843_v1 = vpop.f32.mrb[242].mxu1 }
 0x977   : > { %v14844_v38 = vpop.f32.mrb[243].mxu1 }
 0x978   : > { %v12456_v56 = vadd.f32 %v14842_v63, %v12407_v28  ;;  %v14845_v43 = vadd.f32 %v14844_v38, %v14843_v1 }
 0x97a   : > { %v12459_v30 = vadd.f32 %v14845_v43, %v12410_v39 }
 0x98c   : > { %v14862_v51 = vpop.f32.mrb[244].mxu1 }
 0x98d   : > { %v14863_v29 = vpop.f32.mrb[245].mxu1 }
 0x98e   : > { %v14864_v20 = vadd.f32 %v14863_v29, %v14862_v51  ;;  %v14865_v54 = vpop.f32.mrb[246].mxu1 }
 0x98f   : > { %v14866_v32 = vpop.f32.mrb[247].mxu1 }
 0x990   : > { %v12497_v15 = vadd.f32 %v14864_v20, %v12448_v58  ;;  %v14867_v27 = vadd.f32 %v14866_v32, %v14865_v54 }
 0x992   : > { %v12500_v5 = vadd.f32 %v14867_v27, %v12451_v37 }
 0x994   : > { %v14868_v57 = vpop.f32.mrb[248].mxu1  ;;  %v12511_v10 = vpack.c.bf16 %v12500_v5, %v12497_v15 }
 0x995   : > { %v14869_v47 = vpop.f32.mrb[249].mxu1 }
 0x996   : > { %v14870_v33 = vadd.f32 %v14869_v47, %v14868_v57  ;;  %v14871_v23 = vpop.f32.mrb[250].mxu1  ;;  %15940 = vmatprep.mubr.bf16.mxu1 %v12511_v10 }
 0x997   : > { %v14872_v11 = vpop.f32.mrb[251].mxu1 }
 0x998   : > { %v12505_v49 = vadd.f32 %v14870_v33, %v12456_v56  ;;  %v14873_v22 = vadd.f32 %v14872_v11, %v14871_v23 }
 0x99a   : > { %v12508_v55 = vadd.f32 %v14873_v22, %v12459_v30 }
 0x99c   : > { %v12512_v18 = vpack.c.bf16 %v12508_v55, %v12505_v49 }
 0x99e   : > { %15941 = vmatmul.mubr.bf16.vlgmr.msra.gmra.mrb[252].mxu1 %v12512_v18 }
 0xa71   : > { %v15942_v42 = vpop.f32.mrb[252].mxu1 }
 0xa72   : > { %v12627_v46 = vadd.f32 %v15942_v42, %v13441_v45  ;;  %v12618_v13 = vpop.f32.mrb[253].mxu1 }
 0xa73   : > { %v12619_v9 = vadd.f32 %v13441_v45, %v12618_v13  ;;  %v15943_v0 = vpop.f32.mrb[254].mxu1 }
 0xa74   : > { %12635 = vst [vmem:[%s339_s13 + $0x10] sm:$0xff] %v12627_v46  ;;  %v12630_v40 = vadd.f32 %v15943_v0, %v13441_v45  ;;  %v12621_v2 = vpop.f32.mrb[255].mxu1 }
 0xa75   : > { %12633 = vst [vmem:[%s339_s13] sm:$0xff] %v12619_v9  ;;  %v12622_v14 = vadd.f32 %v13441_v45, %v12621_v2 }
 0xa76   : > { %12636 = vst [vmem:[%s339_s13 + $0x18] sm:$0xff] %v12630_v40 }
 0xa77   : > { %12634 = vst [vmem:[%s339_s13 + $0x8] sm:$0xff] %v12622_v14 }
 0xa78   : > { %16785 = shalt.err (!%p16782_p8)
}
 0xa79   : > { %s16786_s11 = scalar_lea.hbm %s20478_s15, 512  ;;  %s16790_s28 = scalar_lea.hbm %s20528_s6, 1024 }
 0xa7a   : > { %p16787_p6 = scmp.ne.s32.totalorder %s20478_s15, %s16786_s11  ;;  %p16791_p3 = scmp.lt.u32.totalorder %s20478_s15, %s20528_s6 }
 0xa7b   : > { %p16792_p5 = scmp.lt.u32.totalorder %s16790_s28, %s16786_s11  ;;  %p16794_p7 = scmp.lt.u32.totalorder %s16786_s11, %s20478_s15 }
 0xa7c   : > { %p16788_p10 = pnand %p16787_p6, %p20833_p4 }
 0xa7d   : > { %p16793_p9 = por %p16792_p5, %p16791_p3 }
 0xa7e   : > { %p16789_p11 = pneg %p16788_p10 }
 0xa7f   : > { %p16795_p12 = por %p16794_p7, %p16793_p9 }
 0xa81   : > { %p16796_p1 = pnand %p16795_p12, %p16789_p11 }
 0xa83   : > { %16799 = shalt.err (!%p16796_p1)
}
 0xa84   : > { %s16863_s18 = smov 128   ;;  %s16864_s9 = smov 8  }
 0xa85   : > { %15982 = dma.vmem_to_hbm [thread:$0]  (%p20833_p4), %s20473_s14, 512, %s20478_s15, %s12638_s27, %s16863_s18, %s16863_s18, %s16864_s9  }
 0xa86 PF: > { %s12666_s16 = sand.u32 1, %s16838_s21   ;;  %p20834_p13 = scmp.ne.s32.totalorder %s20538_s29, 0 }
 0xa87   : > { %p20835_p0 = scmp.ge.s32.totalorder %s16850_s24, 2  ;;  %s12667_s8 = scalar_lea.sflag [#allocation4], %s12666_s16 }
 0xa89   : > { %p16005_p2 = pnand %p20835_p0, %p20834_p13 }
 0xa8b   : > { %16833 = dma.done.wait (!%p16005_p2), %s12667_s8, 512  }
 0xa8c   : > { %16835 = vsyncadd (!%p16005_p2), %s12667_s8, 4294966784  ;;  %p22_p8 = scmp.ge.s32.totalorder %s17065_s7, 4   ;;  %s20836_s21 = smov %s16842_s22 }
 0xa8d   : > { %s20837_s22 = smov %s16846_s23  ;;  %s20838_s23 = smov %s17077_s17 }
 0xa8e   : > { %s20839_s24 = smov %s17065_s7  ;;  %24 = sbr.rel (!%p22_p8) target bundleno = 8 (0x8), region = 109 }
 0xa95   :  { %12672 = vsyncpa [#allocation3], 1 }
 0xa96   :  { %12674 = vsyncpa [#allocation3 + $0x1], 1 }
 0xa97   :  { %12675 = vsyncpa [#allocation6], 1 }
 0xa98   :  { %12676 = vsyncpa [#allocation9], 1 }
 0xa99   :  { %12677 = vsyncpa [#allocation12], 1 }
 0xa9a   :  { %12678 = vsyncpa [#allocation4], 1 }
 0xa9b   :  { %12680 = vsyncpa [#allocation4 + $0x1], 1 }

</bundles_post_ra>
